<compile_context>
chip_gen: v7x
topology: tpu7x:2x2x1
jax: 0.10.0
libtpu: 0.0.40
codegen_flags: <defaults>
</compile_context>

<pallas_src>
import functools

import jax
import jax.numpy as jnp
from jax.experimental import pallas as pl
from jax.experimental.pallas import tpu as pltpu

BN_EPS = 1e-5


def _round_up(x, m):
    return ((x + m - 1) // m) * m


def _pick_col_tile(total, cap=1024):
    """Largest multiple-of-128 tile <= cap that divides `total` (total % 128 == 0)."""
    t = (min(total, cap) // 128) * 128
    while total % t:
        t -= 128
    return t


# ---------------------------- Pallas kernels ----------------------------

def _matmul_kernel(x_ref, w_ref, o_ref):
    # x: (tr, Kp) f32 (cast to bf16 in-kernel), w: (Kp, tn) bf16 -> o f32 (MXU).
    o_ref[...] = jnp.dot(x_ref[...].astype(jnp.bfloat16), w_ref[...],
                         preferred_element_type=jnp.float32)


def _bnrelu_matmul_kernel(x_ref, sc_ref, sh_ref, w_ref, o_ref):
    # Previous layer's BatchNorm(scale/shift)+ReLU epilogue fused onto the
    # matmul LHS tile: x' = relu(x*scale + shift) (bf16), then MXU dot.
    x = jnp.maximum(x_ref[...] * sc_ref[...] + sh_ref[...], 0.0)
    o_ref[...] = jnp.dot(x.astype(jnp.bfloat16), w_ref[...],
                         preferred_element_type=jnp.float32)


def _bn_coeff_kernel(y_ref, g_ref, b_ref, scale_ref, shift_ref, *, inv_r):
    # Single-block training-mode BatchNorm coefficients.
    # Padded channels have gamma=beta=0 -> scale=shift=0 (benign; they only ever
    # multiply zero-padded weight rows downstream).
    y = y_ref[...]
    mean = jnp.sum(y, axis=0, keepdims=True) * inv_r
    var = jnp.maximum(jnp.sum(y * y, axis=0, keepdims=True) * inv_r - mean * mean, 0.0)
    scale = g_ref[...] * jax.lax.rsqrt(var + BN_EPS)
    scale_ref[...] = scale
    shift_ref[...] = b_ref[...] - mean * scale


# ---------------------------- Pallas wrappers ----------------------------

def pallas_bn_coeff(y2, gamma2, beta2, true_rows):
    """y2: (R, Cp) f32 (Cp % 128 == 0, padded cols are zero), gamma2/beta2: (1, Cp).
    Returns per-channel (scale, shift), each (1, Cp) f32, from biased batch stats
    over the TRUE row count (padded-zero rows contribute nothing to the sums)."""
    R, Cp = y2.shape
    kern = functools.partial(_bn_coeff_kernel, inv_r=1.0 / float(true_rows))
    return pl.pallas_call(
        kern,
        out_shape=(jax.ShapeDtypeStruct((1, Cp), jnp.float32),
                   jax.ShapeDtypeStruct((1, Cp), jnp.float32)),
        grid_spec=pltpu.PrefetchScalarGridSpec(
            num_scalar_prefetch=0,
            grid=(1,),
            in_specs=[pl.BlockSpec((R, Cp), lambda i: (0, 0)),
                      pl.BlockSpec((1, Cp), lambda i: (0, 0)),
                      pl.BlockSpec((1, Cp), lambda i: (0, 0))],
            out_specs=(pl.BlockSpec((1, Cp), lambda i: (0, 0)),
                       pl.BlockSpec((1, Cp), lambda i: (0, 0))),
        ),
        compiler_params=pltpu.CompilerParams(dimension_semantics=("arbitrary",)),
    )(y2, gamma2, beta2)


def convT_matmul(x2, w_pad, scale=None, shift=None):
    """Direct ConvTranspose lowering as an MXU matmul.
    x2: (R, Kp) f32 (Kp % 128 == 0), w_pad: (Kp, Cp) bf16 pre-padded at init.
    If scale/shift (1, Kp) are given, the previous layer's BN+ReLU epilogue is
    applied to x inside the kernel. Returns (R, Cp) f32 contributions."""
    R, Kp = x2.shape
    assert w_pad.shape[0] == Kp
    Cp = w_pad.shape[1]

    tr = min(_round_up(R, 8), 512)
    Rp = _round_up(R, tr)
    tn = _pick_col_tile(Cp, 1024)
    # Keep >= 2 blocks along a "parallel" axis so both v7x TensorCores get work.
    if (Rp // tr) == 1 and (Cp // tn) == 1:
        if Cp >= 256:
            tn = _pick_col_tile(Cp, max(Cp // 2, 128))
        elif Rp >= 16 and Rp % 16 == 0:
            tr = Rp // 2

    if Rp != R:
        x2 = jnp.pad(x2, ((0, Rp - R), (0, 0)))
    grid = (Rp // tr, Cp // tn)

    if scale is None:
        out = pl.pallas_call(
            _matmul_kernel,
            out_shape=jax.ShapeDtypeStruct((Rp, Cp), jnp.float32),
            grid_spec=pltpu.PrefetchScalarGridSpec(
                num_scalar_prefetch=0,
                grid=grid,
                in_specs=[pl.BlockSpec((tr, Kp), lambda i, j: (i, 0)),
                          pl.BlockSpec((Kp, tn), lambda i, j: (0, j))],
                out_specs=pl.BlockSpec((tr, tn), lambda i, j: (i, j)),
            ),
            compiler_params=pltpu.CompilerParams(
                dimension_semantics=("parallel", "parallel")),
        )(x2, w_pad)
    else:
        out = pl.pallas_call(
            _bnrelu_matmul_kernel,
            out_shape=jax.ShapeDtypeStruct((Rp, Cp), jnp.float32),
            grid_spec=pltpu.PrefetchScalarGridSpec(
                num_scalar_prefetch=0,
                grid=grid,
                in_specs=[pl.BlockSpec((tr, Kp), lambda i, j: (i, 0)),
                          pl.BlockSpec((1, Kp), lambda i, j: (0, 0)),
                          pl.BlockSpec((1, Kp), lambda i, j: (0, 0)),
                          pl.BlockSpec((Kp, tn), lambda i, j: (0, j))],
                out_specs=pl.BlockSpec((tr, tn), lambda i, j: (i, j)),
            ),
            compiler_params=pltpu.CompilerParams(
                dimension_semantics=("parallel", "parallel")),
        )(x2, scale, shift, w_pad)
    return out[:R]


# -------------- XLA glue: col2im (overlap-add) for stride=2, k=4, p=1 --------------
# TODO(synk): the overlap-add is a shifted scatter-add; it stays as two tap-pair
# adds + even/odd interleave in XLA glue (a Pallas pltpu.roll version would need
# a tap-contiguous relayout that costs more than it saves at these sizes).

def _col2im_s2k4p1(c):
    """c: (N, Hin, Win, 4, 4, C) f32, tap (kh,kw) of input (i,j) lands at output
    (2i-1+kh, 2j-1+kw). Returns (N, 2*Hin, 2*Win, C)."""
    N, Hin, Win, _, kw, C = c.shape
    # height: even rows <- taps 1 & 3(shifted); odd rows <- taps 2 & 0(shifted)
    c3 = jnp.pad(c[:, :, :, 3], ((0, 0), (1, 0), (0, 0), (0, 0), (0, 0)))[:, :Hin]
    c0 = jnp.pad(c[:, :, :, 0], ((0, 0), (0, 1), (0, 0), (0, 0), (0, 0)))[:, 1:]
    even_h = c[:, :, :, 1] + c3
    odd_h = c[:, :, :, 2] + c0
    h = jnp.stack([even_h, odd_h], axis=2).reshape(N, 2 * Hin, Win, kw, C)
    # width
    w3 = jnp.pad(h[:, :, :, 3], ((0, 0), (0, 0), (1, 0), (0, 0)))[:, :, :Win]
    w0 = jnp.pad(h[:, :, :, 0], ((0, 0), (0, 0), (0, 1), (0, 0)))[:, :, 1:]
    even_w = h[:, :, :, 1] + w3
    odd_w = h[:, :, :, 0 + 2] + w0
    return jnp.stack([even_w, odd_w], axis=3).reshape(N, 2 * Hin, 2 * Win, C)


# ---------------------------- Generator ----------------------------

LAYER_CFG = [
    # (cin, cout, k, stride, pad)
    (100, 512, 4, 1, 0),   # -> 4x4
    (512, 256, 4, 2, 1),   # -> 8x8
    (256, 128, 4, 2, 1),   # -> 16x16
    (128, 64, 4, 2, 1),    # -> 32x32
    (64, 3, 4, 2, 1),      # -> 64x64 (tanh, no BN)
]


def init_params(key):
    """PyTorch-layout parameters: ConvTranspose2d weight (Cin, Cout, k, k),
    BatchNorm2d gamma=1 / beta=0."""
    params = []
    for (cin, cout, k, _, _) in LAYER_CFG:
        key, wk = jax.random.split(key)
        w = 0.05 * jax.random.normal(wk, (cin, cout, k, k), jnp.float32)
        params.append({"w": w,
                       "gamma": jnp.ones((cout,), jnp.float32),
                       "beta": jnp.zeros((cout,), jnp.float32)})
    return params


def prepare_params(params):
    """One-time (init-time) weight relayout + padding + bf16 cast, hoisted out
    of the jitted forward:
      w:      (Cin, Cout, k, k) -> (Kp, Cp) bf16,   Kp=round_up(Cin,128),
              Cp=round_up(k*k*Cout,128), zero-padded.
      gamma/beta: padded to (1, round_up(Cout,128)) f32."""
    prepped = []
    for (cin, cout, k, _, _), p in zip(LAYER_CFG, params):
        cols = k * k * cout
        w2 = jnp.transpose(p["w"], (0, 2, 3, 1)).reshape(cin, cols)
        Kp = _round_up(cin, 128)
        Cp = _round_up(cols, 128)
        w2 = jnp.pad(w2, ((0, Kp - cin), (0, Cp - cols))).astype(jnp.bfloat16)
        Cb = _round_up(cout, 128)
        gamma = jnp.pad(p["gamma"].astype(jnp.float32), (0, Cb - cout)).reshape(1, Cb)
        beta = jnp.pad(p["beta"].astype(jnp.float32), (0, Cb - cout)).reshape(1, Cb)
        prepped.append({"w": w2, "gamma": gamma, "beta": beta})
    return prepped


@jax.jit
def generator_forward(x_nchw, prepped):
    n_layers = len(LAYER_CFG)
    N = x_nchw.shape[0]

    # ---- Layer 1: 1x1 input, s=1, p=0 -> plain dense projection (no BN on input).
    cin0, cout0, k0, _, _ = LAYER_CFG[0]
    Kp0 = prepped[0]["w"].shape[0]
    x2 = x_nchw.reshape(N, cin0).astype(jnp.float32)
    x2 = jnp.pad(x2, ((0, 0), (0, Kp0 - cin0)))
    contrib = convT_matmul(x2, prepped[0]["w"])                       # (N, Cp0) f32
    y = contrib[:, :k0 * k0 * cout0].reshape(N, k0, k0, cout0)        # (N,4,4,512)

    # ---- Layers 2..5: BN(prev)+ReLU fused into the matmul, then col2im.
    for li in range(1, n_layers):
        cin, cout, k, _, _ = LAYER_CFG[li]
        p = prepped[li]
        g_prev = prepped[li - 1]["gamma"]
        b_prev = prepped[li - 1]["beta"]

        Nb, H, W, C = y.shape
        R = Nb * H * W
        Kp = p["w"].shape[0]                                  # round_up(cin, 128)
        y2 = y.reshape(R, C)
        if Kp != C:
            y2 = jnp.pad(y2, ((0, 0), (0, Kp - C)))           # only layer 5 (64->128)

        scale, shift = pallas_bn_coeff(y2, g_prev, b_prev, R)          # (1, Kp)
        contrib = convT_matmul(y2, p["w"], scale, shift)                # (R, Cp) f32
        contrib = contrib[:, :k * k * cout].reshape(Nb, H, W, k, k, cout)
        y = _col2im_s2k4p1(contrib)                                     # (Nb,2H,2W,cout)

    y = jnp.tanh(y)   # final activation: 24K elements, cheaper as glue than a kernel
    return jnp.transpose(y, (0, 3, 1, 2))                               # NHWC -> NCHW


if __name__ == "__main__":
    key = jax.random.PRNGKey(0)
    pkey, xkey = jax.random.split(key)
    params = init_params(pkey)
    prepped = prepare_params(params)   # hoisted: relayout + pad + bf16 cast, once
    x = jax.random.normal(xkey, (2, 100, 1, 1), jnp.float32)   # DCGAN noise, batch=2
    out = jax.block_until_ready(generator_forward(x, prepped))
    assert out.shape == (2, 3, 64, 64), out.shape
    assert bool(jnp.all(jnp.isfinite(out)))
    assert float(jnp.max(jnp.abs(out))) <= 1.0 + 1e-6          # tanh range
    print("KERNEL_OK")
</pallas_src>

<mosaic_0001>
module attributes {stable_mosaic.version = 11 : i64} {
  func.func @_matmul_kernel(%arg0: i32, %arg1: i32, %arg2: memref<8x128xf32, #tpu.memory_space<vmem>>, %arg3: memref<128x1024xbf16, #tpu.memory_space<vmem>>, %arg4: memref<8x1024xf32, #tpu.memory_space<vmem>>) attributes {dimension_semantics = [#tpu.dimension_semantics<parallel>, #tpu.dimension_semantics<parallel>], iteration_bounds = array<i64: 1, 8>, scalar_prefetch = 0 : i64, scratch_operands = 0 : i64, tpu.core_type = #tpu.core_type<tc>, window_params = [{transform_indices = @transform_0, window_bounds = array<i64: 8, 128>}, {transform_indices = @transform_1, window_bounds = array<i64: 128, 1024>}, {transform_indices = @transform_2, window_bounds = array<i64: 8, 1024>}]} {
    %c0 = arith.constant 0 : index
    %c0_0 = arith.constant 0 : index
    %0 = vector.load %arg2[%c0, %c0_0] : memref<8x128xf32, #tpu.memory_space<vmem>>, vector<8x128xf32>
    %1 = arith.truncf %0 : vector<8x128xf32> to vector<8x128xbf16>
    %c0_1 = arith.constant 0 : index
    %c0_2 = arith.constant 0 : index
    %2 = vector.load %arg3[%c0_1, %c0_2] : memref<128x1024xbf16, #tpu.memory_space<vmem>>, vector<128x1024xbf16>
    %cst = arith.constant dense<0.000000e+00> : vector<8x1024xf32>
    %3 = tpu.matmul %1, %2, %cst {dimension_numbers = #tpu.dot_dimension_numbers<[1], [0], [0], [1], [0, 0, 1, 1], [], []>} : vector<8x128xbf16>, vector<128x1024xbf16>, vector<8x1024xf32> -> vector<8x1024xf32>
    %c0_3 = arith.constant 0 : index
    %c0_4 = arith.constant 0 : index
    %4 = vector.load %arg4[%c0_3, %c0_4] : memref<8x1024xf32, #tpu.memory_space<vmem>>, vector<8x1024xf32>
    tpu.vector_store %arg4[%c0_3, %c0_4], %3 {strides = array<i32>} : memref<8x1024xf32, #tpu.memory_space<vmem>>, vector<8x1024xf32>,
    return
  }
  func.func @transform_0(%arg0: i32, %arg1: i32) -> (i32, i32) {
    %c0_i32 = arith.constant 0 : i32
    %c0_i32_0 = arith.constant 0 : i32
    return %arg0, %c0_i32 : i32, i32
  }
  func.func @transform_1(%arg0: i32, %arg1: i32) -> (i32, i32) {
    %c0_i32 = arith.constant 0 : i32
    %c0_i32_0 = arith.constant 0 : i32
    return %c0_i32, %arg1 : i32, i32
  }
  func.func @transform_2(%arg0: i32, %arg1: i32) -> (i32, i32) {
    %c0_i32 = arith.constant 0 : i32
    return %arg0, %arg1 : i32, i32
  }
}

module attributes {stable_mosaic.version = 11 : i64} {
  func.func @_bn_coeff_kernel(%arg0: i32, %arg1: memref<32x512xf32, #tpu.memory_space<vmem>>, %arg2: memref<1x512xf32, #tpu.memory_space<vmem>>, %arg3: memref<1x512xf32, #tpu.memory_space<vmem>>, %arg4: memref<1x512xf32, #tpu.memory_space<vmem>>, %arg5: memref<1x512xf32, #tpu.memory_space<vmem>>) attributes {dimension_semantics = [#tpu.dimension_semantics<arbitrary>], iteration_bounds = array<i64: 1>, scalar_prefetch = 0 : i64, scratch_operands = 0 : i64, tpu.core_type = #tpu.core_type<tc>, window_params = [{pipeline_mode = #tpu.pipeline_mode<synchronous>, transform_indices = @transform_0, window_bounds = array<i64: 32, 512>}, {pipeline_mode = #tpu.pipeline_mode<synchronous>, transform_indices = @transform_1, window_bounds = array<i64: 1, 512>}, {pipeline_mode = #tpu.pipeline_mode<synchronous>, transform_indices = @transform_2, window_bounds = array<i64: 1, 512>}, {pipeline_mode = #tpu.pipeline_mode<synchronous>, transform_indices = @transform_3, window_bounds = array<i64: 1, 512>}, {pipeline_mode = #tpu.pipeline_mode<synchronous>, transform_indices = @transform_4, window_bounds = array<i64: 1, 512>}]} {
    %c0 = arith.constant 0 : index
    %c0_0 = arith.constant 0 : index
    %0 = vector.load %arg1[%c0, %c0_0] : memref<32x512xf32, #tpu.memory_space<vmem>>, vector<32x512xf32>
    %cst = arith.constant dense<0.000000e+00> : vector<512xf32>
    %1 = vector.multi_reduction <add>, %0, %cst [0] : vector<32x512xf32> to vector<512xf32>
    %2 = vector.shape_cast %1 : vector<512xf32> to vector<1x512xf32>
    %cst_1 = arith.constant 3.125000e-02 : f32
    %3 = vector.broadcast %cst_1 : f32 to vector<1x512xf32>
    %4 = arith.mulf %2, %3 : vector<1x512xf32>
    %5 = arith.mulf %0, %0 : vector<32x512xf32>
    %cst_2 = arith.constant dense<0.000000e+00> : vector<512xf32>
    %6 = vector.multi_reduction <add>, %5, %cst_2 [0] : vector<32x512xf32> to vector<512xf32>
    %7 = vector.shape_cast %6 : vector<512xf32> to vector<1x512xf32>
    %cst_3 = arith.constant 3.125000e-02 : f32
    %8 = vector.broadcast %cst_3 : f32 to vector<1x512xf32>
    %9 = arith.mulf %7, %8 : vector<1x512xf32>
    %10 = arith.mulf %4, %4 : vector<1x512xf32>
    %11 = arith.subf %9, %10 : vector<1x512xf32>
    %cst_4 = arith.constant 0.000000e+00 : f32
    %12 = vector.broadcast %cst_4 : f32 to vector<1x512xf32>
    %13 = arith.maximumf %11, %12 : vector<1x512xf32>
    %c0_5 = arith.constant 0 : index
    %c0_6 = arith.constant 0 : index
    %14 = vector.load %arg2[%c0_5, %c0_6] : memref<1x512xf32, #tpu.memory_space<vmem>>, vector<1x512xf32>
    %cst_7 = arith.constant 9.99999974E-6 : f32
    %15 = vector.broadcast %cst_7 : f32 to vector<1x512xf32>
    %16 = arith.addf %13, %15 : vector<1x512xf32>
    %17 = math.rsqrt %16 : vector<1x512xf32>
    %18 = arith.mulf %14, %17 : vector<1x512xf32>
    %c0_8 = arith.constant 0 : index
    %c0_9 = arith.constant 0 : index
    %19 = vector.load %arg4[%c0_8, %c0_9] : memref<1x512xf32, #tpu.memory_space<vmem>>, vector<1x512xf32>
    tpu.vector_store %arg4[%c0_8, %c0_9], %18 {strides = array<i32>} : memref<1x512xf32, #tpu.memory_space<vmem>>, vector<1x512xf32>,
    %c0_10 = arith.constant 0 : index
    %c0_11 = arith.constant 0 : index
    %20 = vector.load %arg3[%c0_10, %c0_11] : memref<1x512xf32, #tpu.memory_space<vmem>>, vector<1x512xf32>
    %21 = arith.mulf %4, %18 : vector<1x512xf32>
    %22 = arith.subf %20, %21 : vector<1x512xf32>
    %c0_12 = arith.constant 0 : index
    %c0_13 = arith.constant 0 : index
    %23 = vector.load %arg5[%c0_12, %c0_13] : memref<1x512xf32, #tpu.memory_space<vmem>>, vector<1x512xf32>
    tpu.vector_store %arg5[%c0_12, %c0_13], %22 {strides = array<i32>} : memref<1x512xf32, #tpu.memory_space<vmem>>, vector<1x512xf32>,
    return
  }
  func.func @transform_0(%arg0: i32) -> (i32, i32) {
    %c0_i32 = arith.constant 0 : i32
    %c0_i32_0 = arith.constant 0 : i32
    %c0_i32_1 = arith.constant 0 : i32
    return %c0_i32, %c0_i32_0 : i32, i32
  }
  func.func @transform_1(%arg0: i32) -> (i32, i32) {
    %c0_i32 = arith.constant 0 : i32
    %c0_i32_0 = arith.constant 0 : i32
    %c0_i32_1 = arith.constant 0 : i32
    return %c0_i32, %c0_i32_0 : i32, i32
  }
  func.func @transform_2(%arg0: i32) -> (i32, i32) {
    %c0_i32 = arith.constant 0 : i32
    %c0_i32_0 = arith.constant 0 : i32
    %c0_i32_1 = arith.constant 0 : i32
    return %c0_i32, %c0_i32_0 : i32, i32
  }
  func.func @transform_3(%arg0: i32) -> (i32, i32) {
    %c0_i32 = arith.constant 0 : i32
    %c0_i32_0 = arith.constant 0 : i32
    %c0_i32_1 = arith.constant 0 : i32
    return %c0_i32, %c0_i32_0 : i32, i32
  }
  func.func @transform_4(%arg0: i32) -> (i32, i32) {
    %c0_i32 = arith.constant 0 : i32
    %c0_i32_0 = arith.constant 0 : i32
    %c0_i32_1 = arith.constant 0 : i32
    return %c0_i32, %c0_i32_0 : i32, i32
  }
}

module attributes {stable_mosaic.version = 11 : i64} {
  func.func @_bnrelu_matmul_kernel(%arg0: i32, %arg1: i32, %arg2: memref<32x512xf32, #tpu.memory_space<vmem>>, %arg3: memref<1x512xf32, #tpu.memory_space<vmem>>, %arg4: memref<1x512xf32, #tpu.memory_space<vmem>>, %arg5: memref<512x1024xbf16, #tpu.memory_space<vmem>>, %arg6: memref<32x1024xf32, #tpu.memory_space<vmem>>) attributes {dimension_semantics = [#tpu.dimension_semantics<parallel>, #tpu.dimension_semantics<parallel>], iteration_bounds = array<i64: 1, 4>, scalar_prefetch = 0 : i64, scratch_operands = 0 : i64, tpu.core_type = #tpu.core_type<tc>, window_params = [{transform_indices = @transform_0, window_bounds = array<i64: 32, 512>}, {pipeline_mode = #tpu.pipeline_mode<synchronous>, transform_indices = @transform_1, window_bounds = array<i64: 1, 512>}, {pipeline_mode = #tpu.pipeline_mode<synchronous>, transform_indices = @transform_2, window_bounds = array<i64: 1, 512>}, {transform_indices = @transform_3, window_bounds = array<i64: 512, 1024>}, {transform_indices = @transform_4, window_bounds = array<i64: 32, 1024>}]} {
    %c0 = arith.constant 0 : index
    %c0_0 = arith.constant 0 : index
    %0 = vector.load %arg2[%c0, %c0_0] : memref<32x512xf32, #tpu.memory_space<vmem>>, vector<32x512xf32>
    %c0_1 = arith.constant 0 : index
    %c0_2 = arith.constant 0 : index
    %1 = vector.load %arg3[%c0_1, %c0_2] : memref<1x512xf32, #tpu.memory_space<vmem>>, vector<1x512xf32>
    %2 = vector.broadcast %1 : vector<1x512xf32> to vector<32x512xf32>
    %3 = arith.mulf %0, %2 : vector<32x512xf32>
    %c0_3 = arith.constant 0 : index
    %c0_4 = arith.constant 0 : index
    %4 = vector.load %arg4[%c0_3, %c0_4] : memref<1x512xf32, #tpu.memory_space<vmem>>, vector<1x512xf32>
    %5 = vector.broadcast %4 : vector<1x512xf32> to vector<32x512xf32>
    %6 = arith.addf %3, %5 : vector<32x512xf32>
    %cst = arith.constant 0.000000e+00 : f32
    %7 = vector.broadcast %cst : f32 to vector<32x512xf32>
    %8 = arith.maximumf %6, %7 : vector<32x512xf32>
    %9 = arith.truncf %8 : vector<32x512xf32> to vector<32x512xbf16>
    %c0_5 = arith.constant 0 : index
    %c0_6 = arith.constant 0 : index
    %10 = vector.load %arg5[%c0_5, %c0_6] : memref<512x1024xbf16, #tpu.memory_space<vmem>>, vector<512x1024xbf16>
    %cst_7 = arith.constant dense<0.000000e+00> : vector<32x1024xf32>
    %11 = tpu.matmul %9, %10, %cst_7 {dimension_numbers = #tpu.dot_dimension_numbers<[1], [0], [0], [1], [0, 0, 1, 1], [], []>} : vector<32x512xbf16>, vector<512x1024xbf16>, vector<32x1024xf32> -> vector<32x1024xf32>
    %c0_8 = arith.constant 0 : index
    %c0_9 = arith.constant 0 : index
    %12 = vector.load %arg6[%c0_8, %c0_9] : memref<32x1024xf32, #tpu.memory_space<vmem>>, vector<32x1024xf32>
    tpu.vector_store %arg6[%c0_8, %c0_9], %11 {strides = array<i32>} : memref<32x1024xf32, #tpu.memory_space<vmem>>, vector<32x1024xf32>,
    return
  }
  func.func @transform_0(%arg0: i32, %arg1: i32) -> (i32, i32) {
    %c0_i32 = arith.constant 0 : i32
    %c0_i32_0 = arith.constant 0 : i32
    return %arg0, %c0_i32 : i32, i32
  }
  func.func @transform_1(%arg0: i32, %arg1: i32) -> (i32, i32) {
    %c0_i32 = arith.constant 0 : i32
    %c0_i32_0 = arith.constant 0 : i32
    %c0_i32_1 = arith.constant 0 : i32
    return %c0_i32, %c0_i32_0 : i32, i32
  }
  func.func @transform_2(%arg0: i32, %arg1: i32) -> (i32, i32) {
    %c0_i32 = arith.constant 0 : i32
    %c0_i32_0 = arith.constant 0 : i32
    %c0_i32_1 = arith.constant 0 : i32
    return %c0_i32, %c0_i32_0 : i32, i32
  }
  func.func @transform_3(%arg0: i32, %arg1: i32) -> (i32, i32) {
    %c0_i32 = arith.constant 0 : i32
    %c0_i32_0 = arith.constant 0 : i32
    return %c0_i32, %arg1 : i32, i32
  }
  func.func @transform_4(%arg0: i32, %arg1: i32) -> (i32, i32) {
    %c0_i32 = arith.constant 0 : i32
    return %arg0, %arg1 : i32, i32
  }
}

module attributes {stable_mosaic.version = 11 : i64} {
  func.func @_bn_coeff_kernel(%arg0: i32, %arg1: memref<128x256xf32, #tpu.memory_space<vmem>>, %arg2: memref<1x256xf32, #tpu.memory_space<vmem>>, %arg3: memref<1x256xf32, #tpu.memory_space<vmem>>, %arg4: memref<1x256xf32, #tpu.memory_space<vmem>>, %arg5: memref<1x256xf32, #tpu.memory_space<vmem>>) attributes {dimension_semantics = [#tpu.dimension_semantics<arbitrary>], iteration_bounds = array<i64: 1>, scalar_prefetch = 0 : i64, scratch_operands = 0 : i64, tpu.core_type = #tpu.core_type<tc>, window_params = [{pipeline_mode = #tpu.pipeline_mode<synchronous>, transform_indices = @transform_0, window_bounds = array<i64: 128, 256>}, {pipeline_mode = #tpu.pipeline_mode<synchronous>, transform_indices = @transform_1, window_bounds = array<i64: 1, 256>}, {pipeline_mode = #tpu.pipeline_mode<synchronous>, transform_indices = @transform_2, window_bounds = array<i64: 1, 256>}, {pipeline_mode = #tpu.pipeline_mode<synchronous>, transform_indices = @transform_3, window_bounds = array<i64: 1, 256>}, {pipeline_mode = #tpu.pipeline_mode<synchronous>, transform_indices = @transform_4, window_bounds = array<i64: 1, 256>}]} {
    %c0 = arith.constant 0 : index
    %c0_0 = arith.constant 0 : index
    %0 = vector.load %arg1[%c0, %c0_0] : memref<128x256xf32, #tpu.memory_space<vmem>>, vector<128x256xf32>
    %cst = arith.constant dense<0.000000e+00> : vector<256xf32>
    %1 = vector.multi_reduction <add>, %0, %cst [0] : vector<128x256xf32> to vector<256xf32>
    %2 = vector.shape_cast %1 : vector<256xf32> to vector<1x256xf32>
    %cst_1 = arith.constant 7.812500e-03 : f32
    %3 = vector.broadcast %cst_1 : f32 to vector<1x256xf32>
    %4 = arith.mulf %2, %3 : vector<1x256xf32>
    %5 = arith.mulf %0, %0 : vector<128x256xf32>
    %cst_2 = arith.constant dense<0.000000e+00> : vector<256xf32>
    %6 = vector.multi_reduction <add>, %5, %cst_2 [0] : vector<128x256xf32> to vector<256xf32>
    %7 = vector.shape_cast %6 : vector<256xf32> to vector<1x256xf32>
    %cst_3 = arith.constant 7.812500e-03 : f32
    %8 = vector.broadcast %cst_3 : f32 to vector<1x256xf32>
    %9 = arith.mulf %7, %8 : vector<1x256xf32>
    %10 = arith.mulf %4, %4 : vector<1x256xf32>
    %11 = arith.subf %9, %10 : vector<1x256xf32>
    %cst_4 = arith.constant 0.000000e+00 : f32
    %12 = vector.broadcast %cst_4 : f32 to vector<1x256xf32>
    %13 = arith.maximumf %11, %12 : vector<1x256xf32>
    %c0_5 = arith.constant 0 : index
    %c0_6 = arith.constant 0 : index
    %14 = vector.load %arg2[%c0_5, %c0_6] : memref<1x256xf32, #tpu.memory_space<vmem>>, vector<1x256xf32>
    %cst_7 = arith.constant 9.99999974E-6 : f32
    %15 = vector.broadcast %cst_7 : f32 to vector<1x256xf32>
    %16 = arith.addf %13, %15 : vector<1x256xf32>
    %17 = math.rsqrt %16 : vector<1x256xf32>
    %18 = arith.mulf %14, %17 : vector<1x256xf32>
    %c0_8 = arith.constant 0 : index
    %c0_9 = arith.constant 0 : index
    %19 = vector.load %arg4[%c0_8, %c0_9] : memref<1x256xf32, #tpu.memory_space<vmem>>, vector<1x256xf32>
    tpu.vector_store %arg4[%c0_8, %c0_9], %18 {strides = array<i32>} : memref<1x256xf32, #tpu.memory_space<vmem>>, vector<1x256xf32>,
    %c0_10 = arith.constant 0 : index
    %c0_11 = arith.constant 0 : index
    %20 = vector.load %arg3[%c0_10, %c0_11] : memref<1x256xf32, #tpu.memory_space<vmem>>, vector<1x256xf32>
    %21 = arith.mulf %4, %18 : vector<1x256xf32>
    %22 = arith.subf %20, %21 : vector<1x256xf32>
    %c0_12 = arith.constant 0 : index
    %c0_13 = arith.constant 0 : index
    %23 = vector.load %arg5[%c0_12, %c0_13] : memref<1x256xf32, #tpu.memory_space<vmem>>, vector<1x256xf32>
    tpu.vector_store %arg5[%c0_12, %c0_13], %22 {strides = array<i32>} : memref<1x256xf32, #tpu.memory_space<vmem>>, vector<1x256xf32>,
    return
  }
  func.func @transform_0(%arg0: i32) -> (i32, i32) {
    %c0_i32 = arith.constant 0 : i32
    %c0_i32_0 = arith.constant 0 : i32
    %c0_i32_1 = arith.constant 0 : i32
    return %c0_i32, %c0_i32_0 : i32, i32
  }
  func.func @transform_1(%arg0: i32) -> (i32, i32) {
    %c0_i32 = arith.constant 0 : i32
    %c0_i32_0 = arith.constant 0 : i32
    %c0_i32_1 = arith.constant 0 : i32
    return %c0_i32, %c0_i32_0 : i32, i32
  }
  func.func @transform_2(%arg0: i32) -> (i32, i32) {
    %c0_i32 = arith.constant 0 : i32
    %c0_i32_0 = arith.constant 0 : i32
    %c0_i32_1 = arith.constant 0 : i32
    return %c0_i32, %c0_i32_0 : i32, i32
  }
  func.func @transform_3(%arg0: i32) -> (i32, i32) {
    %c0_i32 = arith.constant 0 : i32
    %c0_i32_0 = arith.constant 0 : i32
    %c0_i32_1 = arith.constant 0 : i32
    return %c0_i32, %c0_i32_0 : i32, i32
  }
  func.func @transform_4(%arg0: i32) -> (i32, i32) {
    %c0_i32 = arith.constant 0 : i32
    %c0_i32_0 = arith.constant 0 : i32
    %c0_i32_1 = arith.constant 0 : i32
    return %c0_i32, %c0_i32_0 : i32, i32
  }
}

module attributes {stable_mosaic.version = 11 : i64} {
  func.func @_bnrelu_matmul_kernel(%arg0: i32, %arg1: i32, %arg2: memref<128x256xf32, #tpu.memory_space<vmem>>, %arg3: memref<1x256xf32, #tpu.memory_space<vmem>>, %arg4: memref<1x256xf32, #tpu.memory_space<vmem>>, %arg5: memref<256x1024xbf16, #tpu.memory_space<vmem>>, %arg6: memref<128x1024xf32, #tpu.memory_space<vmem>>) attributes {dimension_semantics = [#tpu.dimension_semantics<parallel>, #tpu.dimension_semantics<parallel>], iteration_bounds = array<i64: 1, 2>, scalar_prefetch = 0 : i64, scratch_operands = 0 : i64, tpu.core_type = #tpu.core_type<tc>, window_params = [{transform_indices = @transform_0, window_bounds = array<i64: 128, 256>}, {pipeline_mode = #tpu.pipeline_mode<synchronous>, transform_indices = @transform_1, window_bounds = array<i64: 1, 256>}, {pipeline_mode = #tpu.pipeline_mode<synchronous>, transform_indices = @transform_2, window_bounds = array<i64: 1, 256>}, {transform_indices = @transform_3, window_bounds = array<i64: 256, 1024>}, {transform_indices = @transform_4, window_bounds = array<i64: 128, 1024>}]} {
    %c0 = arith.constant 0 : index
    %c0_0 = arith.constant 0 : index
    %0 = vector.load %arg2[%c0, %c0_0] : memref<128x256xf32, #tpu.memory_space<vmem>>, vector<128x256xf32>
    %c0_1 = arith.constant 0 : index
    %c0_2 = arith.constant 0 : index
    %1 = vector.load %arg3[%c0_1, %c0_2] : memref<1x256xf32, #tpu.memory_space<vmem>>, vector<1x256xf32>
    %2 = vector.broadcast %1 : vector<1x256xf32> to vector<128x256xf32>
    %3 = arith.mulf %0, %2 : vector<128x256xf32>
    %c0_3 = arith.constant 0 : index
    %c0_4 = arith.constant 0 : index
    %4 = vector.load %arg4[%c0_3, %c0_4] : memref<1x256xf32, #tpu.memory_space<vmem>>, vector<1x256xf32>
    %5 = vector.broadcast %4 : vector<1x256xf32> to vector<128x256xf32>
    %6 = arith.addf %3, %5 : vector<128x256xf32>
    %cst = arith.constant 0.000000e+00 : f32
    %7 = vector.broadcast %cst : f32 to vector<128x256xf32>
    %8 = arith.maximumf %6, %7 : vector<128x256xf32>
    %9 = arith.truncf %8 : vector<128x256xf32> to vector<128x256xbf16>
    %c0_5 = arith.constant 0 : index
    %c0_6 = arith.constant 0 : index
    %10 = vector.load %arg5[%c0_5, %c0_6] : memref<256x1024xbf16, #tpu.memory_space<vmem>>, vector<256x1024xbf16>
    %cst_7 = arith.constant dense<0.000000e+00> : vector<128x1024xf32>
    %11 = tpu.matmul %9, %10, %cst_7 {dimension_numbers = #tpu.dot_dimension_numbers<[1], [0], [0], [1], [0, 0, 1, 1], [], []>} : vector<128x256xbf16>, vector<256x1024xbf16>, vector<128x1024xf32> -> vector<128x1024xf32>
    %c0_8 = arith.constant 0 : index
    %c0_9 = arith.constant 0 : index
    %12 = vector.load %arg6[%c0_8, %c0_9] : memref<128x1024xf32, #tpu.memory_space<vmem>>, vector<128x1024xf32>
    tpu.vector_store %arg6[%c0_8, %c0_9], %11 {strides = array<i32>} : memref<128x1024xf32, #tpu.memory_space<vmem>>, vector<128x1024xf32>,
    return
  }
  func.func @transform_0(%arg0: i32, %arg1: i32) -> (i32, i32) {
    %c0_i32 = arith.constant 0 : i32
    %c0_i32_0 = arith.constant 0 : i32
    return %arg0, %c0_i32 : i32, i32
  }
  func.func @transform_1(%arg0: i32, %arg1: i32) -> (i32, i32) {
    %c0_i32 = arith.constant 0 : i32
    %c0_i32_0 = arith.constant 0 : i32
    %c0_i32_1 = arith.constant 0 : i32
    return %c0_i32, %c0_i32_0 : i32, i32
  }
  func.func @transform_2(%arg0: i32, %arg1: i32) -> (i32, i32) {
    %c0_i32 = arith.constant 0 : i32
    %c0_i32_0 = arith.constant 0 : i32
    %c0_i32_1 = arith.constant 0 : i32
    return %c0_i32, %c0_i32_0 : i32, i32
  }
  func.func @transform_3(%arg0: i32, %arg1: i32) -> (i32, i32) {
    %c0_i32 = arith.constant 0 : i32
    %c0_i32_0 = arith.constant 0 : i32
    return %c0_i32, %arg1 : i32, i32
  }
  func.func @transform_4(%arg0: i32, %arg1: i32) -> (i32, i32) {
    %c0_i32 = arith.constant 0 : i32
    return %arg0, %arg1 : i32, i32
  }
}

module attributes {stable_mosaic.version = 11 : i64} {
  func.func @_bn_coeff_kernel(%arg0: i32, %arg1: memref<512x128xf32, #tpu.memory_space<vmem>>, %arg2: memref<1x128xf32, #tpu.memory_space<vmem>>, %arg3: memref<1x128xf32, #tpu.memory_space<vmem>>, %arg4: memref<1x128xf32, #tpu.memory_space<vmem>>, %arg5: memref<1x128xf32, #tpu.memory_space<vmem>>) attributes {dimension_semantics = [#tpu.dimension_semantics<arbitrary>], iteration_bounds = array<i64: 1>, scalar_prefetch = 0 : i64, scratch_operands = 0 : i64, tpu.core_type = #tpu.core_type<tc>, window_params = [{pipeline_mode = #tpu.pipeline_mode<synchronous>, transform_indices = @transform_0, window_bounds = array<i64: 512, 128>}, {pipeline_mode = #tpu.pipeline_mode<synchronous>, transform_indices = @transform_1, window_bounds = array<i64: 1, 128>}, {pipeline_mode = #tpu.pipeline_mode<synchronous>, transform_indices = @transform_2, window_bounds = array<i64: 1, 128>}, {pipeline_mode = #tpu.pipeline_mode<synchronous>, transform_indices = @transform_3, window_bounds = array<i64: 1, 128>}, {pipeline_mode = #tpu.pipeline_mode<synchronous>, transform_indices = @transform_4, window_bounds = array<i64: 1, 128>}]} {
    %c0 = arith.constant 0 : index
    %c0_0 = arith.constant 0 : index
    %0 = vector.load %arg1[%c0, %c0_0] : memref<512x128xf32, #tpu.memory_space<vmem>>, vector<512x128xf32>
    %cst = arith.constant dense<0.000000e+00> : vector<128xf32>
    %1 = vector.multi_reduction <add>, %0, %cst [0] : vector<512x128xf32> to vector<128xf32>
    %2 = vector.shape_cast %1 : vector<128xf32> to vector<1x128xf32>
    %cst_1 = arith.constant 0.001953125 : f32
    %3 = vector.broadcast %cst_1 : f32 to vector<1x128xf32>
    %4 = arith.mulf %2, %3 : vector<1x128xf32>
    %5 = arith.mulf %0, %0 : vector<512x128xf32>
    %cst_2 = arith.constant dense<0.000000e+00> : vector<128xf32>
    %6 = vector.multi_reduction <add>, %5, %cst_2 [0] : vector<512x128xf32> to vector<128xf32>
    %7 = vector.shape_cast %6 : vector<128xf32> to vector<1x128xf32>
    %cst_3 = arith.constant 0.001953125 : f32
    %8 = vector.broadcast %cst_3 : f32 to vector<1x128xf32>
    %9 = arith.mulf %7, %8 : vector<1x128xf32>
    %10 = arith.mulf %4, %4 : vector<1x128xf32>
    %11 = arith.subf %9, %10 : vector<1x128xf32>
    %cst_4 = arith.constant 0.000000e+00 : f32
    %12 = vector.broadcast %cst_4 : f32 to vector<1x128xf32>
    %13 = arith.maximumf %11, %12 : vector<1x128xf32>
    %c0_5 = arith.constant 0 : index
    %c0_6 = arith.constant 0 : index
    %14 = vector.load %arg2[%c0_5, %c0_6] : memref<1x128xf32, #tpu.memory_space<vmem>>, vector<1x128xf32>
    %cst_7 = arith.constant 9.99999974E-6 : f32
    %15 = vector.broadcast %cst_7 : f32 to vector<1x128xf32>
    %16 = arith.addf %13, %15 : vector<1x128xf32>
    %17 = math.rsqrt %16 : vector<1x128xf32>
    %18 = arith.mulf %14, %17 : vector<1x128xf32>
    %c0_8 = arith.constant 0 : index
    %c0_9 = arith.constant 0 : index
    %19 = vector.load %arg4[%c0_8, %c0_9] : memref<1x128xf32, #tpu.memory_space<vmem>>, vector<1x128xf32>
    tpu.vector_store %arg4[%c0_8, %c0_9], %18 {strides = array<i32>} : memref<1x128xf32, #tpu.memory_space<vmem>>, vector<1x128xf32>,
    %c0_10 = arith.constant 0 : index
    %c0_11 = arith.constant 0 : index
    %20 = vector.load %arg3[%c0_10, %c0_11] : memref<1x128xf32, #tpu.memory_space<vmem>>, vector<1x128xf32>
    %21 = arith.mulf %4, %18 : vector<1x128xf32>
    %22 = arith.subf %20, %21 : vector<1x128xf32>
    %c0_12 = arith.constant 0 : index
    %c0_13 = arith.constant 0 : index
    %23 = vector.load %arg5[%c0_12, %c0_13] : memref<1x128xf32, #tpu.memory_space<vmem>>, vector<1x128xf32>
    tpu.vector_store %arg5[%c0_12, %c0_13], %22 {strides = array<i32>} : memref<1x128xf32, #tpu.memory_space<vmem>>, vector<1x128xf32>,
    return
  }
  func.func @transform_0(%arg0: i32) -> (i32, i32) {
    %c0_i32 = arith.constant 0 : i32
    %c0_i32_0 = arith.constant 0 : i32
    %c0_i32_1 = arith.constant 0 : i32
    return %c0_i32, %c0_i32_0 : i32, i32
  }
  func.func @transform_1(%arg0: i32) -> (i32, i32) {
    %c0_i32 = arith.constant 0 : i32
    %c0_i32_0 = arith.constant 0 : i32
    %c0_i32_1 = arith.constant 0 : i32
    return %c0_i32, %c0_i32_0 : i32, i32
  }
  func.func @transform_2(%arg0: i32) -> (i32, i32) {
    %c0_i32 = arith.constant 0 : i32
    %c0_i32_0 = arith.constant 0 : i32
    %c0_i32_1 = arith.constant 0 : i32
    return %c0_i32, %c0_i32_0 : i32, i32
  }
  func.func @transform_3(%arg0: i32) -> (i32, i32) {
    %c0_i32 = arith.constant 0 : i32
    %c0_i32_0 = arith.constant 0 : i32
    %c0_i32_1 = arith.constant 0 : i32
    return %c0_i32, %c0_i32_0 : i32, i32
  }
  func.func @transform_4(%arg0: i32) -> (i32, i32) {
    %c0_i32 = arith.constant 0 : i32
    %c0_i32_0 = arith.constant 0 : i32
    %c0_i32_1 = arith.constant 0 : i32
    return %c0_i32, %c0_i32_0 : i32, i32
  }
}

module attributes {stable_mosaic.version = 11 : i64} {
  func.func @_bnrelu_matmul_kernel(%arg0: i32, %arg1: i32, %arg2: memref<512x128xf32, #tpu.memory_space<vmem>>, %arg3: memref<1x128xf32, #tpu.memory_space<vmem>>, %arg4: memref<1x128xf32, #tpu.memory_space<vmem>>, %arg5: memref<128x512xbf16, #tpu.memory_space<vmem>>, %arg6: memref<512x512xf32, #tpu.memory_space<vmem>>) attributes {dimension_semantics = [#tpu.dimension_semantics<parallel>, #tpu.dimension_semantics<parallel>], iteration_bounds = array<i64: 1, 2>, scalar_prefetch = 0 : i64, scratch_operands = 0 : i64, tpu.core_type = #tpu.core_type<tc>, window_params = [{transform_indices = @transform_0, window_bounds = array<i64: 512, 128>}, {pipeline_mode = #tpu.pipeline_mode<synchronous>, transform_indices = @transform_1, window_bounds = array<i64: 1, 128>}, {pipeline_mode = #tpu.pipeline_mode<synchronous>, transform_indices = @transform_2, window_bounds = array<i64: 1, 128>}, {transform_indices = @transform_3, window_bounds = array<i64: 128, 512>}, {transform_indices = @transform_4, window_bounds = array<i64: 512, 512>}]} {
    %c0 = arith.constant 0 : index
    %c0_0 = arith.constant 0 : index
    %0 = vector.load %arg2[%c0, %c0_0] : memref<512x128xf32, #tpu.memory_space<vmem>>, vector<512x128xf32>
    %c0_1 = arith.constant 0 : index
    %c0_2 = arith.constant 0 : index
    %1 = vector.load %arg3[%c0_1, %c0_2] : memref<1x128xf32, #tpu.memory_space<vmem>>, vector<1x128xf32>
    %2 = vector.broadcast %1 : vector<1x128xf32> to vector<512x128xf32>
    %3 = arith.mulf %0, %2 : vector<512x128xf32>
    %c0_3 = arith.constant 0 : index
    %c0_4 = arith.constant 0 : index
    %4 = vector.load %arg4[%c0_3, %c0_4] : memref<1x128xf32, #tpu.memory_space<vmem>>, vector<1x128xf32>
    %5 = vector.broadcast %4 : vector<1x128xf32> to vector<512x128xf32>
    %6 = arith.addf %3, %5 : vector<512x128xf32>
    %cst = arith.constant 0.000000e+00 : f32
    %7 = vector.broadcast %cst : f32 to vector<512x128xf32>
    %8 = arith.maximumf %6, %7 : vector<512x128xf32>
    %9 = arith.truncf %8 : vector<512x128xf32> to vector<512x128xbf16>
    %c0_5 = arith.constant 0 : index
    %c0_6 = arith.constant 0 : index
    %10 = vector.load %arg5[%c0_5, %c0_6] : memref<128x512xbf16, #tpu.memory_space<vmem>>, vector<128x512xbf16>
    %cst_7 = arith.constant dense<0.000000e+00> : vector<512x512xf32>
    %11 = tpu.matmul %9, %10, %cst_7 {dimension_numbers = #tpu.dot_dimension_numbers<[1], [0], [0], [1], [0, 0, 1, 1], [], []>} : vector<512x128xbf16>, vector<128x512xbf16>, vector<512x512xf32> -> vector<512x512xf32>
    %c0_8 = arith.constant 0 : index
    %c0_9 = arith.constant 0 : index
    %12 = vector.load %arg6[%c0_8, %c0_9] : memref<512x512xf32, #tpu.memory_space<vmem>>, vector<512x512xf32>
    tpu.vector_store %arg6[%c0_8, %c0_9], %11 {strides = array<i32>} : memref<512x512xf32, #tpu.memory_space<vmem>>, vector<512x512xf32>,
    return
  }
  func.func @transform_0(%arg0: i32, %arg1: i32) -> (i32, i32) {
    %c0_i32 = arith.constant 0 : i32
    %c0_i32_0 = arith.constant 0 : i32
    return %arg0, %c0_i32 : i32, i32
  }
  func.func @transform_1(%arg0: i32, %arg1: i32) -> (i32, i32) {
    %c0_i32 = arith.constant 0 : i32
    %c0_i32_0 = arith.constant 0 : i32
    %c0_i32_1 = arith.constant 0 : i32
    return %c0_i32, %c0_i32_0 : i32, i32
  }
  func.func @transform_2(%arg0: i32, %arg1: i32) -> (i32, i32) {
    %c0_i32 = arith.constant 0 : i32
    %c0_i32_0 = arith.constant 0 : i32
    %c0_i32_1 = arith.constant 0 : i32
    return %c0_i32, %c0_i32_0 : i32, i32
  }
  func.func @transform_3(%arg0: i32, %arg1: i32) -> (i32, i32) {
    %c0_i32 = arith.constant 0 : i32
    %c0_i32_0 = arith.constant 0 : i32
    return %c0_i32, %arg1 : i32, i32
  }
  func.func @transform_4(%arg0: i32, %arg1: i32) -> (i32, i32) {
    %c0_i32 = arith.constant 0 : i32
    return %arg0, %arg1 : i32, i32
  }
}

module attributes {stable_mosaic.version = 11 : i64} {
  func.func @_bn_coeff_kernel(%arg0: i32, %arg1: memref<2048x128xf32, #tpu.memory_space<vmem>>, %arg2: memref<1x128xf32, #tpu.memory_space<vmem>>, %arg3: memref<1x128xf32, #tpu.memory_space<vmem>>, %arg4: memref<1x128xf32, #tpu.memory_space<vmem>>, %arg5: memref<1x128xf32, #tpu.memory_space<vmem>>) attributes {dimension_semantics = [#tpu.dimension_semantics<arbitrary>], iteration_bounds = array<i64: 1>, scalar_prefetch = 0 : i64, scratch_operands = 0 : i64, tpu.core_type = #tpu.core_type<tc>, window_params = [{pipeline_mode = #tpu.pipeline_mode<synchronous>, transform_indices = @transform_0, window_bounds = array<i64: 2048, 128>}, {pipeline_mode = #tpu.pipeline_mode<synchronous>, transform_indices = @transform_1, window_bounds = array<i64: 1, 128>}, {pipeline_mode = #tpu.pipeline_mode<synchronous>, transform_indices = @transform_2, window_bounds = array<i64: 1, 128>}, {pipeline_mode = #tpu.pipeline_mode<synchronous>, transform_indices = @transform_3, window_bounds = array<i64: 1, 128>}, {pipeline_mode = #tpu.pipeline_mode<synchronous>, transform_indices = @transform_4, window_bounds = array<i64: 1, 128>}]} {
    %c0 = arith.constant 0 : index
    %c0_0 = arith.constant 0 : index
    %0 = vector.load %arg1[%c0, %c0_0] : memref<2048x128xf32, #tpu.memory_space<vmem>>, vector<2048x128xf32>
    %cst = arith.constant dense<0.000000e+00> : vector<128xf32>
    %1 = vector.multi_reduction <add>, %0, %cst [0] : vector<2048x128xf32> to vector<128xf32>
    %2 = vector.shape_cast %1 : vector<128xf32> to vector<1x128xf32>
    %cst_1 = arith.constant 4.8828125E-4 : f32
    %3 = vector.broadcast %cst_1 : f32 to vector<1x128xf32>
    %4 = arith.mulf %2, %3 : vector<1x128xf32>
    %5 = arith.mulf %0, %0 : vector<2048x128xf32>
    %cst_2 = arith.constant dense<0.000000e+00> : vector<128xf32>
    %6 = vector.multi_reduction <add>, %5, %cst_2 [0] : vector<2048x128xf32> to vector<128xf32>
    %7 = vector.shape_cast %6 : vector<128xf32> to vector<1x128xf32>
    %cst_3 = arith.constant 4.8828125E-4 : f32
    %8 = vector.broadcast %cst_3 : f32 to vector<1x128xf32>
    %9 = arith.mulf %7, %8 : vector<1x128xf32>
    %10 = arith.mulf %4, %4 : vector<1x128xf32>
    %11 = arith.subf %9, %10 : vector<1x128xf32>
    %cst_4 = arith.constant 0.000000e+00 : f32
    %12 = vector.broadcast %cst_4 : f32 to vector<1x128xf32>
    %13 = arith.maximumf %11, %12 : vector<1x128xf32>
    %c0_5 = arith.constant 0 : index
    %c0_6 = arith.constant 0 : index
    %14 = vector.load %arg2[%c0_5, %c0_6] : memref<1x128xf32, #tpu.memory_space<vmem>>, vector<1x128xf32>
    %cst_7 = arith.constant 9.99999974E-6 : f32
    %15 = vector.broadcast %cst_7 : f32 to vector<1x128xf32>
    %16 = arith.addf %13, %15 : vector<1x128xf32>
    %17 = math.rsqrt %16 : vector<1x128xf32>
    %18 = arith.mulf %14, %17 : vector<1x128xf32>
    %c0_8 = arith.constant 0 : index
    %c0_9 = arith.constant 0 : index
    %19 = vector.load %arg4[%c0_8, %c0_9] : memref<1x128xf32, #tpu.memory_space<vmem>>, vector<1x128xf32>
    tpu.vector_store %arg4[%c0_8, %c0_9], %18 {strides = array<i32>} : memref<1x128xf32, #tpu.memory_space<vmem>>, vector<1x128xf32>,
    %c0_10 = arith.constant 0 : index
    %c0_11 = arith.constant 0 : index
    %20 = vector.load %arg3[%c0_10, %c0_11] : memref<1x128xf32, #tpu.memory_space<vmem>>, vector<1x128xf32>
    %21 = arith.mulf %4, %18 : vector<1x128xf32>
    %22 = arith.subf %20, %21 : vector<1x128xf32>
    %c0_12 = arith.constant 0 : index
    %c0_13 = arith.constant 0 : index
    %23 = vector.load %arg5[%c0_12, %c0_13] : memref<1x128xf32, #tpu.memory_space<vmem>>, vector<1x128xf32>
    tpu.vector_store %arg5[%c0_12, %c0_13], %22 {strides = array<i32>} : memref<1x128xf32, #tpu.memory_space<vmem>>, vector<1x128xf32>,
    return
  }
  func.func @transform_0(%arg0: i32) -> (i32, i32) {
    %c0_i32 = arith.constant 0 : i32
    %c0_i32_0 = arith.constant 0 : i32
    %c0_i32_1 = arith.constant 0 : i32
    return %c0_i32, %c0_i32_0 : i32, i32
  }
  func.func @transform_1(%arg0: i32) -> (i32, i32) {
    %c0_i32 = arith.constant 0 : i32
    %c0_i32_0 = arith.constant 0 : i32
    %c0_i32_1 = arith.constant 0 : i32
    return %c0_i32, %c0_i32_0 : i32, i32
  }
  func.func @transform_2(%arg0: i32) -> (i32, i32) {
    %c0_i32 = arith.constant 0 : i32
    %c0_i32_0 = arith.constant 0 : i32
    %c0_i32_1 = arith.constant 0 : i32
    return %c0_i32, %c0_i32_0 : i32, i32
  }
  func.func @transform_3(%arg0: i32) -> (i32, i32) {
    %c0_i32 = arith.constant 0 : i32
    %c0_i32_0 = arith.constant 0 : i32
    %c0_i32_1 = arith.constant 0 : i32
    return %c0_i32, %c0_i32_0 : i32, i32
  }
  func.func @transform_4(%arg0: i32) -> (i32, i32) {
    %c0_i32 = arith.constant 0 : i32
    %c0_i32_0 = arith.constant 0 : i32
    %c0_i32_1 = arith.constant 0 : i32
    return %c0_i32, %c0_i32_0 : i32, i32
  }
}

module attributes {stable_mosaic.version = 11 : i64} {
  func.func @_bnrelu_matmul_kernel(%arg0: i32, %arg1: i32, %arg2: memref<512x128xf32, #tpu.memory_space<vmem>>, %arg3: memref<1x128xf32, #tpu.memory_space<vmem>>, %arg4: memref<1x128xf32, #tpu.memory_space<vmem>>, %arg5: memref<128x128xbf16, #tpu.memory_space<vmem>>, %arg6: memref<512x128xf32, #tpu.memory_space<vmem>>) attributes {dimension_semantics = [#tpu.dimension_semantics<parallel>, #tpu.dimension_semantics<parallel>], iteration_bounds = array<i64: 4, 1>, scalar_prefetch = 0 : i64, scratch_operands = 0 : i64, tpu.core_type = #tpu.core_type<tc>, window_params = [{transform_indices = @transform_0, window_bounds = array<i64: 512, 128>}, {pipeline_mode = #tpu.pipeline_mode<synchronous>, transform_indices = @transform_1, window_bounds = array<i64: 1, 128>}, {pipeline_mode = #tpu.pipeline_mode<synchronous>, transform_indices = @transform_2, window_bounds = array<i64: 1, 128>}, {transform_indices = @transform_3, window_bounds = array<i64: 128, 128>}, {transform_indices = @transform_4, window_bounds = array<i64: 512, 128>}]} {
    %c0 = arith.constant 0 : index
    %c0_0 = arith.constant 0 : index
    %0 = vector.load %arg2[%c0, %c0_0] : memref<512x128xf32, #tpu.memory_space<vmem>>, vector<512x128xf32>
    %c0_1 = arith.constant 0 : index
    %c0_2 = arith.constant 0 : index
    %1 = vector.load %arg3[%c0_1, %c0_2] : memref<1x128xf32, #tpu.memory_space<vmem>>, vector<1x128xf32>
    %2 = vector.broadcast %1 : vector<1x128xf32> to vector<512x128xf32>
    %3 = arith.mulf %0, %2 : vector<512x128xf32>
    %c0_3 = arith.constant 0 : index
    %c0_4 = arith.constant 0 : index
    %4 = vector.load %arg4[%c0_3, %c0_4] : memref<1x128xf32, #tpu.memory_space<vmem>>, vector<1x128xf32>
    %5 = vector.broadcast %4 : vector<1x128xf32> to vector<512x128xf32>
    %6 = arith.addf %3, %5 : vector<512x128xf32>
    %cst = arith.constant 0.000000e+00 : f32
    %7 = vector.broadcast %cst : f32 to vector<512x128xf32>
    %8 = arith.maximumf %6, %7 : vector<512x128xf32>
    %9 = arith.truncf %8 : vector<512x128xf32> to vector<512x128xbf16>
    %c0_5 = arith.constant 0 : index
    %c0_6 = arith.constant 0 : index
    %10 = vector.load %arg5[%c0_5, %c0_6] : memref<128x128xbf16, #tpu.memory_space<vmem>>, vector<128x128xbf16>
    %cst_7 = arith.constant dense<0.000000e+00> : vector<512x128xf32>
    %11 = tpu.matmul %9, %10, %cst_7 {dimension_numbers = #tpu.dot_dimension_numbers<[1], [0], [0], [1], [0, 0, 1, 1], [], []>} : vector<512x128xbf16>, vector<128x128xbf16>, vector<512x128xf32> -> vector<512x128xf32>
    %c0_8 = arith.constant 0 : index
    %c0_9 = arith.constant 0 : index
    %12 = vector.load %arg6[%c0_8, %c0_9] : memref<512x128xf32, #tpu.memory_space<vmem>>, vector<512x128xf32>
    tpu.vector_store %arg6[%c0_8, %c0_9], %11 {strides = array<i32>} : memref<512x128xf32, #tpu.memory_space<vmem>>, vector<512x128xf32>,
    return
  }
  func.func @transform_0(%arg0: i32, %arg1: i32) -> (i32, i32) {
    %c0_i32 = arith.constant 0 : i32
    %c0_i32_0 = arith.constant 0 : i32
    return %arg0, %c0_i32 : i32, i32
  }
  func.func @transform_1(%arg0: i32, %arg1: i32) -> (i32, i32) {
    %c0_i32 = arith.constant 0 : i32
    %c0_i32_0 = arith.constant 0 : i32
    %c0_i32_1 = arith.constant 0 : i32
    return %c0_i32, %c0_i32_0 : i32, i32
  }
  func.func @transform_2(%arg0: i32, %arg1: i32) -> (i32, i32) {
    %c0_i32 = arith.constant 0 : i32
    %c0_i32_0 = arith.constant 0 : i32
    %c0_i32_1 = arith.constant 0 : i32
    return %c0_i32, %c0_i32_0 : i32, i32
  }
  func.func @transform_3(%arg0: i32, %arg1: i32) -> (i32, i32) {
    %c0_i32 = arith.constant 0 : i32
    %c0_i32_0 = arith.constant 0 : i32
    return %c0_i32, %arg1 : i32, i32
  }
  func.func @transform_4(%arg0: i32, %arg1: i32) -> (i32, i32) {
    %c0_i32 = arith.constant 0 : i32
    return %arg0, %arg1 : i32, i32
  }
}

</mosaic_0001>

<bundles_post_ra>
// kernel: generator_forward.10
= control target key start
LH: loop header
LB: loop body
LE: loop exit
PB: predicated region body
PF: predicated region fallthrough
CT: control target
= control target key end

     0   :  { %s372_s0 = inlined_call_operand.vmem [shape: f32[32,512], index: 0, kind: input, shape index: {}]   ;;  %s373_s1 = inlined_call_operand.vmem [shape: f32[1,512], index: 1, kind: input, shape index: {}]   ;;  %s374_s3 = inlined_call_operand.vmem [shape: f32[1,512], index: 3, kind: output, shape index: {0}]   ;;  %s375_s2 = inlined_call_operand.vmem [shape: f32[1,512], index: 2, kind: input, shape index: {}]   ;;  %s376_s4 = inlined_call_operand.vmem [shape: f32[1,512], index: 4, kind: output, shape index: {1}]  }
   0x1   :  { %v16_v0 = vld [vmem:[%s372_s0] sm:$0xff]  ;;  %v17_v1 = vld [vmem:[%s372_s0 + $0x8] sm:$0xff]  ;;  %v18_v2 = vld [vmem:[%s372_s0 + $0x10] sm:$0xff] }
   0x2   :  { %v19_v3 = vld [vmem:[%s372_s0 + $0x18] sm:$0xff]  ;;  %v20_v4 = vld [vmem:[%s372_s0 + $0x20] sm:$0xff]  ;;  %v21_v5 = vld [vmem:[%s372_s0 + $0x28] sm:$0xff]  ;;  %v72_v6 = vmul.f32 %v16_v0, %v16_v0  ;;  %v73_v7 = vmul.f32 %v17_v1, %v17_v1  ;;  %v74_v8 = vmul.f32 %v18_v2, %v18_v2 }
   0x3   :  { %v22_v9 = vld [vmem:[%s372_s0 + $0x30] sm:$0xff]  ;;  %v23_v10 = vld [vmem:[%s372_s0 + $0x38] sm:$0xff]  ;;  %v24_v11 = vld [vmem:[%s372_s0 + $0x40] sm:$0xff]  ;;  %v32_v12 = vadd.f32 %v20_v4, %v16_v0  ;;  %v41_v13 = vadd.f32 %v21_v5, %v17_v1  ;;  %v75_v14 = vmul.f32 %v19_v3, %v19_v3  ;;  %v76_v15 = vmul.f32 %v20_v4, %v20_v4 }
   0x4   :  { %v25_v16 = vld [vmem:[%s372_s0 + $0x48] sm:$0xff]  ;;  %v26_v17 = vld [vmem:[%s372_s0 + $0x50] sm:$0xff]  ;;  %v27_v18 = vld [vmem:[%s372_s0 + $0x58] sm:$0xff]  ;;  %v50_v19 = vadd.f32 %v22_v9, %v18_v2  ;;  %v59_v20 = vadd.f32 %v23_v10, %v19_v3  ;;  %v77_v21 = vmul.f32 %v21_v5, %v21_v5  ;;  %v78_v22 = vmul.f32 %v22_v9, %v22_v9 }
   0x5   :  { %v28_v23 = vld [vmem:[%s372_s0 + $0x60] sm:$0xff]  ;;  %v29_v24 = vld [vmem:[%s372_s0 + $0x68] sm:$0xff]  ;;  %v30_v25 = vld [vmem:[%s372_s0 + $0x70] sm:$0xff]  ;;  %v33_v26 = vadd.f32 %v32_v12, %v24_v11  ;;  %v42_v27 = vadd.f32 %v41_v13, %v25_v16  ;;  %v79_v28 = vmul.f32 %v23_v10, %v23_v10  ;;  %v80_v29 = vmul.f32 %v24_v11, %v24_v11 }
   0x6   :  { %v31_v30 = vld [vmem:[%s372_s0 + $0x78] sm:$0xff]  ;;  %v51_v31 = vadd.f32 %v50_v19, %v26_v17  ;;  %v60_v32 = vadd.f32 %v59_v20, %v27_v18  ;;  %v81_v33 = vmul.f32 %v25_v16, %v25_v16  ;;  %v82_v34 = vmul.f32 %v26_v17, %v26_v17 }
   0x7   :  { %v34_v35 = vadd.f32 %v33_v26, %v28_v23  ;;  %v43_v36 = vadd.f32 %v42_v27, %v29_v24  ;;  %v83_v37 = vmul.f32 %v27_v18, %v27_v18  ;;  %v84_v38 = vmul.f32 %v28_v23, %v28_v23 }
   0x8   :  { %v52_v39 = vadd.f32 %v51_v31, %v30_v25  ;;  %v61_v40 = vadd.f32 %v60_v32, %v31_v30  ;;  %v85_v41 = vmul.f32 %v29_v24, %v29_v24  ;;  %v86_v42 = vmul.f32 %v30_v25, %v30_v25 }
   0x9   :  { %v35_v43 = vrot.slane %v34_v35, 4  ;;  %v44_v44 = vrot.slane %v43_v36, 4  ;;  %v87_v45 = vmul.f32 %v31_v30, %v31_v30  ;;  %v88_v46 = vadd.f32 %v76_v15, %v72_v6 }
   0xa   :  { %v53_v47 = vrot.slane %v52_v39, 4  ;;  %v62_v48 = vrot.slane %v61_v40, 4  ;;  %v97_v49 = vadd.f32 %v77_v21, %v73_v7  ;;  %v106_v50 = vadd.f32 %v78_v22, %v74_v8 }
   0xb   :  { %v36_v51 = vadd.f32 %v35_v43, %v34_v35  ;;  %v45_v52 = vadd.f32 %v44_v44, %v43_v36  ;;  %v89_v53 = vadd.f32 %v88_v46, %v80_v29  ;;  %v115_v54 = vadd.f32 %v79_v28, %v75_v14 }
   0xc   :  { %v54_v55 = vadd.f32 %v53_v47, %v52_v39  ;;  %v63_v56 = vadd.f32 %v62_v48, %v61_v40  ;;  %v98_v57 = vadd.f32 %v97_v49, %v81_v33  ;;  %v107_v58 = vadd.f32 %v106_v50, %v82_v34 }
   0xd   :  { %v37_v59 = vrot.slane %v36_v51, 2  ;;  %v46_v60 = vrot.slane %v45_v52, 2  ;;  %v90_v61 = vadd.f32 %v89_v53, %v84_v38  ;;  %v116_v62 = vadd.f32 %v115_v54, %v83_v37 }
   0xe   :  { %v55_v63 = vrot.slane %v54_v55, 2  ;;  %v64_v0 = vrot.slane %v63_v56, 2  ;;  %v99_v1 = vadd.f32 %v98_v57, %v85_v41  ;;  %v108_v2 = vadd.f32 %v107_v58, %v86_v42 }
   0xf   :  { %v38_v3 = vadd.f32 %v37_v59, %v36_v51  ;;  %v47_v4 = vadd.f32 %v46_v60, %v45_v52  ;;  %v91_v5 = vrot.slane %v90_v61, 4  ;;  %v117_v6 = vadd.f32 %v116_v62, %v87_v45 }
  0x10   :  { %v56_v7 = vadd.f32 %v55_v63, %v54_v55  ;;  %v65_v8 = vadd.f32 %v64_v0, %v63_v56  ;;  %v100_v9 = vrot.slane %v99_v1, 4  ;;  %v109_v10 = vrot.slane %v108_v2, 4 }
  0x11   :  { %v39_v11 = vrot.slane %v38_v3, 1  ;;  %v48_v12 = vrot.slane %v47_v4, 1  ;;  %v92_v13 = vadd.f32 %v91_v5, %v90_v61  ;;  %v118_v14 = vrot.slane %v117_v6, 4 }
  0x12   :  { %v57_v15 = vrot.slane %v56_v7, 1  ;;  %v66_v16 = vrot.slane %v65_v8, 1  ;;  %v101_v17 = vadd.f32 %v100_v9, %v99_v1  ;;  %v110_v18 = vadd.f32 %v109_v10, %v108_v2 }
  0x13   :  { %v40_v19 = vadd.f32 %v39_v11, %v38_v3  ;;  %v49_v20 = vadd.f32 %v48_v12, %v47_v4  ;;  %v93_v21 = vrot.slane %v92_v13, 2  ;;  %v119_v22 = vadd.f32 %v118_v14, %v117_v6 }
  0x14   :  { %v58_v23 = vadd.f32 %v57_v15, %v56_v7  ;;  %v67_v24 = vadd.f32 %v66_v16, %v65_v8  ;;  %v102_v25 = vrot.slane %v101_v17, 2  ;;  %v111_v26 = vrot.slane %v110_v18, 2  ;;  %v140_v15 = vld [vmem:[%s373_s1] sm:$0xf] }
  0x15   :  { %v332_v27 = vmul.f32 0.03125, %v40_v19  ;;  %v94_v28 = vadd.f32 %v93_v21, %v92_v13  ;;  %v120_v29 = vrot.slane %v119_v22, 2  ;;  %v334_v30 = vmul.f32 0.03125, %v49_v20 }
  0x16   :  { %v336_v31 = vmul.f32 0.03125, %v58_v23  ;;  %v103_v32 = vadd.f32 %v102_v25, %v101_v17  ;;  %v112_v33 = vadd.f32 %v111_v26, %v110_v18  ;;  %v338_v34 = vmul.f32 0.03125, %v67_v24 }
  0x17   :  { %v95_v35 = vrot.slane %v94_v28, 1  ;;  %v121_v36 = vadd.f32 %v120_v29, %v119_v22  ;;  %v128_v41 = vmul.f32 %v332_v27, %v332_v27  ;;  %v129_v44 = vmul.f32 %v334_v30, %v334_v30 }
  0x18   :  { %v104_v37 = vrot.slane %v103_v32, 1  ;;  %v113_v38 = vrot.slane %v112_v33, 1  ;;  %v130_v45 = vmul.f32 %v336_v31, %v336_v31  ;;  %v131_v48 = vmul.f32 %v338_v34, %v338_v34 }
  0x19   :  { %v96_v39 = vadd.f32 %v95_v35, %v94_v28  ;;  %v122_v40 = vrot.slane %v121_v36, 1  ;;  %v258_v0 = vmov 1966171168   ;;  %v158_v2 = vlaneseq }
  0x1a   :  { %v105_v42 = vadd.f32 %v104_v37, %v103_v32  ;;  %v114_v43 = vadd.f32 %v113_v38, %v112_v33  ;;  %v156_v1 = vunpack.c.l.s4 %v258_v0 }
  0x1b   :  { %v123_v46 = vadd.f32 %v122_v40, %v121_v36  ;;  %v124_v47 = vmul.f32 0.03125, %v96_v39  ;;  %v159_v4 = vshrl.u32 %v158_v2, 7  ;;  %vm351_vm0 = vcmp.lt.s32.totalorder %v158_v2, 512  ;;  %v184_v40 = vld [vmem:[%s375_s2] sm:$0xf] }
  0x1c   :  { %v125_v49 = vmul.f32 0.03125, %v105_v42  ;;  %v126_v50 = vmul.f32 0.03125, %v114_v43  ;;  %v157_v3 = vunpack.c.0.s8 %v156_v1 }
  0x1d   :  { %v127_v51 = vmul.f32 0.03125, %v123_v46  ;;  %v132_v52 = vsub.f32 %v124_v47, %v128_v41  ;;  %v188_v16 = vsub.s32 0, %v159_v4  ;;  %v192_v18 = vsub.s32 1, %v159_v4 }
  0x1e   :  { %v133_v53 = vsub.f32 %v125_v49, %v129_v44  ;;  %v134_v54 = vsub.f32 %v126_v50, %v130_v45  ;;  %v160_v6 = vsub.s32 %v157_v3, %v159_v4  ;;  %v196_v19 = vsub.s32 2, %v159_v4 }
  0x1f   :  { %v135_v55 = vsub.f32 %v127_v51, %v131_v48  ;;  %v136_v56 = vmax.f32 %v132_v52, 0.0  ;;  %v200_v20 = vsub.s32 3, %v159_v4 }
  0x20   :  { %v137_v57 = vmax.f32 %v133_v53, 0.0  ;;  %v138_v58 = vmax.f32 %v134_v54, 0.0 }
  0x21   :  { %v139_v59 = vmax.f32 %v135_v55, 0.0  ;;  %v141_v60 = vadd.f32 1e-05, %v136_v56 }
  0x22   :  { %v142_v61 = vadd.f32 1e-05, %v137_v57  ;;  %v143_v62 = vadd.f32 1e-05, %v138_v58 }
  0x23   :  { %v144_v63 = vadd.f32 1e-05, %v139_v59  ;;  %250 = vrsqrt.f32 %v141_v60 }
  0x24   :  { %252 = vrsqrt.f32 %v142_v61 }
  0x25   :  { %254 = vrsqrt.f32 %v143_v62 }
  0x26   :  { %256 = vrsqrt.f32 %v144_v63 }
  0x2d   :  { %v251_v5 = vpop.eup %250 }
  0x2e   :  { %v253_v7 = vpop.eup %252 }
  0x2f   :  { %v255_v8 = vpop.eup %254  ;;  %v153_v9 = vcombine.low %v251_v5, %v253_v7 }
  0x30   :  { %v257_v10 = vpop.eup %256 }
  0x31   :  { %v154_v11 = vcombine.low %v255_v8, %v257_v10  ;;  %v161_v12 = vrot.slane %v153_v9, %v160_v6 }
  0x33   :  { %v168_v13 = vrot.slane %v154_v11, %v160_v6 }
  0x35   :  { %v169_v14 = vcombine.low %v161_v12, %v168_v13 }
  0x37   :  { %v176_v17 = vrot.slane %v169_v14, %v160_v6 }
  0x39   :  { %v178_v22 = vmul.f32 %v176_v17, %v140_v15 }
  0x3b   :  { %183 = vst.msk [vmem:[%s374_s3] sm:$0xf] %vm351_vm0, %v178_v22  ;;  %v189_v23 = vrot.slane %v178_v22, %v188_v16  ;;  %v193_v24 = vrot.slane %v178_v22, %v192_v18  ;;  %v197_v25 = vrot.slane %v178_v22, %v196_v19  ;;  %v201_v26 = vrot.slane %v178_v22, %v200_v20 }
  0x3d   :  { %v206_v28 = vmul.f32 %v189_v23, %v332_v27  ;;  %v207_v29 = vmul.f32 %v193_v24, %v334_v30  ;;  %v208_v32 = vmul.f32 %v197_v25, %v336_v31  ;;  %v209_v33 = vmul.f32 %v201_v26, %v338_v34 }
  0x3f   :  { %v214_v35 = vcombine.low %v206_v28, %v207_v29  ;;  %v215_v36 = vcombine.low %v208_v32, %v209_v33 }
  0x41   :  { %v222_v37 = vrot.slane %v214_v35, %v160_v6  ;;  %v229_v38 = vrot.slane %v215_v36, %v160_v6 }
  0x43   :  { %v230_v39 = vcombine.low %v222_v37, %v229_v38 }
  0x45   :  { %v237_v41 = vrot.slane %v230_v39, %v160_v6 }
  0x47   :  { %v239_v42 = vsub.f32 %v184_v40, %v237_v41 }
  0x49   :  { %240 = vst.msk [vmem:[%s376_s4] sm:$0xf] %vm351_vm0, %v239_v42 }

// kernel: generator_forward.9
= control target key start
LH: loop header
LB: loop body
LE: loop exit
PB: predicated region body
PF: predicated region fallthrough
CT: control target
= control target key end

     0   :  { %7 = vsyncpa [#allocation3], 0  ;;  %s1315_s0 = inlined_call_operand.vmem [shape: f32[8,128], index: 0, kind: input, shape index: {}]   ;;  %s1316_s1 = inlined_call_operand.hbm [shape: bf16[128,8192], index: 1, kind: input, shape index: {}]   ;;  %s1317_s2 = inlined_call_operand.vmem [shape: f32[8,8192], index: 2, kind: output, shape index: {}]  }
   0x1   :  { %9 = vsyncpa [#allocation3 + $0x1], 0  ;;  %s1111_s9 = smov 0   ;;  %s1113_s10 = smov 0  }
   0x2   :  { %s1115_s11 = smov 0   ;;  %s1117_s12 = smov 0  }
   0x3   :  { %s1119_s13 = smov 0   ;;  %s1121_s14 = smov 0  }
   0x4 LB: > { %s871_s15 = sadd.s32 4294967295, %s1089_s14   ;;  %s24_s16 = sadd.s32 1, %s1085_s13  ;;  %s1089_s14 = sphi %s1121_s14, %s15_s14   ;;  %s1085_s13 = sphi %s1119_s13, %s1326_s13   ;;  %s1081_s12 = sphi %s1117_s12, %s1325_s12   ;;  %s1077_s11 = sphi %s1115_s11, %s1324_s11   ;;  %s1073_s10 = sphi %s1113_s10, %s1323_s10   ;;  %s1069_s9 = sphi %s1111_s9, %s1322_s9  }
   0x5   : > { %p25_p0 = scmp.ge.s32.totalorder %s24_s16, 8  ;;  %s60_s17 = sadd.s32 1, %s1077_s11 }
   0x6   : > { %p67_p1 = scmp.ne.s32.totalorder %s1077_s11, %s1073_s10  ;;  %p68_p2 = scmp.eq.s32.totalorder %s1089_s14, 0 }
   0x7   : > { %s1328_s16 = smov (%p25_p0, %s24_s16), 0  ;;  %p73_p4 = scmp.ne.s32.totalorder %s1073_s10, %s1069_s9 }
   0x8   : > { %p1147_p3 = por %p68_p2, %p67_p1  ;;  %s57_s19 = ssub.s32 %s1085_s13, %s1328_s16 }
   0x9   : > { %p74_p5 = scmp.eq.s32.totalorder %s871_s15, 0  ;;  %p58_p6 = scmp.eq.s32.totalorder %s57_s19, 0 }
   0xa   : > { %p956_p8 = scmp.lt.s32.totalorder %s1089_s14, 8  ;;  %s132_s22 = sand.u32 1, %s1077_s11  }
   0xb   : > { %p1154_p7 = por %p74_p5, %p73_p4  ;;  %s949_s23 = sshll.u32 %s1085_s13, 9 }
   0xc   : > { %s1160_s21 = scalar_select %p58_p6, %s1077_s11, %s60_s17  }
   0xd   : > { %s876_s24 = sshll.u32 %s132_s22, 9  ;;  %s1167_s27 = scalar_lea.hbm %s1316_s1, %s949_s23 }
   0xe   : > { %s136_s28 = scalar_lea.vmem [#allocation2], %s876_s24  ;;  %p1171_p9 = pnand %p956_p8, %p1147_p3 }
   0xf   : > { %s143_s29 = sshll.u32 %s136_s28, 4  ;;  %s1178_s3 = scalar_lea.sflag [#allocation3], %s132_s22  ;;  %s1175_s29 = int_to_ptr.vmem [resolvable:$true] %s143_s29 }
  0x10   : > { %s1009_s4 = scalar_lea.hbm %s1167_s27, 8192  ;;  %p1011_p12 = pneg %p1171_p9 }
  0x11   : > { %p1010_p11 = scmp.ne.s32.totalorder %s1167_s27, %s1009_s4  ;;  %s1014_s7 = scalar_lea.hbm %s1316_s1, 65536 }
  0x12   : > { %p1015_p1 = scmp.lt.u32.totalorder %s1167_s27, %s1316_s1  ;;  %p1016_p2 = scmp.lt.u32.totalorder %s1014_s7, %s1009_s4 }
  0x13   : > { %p1012_p13 = pnand %p1011_p12, %p1010_p11  ;;  %p1018_p4 = scmp.lt.u32.totalorder %s1009_s4, %s1167_s27 }
  0x14   : > { %p1017_p3 = por %p1016_p2, %p1015_p1 }
  0x15   : > { %p1013_p0 = pneg %p1012_p13 }
  0x16   : > { %p1019_p5 = por %p1018_p4, %p1017_p3 }
  0x18   : > { %p1020_p6 = pnand %p1019_p5, %p1013_p0 }
  0x1a   : > { %1023 = shalt.err (!%p1020_p6)
}
  0x1b   : > { %s1024_s15 = scalar_lea.vmem %s1175_s29, 8192  ;;  %s1091_s17 = smov [#allocation2]  }
  0x1c   : > { %p1025_p8 = scmp.ne.s32.totalorder %s1175_s29, %s1024_s15  ;;  %s1029_s18 = sshll.u32 %s1091_s17, 4  ;;  %s1030_s18 = int_to_ptr.vmem [resolvable:$false] %s1029_s18 }
  0x1d   : > { %s1031_s19 = scalar_lea.vmem %s1030_s18, 16384  ;;  %p1032_p10 = scmp.lt.s32.totalorder %s1175_s29, %s1030_s18 }
  0x1e   : > { %p1027_p11 = pnand %p1025_p8, %p1011_p12  ;;  %p1033_p1 = scmp.lt.s32.totalorder %s1031_s19, %s1024_s15 }
  0x20   : > { %p1028_p13 = pneg %p1027_p11  ;;  %p1034_p2 = por %p1033_p1, %p1032_p10 }
  0x22   : > { %p1035_p3 = pnand %p1034_p2, %p1028_p13 }
  0x24   : > { %1038 = shalt.err (!%p1035_p3)
}
  0x25   : > { %s1092_s22 = smov 4096   ;;  %s1093_s23 = smov 512  }
  0x26   : > { %s1094_s24 = smov 32   ;;  %p151_p12 = scmp.lt.s32.totalorder %s1089_s14, 9 }
  0x27   : > { %955 = dma.hbm_to_vmem [thread:$0]  (!%p1171_p9), %s1167_s27, 8192, %s1175_s29, %s1178_s3, %s1092_s22, %s1093_s23, %s1094_s24  }
  0x28   : > { %p1321_p0 = scmp.ge.s32.totalorder %s1089_s14, 1 }
  0x2a   : > { %p152_p4 = pnand %p1321_p0, %p151_p12 }
  0x2b   : > { %s157_s25 = sand.u32 (!%p152_p4), 1, %s1073_s10  }
  0x2c   : > { %155 = sbr.rel (%p152_p4) target bundleno = 335 (0x14f), region = 28  ;;  %s880_s26 = sshll.u32 (!%p152_p4), %s157_s25, 9 }
  0x2d   : > { %s158_s28 = scalar_lea.sflag (!%p152_p4), [#allocation3], %s157_s25  ;;  %s1210_s4 = scalar_lea.vmem (!%p152_p4), [#allocation2], %s880_s26 }
  0x33   : > { %1064 = dma.done.wait (%p1154_p7), %s158_s28, 8192  }
  0x34   : > { %1066 = vsyncadd (%p1154_p7), %s158_s28, 4294959104  ;;  %v1095_v0 = vmov 0   ;;  %v208_v1 = vld [vmem:[%s1210_s4] sm:$0xff]  ;;  %v209_v3 = vld [vmem:[%s1210_s4 + $0x8] sm:$0xff]  ;;  %s881_s29 = sshll.u32 %s1081_s12, 3 }
  0x35   : > { %624 = vmatprep.mubr.bf16.mxu0 %v1095_v0  ;;  %665 = vmatprep.mubr.bf16.mxu1 %v1095_v0  ;;  %v212_v2 = vld [vmem:[%s1210_s4 + $0x20] sm:$0xff]  ;;  %v213_v5 = vld [vmem:[%s1210_s4 + $0x28] sm:$0xff]  ;;  %v210_v63 = vld [vmem:[%s1210_s4 + $0x10] sm:$0xff]  ;;  %p198_p7 = scmp.lt.s32.totalorder %s881_s29, 63 }
  0x36   : > { %v884_v4 = vcombine.high %v208_v1, %v212_v2  ;;  %v883_v6 = vcombine.low %v208_v1, %v212_v2  ;;  %v216_v7 = vld [vmem:[%s1210_s4 + $0x40] sm:$0xff]  ;;  %v886_v9 = vcombine.high %v209_v3, %v213_v5  ;;  %v885_v10 = vcombine.low %v209_v3, %v213_v5  ;;  %v217_v12 = vld [vmem:[%s1210_s4 + $0x48] sm:$0xff]  ;;  %v214_v1 = vld [vmem:[%s1210_s4 + $0x30] sm:$0xff] }
  0x37   : > { %v220_v8 = vld [vmem:[%s1210_s4 + $0x60] sm:$0xff]  ;;  %v221_v13 = vld [vmem:[%s1210_s4 + $0x68] sm:$0xff]  ;;  %v211_v2 = vld [vmem:[%s1210_s4 + $0x18] sm:$0xff]  ;;  %s1330_s29 = smov (!%p198_p7, %s881_s29), 63 }
  0x38   : > { %v892_v11 = vcombine.high %v216_v7, %v220_v8  ;;  %v224_v14 = vld [vmem:[%s1210_s4 + $0x80] sm:$0xff]  ;;  %592 = vmatprep.subr.bf16.mxu0 %v884_v4  ;;  %v894_v15 = vcombine.high %v217_v12, %v221_v13  ;;  %v225_v17 = vld [vmem:[%s1210_s4 + $0x88] sm:$0xff]  ;;  %633 = vmatprep.subr.bf16.mxu1 %v886_v9  ;;  %v891_v19 = vcombine.low %v216_v7, %v220_v8  ;;  %v215_v3 = vld [vmem:[%s1210_s4 + $0x38] sm:$0xff]  ;;  %s882_s30 = sshll.u32 %s1330_s29, 3 }
  0x39   : > { %v228_v16 = vld [vmem:[%s1210_s4 + $0xa0] sm:$0xff]  ;;  %v229_v18 = vld [vmem:[%s1210_s4 + $0xa8] sm:$0xff]  ;;  %593 = vmatpush1.bf16.msra.mxu0 %v883_v6  ;;  %634 = vmatpush1.bf16.msra.mxu1 %v885_v10  ;;  %v893_v20 = vcombine.low %v217_v12, %v221_v13  ;;  %v888_v7 = vcombine.high %v210_v63, %v214_v1  ;;  %v890_v8 = vcombine.high %v211_v2, %v215_v3  ;;  %v218_v9 = vld [vmem:[%s1210_s4 + $0x50] sm:$0xff]  ;;  %s203_s6 = scalar_lea.vmem %s1317_s2, %s882_s30 }
  0x3a   : > { %594 = vmatprep.subr.bf16.mxu0 %v892_v11  ;;  %v900_v21 = vcombine.high %v224_v14, %v228_v16  ;;  %635 = vmatprep.subr.bf16.mxu1 %v894_v15  ;;  %v902_v22 = vcombine.high %v225_v17, %v229_v18  ;;  %v232_v23 = vld [vmem:[%s1210_s4 + $0xc0] sm:$0xff]  ;;  %v233_v25 = vld [vmem:[%s1210_s4 + $0xc8] sm:$0xff]  ;;  %v899_v27 = vcombine.low %v224_v14, %v228_v16  ;;  %v222_v10 = vld [vmem:[%s1210_s4 + $0x70] sm:$0xff] }
  0x3b   : > { %v236_v24 = vld [vmem:[%s1210_s4 + $0xe0] sm:$0xff]  ;;  %v237_v26 = vld [vmem:[%s1210_s4 + $0xe8] sm:$0xff]  ;;  %v901_v28 = vcombine.low %v225_v17, %v229_v18  ;;  %v219_v12 = vld [vmem:[%s1210_s4 + $0x58] sm:$0xff]  ;;  %v887_v14 = vcombine.low %v210_v63, %v214_v1  ;;  %v889_v15 = vcombine.low %v211_v2, %v215_v3  ;;  %v896_v16 = vcombine.high %v218_v9, %v222_v10 }
  0x3c   : > { %v908_v29 = vcombine.high %v232_v23, %v236_v24  ;;  %v910_v30 = vcombine.high %v233_v25, %v237_v26  ;;  %v240_v31 = vld [vmem:[%s1210_s4 + $0x100] sm:$0xff]  ;;  %v241_v33 = vld [vmem:[%s1210_s4 + $0x108] sm:$0xff]  ;;  %v907_v35 = vcombine.low %v232_v23, %v236_v24  ;;  %v909_v36 = vcombine.low %v233_v25, %v237_v26  ;;  %v223_v13 = vld [vmem:[%s1210_s4 + $0x78] sm:$0xff] }
  0x3d   : > { %595 = vmatpush1.bf16.msra.mxu0 %v891_v19  ;;  %636 = vmatpush1.bf16.msra.mxu1 %v893_v20  ;;  %v244_v32 = vld [vmem:[%s1210_s4 + $0x120] sm:$0xff]  ;;  %v245_v34 = vld [vmem:[%s1210_s4 + $0x128] sm:$0xff]  ;;  %v898_v17 = vcombine.high %v219_v12, %v223_v13  ;;  %v226_v18 = vld [vmem:[%s1210_s4 + $0x90] sm:$0xff]  ;;  %v897_v23 = vcombine.low %v219_v12, %v223_v13 }
  0x3e   : > { %596 = vmatprep.subr.bf16.mxu0 %v900_v21  ;;  %637 = vmatprep.subr.bf16.mxu1 %v902_v22  ;;  %v916_v37 = vcombine.high %v240_v31, %v244_v32  ;;  %v918_v38 = vcombine.high %v241_v33, %v245_v34  ;;  %v248_v39 = vld [vmem:[%s1210_s4 + $0x140] sm:$0xff]  ;;  %v249_v41 = vld [vmem:[%s1210_s4 + $0x148] sm:$0xff]  ;;  %v915_v43 = vcombine.low %v240_v31, %v244_v32  ;;  %v230_v19 = vld [vmem:[%s1210_s4 + $0xb0] sm:$0xff] }
  0x3f   : > { %v252_v40 = vld [vmem:[%s1210_s4 + $0x160] sm:$0xff]  ;;  %v253_v42 = vld [vmem:[%s1210_s4 + $0x168] sm:$0xff]  ;;  %v917_v44 = vcombine.low %v241_v33, %v245_v34  ;;  %v227_v20 = vld [vmem:[%s1210_s4 + $0x98] sm:$0xff]  ;;  %v895_v22 = vcombine.low %v218_v9, %v222_v10  ;;  %v904_v24 = vcombine.high %v226_v18, %v230_v19 }
  0x40   : > { %v924_v45 = vcombine.high %v248_v39, %v252_v40  ;;  %v926_v46 = vcombine.high %v249_v41, %v253_v42  ;;  %v256_v47 = vld [vmem:[%s1210_s4 + $0x180] sm:$0xff]  ;;  %v257_v49 = vld [vmem:[%s1210_s4 + $0x188] sm:$0xff]  ;;  %v923_v51 = vcombine.low %v248_v39, %v252_v40  ;;  %v925_v52 = vcombine.low %v249_v41, %v253_v42  ;;  %v231_v21 = vld [vmem:[%s1210_s4 + $0xb8] sm:$0xff] }
  0x41   : > { %597 = vmatpush1.bf16.msra.mxu0 %v899_v27  ;;  %638 = vmatpush1.bf16.msra.mxu1 %v901_v28  ;;  %v260_v48 = vld [vmem:[%s1210_s4 + $0x1a0] sm:$0xff]  ;;  %v261_v50 = vld [vmem:[%s1210_s4 + $0x1a8] sm:$0xff]  ;;  %v906_v25 = vcombine.high %v227_v20, %v231_v21  ;;  %v234_v26 = vld [vmem:[%s1210_s4 + $0xd0] sm:$0xff]  ;;  %v905_v31 = vcombine.low %v227_v20, %v231_v21 }
  0x42   : > { %598 = vmatprep.subr.bf16.mxu0 %v908_v29  ;;  %639 = vmatprep.subr.bf16.mxu1 %v910_v30  ;;  %v932_v53 = vcombine.high %v256_v47, %v260_v48  ;;  %v934_v54 = vcombine.high %v257_v49, %v261_v50  ;;  %v264_v55 = vld [vmem:[%s1210_s4 + $0x1c0] sm:$0xff]  ;;  %v265_v57 = vld [vmem:[%s1210_s4 + $0x1c8] sm:$0xff]  ;;  %v931_v59 = vcombine.low %v256_v47, %v260_v48  ;;  %v238_v27 = vld [vmem:[%s1210_s4 + $0xf0] sm:$0xff] }
  0x43   : > { %v268_v56 = vld [vmem:[%s1210_s4 + $0x1e0] sm:$0xff]  ;;  %v269_v58 = vld [vmem:[%s1210_s4 + $0x1e8] sm:$0xff]  ;;  %v933_v60 = vcombine.low %v257_v49, %v261_v50  ;;  %v235_v28 = vld [vmem:[%s1210_s4 + $0xd8] sm:$0xff]  ;;  %v903_v30 = vcombine.low %v226_v18, %v230_v19  ;;  %v912_v32 = vcombine.high %v234_v26, %v238_v27 }
  0x44   : > { %v940_v61 = vcombine.high %v264_v55, %v268_v56  ;;  %v942_v62 = vcombine.high %v265_v57, %v269_v58  ;;  %v939_v4 = vcombine.low %v264_v55, %v268_v56  ;;  %v206_v5 = vld [vmem:[%s1315_s0] sm:$0xff]  ;;  %v941_v6 = vcombine.low %v265_v57, %v269_v58  ;;  %v239_v29 = vld [vmem:[%s1210_s4 + $0xf8] sm:$0xff]  ;;  %v242_v34 = vld [vmem:[%s1210_s4 + $0x110] sm:$0xff] }
  0x45   : > { %599 = vmatpush1.bf16.msra.mxu0 %v907_v35  ;;  %640 = vmatpush1.bf16.msra.mxu1 %v909_v36  ;;  %v1259_v11 = vpack.c.bf16 %v206_v5, %v206_v5  ;;  %v914_v33 = vcombine.high %v235_v28, %v239_v29  ;;  %v246_v35 = vld [vmem:[%s1210_s4 + $0x130] sm:$0xff]  ;;  %v243_v36 = vld [vmem:[%s1210_s4 + $0x118] sm:$0xff] }
  0x46   : > { %600 = vmatprep.subr.bf16.mxu0 %v916_v37  ;;  %641 = vmatprep.subr.bf16.mxu1 %v918_v38  ;;  %v247_v37 = vld [vmem:[%s1210_s4 + $0x138] sm:$0xff]  ;;  %v911_v38 = vcombine.low %v234_v26, %v238_v27  ;;  %v920_v39 = vcombine.high %v242_v34, %v246_v35  ;;  %v250_v41 = vld [vmem:[%s1210_s4 + $0x150] sm:$0xff] }
  0x47   : > { %v922_v40 = vcombine.high %v243_v36, %v247_v37  ;;  %v254_v42 = vld [vmem:[%s1210_s4 + $0x170] sm:$0xff] }
  0x48   : > { %v928_v47 = vcombine.high %v250_v41, %v254_v42  ;;  %v258_v49 = vld [vmem:[%s1210_s4 + $0x190] sm:$0xff] }
  0x49   : > { %601 = vmatpush1.bf16.msra.mxu0 %v915_v43  ;;  %642 = vmatpush1.bf16.msra.mxu1 %v917_v44  ;;  %v251_v43 = vld [vmem:[%s1210_s4 + $0x158] sm:$0xff]  ;;  %v262_v50 = vld [vmem:[%s1210_s4 + $0x1b0] sm:$0xff] }
  0x4a   : > { %602 = vmatprep.subr.bf16.mxu0 %v924_v45  ;;  %643 = vmatprep.subr.bf16.mxu1 %v926_v46  ;;  %v255_v44 = vld [vmem:[%s1210_s4 + $0x178] sm:$0xff]  ;;  %v919_v45 = vcombine.low %v242_v34, %v246_v35  ;;  %v921_v46 = vcombine.low %v243_v36, %v247_v37  ;;  %v936_v55 = vcombine.high %v258_v49, %v262_v50  ;;  %v266_v57 = vld [vmem:[%s1210_s4 + $0x1d0] sm:$0xff] }
  0x4b   : > { %v930_v48 = vcombine.high %v251_v43, %v255_v44  ;;  %v270_v58 = vld [vmem:[%s1210_s4 + $0x1f0] sm:$0xff] }
  0x4c   : > { %v944_v63 = vcombine.high %v266_v57, %v270_v58  ;;  %v943_v2 = vcombine.low %v266_v57, %v270_v58 }
  0x4d   : > { %603 = vmatpush1.bf16.msra.mxu0 %v923_v51  ;;  %644 = vmatpush1.bf16.msra.mxu1 %v925_v52  ;;  %v259_v51 = vld [vmem:[%s1210_s4 + $0x198] sm:$0xff] }
  0x4e   : > { %604 = vmatprep.subr.bf16.mxu0 %v932_v53  ;;  %645 = vmatprep.subr.bf16.mxu1 %v934_v54  ;;  %v263_v52 = vld [vmem:[%s1210_s4 + $0x1b8] sm:$0xff]  ;;  %v927_v53 = vcombine.low %v250_v41, %v254_v42  ;;  %v929_v54 = vcombine.low %v251_v43, %v255_v44 }
  0x4f   : > { %v938_v56 = vcombine.high %v259_v51, %v263_v52 }
  0x51   : > { %605 = vmatpush1.bf16.msra.mxu0 %v931_v59  ;;  %646 = vmatpush1.bf16.msra.mxu1 %v933_v60  ;;  %v267_v59 = vld [vmem:[%s1210_s4 + $0x1d8] sm:$0xff] }
  0x52   : > { %606 = vmatprep.subr.bf16.mxu0 %v940_v61  ;;  %647 = vmatprep.subr.bf16.mxu1 %v942_v62  ;;  %v271_v60 = vld [vmem:[%s1210_s4 + $0x1f8] sm:$0xff]  ;;  %v935_v61 = vcombine.low %v258_v49, %v262_v50  ;;  %v937_v62 = vcombine.low %v259_v51, %v263_v52 }
  0x53   : > { %v946_v1 = vcombine.high %v267_v59, %v271_v60  ;;  %v945_v3 = vcombine.low %v267_v59, %v271_v60 }
  0x55   : > { %607 = vmatpush1.bf16.msra.mxu0 %v939_v4  ;;  %648 = vmatpush1.bf16.msra.mxu1 %v941_v6 }
  0x56   : > { %674 = vmatprep.subr.bf16.mxu0 %v888_v7  ;;  %715 = vmatprep.subr.bf16.mxu1 %v890_v8 }
  0x58   : > { %625 = vmatmul.mubr.bf16.vlgmr.msra.gmra.mrb[0].mxu0 %v1259_v11  ;;  %666 = vmatmul.mubr.bf16.vlgmr.msra.gmra.mrb[0].mxu1 %v1259_v11 }
  0x59   : > { %675 = vmatpush1.bf16.msra.mxu0 %v887_v14  ;;  %716 = vmatpush1.bf16.msra.mxu1 %v889_v15 }
  0x5a   : > { %676 = vmatprep.subr.bf16.mxu0 %v896_v16  ;;  %717 = vmatprep.subr.bf16.mxu1 %v898_v17 }
  0x5b   : > { %706 = vmatprep.mubr.bf16.mxu0 %v1095_v0  ;;  %747 = vmatprep.mubr.bf16.mxu1 %v1095_v0  ;;  %v913_v0 = vcombine.low %v235_v28, %v239_v29 }
  0x5d   : > { %677 = vmatpush1.bf16.msra.mxu0 %v895_v22  ;;  %718 = vmatpush1.bf16.msra.mxu1 %v897_v23 }
  0x5e   : > { %678 = vmatprep.subr.bf16.mxu0 %v904_v24  ;;  %719 = vmatprep.subr.bf16.mxu1 %v906_v25 }
  0x61   : > { %679 = vmatpush1.bf16.msra.mxu0 %v903_v30  ;;  %720 = vmatpush1.bf16.msra.mxu1 %v905_v31 }
  0x62   : > { %680 = vmatprep.subr.bf16.mxu0 %v912_v32  ;;  %721 = vmatprep.subr.bf16.mxu1 %v914_v33 }
  0x65   : > { %681 = vmatpush1.bf16.msra.mxu0 %v911_v38  ;;  %722 = vmatpush1.bf16.msra.mxu1 %v913_v0 }
  0x66   : > { %682 = vmatprep.subr.bf16.mxu0 %v920_v39  ;;  %723 = vmatprep.subr.bf16.mxu1 %v922_v40 }
  0x69   : > { %683 = vmatpush1.bf16.msra.mxu0 %v919_v45  ;;  %724 = vmatpush1.bf16.msra.mxu1 %v921_v46 }
  0x6a   : > { %684 = vmatprep.subr.bf16.mxu0 %v928_v47  ;;  %725 = vmatprep.subr.bf16.mxu1 %v930_v48 }
  0x6d   : > { %685 = vmatpush1.bf16.msra.mxu0 %v927_v53  ;;  %726 = vmatpush1.bf16.msra.mxu1 %v929_v54 }
  0x6e   : > { %686 = vmatprep.subr.bf16.mxu0 %v936_v55  ;;  %727 = vmatprep.subr.bf16.mxu1 %v938_v56 }
  0x71   : > { %687 = vmatpush1.bf16.msra.mxu0 %v935_v61  ;;  %728 = vmatpush1.bf16.msra.mxu1 %v937_v62 }
  0x72   : > { %688 = vmatprep.subr.bf16.mxu0 %v944_v63  ;;  %729 = vmatprep.subr.bf16.mxu1 %v946_v1 }
  0x75   : > { %689 = vmatpush1.bf16.msra.mxu0 %v943_v2  ;;  %730 = vmatpush1.bf16.msra.mxu1 %v945_v3 }
  0x78   : > { %707 = vmatmul.mubr.bf16.vlgmr.msra.gmra.mrb[4].mxu0 %v1259_v11  ;;  %748 = vmatmul.mubr.bf16.vlgmr.msra.gmra.mrb[4].mxu1 %v1259_v11 }
 0x12b   : > { %v626_v4 = vpop.f32.mrb[0].mxu0  ;;  %v667_v5 = vpop.f32.mrb[0].mxu1 }
 0x12c   : > { %756 = vst [vmem:[%s203_s6] sm:$0xff] %v626_v4  ;;  %v628_v6 = vpop.f32.mrb[1].mxu0  ;;  %758 = vst [vmem:[%s203_s6 + $0x10] sm:$0xff] %v667_v5  ;;  %v669_v7 = vpop.f32.mrb[1].mxu1 }
 0x12d   : > { %757 = vst [vmem:[%s203_s6 + $0x8] sm:$0xff] %v628_v6  ;;  %v630_v8 = vpop.f32.mrb[2].mxu0  ;;  %759 = vst [vmem:[%s203_s6 + $0x18] sm:$0xff] %v669_v7  ;;  %v671_v9 = vpop.f32.mrb[2].mxu1 }
 0x12e   : > { %v631_v10 = vpop.f32.mrb[3].mxu0  ;;  %v672_v11 = vpop.f32.mrb[3].mxu1 }
 0x14b   : > { %v708_v12 = vpop.f32.mrb[4].mxu0  ;;  %v749_v13 = vpop.f32.mrb[4].mxu1 }
 0x14c   : > { %760 = vst [vmem:[%s203_s6 + $0x20] sm:$0xff] %v708_v12  ;;  %v710_v14 = vpop.f32.mrb[5].mxu0  ;;  %762 = vst [vmem:[%s203_s6 + $0x30] sm:$0xff] %v749_v13  ;;  %v751_v15 = vpop.f32.mrb[5].mxu1 }
 0x14d   : > { %761 = vst [vmem:[%s203_s6 + $0x28] sm:$0xff] %v710_v14  ;;  %v712_v16 = vpop.f32.mrb[6].mxu0  ;;  %763 = vst [vmem:[%s203_s6 + $0x38] sm:$0xff] %v751_v15  ;;  %v753_v17 = vpop.f32.mrb[6].mxu1 }
 0x14e   : > { %v713_v18 = vpop.f32.mrb[7].mxu0  ;;  %v754_v19 = vpop.f32.mrb[7].mxu1 }
 0x14f PF: > { %s15_s14 = sadd.s32 1, %s1089_s14   ;;  %s1322_s9 = smov %s1073_s10 }
 0x150   : > { %p12_p9 = scmp.ge.s32.totalorder %s15_s14, 10   ;;  %s1323_s10 = smov %s1077_s11 }
 0x151   : > { %s1324_s11 = smov %s1160_s21  ;;  %s1325_s12 = smov %s1085_s13 }
 0x152   : > { %s1326_s13 = smov %s1328_s16  ;;  %14 = sbr.rel (!%p12_p9) target bundleno = 4 (0x4), region = 71 }
 0x159   :  { %794 = vsyncpa [#allocation3], 1 }
 0x15a   :  { %796 = vsyncpa [#allocation3 + $0x1], 1 }

// kernel: generator_forward.11
= control target key start
LH: loop header
LB: loop body
LE: loop exit
PB: predicated region body
PF: predicated region fallthrough
CT: control target
= control target key end

     0   :  { %9 = vsyncpa [#allocation3], 0  ;;  %s3683_s0 = inlined_call_operand.vmem [shape: f32[32,512], index: 0, kind: input, shape index: {}]   ;;  %s3684_s1 = inlined_call_operand.vmem [shape: f32[1,512], index: 1, kind: input, shape index: {}]   ;;  %s3685_s2 = inlined_call_operand.vmem [shape: f32[1,512], index: 2, kind: input, shape index: {}]   ;;  %s3686_s3 = inlined_call_operand.hbm [shape: bf16[512,4096], index: 3, kind: input, shape index: {}]   ;;  %s3687_s4 = inlined_call_operand.vmem [shape: f32[32,4096], index: 4, kind: output, shape index: {}]  }
   0x1   :  { %11 = vsyncpa [#allocation3 + $0x1], 0  ;;  %s3017_s15 = smov 0   ;;  %s3019_s16 = smov 0  }
   0x2   :  { %s3021_s17 = smov 0   ;;  %s3023_s18 = smov 0  }
   0x3   :  { %s3025_s19 = smov 0   ;;  %s3027_s20 = smov 0  }
   0x4 LB: > { %s2542_s21 = sadd.s32 4294967295, %s2986_s20   ;;  %s26_s22 = sadd.s32 1, %s2982_s19  ;;  %s2986_s20 = sphi %s3027_s20, %s17_s20   ;;  %s2982_s19 = sphi %s3025_s19, %s3698_s19   ;;  %s2978_s18 = sphi %s3023_s18, %s3697_s18   ;;  %s2974_s17 = sphi %s3021_s17, %s3696_s17   ;;  %s2970_s16 = sphi %s3019_s16, %s3695_s16   ;;  %s2966_s15 = sphi %s3017_s15, %s3694_s15  }
   0x5   : > { %p27_p0 = scmp.ge.s32.totalorder %s26_s22, 4  ;;  %s104_s23 = sadd.s32 1, %s2974_s17 }
   0x6   : > { %p111_p1 = scmp.ne.s32.totalorder %s2974_s17, %s2970_s16  ;;  %p112_p2 = scmp.eq.s32.totalorder %s2986_s20, 0 }
   0x7   : > { %s3700_s22 = smov (%p27_p0, %s26_s22), 0  ;;  %p117_p4 = scmp.ne.s32.totalorder %s2970_s16, %s2966_s15 }
   0x8   : > { %p3053_p3 = por %p112_p2, %p111_p1  ;;  %s101_s25 = ssub.s32 %s2982_s19, %s3700_s22 }
   0x9   : > { %p118_p5 = scmp.eq.s32.totalorder %s2542_s21, 0  ;;  %p102_p6 = scmp.eq.s32.totalorder %s101_s25, 0 }
   0xa   : > { %p143_p7 = scmp.eq.s32.totalorder %s2542_s21, 3  ;;  %p2854_p10 = scmp.lt.s32.totalorder %s2986_s20, 4 }
   0xb   : > { %p3060_p8 = por %p118_p5, %p117_p4  ;;  %s185_s29 = sand.u32 1, %s2974_s17  }
   0xc   : > { %s3065_s27 = scalar_select %p102_p6, %s2974_s17, %s104_s23  }
   0xd   : > { %p3067_p9 = por %p143_p7, %p111_p1  ;;  %s2814_s30 = sshll.u32 %s2982_s19, 9 }
   0xe   : > { %s2547_s5 = sshll.u32 %s185_s29, 11  ;;  %s3077_s8 = scalar_lea.hbm %s3686_s3, %s2814_s30 }
   0xf   : > { %s3690_s28 = scalar_select %p3067_p9, 1, 0 }
  0x10   : > { %s189_s9 = scalar_lea.vmem [#allocation2], %s2547_s5  ;;  %p3081_p11 = pnand %p2854_p10, %p3053_p3 }
  0x11   : > { %s196_s10 = sshll.u32 %s189_s9, 4  ;;  %s3088_s12 = scalar_lea.sflag [#allocation3], %s185_s29  ;;  %s3085_s10 = int_to_ptr.vmem [resolvable:$true] %s196_s10 }
  0x12   : > { %s2906_s13 = scalar_lea.hbm %s3077_s8, 32768  ;;  %p2908_p0 = pneg %p3081_p11 }
  0x13   : > { %p2907_p13 = scmp.ne.s32.totalorder %s3077_s8, %s2906_s13  ;;  %s2911_s21 = scalar_lea.hbm %s3686_s3, 131072 }
  0x14   : > { %p2912_p3 = scmp.lt.u32.totalorder %s3077_s8, %s3686_s3  ;;  %p2913_p4 = scmp.lt.u32.totalorder %s2911_s21, %s2906_s13 }
  0x15   : > { %p2909_p1 = pnand %p2908_p0, %p2907_p13  ;;  %p2915_p6 = scmp.lt.u32.totalorder %s2906_s13, %s3077_s8 }
  0x16   : > { %p2914_p5 = por %p2913_p4, %p2912_p3 }
  0x17   : > { %p2910_p2 = pneg %p2909_p1 }
  0x18   : > { %p2916_p7 = por %p2915_p6, %p2914_p5 }
  0x1a   : > { %p2917_p10 = pnand %p2916_p7, %p2910_p2 }
  0x1c   : > { %2920 = shalt.err (!%p2917_p10)
}
  0x1d   : > { %s2921_s25 = scalar_lea.vmem %s3085_s10, 32768  ;;  %s2988_s29 = smov [#allocation2]  }
  0x1e   : > { %p2922_p13 = scmp.ne.s32.totalorder %s3085_s10, %s2921_s25  ;;  %s2926_s30 = sshll.u32 %s2988_s29, 4  ;;  %s2927_s30 = int_to_ptr.vmem [resolvable:$false] %s2926_s30 }
  0x1f   : > { %s2928_s5 = scalar_lea.vmem %s2927_s30, 65536  ;;  %p2929_p9 = scmp.lt.s32.totalorder %s3085_s10, %s2927_s30 }
  0x20   : > { %p2924_p1 = pnand %p2922_p13, %p2908_p0  ;;  %p2930_p3 = scmp.lt.s32.totalorder %s2928_s5, %s2921_s25 }
  0x22   : > { %p2925_p12 = pneg %p2924_p1  ;;  %p2931_p4 = por %p2930_p3, %p2929_p9 }
  0x24   : > { %p2932_p5 = pnand %p2931_p4, %p2925_p12 }
  0x26   : > { %2935 = shalt.err (!%p2932_p5)
}
  0x27   : > { %s2989_s6 = smov 2048   ;;  %s2990_s7 = smov 512  }
  0x28   : > { %s2991_s9 = smov 32   ;;  %p204_p0 = scmp.lt.s32.totalorder %s2986_s20, 5 }
  0x29   : > { %2853 = dma.hbm_to_vmem [thread:$0]  (!%p3081_p11), %s3077_s8, 32768, %s3085_s10, %s3088_s12, %s2989_s6, %s2990_s7, %s2991_s9  }
  0x2a   : > { %p3692_p2 = scmp.ge.s32.totalorder %s2986_s20, 1 }
  0x2c   : > { %p205_p6 = pnand %p3692_p2, %p204_p0 }
  0x2d   : > { %s3120_s13 = sand.u32 (!%p205_p6), 1, %s2970_s16  }
  0x2e   : > { %208 = sbr.rel (%p205_p6) target bundleno = 546 (0x222), region = 36  ;;  %s2551_s14 = sshll.u32 (!%p205_p6), %s3120_s13, 11 }
  0x2f   : > { %s211_s15 = scalar_lea.sflag (!%p205_p6), [#allocation3], %s3120_s13  ;;  %s3124_s21 = scalar_lea.vmem (!%p205_p6), [#allocation2], %s2551_s14 }
  0x35   : > { %2961 = dma.done.wait (%p3060_p8), %s211_s15, 32768  }
  0x36   : > { %2963 = vsyncadd (%p3060_p8), %s211_s15, 4294934528  ;;  %v370_v0 = vld [vmem:[%s3124_s21] sm:$0xff]  ;;  %v371_v2 = vld [vmem:[%s3124_s21 + $0x8] sm:$0xff]  ;;  %v272_v34 = vlaneseq  ;;  %p3693_p8 = scmp.ne.s32.totalorder %s3690_s28, 0 }
  0x37   : > { %v374_v1 = vld [vmem:[%s3124_s21 + $0x20] sm:$0xff]  ;;  %v375_v4 = vld [vmem:[%s3124_s21 + $0x28] sm:$0xff] }
  0x38   : > { %v2554_v3 = vcombine.high %v370_v0, %v374_v1  ;;  %v2553_v5 = vcombine.low %v370_v0, %v374_v1  ;;  %v378_v6 = vld [vmem:[%s3124_s21 + $0x40] sm:$0xff]  ;;  %v2556_v8 = vcombine.high %v371_v2, %v375_v4  ;;  %v2555_v9 = vcombine.low %v371_v2, %v375_v4  ;;  %v379_v11 = vld [vmem:[%s3124_s21 + $0x48] sm:$0xff] }
  0x39   : > { %v382_v7 = vld [vmem:[%s3124_s21 + $0x60] sm:$0xff]  ;;  %v383_v12 = vld [vmem:[%s3124_s21 + $0x68] sm:$0xff]  ;;  %v3154_v43 = vshrl.u32 %v272_v34, 7 }
  0x3a   : > { %v2562_v10 = vcombine.high %v378_v6, %v382_v7  ;;  %v386_v13 = vld [vmem:[%s3124_s21 + $0x80] sm:$0xff]  ;;  %1906 = vmatprep.subr.bf16.mxu0 %v2554_v3  ;;  %v2564_v14 = vcombine.high %v379_v11, %v383_v12  ;;  %v387_v16 = vld [vmem:[%s3124_s21 + $0x88] sm:$0xff]  ;;  %2012 = vmatprep.subr.bf16.mxu1 %v2556_v8  ;;  %v2561_v18 = vcombine.low %v378_v6, %v382_v7 }
  0x3b   : > { %v390_v15 = vld [vmem:[%s3124_s21 + $0xa0] sm:$0xff]  ;;  %v391_v17 = vld [vmem:[%s3124_s21 + $0xa8] sm:$0xff]  ;;  %1907 = vmatpush1.bf16.msra.mxu0 %v2553_v5  ;;  %2013 = vmatpush1.bf16.msra.mxu1 %v2555_v9  ;;  %v2563_v19 = vcombine.low %v379_v11, %v383_v12  ;;  %v278_v52 = vsub.s32 1, %v3154_v43 }
  0x3c   : > { %1908 = vmatprep.subr.bf16.mxu0 %v2562_v10  ;;  %v2570_v20 = vcombine.high %v386_v13, %v390_v15  ;;  %2014 = vmatprep.subr.bf16.mxu1 %v2564_v14  ;;  %v2572_v21 = vcombine.high %v387_v16, %v391_v17  ;;  %v394_v22 = vld [vmem:[%s3124_s21 + $0xc0] sm:$0xff]  ;;  %v395_v24 = vld [vmem:[%s3124_s21 + $0xc8] sm:$0xff]  ;;  %v2569_v26 = vcombine.low %v386_v13, %v390_v15 }
  0x3d   : > { %v398_v23 = vld [vmem:[%s3124_s21 + $0xe0] sm:$0xff]  ;;  %v399_v25 = vld [vmem:[%s3124_s21 + $0xe8] sm:$0xff]  ;;  %v2571_v27 = vcombine.low %v387_v16, %v391_v17 }
  0x3e   : > { %v2578_v28 = vcombine.high %v394_v22, %v398_v23  ;;  %v2580_v29 = vcombine.high %v395_v24, %v399_v25  ;;  %v402_v30 = vld [vmem:[%s3124_s21 + $0x100] sm:$0xff]  ;;  %v403_v32 = vld [vmem:[%s3124_s21 + $0x108] sm:$0xff]  ;;  %v2577_v35 = vcombine.low %v394_v22, %v398_v23  ;;  %v2579_v36 = vcombine.low %v395_v24, %v399_v25 }
  0x3f   : > { %1909 = vmatpush1.bf16.msra.mxu0 %v2561_v18  ;;  %2015 = vmatpush1.bf16.msra.mxu1 %v2563_v19  ;;  %v406_v31 = vld [vmem:[%s3124_s21 + $0x120] sm:$0xff]  ;;  %v407_v33 = vld [vmem:[%s3124_s21 + $0x128] sm:$0xff] }
  0x40   : > { %1910 = vmatprep.subr.bf16.mxu0 %v2570_v20  ;;  %2016 = vmatprep.subr.bf16.mxu1 %v2572_v21  ;;  %v2586_v37 = vcombine.high %v402_v30, %v406_v31  ;;  %v2588_v38 = vcombine.high %v403_v32, %v407_v33  ;;  %v410_v39 = vld [vmem:[%s3124_s21 + $0x140] sm:$0xff]  ;;  %v411_v41 = vld [vmem:[%s3124_s21 + $0x148] sm:$0xff]  ;;  %v2585_v44 = vcombine.low %v402_v30, %v406_v31 }
  0x41   : > { %v414_v40 = vld [vmem:[%s3124_s21 + $0x160] sm:$0xff]  ;;  %v415_v42 = vld [vmem:[%s3124_s21 + $0x168] sm:$0xff]  ;;  %v2587_v45 = vcombine.low %v403_v32, %v407_v33 }
  0x42   : > { %v2594_v46 = vcombine.high %v410_v39, %v414_v40  ;;  %v2596_v47 = vcombine.high %v411_v41, %v415_v42  ;;  %v418_v48 = vld [vmem:[%s3124_s21 + $0x180] sm:$0xff]  ;;  %v419_v50 = vld [vmem:[%s3124_s21 + $0x188] sm:$0xff]  ;;  %v2593_v53 = vcombine.low %v410_v39, %v414_v40  ;;  %v2595_v54 = vcombine.low %v411_v41, %v415_v42 }
  0x43   : > { %1911 = vmatpush1.bf16.msra.mxu0 %v2569_v26  ;;  %2017 = vmatpush1.bf16.msra.mxu1 %v2571_v27  ;;  %v422_v49 = vld [vmem:[%s3124_s21 + $0x1a0] sm:$0xff]  ;;  %v423_v51 = vld [vmem:[%s3124_s21 + $0x1a8] sm:$0xff] }
  0x44   : > { %1912 = vmatprep.subr.bf16.mxu0 %v2578_v28  ;;  %2018 = vmatprep.subr.bf16.mxu1 %v2580_v29  ;;  %v2602_v55 = vcombine.high %v418_v48, %v422_v49  ;;  %v426_v56 = vld [vmem:[%s3124_s21 + $0x1c0] sm:$0xff]  ;;  %v255_v58 = vld [vmem:[%s3683_s0 + $0x8] sm:$0xff]  ;;  %v2604_v59 = vcombine.high %v419_v50, %v423_v51  ;;  %v2601_v3 = vcombine.low %v418_v48, %v422_v49 }
  0x45   : > { %v430_v57 = vld [vmem:[%s3124_s21 + $0x1e0] sm:$0xff]  ;;  %v259_v60 = vld [vmem:[%s3683_s0 + $0x28] sm:$0xff]  ;;  %v2603_v4 = vcombine.low %v419_v50, %v423_v51 }
  0x46   : > { %v3172_v61 = vld [vmem:[%s3684_s1] sm:$0xf]  ;;  %v427_v63 = vld [vmem:[%s3124_s21 + $0x1c8] sm:$0xff]  ;;  %v2610_v5 = vcombine.high %v426_v56, %v430_v57  ;;  %v2609_v15 = vcombine.low %v426_v56, %v430_v57 }
  0x47   : > { %1913 = vmatpush1.bf16.msra.mxu0 %v2577_v35  ;;  %2019 = vmatpush1.bf16.msra.mxu1 %v2579_v36  ;;  %v3177_v62 = vld [vmem:[%s3685_s2] sm:$0xf]  ;;  %v431_v0 = vld [vmem:[%s3124_s21 + $0x1e8] sm:$0xff]  ;;  %v3182_v1 = vrot.slane %v3172_v61, %v278_v52 }
  0x48   : > { %1914 = vmatprep.subr.bf16.mxu0 %v2586_v37  ;;  %2020 = vmatprep.subr.bf16.mxu1 %v2588_v38  ;;  %v3185_v2 = vrot.slane %v3177_v62, %v278_v52  ;;  %v2612_v8 = vcombine.high %v427_v63, %v431_v0  ;;  %v434_v9 = vld [vmem:[%s3124_s21 + $0x200] sm:$0xff]  ;;  %v435_v11 = vld [vmem:[%s3124_s21 + $0x208] sm:$0xff]  ;;  %v2611_v16 = vcombine.low %v427_v63, %v431_v0 }
  0x49   : > { %v293_v6 = vmul.f32 %v3182_v1, %v255_v58  ;;  %v297_v7 = vmul.f32 %v3182_v1, %v259_v60  ;;  %v438_v10 = vld [vmem:[%s3124_s21 + $0x220] sm:$0xff]  ;;  %v439_v12 = vld [vmem:[%s3124_s21 + $0x228] sm:$0xff] }
  0x4a   : > { %v2618_v17 = vcombine.high %v434_v9, %v438_v10  ;;  %v2620_v20 = vcombine.high %v435_v11, %v439_v12  ;;  %v442_v21 = vld [vmem:[%s3124_s21 + $0x240] sm:$0xff]  ;;  %v443_v23 = vld [vmem:[%s3124_s21 + $0x248] sm:$0xff]  ;;  %v2617_v26 = vcombine.low %v434_v9, %v438_v10  ;;  %v2619_v27 = vcombine.low %v435_v11, %v439_v12 }
  0x4b   : > { %1915 = vmatpush1.bf16.msra.mxu0 %v2585_v44  ;;  %2021 = vmatpush1.bf16.msra.mxu1 %v2587_v45  ;;  %v331_v13 = vadd.f32 %v3185_v2, %v293_v6  ;;  %v335_v14 = vadd.f32 %v3185_v2, %v297_v7  ;;  %v446_v22 = vld [vmem:[%s3124_s21 + $0x260] sm:$0xff]  ;;  %v447_v24 = vld [vmem:[%s3124_s21 + $0x268] sm:$0xff]  ;;  %v282_v44 = vsub.s32 2, %v3154_v43  ;;  %v260_v6 = vld [vmem:[%s3683_s0 + $0x30] sm:$0xff] }
  0x4c   : > { %1916 = vmatprep.subr.bf16.mxu0 %v2594_v46  ;;  %2022 = vmatprep.subr.bf16.mxu1 %v2596_v47  ;;  %v2626_v28 = vcombine.high %v442_v21, %v446_v22  ;;  %v2628_v29 = vcombine.high %v443_v23, %v447_v24  ;;  %v450_v30 = vld [vmem:[%s3124_s21 + $0x280] sm:$0xff]  ;;  %v451_v32 = vld [vmem:[%s3124_s21 + $0x288] sm:$0xff]  ;;  %v2625_v34 = vcombine.low %v442_v21, %v446_v22  ;;  %v274_v47 = vsub.s32 0, %v3154_v43 }
  0x4d   : > { %v347_v18 = vmax.f32 %v331_v13, 0.0  ;;  %v351_v19 = vmax.f32 %v335_v14, 0.0  ;;  %v454_v31 = vld [vmem:[%s3124_s21 + $0x2a0] sm:$0xff]  ;;  %v455_v33 = vld [vmem:[%s3124_s21 + $0x2a8] sm:$0xff]  ;;  %v2627_v35 = vcombine.low %v443_v23, %v447_v24 }
  0x4e   : > { %v2634_v36 = vcombine.high %v450_v30, %v454_v31  ;;  %v2636_v37 = vcombine.high %v451_v32, %v455_v33  ;;  %v458_v38 = vld [vmem:[%s3124_s21 + $0x2c0] sm:$0xff]  ;;  %v459_v40 = vld [vmem:[%s3124_s21 + $0x2c8] sm:$0xff]  ;;  %v2633_v42 = vcombine.low %v450_v30, %v454_v31  ;;  %v2635_v45 = vcombine.low %v451_v32, %v455_v33  ;;  %v268_v30 = vld [vmem:[%s3683_s0 + $0x70] sm:$0xff] }
  0x4f   : > { %1917 = vmatpush1.bf16.msra.mxu0 %v2593_v53  ;;  %2023 = vmatpush1.bf16.msra.mxu1 %v2595_v54  ;;  %v3199_v25 = vpack.c.bf16 %v351_v19, %v347_v18  ;;  %v462_v39 = vld [vmem:[%s3124_s21 + $0x2e0] sm:$0xff]  ;;  %v463_v41 = vld [vmem:[%s3124_s21 + $0x2e8] sm:$0xff]  ;;  %v283_v54 = vrot.slane %v3172_v61, %v282_v44  ;;  %v3238_v10 = vrot.slane %v3177_v62, %v274_v47 }
  0x50   : > { %1918 = vmatprep.subr.bf16.mxu0 %v2602_v55  ;;  %2024 = vmatprep.subr.bf16.mxu1 %v2604_v59  ;;  %v2642_v46 = vcombine.high %v458_v38, %v462_v39  ;;  %v2644_v48 = vcombine.high %v459_v40, %v463_v41  ;;  %v466_v49 = vld [vmem:[%s3124_s21 + $0x300] sm:$0xff]  ;;  %v467_v51 = vld [vmem:[%s3124_s21 + $0x308] sm:$0xff]  ;;  %v2641_v53 = vcombine.low %v458_v38, %v462_v39 }
  0x51   : > { %1938 = vmatprep.mubr.bf16.mxu0 %v3199_v25  ;;  %2044 = vmatprep.mubr.bf16.mxu1 %v3199_v25  ;;  %v470_v50 = vld [vmem:[%s3124_s21 + $0x320] sm:$0xff]  ;;  %v471_v52 = vld [vmem:[%s3124_s21 + $0x328] sm:$0xff]  ;;  %v2643_v55 = vcombine.low %v459_v40, %v463_v41  ;;  %v3221_v59 = vrot.slane %v3172_v61, %v274_v47  ;;  %v298_v19 = vmul.f32 %v283_v54, %v260_v6  ;;  %v261_v6 = vld [vmem:[%s3683_s0 + $0x38] sm:$0xff] }
  0x52   : > { %v2650_v56 = vcombine.high %v466_v49, %v470_v50  ;;  %v474_v57 = vld [vmem:[%s3124_s21 + $0x340] sm:$0xff]  ;;  %v2652_v60 = vcombine.high %v467_v51, %v471_v52  ;;  %v2649_v7 = vcombine.low %v466_v49, %v470_v50  ;;  %v487_v18 = vld [vmem:[%s3124_s21 + $0x3a8] sm:$0xff] }
  0x53   : > { %1919 = vmatpush1.bf16.msra.mxu0 %v2601_v3  ;;  %2025 = vmatpush1.bf16.msra.mxu1 %v2603_v4  ;;  %v478_v58 = vld [vmem:[%s3124_s21 + $0x360] sm:$0xff]  ;;  %v256_v3 = vld [vmem:[%s3683_s0 + $0x10] sm:$0xff]  ;;  %v475_v4 = vld [vmem:[%s3124_s21 + $0x348] sm:$0xff] }
  0x54   : > { %1920 = vmatprep.subr.bf16.mxu0 %v2610_v5  ;;  %2026 = vmatprep.subr.bf16.mxu1 %v2612_v8  ;;  %v254_v63 = vld [vmem:[%s3683_s0] sm:$0xff]  ;;  %v479_v5 = vld [vmem:[%s3124_s21 + $0x368] sm:$0xff]  ;;  %v2651_v8 = vcombine.low %v467_v51, %v471_v52  ;;  %v2658_v9 = vcombine.high %v474_v57, %v478_v58  ;;  %v2657_v21 = vcombine.low %v474_v57, %v478_v58 }
  0x55   : > { %v258_v0 = vld [vmem:[%s3683_s0 + $0x20] sm:$0xff]  ;;  %v292_v13 = vmul.f32 %v3221_v59, %v254_v63  ;;  %v263_v22 = vld [vmem:[%s3683_s0 + $0x48] sm:$0xff]  ;;  %v2659_v24 = vcombine.low %v475_v4, %v479_v5 }
  0x56   : > { %v3241_v11 = vld [vmem:[%s3124_s21 + $0x380] sm:$0xff]  ;;  %v296_v14 = vmul.f32 %v3221_v59, %v258_v0  ;;  %v267_v23 = vld [vmem:[%s3683_s0 + $0x68] sm:$0xff]  ;;  %v301_v39 = vmul.f32 %v3182_v1, %v263_v22 }
  0x57   : > { %1921 = vmatpush1.bf16.msra.mxu0 %v2609_v15  ;;  %2027 = vmatpush1.bf16.msra.mxu1 %v2611_v16  ;;  %v3244_v12 = vld [vmem:[%s3124_s21 + $0x3a0] sm:$0xff]  ;;  %v294_v15 = vmul.f32 %v283_v54, %v256_v3  ;;  %v2660_v16 = vcombine.high %v475_v4, %v479_v5  ;;  %v495_v38 = vld [vmem:[%s3124_s21 + $0x3e8] sm:$0xff]  ;;  %v305_v40 = vmul.f32 %v3182_v1, %v267_v23  ;;  %v257_v5 = vld [vmem:[%s3683_s0 + $0x18] sm:$0xff] }
  0x58   : > { %1922 = vmatprep.subr.bf16.mxu0 %v2618_v17  ;;  %2028 = vmatprep.subr.bf16.mxu1 %v2620_v20  ;;  %v3249_v17 = vld [vmem:[%s3124_s21 + $0x388] sm:$0xff]  ;;  %v321_v20 = vrot.slane %v3177_v62, %v282_v44  ;;  %v3269_v32 = vld [vmem:[%s3124_s21 + $0x3c0] sm:$0xff] }
  0x59   : > { %v2668_v31 = vcombine.high %v3249_v17, %v487_v18  ;;  %v494_v33 = vld [vmem:[%s3124_s21 + $0x3e0] sm:$0xff]  ;;  %v503_v57 = vld [vmem:[%s3124_s21 + $0x428] sm:$0xff]  ;;  %v343_v63 = vadd.f32 %v3185_v2, %v305_v40 }
  0x5a   : > { %v2674_v47 = vcombine.high %v3269_v32, %v494_v33  ;;  %v266_v1 = vld [vmem:[%s3683_s0 + $0x60] sm:$0xff] }
  0x5b   : > { %1923 = vmatpush1.bf16.msra.mxu0 %v2617_v26  ;;  %2029 = vmatpush1.bf16.msra.mxu1 %v2619_v27  ;;  %v2666_v26 = vcombine.high %v3241_v11, %v3244_v12  ;;  %v332_v27 = vadd.f32 %v321_v20, %v294_v15  ;;  %v498_v51 = vld [vmem:[%s3124_s21 + $0x400] sm:$0xff]  ;;  %v304_v4 = vmul.f32 %v3221_v59, %v266_v1 }
  0x5c   : > { %1924 = vmatprep.subr.bf16.mxu0 %v2626_v28  ;;  %2030 = vmatprep.subr.bf16.mxu1 %v2628_v29  ;;  %v336_v28 = vadd.f32 %v321_v20, %v298_v19  ;;  %v264_v29 = vld [vmem:[%s3683_s0 + $0x50] sm:$0xff]  ;;  %v502_v52 = vld [vmem:[%s3124_s21 + $0x420] sm:$0xff] }
  0x5d   : > { %v348_v41 = vmax.f32 %v332_v27, 0.0  ;;  %v302_v44 = vmul.f32 %v283_v54, %v264_v29  ;;  %v342_v22 = vadd.f32 %v3238_v10, %v304_v4  ;;  %v2681_v23 = vcombine.low %v498_v51, %v502_v52  ;;  %v518_v29 = vld [vmem:[%s3124_s21 + $0x4a0] sm:$0xff]  ;;  %v539_v4 = vld [vmem:[%s3124_s21 + $0x548] sm:$0xff] }
  0x5e   : > { %v522_v40 = vld [vmem:[%s3124_s21 + $0x4c0] sm:$0xff] }
  0x5f   : > { %1925 = vmatpush1.bf16.msra.mxu0 %v2625_v34  ;;  %2031 = vmatpush1.bf16.msra.mxu1 %v2627_v35  ;;  %v330_v34 = vadd.f32 %v3238_v10, %v292_v13  ;;  %v334_v35 = vadd.f32 %v3238_v10, %v296_v14  ;;  %v506_v13 = vld [vmem:[%s3124_s21 + $0x440] sm:$0xff] }
  0x60   : > { %1926 = vmatprep.subr.bf16.mxu0 %v2634_v36  ;;  %2032 = vmatprep.subr.bf16.mxu1 %v2636_v37  ;;  %v286_v36 = vsub.s32 3, %v3154_v43  ;;  %v491_v37 = vld [vmem:[%s3124_s21 + $0x3c8] sm:$0xff]  ;;  %v2667_v43 = vcombine.low %v3249_v17, %v487_v18  ;;  %v510_v14 = vld [vmem:[%s3124_s21 + $0x460] sm:$0xff] }
  0x61   : > { %v2676_v50 = vcombine.high %v491_v37, %v495_v38  ;;  %v350_v58 = vmax.f32 %v334_v35, 0.0  ;;  %v358_v35 = vmax.f32 %v342_v22, 0.0 }
  0x62   : > { %v3298_v0 = vrot.slane %v3172_v61, %v286_v36  ;;  %v2673_v61 = vcombine.low %v3269_v32, %v494_v33  ;;  %v519_v33 = vld [vmem:[%s3124_s21 + $0x4a8] sm:$0xff] }
  0x63   : > { %1927 = vmatpush1.bf16.msra.mxu0 %v2633_v42  ;;  %2033 = vmatpush1.bf16.msra.mxu1 %v2635_v45  ;;  %v352_v42 = vmax.f32 %v336_v28, 0.0  ;;  %v306_v45 = vmul.f32 %v283_v54, %v268_v30  ;;  %v340_v54 = vadd.f32 %v321_v20, %v302_v44  ;;  %v514_v28 = vld [vmem:[%s3124_s21 + $0x480] sm:$0xff] }
  0x64   : > { %1928 = vmatprep.subr.bf16.mxu0 %v2642_v46  ;;  %2034 = vmatprep.subr.bf16.mxu1 %v2644_v48  ;;  %v2665_v46 = vcombine.low %v3241_v11, %v3244_v12  ;;  %v262_v48 = vld [vmem:[%s3683_s0 + $0x40] sm:$0xff]  ;;  %v3310_v11 = vrot.slane %v3177_v62, %v286_v36  ;;  %v295_v17 = vmul.f32 %v3298_v0, %v257_v5  ;;  %v543_v5 = vld [vmem:[%s3124_s21 + $0x568] sm:$0xff] }
  0x65   : > { %v3289_v49 = vpack.c.bf16 %v352_v42, %v348_v41  ;;  %v300_v3 = vmul.f32 %v3221_v59, %v262_v48  ;;  %v299_v18 = vmul.f32 %v3298_v0, %v261_v6  ;;  %v2689_v36 = vcombine.low %v506_v13, %v510_v14  ;;  %v526_v41 = vld [vmem:[%s3124_s21 + $0x4e0] sm:$0xff] }
  0x66   : > { %v2706_v1 = vcombine.high %v522_v40, %v526_v41 }
  0x67   : > { %1929 = vmatpush1.bf16.msra.mxu0 %v2641_v53  ;;  %2035 = vmatpush1.bf16.msra.mxu1 %v2643_v55  ;;  %v346_v53 = vmax.f32 %v330_v34, 0.0  ;;  %v344_v55 = vadd.f32 %v321_v20, %v306_v45  ;;  %v507_v20 = vld [vmem:[%s3124_s21 + $0x448] sm:$0xff]  ;;  %v338_v62 = vadd.f32 %v3238_v10, %v300_v3  ;;  %v337_v32 = vadd.f32 %v3310_v11, %v299_v18  ;;  %v542_v3 = vld [vmem:[%s3124_s21 + $0x560] sm:$0xff] }
  0x68   : > { %1930 = vmatprep.subr.bf16.mxu0 %v2650_v56  ;;  %2036 = vmatprep.subr.bf16.mxu1 %v2652_v60  ;;  %v499_v56 = vld [vmem:[%s3124_s21 + $0x408] sm:$0xff]  ;;  %v339_v60 = vadd.f32 %v3185_v2, %v301_v39  ;;  %v2675_v2 = vcombine.low %v491_v37, %v495_v38  ;;  %v2698_v38 = vcombine.high %v514_v28, %v518_v29  ;;  %v554_v18 = vld [vmem:[%s3124_s21 + $0x5c0] sm:$0xff] }
  0x69   : > { %v2684_v59 = vcombine.high %v499_v56, %v503_v57  ;;  %v3318_v19 = vpack.c.bf16 %v350_v58, %v346_v53  ;;  %v515_v10 = vld [vmem:[%s3124_s21 + $0x488] sm:$0xff]  ;;  %v354_v34 = vmax.f32 %v338_v62, 0.0  ;;  %v353_v44 = vmax.f32 %v337_v32, 0.0 }
  0x6a   : > { %v355_v15 = vmax.f32 %v339_v60, 0.0  ;;  %v2700_v39 = vcombine.high %v515_v10, %v519_v33  ;;  %v523_v45 = vld [vmem:[%s3124_s21 + $0x4c8] sm:$0xff]  ;;  %v2699_v48 = vcombine.low %v515_v10, %v519_v33 }
  0x6b   : > { %1931 = vmatpush1.bf16.msra.mxu0 %v2649_v7  ;;  %2037 = vmatpush1.bf16.msra.mxu1 %v2651_v8  ;;  %v356_v7 = vmax.f32 %v340_v54, 0.0  ;;  %v360_v8 = vmax.f32 %v344_v55, 0.0  ;;  %v531_v54 = vld [vmem:[%s3124_s21 + $0x508] sm:$0xff] }
  0x6c   : > { %1932 = vmatprep.subr.bf16.mxu0 %v2658_v9  ;;  %2038 = vmatprep.subr.bf16.mxu1 %v2660_v16  ;;  %v2682_v9 = vcombine.high %v498_v51, %v502_v52  ;;  %v359_v16 = vmax.f32 %v343_v63, 0.0  ;;  %v530_v51 = vld [vmem:[%s3124_s21 + $0x500] sm:$0xff]  ;;  %v535_v55 = vld [vmem:[%s3124_s21 + $0x528] sm:$0xff] }
  0x6d   : > { %v3312_v12 = vpack.c.bf16 %v360_v8, %v356_v7  ;;  %v534_v52 = vld [vmem:[%s3124_s21 + $0x520] sm:$0xff]  ;;  %v2716_v60 = vcombine.high %v531_v54, %v535_v55  ;;  %v2715_v7 = vcombine.low %v531_v54, %v535_v55  ;;  %v559_v62 = vld [vmem:[%s3124_s21 + $0x5e8] sm:$0xff] }
  0x6e   : > { %v3326_v30 = vpack.c.bf16 %v359_v16, %v355_v15  ;;  %v2714_v58 = vcombine.high %v530_v51, %v534_v52  ;;  %v538_v63 = vld [vmem:[%s3124_s21 + $0x540] sm:$0xff]  ;;  %v2713_v6 = vcombine.low %v530_v51, %v534_v52  ;;  %v2723_v15 = vcombine.low %v539_v4, %v543_v5  ;;  %v587_v55 = vld [vmem:[%s3124_s21 + $0x6c8] sm:$0xff] }
  0x6f   : > { %1933 = vmatpush1.bf16.msra.mxu0 %v2657_v21  ;;  %2039 = vmatpush1.bf16.msra.mxu1 %v2659_v24  ;;  %v511_v21 = vld [vmem:[%s3124_s21 + $0x468] sm:$0xff]  ;;  %v2683_v24 = vcombine.low %v499_v56, %v503_v57  ;;  %v2705_v56 = vcombine.low %v522_v40, %v526_v41  ;;  %v2722_v8 = vcombine.high %v538_v63, %v542_v3  ;;  %v586_v52 = vld [vmem:[%s3124_s21 + $0x6c0] sm:$0xff] }
  0x70   : > { %1934 = vmatprep.subr.bf16.mxu0 %v2666_v26  ;;  %2040 = vmatprep.subr.bf16.mxu1 %v2668_v31  ;;  %v2690_v26 = vcombine.high %v506_v13, %v510_v14  ;;  %v2692_v27 = vcombine.high %v507_v20, %v511_v21  ;;  %v333_v31 = vadd.f32 %v3310_v11, %v295_v17  ;;  %v551_v13 = vld [vmem:[%s3124_s21 + $0x5a8] sm:$0xff]  ;;  %v590_v54 = vld [vmem:[%s3124_s21 + $0x6e0] sm:$0xff] }
  0x71   : > { %v2691_v37 = vcombine.low %v507_v20, %v511_v21  ;;  %v2721_v14 = vcombine.low %v538_v63, %v542_v3  ;;  %v558_v20 = vld [vmem:[%s3124_s21 + $0x5e0] sm:$0xff]  ;;  %v555_v21 = vld [vmem:[%s3124_s21 + $0x5c8] sm:$0xff] }
  0x72   : > { %v349_v42 = vmax.f32 %v333_v31, 0.0  ;;  %v567_v31 = vld [vmem:[%s3124_s21 + $0x628] sm:$0xff]  ;;  %v2737_v32 = vcombine.low %v554_v18, %v558_v20  ;;  %v2739_v10 = vcombine.low %v555_v21, %v559_v62  ;;  %v594_v3 = vld [vmem:[%s3124_s21 + $0x700] sm:$0xff] }
  0x73   : > { %1935 = vmatpush1.bf16.msra.mxu0 %v2665_v46  ;;  %2041 = vmatpush1.bf16.msra.mxu1 %v2667_v43  ;;  %v527_v46 = vld [vmem:[%s3124_s21 + $0x4e8] sm:$0xff]  ;;  %v3340_v43 = vpack.c.bf16 %v358_v35, %v354_v34  ;;  %v570_v35 = vld [vmem:[%s3124_s21 + $0x640] sm:$0xff] }
  0x74   : > { %1936 = vmatprep.subr.bf16.mxu0 %v2674_v47  ;;  %2042 = vmatprep.subr.bf16.mxu1 %v2676_v50  ;;  %v2697_v47 = vcombine.low %v514_v28, %v518_v29  ;;  %v2708_v50 = vcombine.high %v523_v45, %v527_v46  ;;  %v3344_v53 = vpack.c.bf16 %v353_v44, %v349_v42  ;;  %v566_v28 = vld [vmem:[%s3124_s21 + $0x620] sm:$0xff]  ;;  %v563_v29 = vld [vmem:[%s3124_s21 + $0x608] sm:$0xff] }
  0x75   : > { %v2707_v57 = vcombine.low %v523_v45, %v527_v46  ;;  %v2748_v34 = vcombine.high %v563_v29, %v567_v31  ;;  %v2747_v40 = vcombine.low %v563_v29, %v567_v31  ;;  %v578_v44 = vld [vmem:[%s3124_s21 + $0x680] sm:$0xff]  ;;  %v579_v46 = vld [vmem:[%s3124_s21 + $0x688] sm:$0xff] }
  0x76   : > { %v582_v45 = vld [vmem:[%s3124_s21 + $0x6a0] sm:$0xff] }
  0x77   : > { %1937 = vmatpush1.bf16.msra.mxu0 %v2673_v61  ;;  %2043 = vmatpush1.bf16.msra.mxu1 %v2675_v2  ;;  %v2724_v61 = vcombine.high %v539_v4, %v543_v5  ;;  %v546_v2 = vld [vmem:[%s3124_s21 + $0x580] sm:$0xff]  ;;  %v595_v5 = vld [vmem:[%s3124_s21 + $0x708] sm:$0xff] }
  0x78   : > { %1959 = vmatprep.subr.bf16.mxu0 %v2682_v9  ;;  %2065 = vmatprep.subr.bf16.mxu1 %v2684_v59  ;;  %v550_v9 = vld [vmem:[%s3124_s21 + $0x5a0] sm:$0xff]  ;;  %v547_v59 = vld [vmem:[%s3124_s21 + $0x588] sm:$0xff] }
  0x79   : > { %v2730_v16 = vcombine.high %v546_v2, %v550_v9  ;;  %v2732_v17 = vcombine.high %v547_v59, %v551_v13  ;;  %v2729_v22 = vcombine.low %v546_v2, %v550_v9  ;;  %v598_v4 = vld [vmem:[%s3124_s21 + $0x720] sm:$0xff] }
  0x7a   : > { %1939 = vmatmul.mubr.bf16.vlgmr.msra.gmra.mrb[0].mxu0 %v3318_v19  ;;  %2045 = vmatmul.mubr.bf16.vlgmr.msra.gmra.mrb[0].mxu1 %v3318_v19  ;;  %v602_v9 = vld [vmem:[%s3124_s21 + $0x740] sm:$0xff] }
  0x7b   : > { %1960 = vmatpush1.bf16.msra.mxu0 %v2681_v23  ;;  %2066 = vmatpush1.bf16.msra.mxu1 %v2683_v24  ;;  %v2731_v23 = vcombine.low %v547_v59, %v551_v13  ;;  %v2738_v24 = vcombine.high %v554_v18, %v558_v20  ;;  %v606_v59 = vld [vmem:[%s3124_s21 + $0x760] sm:$0xff]  ;;  %v603_v13 = vld [vmem:[%s3124_s21 + $0x748] sm:$0xff] }
  0x7c   : > { %1961 = vmatprep.subr.bf16.mxu0 %v2690_v26  ;;  %2067 = vmatprep.subr.bf16.mxu1 %v2692_v27  ;;  %v2740_v26 = vcombine.high %v555_v21, %v559_v62  ;;  %v562_v27 = vld [vmem:[%s3124_s21 + $0x600] sm:$0xff]  ;;  %v611_v62 = vld [vmem:[%s3124_s21 + $0x788] sm:$0xff] }
  0x7d   : > { %1948 = vmatprep.mubr.bf16.mxu0 %v3326_v30  ;;  %2054 = vmatprep.mubr.bf16.mxu1 %v3326_v30  ;;  %v2746_v33 = vcombine.high %v562_v27, %v566_v28  ;;  %v610_v20 = vld [vmem:[%s3124_s21 + $0x780] sm:$0xff] }
  0x7e   : > { %v614_v21 = vld [vmem:[%s3124_s21 + $0x7a0] sm:$0xff] }
  0x7f   : > { %1962 = vmatpush1.bf16.msra.mxu0 %v2689_v36  ;;  %2068 = vmatpush1.bf16.msra.mxu1 %v2691_v37  ;;  %v574_v36 = vld [vmem:[%s3124_s21 + $0x660] sm:$0xff]  ;;  %v571_v37 = vld [vmem:[%s3124_s21 + $0x648] sm:$0xff] }
  0x80   : > { %1963 = vmatprep.subr.bf16.mxu0 %v2698_v38  ;;  %2069 = vmatprep.subr.bf16.mxu1 %v2700_v39  ;;  %v575_v38 = vld [vmem:[%s3124_s21 + $0x668] sm:$0xff]  ;;  %v2745_v39 = vcombine.low %v562_v27, %v566_v28  ;;  %v2754_v41 = vcombine.high %v570_v35, %v574_v36  ;;  %v2794_v28 = vcombine.high %v610_v20, %v614_v21  ;;  %v618_v31 = vld [vmem:[%s3124_s21 + $0x7c0] sm:$0xff] }
  0x81   : > { %v2756_v42 = vcombine.high %v571_v37, %v575_v38 }
  0x82   : > { %1949 = vmatmul.mubr.bf16.gmra.mrb[4].mxu0 %v3340_v43  ;;  %2055 = vmatmul.mubr.bf16.gmra.mrb[4].mxu1 %v3340_v43 }
  0x83   : > { %1964 = vmatpush1.bf16.msra.mxu0 %v2697_v47  ;;  %2070 = vmatpush1.bf16.msra.mxu1 %v2699_v48  ;;  %v583_v47 = vld [vmem:[%s3124_s21 + $0x6a8] sm:$0xff]  ;;  %v2753_v48 = vcombine.low %v570_v35, %v574_v36  ;;  %v2793_v36 = vcombine.low %v610_v20, %v614_v21  ;;  %v404_v20 = vld [vmem:[%s3124_s21 + $0x110] sm:$0xff] }
  0x84   : > { %1965 = vmatprep.subr.bf16.mxu0 %v2706_v1  ;;  %2071 = vmatprep.subr.bf16.mxu1 %v2708_v50  ;;  %v2755_v1 = vcombine.low %v571_v37, %v575_v38  ;;  %v2762_v50 = vcombine.high %v578_v44, %v582_v45  ;;  %v2764_v51 = vcombine.high %v579_v46, %v583_v47  ;;  %v623_v35 = vld [vmem:[%s3124_s21 + $0x7e8] sm:$0xff]  ;;  %v408_v21 = vld [vmem:[%s3124_s21 + $0x130] sm:$0xff] }
  0x85   : > { %1991 = vmatprep.mubr.bf16.mxu0 %v3344_v53  ;;  %2097 = vmatprep.mubr.bf16.mxu1 %v3344_v53 }
  0x87   : > { %1966 = vmatpush1.bf16.msra.mxu0 %v2705_v56  ;;  %2072 = vmatpush1.bf16.msra.mxu1 %v2707_v57  ;;  %v591_v56 = vld [vmem:[%s3124_s21 + $0x6e8] sm:$0xff]  ;;  %v2761_v57 = vcombine.low %v578_v44, %v582_v45  ;;  %v373_v44 = vld [vmem:[%s3124_s21 + $0x18] sm:$0xff] }
  0x88   : > { %1967 = vmatprep.subr.bf16.mxu0 %v2714_v58  ;;  %2073 = vmatprep.subr.bf16.mxu1 %v2716_v60  ;;  %v2763_v58 = vcombine.low %v579_v46, %v583_v47  ;;  %v2770_v60 = vcombine.high %v586_v52, %v590_v54  ;;  %v2772_v63 = vcombine.high %v587_v55, %v591_v56  ;;  %v377_v45 = vld [vmem:[%s3124_s21 + $0x38] sm:$0xff] }
  0x8b   : > { %1968 = vmatpush1.bf16.msra.mxu0 %v2713_v6  ;;  %2074 = vmatpush1.bf16.msra.mxu1 %v2715_v7  ;;  %v599_v6 = vld [vmem:[%s3124_s21 + $0x728] sm:$0xff]  ;;  %v2769_v7 = vcombine.low %v586_v52, %v590_v54 }
  0x8c   : > { %1969 = vmatprep.subr.bf16.mxu0 %v2722_v8  ;;  %2075 = vmatprep.subr.bf16.mxu1 %v2724_v61  ;;  %v2771_v8 = vcombine.low %v587_v55, %v591_v56  ;;  %v2778_v61 = vcombine.high %v594_v3, %v598_v4  ;;  %v2780_v2 = vcombine.high %v595_v5, %v599_v6  ;;  %v385_v55 = vld [vmem:[%s3124_s21 + $0x78] sm:$0xff] }
  0x8f   : > { %1970 = vmatpush1.bf16.msra.mxu0 %v2721_v14  ;;  %2076 = vmatpush1.bf16.msra.mxu1 %v2723_v15  ;;  %v607_v14 = vld [vmem:[%s3124_s21 + $0x768] sm:$0xff]  ;;  %v2777_v15 = vcombine.low %v594_v3, %v598_v4  ;;  %v388_v3 = vld [vmem:[%s3124_s21 + $0x90] sm:$0xff] }
  0x90   : > { %1971 = vmatprep.subr.bf16.mxu0 %v2730_v16  ;;  %2077 = vmatprep.subr.bf16.mxu1 %v2732_v17  ;;  %v2779_v16 = vcombine.low %v595_v5, %v599_v6  ;;  %v2786_v17 = vcombine.high %v602_v9, %v606_v59  ;;  %v2788_v18 = vcombine.high %v603_v13, %v607_v14  ;;  %v392_v4 = vld [vmem:[%s3124_s21 + $0xb0] sm:$0xff]  ;;  %v389_v5 = vld [vmem:[%s3124_s21 + $0x98] sm:$0xff] }
  0x91   : > { %v2787_v27 = vcombine.low %v603_v13, %v607_v14  ;;  %v393_v6 = vld [vmem:[%s3124_s21 + $0xb8] sm:$0xff] }
  0x92   : > { %v397_v13 = vld [vmem:[%s3124_s21 + $0xd8] sm:$0xff] }
  0x93   : > { %1972 = vmatpush1.bf16.msra.mxu0 %v2729_v22  ;;  %2078 = vmatpush1.bf16.msra.mxu1 %v2731_v23  ;;  %v615_v22 = vld [vmem:[%s3124_s21 + $0x7a8] sm:$0xff]  ;;  %v265_v23 = vld [vmem:[%s3683_s0 + $0x58] sm:$0xff] }
  0x94   : > { %1973 = vmatprep.subr.bf16.mxu0 %v2738_v24  ;;  %2079 = vmatprep.subr.bf16.mxu1 %v2740_v26  ;;  %v269_v24 = vld [vmem:[%s3683_s0 + $0x78] sm:$0xff]  ;;  %v2785_v26 = vcombine.low %v602_v9, %v606_v59  ;;  %v2796_v29 = vcombine.high %v611_v62, %v615_v22  ;;  %v2795_v37 = vcombine.low %v611_v62, %v615_v22  ;;  %v396_v9 = vld [vmem:[%s3124_s21 + $0xd0] sm:$0xff] }
  0x95   : > { %v400_v59 = vld [vmem:[%s3124_s21 + $0xf0] sm:$0xff]  ;;  %v401_v14 = vld [vmem:[%s3124_s21 + $0xf8] sm:$0xff] }
  0x96   : > { %v405_v62 = vld [vmem:[%s3124_s21 + $0x118] sm:$0xff] }
  0x97   : > { %1974 = vmatpush1.bf16.msra.mxu0 %v2737_v32  ;;  %2080 = vmatpush1.bf16.msra.mxu1 %v2739_v10  ;;  %v622_v32 = vld [vmem:[%s3124_s21 + $0x7e0] sm:$0xff]  ;;  %v303_v10 = vmul.f32 %v3298_v0, %v265_v23  ;;  %v409_v22 = vld [vmem:[%s3124_s21 + $0x138] sm:$0xff]  ;;  %v2581_v23 = vcombine.low %v396_v9, %v400_v59 }
  0x98   : > { %1975 = vmatprep.subr.bf16.mxu0 %v2746_v33  ;;  %2081 = vmatprep.subr.bf16.mxu1 %v2748_v34  ;;  %v307_v33 = vmul.f32 %v3298_v0, %v269_v24  ;;  %v619_v34 = vld [vmem:[%s3124_s21 + $0x7c8] sm:$0xff]  ;;  %v2802_v38 = vcombine.high %v618_v31, %v622_v32  ;;  %v2801_v46 = vcombine.low %v618_v31, %v622_v32  ;;  %v413_v31 = vld [vmem:[%s3124_s21 + $0x158] sm:$0xff] }
  0x99   : > { %v2803_v47 = vcombine.low %v619_v34, %v623_v35  ;;  %v2583_v24 = vcombine.low %v397_v13, %v401_v14  ;;  %v417_v32 = vld [vmem:[%s3124_s21 + $0x178] sm:$0xff] }
  0x9a   : > { %v345_v0 = vadd.f32 %v3310_v11, %v307_v33  ;;  %v2591_v33 = vcombine.low %v405_v62, %v409_v22 }
  0x9b   : > { %1976 = vmatpush1.bf16.msra.mxu0 %v2745_v39  ;;  %2082 = vmatpush1.bf16.msra.mxu1 %v2747_v40  ;;  %v2804_v39 = vcombine.high %v619_v34, %v623_v35  ;;  %v372_v40 = vld [vmem:[%s3124_s21 + $0x10] sm:$0xff]  ;;  %v2600_v35 = vcombine.high %v413_v31, %v417_v32 }
  0x9c   : > { %1977 = vmatprep.subr.bf16.mxu0 %v2754_v41  ;;  %2083 = vmatprep.subr.bf16.mxu1 %v2756_v42  ;;  %v376_v41 = vld [vmem:[%s3124_s21 + $0x30] sm:$0xff]  ;;  %v341_v42 = vadd.f32 %v3310_v11, %v303_v10  ;;  %v361_v54 = vmax.f32 %v345_v0, 0.0  ;;  %v381_v11 = vld [vmem:[%s3124_s21 + $0x58] sm:$0xff]  ;;  %v2589_v10 = vcombine.low %v404_v20, %v408_v21 }
  0x9d   : > { %v2557_v56 = vcombine.low %v372_v40, %v376_v41  ;;  %v428_v0 = vld [vmem:[%s3124_s21 + $0x1d0] sm:$0xff] }
  0x9e   : > { %v357_v52 = vmax.f32 %v341_v42, 0.0 }
  0x9f   : > { %1978 = vmatpush1.bf16.msra.mxu0 %v2753_v48  ;;  %2084 = vmatpush1.bf16.msra.mxu1 %v2755_v1  ;;  %v2558_v48 = vcombine.high %v372_v40, %v376_v41  ;;  %v2560_v1 = vcombine.high %v373_v44, %v377_v45 }
  0xa0   : > { %1979 = vmatprep.subr.bf16.mxu0 %v2762_v50  ;;  %2085 = vmatprep.subr.bf16.mxu1 %v2764_v51  ;;  %v380_v50 = vld [vmem:[%s3124_s21 + $0x50] sm:$0xff] }
  0xa1   : > { %v384_v51 = vld [vmem:[%s3124_s21 + $0x70] sm:$0xff] }
  0xa3   : > { %1980 = vmatpush1.bf16.msra.mxu0 %v2761_v57  ;;  %2086 = vmatpush1.bf16.msra.mxu1 %v2763_v58  ;;  %v2559_v57 = vcombine.low %v373_v44, %v377_v45  ;;  %v2566_v58 = vcombine.high %v380_v50, %v384_v51  ;;  %v432_v44 = vld [vmem:[%s3124_s21 + $0x1f0] sm:$0xff]  ;;  %v429_v45 = vld [vmem:[%s3124_s21 + $0x1d8] sm:$0xff] }
  0xa4   : > { %1981 = vmatprep.subr.bf16.mxu0 %v2770_v60  ;;  %2087 = vmatprep.subr.bf16.mxu1 %v2772_v63  ;;  %v2568_v60 = vcombine.high %v381_v11, %v385_v55  ;;  %v3414_v63 = vpack.c.bf16 %v361_v54, %v357_v52  ;;  %v440_v52 = vld [vmem:[%s3124_s21 + $0x230] sm:$0xff]  ;;  %v437_v54 = vld [vmem:[%s3124_s21 + $0x218] sm:$0xff] }
  0xa7   : > { %1982 = vmatpush1.bf16.msra.mxu0 %v2769_v7  ;;  %2088 = vmatpush1.bf16.msra.mxu1 %v2771_v8  ;;  %v2565_v7 = vcombine.low %v380_v50, %v384_v51  ;;  %v2567_v8 = vcombine.low %v381_v11, %v385_v55  ;;  %v436_v51 = vld [vmem:[%s3124_s21 + $0x210] sm:$0xff]  ;;  %v441_v11 = vld [vmem:[%s3124_s21 + $0x238] sm:$0xff]  ;;  %v2613_v55 = vcombine.low %v428_v0, %v432_v44 }
  0xa8   : > { %1983 = vmatprep.subr.bf16.mxu0 %v2778_v61  ;;  %2089 = vmatprep.subr.bf16.mxu1 %v2780_v2  ;;  %v2574_v61 = vcombine.high %v388_v3, %v392_v4  ;;  %v2576_v2 = vcombine.high %v389_v5, %v393_v6 }
  0xab   : > { %1984 = vmatpush1.bf16.msra.mxu0 %v2777_v15  ;;  %2090 = vmatpush1.bf16.msra.mxu1 %v2779_v16  ;;  %v2573_v15 = vcombine.low %v388_v3, %v392_v4  ;;  %v2575_v16 = vcombine.low %v389_v5, %v393_v6  ;;  %v448_v3 = vld [vmem:[%s3124_s21 + $0x270] sm:$0xff]  ;;  %v445_v4 = vld [vmem:[%s3124_s21 + $0x258] sm:$0xff]  ;;  %v2621_v6 = vcombine.low %v436_v51, %v440_v52 }
  0xac   : > { %1985 = vmatprep.subr.bf16.mxu0 %v2786_v17  ;;  %2091 = vmatprep.subr.bf16.mxu1 %v2788_v18  ;;  %v2582_v17 = vcombine.high %v396_v9, %v400_v59  ;;  %v2584_v18 = vcombine.high %v397_v13, %v401_v14  ;;  %v449_v5 = vld [vmem:[%s3124_s21 + $0x278] sm:$0xff]  ;;  %v456_v9 = vld [vmem:[%s3124_s21 + $0x2b0] sm:$0xff] }
  0xad   : > { %v453_v59 = vld [vmem:[%s3124_s21 + $0x298] sm:$0xff] }
  0xae   : > { %v457_v13 = vld [vmem:[%s3124_s21 + $0x2b8] sm:$0xff] }
  0xaf   : > { %1986 = vmatpush1.bf16.msra.mxu0 %v2785_v26  ;;  %2092 = vmatpush1.bf16.msra.mxu1 %v2787_v27  ;;  %v2590_v26 = vcombine.high %v404_v20, %v408_v21  ;;  %v2592_v27 = vcombine.high %v405_v62, %v409_v22  ;;  %v464_v20 = vld [vmem:[%s3124_s21 + $0x2f0] sm:$0xff]  ;;  %v461_v21 = vld [vmem:[%s3124_s21 + $0x2d8] sm:$0xff] }
  0xb0   : > { %1987 = vmatprep.subr.bf16.mxu0 %v2794_v28  ;;  %2093 = vmatprep.subr.bf16.mxu1 %v2796_v29  ;;  %v412_v28 = vld [vmem:[%s3124_s21 + $0x150] sm:$0xff]  ;;  %v465_v62 = vld [vmem:[%s3124_s21 + $0x2f8] sm:$0xff] }
  0xb1   : > { %v416_v29 = vld [vmem:[%s3124_s21 + $0x170] sm:$0xff] }
  0xb2   : > { %v2598_v34 = vcombine.high %v412_v28, %v416_v29  ;;  %v2597_v40 = vcombine.low %v412_v28, %v416_v29  ;;  %v472_v28 = vld [vmem:[%s3124_s21 + $0x330] sm:$0xff]  ;;  %v469_v29 = vld [vmem:[%s3124_s21 + $0x318] sm:$0xff] }
  0xb3   : > { %1988 = vmatpush1.bf16.msra.mxu0 %v2793_v36  ;;  %2094 = vmatpush1.bf16.msra.mxu1 %v2795_v37  ;;  %v420_v36 = vld [vmem:[%s3124_s21 + $0x190] sm:$0xff] }
  0xb4   : > { %1989 = vmatprep.subr.bf16.mxu0 %v2802_v38  ;;  %2095 = vmatprep.subr.bf16.mxu1 %v2804_v39  ;;  %v424_v37 = vld [vmem:[%s3124_s21 + $0x1b0] sm:$0xff]  ;;  %v421_v38 = vld [vmem:[%s3124_s21 + $0x198] sm:$0xff] }
  0xb5   : > { %v425_v39 = vld [vmem:[%s3124_s21 + $0x1b8] sm:$0xff]  ;;  %v2606_v41 = vcombine.high %v420_v36, %v424_v37 }
  0xb6   : > { %v2608_v42 = vcombine.high %v421_v38, %v425_v39 }
  0xb7   : > { %1990 = vmatpush1.bf16.msra.mxu0 %v2801_v46  ;;  %2096 = vmatpush1.bf16.msra.mxu1 %v2803_v47  ;;  %v433_v46 = vld [vmem:[%s3124_s21 + $0x1f8] sm:$0xff]  ;;  %v2605_v47 = vcombine.low %v420_v36, %v424_v37  ;;  %v480_v36 = vld [vmem:[%s3124_s21 + $0x370] sm:$0xff] }
  0xb8   : > { %2118 = vmatprep.subr.bf16.mxu0 %v2558_v48  ;;  %2224 = vmatprep.subr.bf16.mxu1 %v2560_v1  ;;  %v2607_v48 = vcombine.low %v421_v38, %v425_v39  ;;  %v2614_v1 = vcombine.high %v428_v0, %v432_v44  ;;  %v2616_v50 = vcombine.high %v429_v45, %v433_v46  ;;  %v477_v37 = vld [vmem:[%s3124_s21 + $0x358] sm:$0xff]  ;;  %v488_v0 = vld [vmem:[%s3124_s21 + $0x3b0] sm:$0xff] }
  0xb9   : > { %v481_v38 = vld [vmem:[%s3124_s21 + $0x378] sm:$0xff] }
  0xba   : > { %1992 = vmatmul.mubr.bf16.vlgmr.msra.gmra.mrb[0].mxu0 %v3289_v49  ;;  %2098 = vmatmul.mubr.bf16.vlgmr.msra.gmra.mrb[0].mxu1 %v3289_v49  ;;  %v485_v44 = vld [vmem:[%s3124_s21 + $0x398] sm:$0xff] }
  0xbb   : > { %2119 = vmatpush1.bf16.msra.mxu0 %v2557_v56  ;;  %2225 = vmatpush1.bf16.msra.mxu1 %v2559_v57  ;;  %v2615_v56 = vcombine.low %v429_v45, %v433_v46  ;;  %v2622_v57 = vcombine.high %v436_v51, %v440_v52  ;;  %v489_v45 = vld [vmem:[%s3124_s21 + $0x3b8] sm:$0xff]  ;;  %v496_v51 = vld [vmem:[%s3124_s21 + $0x3f0] sm:$0xff] }
  0xbc   : > { %2120 = vmatprep.subr.bf16.mxu0 %v2566_v58  ;;  %2226 = vmatprep.subr.bf16.mxu1 %v2568_v60  ;;  %v2624_v58 = vcombine.high %v437_v54, %v441_v11  ;;  %v444_v60 = vld [vmem:[%s3124_s21 + $0x250] sm:$0xff]  ;;  %v493_v52 = vld [vmem:[%s3124_s21 + $0x3d8] sm:$0xff] }
  0xbd   : > { %2001 = vmatprep.mubr.bf16.mxu0 %v3414_v63  ;;  %2107 = vmatprep.mubr.bf16.mxu1 %v3414_v63  ;;  %v2629_v14 = vcombine.low %v444_v60, %v448_v3 }
  0xbf   : > { %2121 = vmatpush1.bf16.msra.mxu0 %v2565_v7  ;;  %2227 = vmatpush1.bf16.msra.mxu1 %v2567_v8  ;;  %v2623_v7 = vcombine.low %v437_v54, %v441_v11  ;;  %v2630_v8 = vcombine.high %v444_v60, %v448_v3  ;;  %v497_v54 = vld [vmem:[%s3124_s21 + $0x3f8] sm:$0xff]  ;;  %v504_v60 = vld [vmem:[%s3124_s21 + $0x430] sm:$0xff] }
  0xc0   : > { %2122 = vmatprep.subr.bf16.mxu0 %v2574_v61  ;;  %2228 = vmatprep.subr.bf16.mxu1 %v2576_v2  ;;  %v2632_v61 = vcombine.high %v445_v4, %v449_v5  ;;  %v452_v2 = vld [vmem:[%s3124_s21 + $0x290] sm:$0xff]  ;;  %v501_v3 = vld [vmem:[%s3124_s21 + $0x418] sm:$0xff] }
  0xc1   : > { %v2637_v22 = vcombine.low %v452_v2, %v456_v9 }
  0xc2   : > { %2002 = vmatmul.mubr.bf16.gmra.mrb[4].mxu0 %v3312_v12  ;;  %2108 = vmatmul.mubr.bf16.gmra.mrb[4].mxu1 %v3312_v12 }
  0xc3   : > { %2123 = vmatpush1.bf16.msra.mxu0 %v2573_v15  ;;  %2229 = vmatpush1.bf16.msra.mxu1 %v2575_v16  ;;  %v2631_v15 = vcombine.low %v445_v4, %v449_v5  ;;  %v2638_v16 = vcombine.high %v452_v2, %v456_v9  ;;  %v505_v4 = vld [vmem:[%s3124_s21 + $0x438] sm:$0xff]  ;;  %v512_v2 = vld [vmem:[%s3124_s21 + $0x470] sm:$0xff] }
  0xc4   : > { %2124 = vmatprep.subr.bf16.mxu0 %v2582_v17  ;;  %2230 = vmatprep.subr.bf16.mxu1 %v2584_v18  ;;  %v2640_v17 = vcombine.high %v453_v59, %v457_v13  ;;  %v460_v18 = vld [vmem:[%s3124_s21 + $0x2d0] sm:$0xff]  ;;  %v509_v9 = vld [vmem:[%s3124_s21 + $0x458] sm:$0xff] }
  0xc5   : > { %2150 = vmatprep.mubr.bf16.mxu0 %v3199_v25  ;;  %2256 = vmatprep.mubr.bf16.mxu1 %v3199_v25  ;;  %v2599_v25 = vcombine.low %v413_v31, %v417_v32  ;;  %v473_v31 = vld [vmem:[%s3124_s21 + $0x338] sm:$0xff]  ;;  %v2645_v32 = vcombine.low %v460_v18, %v464_v20 }
  0xc7   : > { %2125 = vmatpush1.bf16.msra.mxu0 %v2581_v23  ;;  %2231 = vmatpush1.bf16.msra.mxu1 %v2583_v24  ;;  %v2639_v23 = vcombine.low %v453_v59, %v457_v13  ;;  %v2646_v24 = vcombine.high %v460_v18, %v464_v20  ;;  %v513_v59 = vld [vmem:[%s3124_s21 + $0x478] sm:$0xff]  ;;  %v520_v18 = vld [vmem:[%s3124_s21 + $0x4b0] sm:$0xff] }
  0xc8   : > { %2126 = vmatprep.subr.bf16.mxu0 %v2590_v26  ;;  %2232 = vmatprep.subr.bf16.mxu1 %v2592_v27  ;;  %v2648_v26 = vcombine.high %v461_v21, %v465_v62  ;;  %v468_v27 = vld [vmem:[%s3124_s21 + $0x310] sm:$0xff]  ;;  %v517_v20 = vld [vmem:[%s3124_s21 + $0x498] sm:$0xff] }
  0xc9   : > { %v2653_v39 = vcombine.low %v468_v27, %v472_v28 }
  0xcb   : > { %2127 = vmatpush1.bf16.msra.mxu0 %v2589_v10  ;;  %2233 = vmatpush1.bf16.msra.mxu1 %v2591_v33  ;;  %v2647_v10 = vcombine.low %v461_v21, %v465_v62  ;;  %v2654_v33 = vcombine.high %v468_v27, %v472_v28  ;;  %v521_v21 = vld [vmem:[%s3124_s21 + $0x4b8] sm:$0xff]  ;;  %v528_v27 = vld [vmem:[%s3124_s21 + $0x4f0] sm:$0xff] }
  0xcc   : > { %2128 = vmatprep.subr.bf16.mxu0 %v2598_v34  ;;  %2234 = vmatprep.subr.bf16.mxu1 %v2600_v35  ;;  %v2656_v34 = vcombine.high %v469_v29, %v473_v31  ;;  %v476_v35 = vld [vmem:[%s3124_s21 + $0x350] sm:$0xff]  ;;  %v525_v28 = vld [vmem:[%s3124_s21 + $0x4d8] sm:$0xff] }
  0xcd   : > { %v2661_v46 = vcombine.low %v476_v35, %v480_v36 }
  0xcf   : > { %2129 = vmatpush1.bf16.msra.mxu0 %v2597_v40  ;;  %2235 = vmatpush1.bf16.msra.mxu1 %v2599_v25  ;;  %v2655_v40 = vcombine.low %v469_v29, %v473_v31  ;;  %v2662_v25 = vcombine.high %v476_v35, %v480_v36  ;;  %v529_v29 = vld [vmem:[%s3124_s21 + $0x4f8] sm:$0xff]  ;;  %v2703_v31 = vcombine.low %v517_v20, %v521_v21 }
  0xd0   : > { %2130 = vmatprep.subr.bf16.mxu0 %v2606_v41  ;;  %2236 = vmatprep.subr.bf16.mxu1 %v2608_v42  ;;  %v2664_v41 = vcombine.high %v477_v37, %v481_v38  ;;  %v484_v42 = vld [vmem:[%s3124_s21 + $0x390] sm:$0xff]  ;;  %v533_v35 = vld [vmem:[%s3124_s21 + $0x518] sm:$0xff] }
  0xd1   : > { %v2669_v11 = vcombine.low %v484_v42, %v488_v0  ;;  %v537_v36 = vld [vmem:[%s3124_s21 + $0x538] sm:$0xff] }
  0xd3   : > { %2131 = vmatpush1.bf16.msra.mxu0 %v2605_v47  ;;  %2237 = vmatpush1.bf16.msra.mxu1 %v2607_v48  ;;  %v2663_v47 = vcombine.low %v477_v37, %v481_v38  ;;  %v2670_v48 = vcombine.high %v484_v42, %v488_v0  ;;  %v2711_v37 = vcombine.low %v525_v28, %v529_v29  ;;  %v545_v42 = vld [vmem:[%s3124_s21 + $0x578] sm:$0xff] }
  0xd4   : > { %2132 = vmatprep.subr.bf16.mxu0 %v2614_v1  ;;  %2238 = vmatprep.subr.bf16.mxu1 %v2616_v50  ;;  %v2672_v1 = vcombine.high %v485_v44, %v489_v45  ;;  %v492_v50 = vld [vmem:[%s3124_s21 + $0x3d0] sm:$0xff]  ;;  %v2719_v0 = vcombine.low %v533_v35, %v537_v36 }
  0xd5   : > { %v2677_v5 = vcombine.low %v492_v50, %v496_v51 }
  0xd7   : > { %2133 = vmatpush1.bf16.msra.mxu0 %v2613_v55  ;;  %2239 = vmatpush1.bf16.msra.mxu1 %v2615_v56  ;;  %v2671_v55 = vcombine.low %v485_v44, %v489_v45  ;;  %v2678_v56 = vcombine.high %v492_v50, %v496_v51 }
  0xd8   : > { %2134 = vmatprep.subr.bf16.mxu0 %v2622_v57  ;;  %2240 = vmatprep.subr.bf16.mxu1 %v2624_v58  ;;  %v2680_v57 = vcombine.high %v493_v52, %v497_v54  ;;  %v500_v58 = vld [vmem:[%s3124_s21 + $0x410] sm:$0xff] }
  0xd9   : > { %v2685_v13 = vcombine.low %v500_v58, %v504_v60 }
  0xdb   : > { %2135 = vmatpush1.bf16.msra.mxu0 %v2621_v6  ;;  %2241 = vmatpush1.bf16.msra.mxu1 %v2623_v7  ;;  %v2679_v6 = vcombine.low %v493_v52, %v497_v54  ;;  %v2686_v7 = vcombine.high %v500_v58, %v504_v60  ;;  %v556_v54 = vld [vmem:[%s3124_s21 + $0x5d0] sm:$0xff] }
  0xdc   : > { %2136 = vmatprep.subr.bf16.mxu0 %v2630_v8  ;;  %2242 = vmatprep.subr.bf16.mxu1 %v2632_v61  ;;  %v2688_v8 = vcombine.high %v501_v3, %v505_v4  ;;  %v508_v61 = vld [vmem:[%s3124_s21 + $0x450] sm:$0xff] }
  0xdd   : > { %v2693_v62 = vcombine.low %v508_v61, %v512_v2 }
  0xdf   : > { %2137 = vmatpush1.bf16.msra.mxu0 %v2629_v14  ;;  %2243 = vmatpush1.bf16.msra.mxu1 %v2631_v15  ;;  %v2687_v14 = vcombine.low %v501_v3, %v505_v4  ;;  %v2694_v15 = vcombine.high %v508_v61, %v512_v2  ;;  %v564_v4 = vld [vmem:[%s3124_s21 + $0x610] sm:$0xff] }
  0xe0   : > { %2138 = vmatprep.subr.bf16.mxu0 %v2638_v16  ;;  %2244 = vmatprep.subr.bf16.mxu1 %v2640_v17  ;;  %v2696_v16 = vcombine.high %v509_v9, %v513_v59  ;;  %v516_v17 = vld [vmem:[%s3124_s21 + $0x490] sm:$0xff] }
  0xe3   : > { %2139 = vmatpush1.bf16.msra.mxu0 %v2637_v22  ;;  %2245 = vmatpush1.bf16.msra.mxu1 %v2639_v23  ;;  %v2695_v22 = vcombine.low %v509_v9, %v513_v59  ;;  %v2702_v23 = vcombine.high %v516_v17, %v520_v18  ;;  %v572_v59 = vld [vmem:[%s3124_s21 + $0x650] sm:$0xff] }
  0xe4   : > { %2140 = vmatprep.subr.bf16.mxu0 %v2646_v24  ;;  %2246 = vmatprep.subr.bf16.mxu1 %v2648_v26  ;;  %v2704_v24 = vcombine.high %v517_v20, %v521_v21  ;;  %v524_v26 = vld [vmem:[%s3124_s21 + $0x4d0] sm:$0xff] }
  0xe5   : > { %v580_v21 = vld [vmem:[%s3124_s21 + $0x690] sm:$0xff] }
  0xe7   : > { %2141 = vmatpush1.bf16.msra.mxu0 %v2645_v32  ;;  %2247 = vmatpush1.bf16.msra.mxu1 %v2647_v10  ;;  %v2710_v32 = vcombine.high %v524_v26, %v528_v27  ;;  %v2712_v10 = vcombine.high %v525_v28, %v529_v29  ;;  %v588_v29 = vld [vmem:[%s3124_s21 + $0x6d0] sm:$0xff] }
  0xe8   : > { %2142 = vmatprep.subr.bf16.mxu0 %v2654_v33  ;;  %2248 = vmatprep.subr.bf16.mxu1 %v2656_v34  ;;  %v532_v33 = vld [vmem:[%s3124_s21 + $0x510] sm:$0xff] }
  0xe9   : > { %v536_v34 = vld [vmem:[%s3124_s21 + $0x530] sm:$0xff] }
  0xea   : > { %v2718_v38 = vcombine.high %v532_v33, %v536_v34 }
  0xeb   : > { %2143 = vmatpush1.bf16.msra.mxu0 %v2653_v39  ;;  %2249 = vmatpush1.bf16.msra.mxu1 %v2655_v40  ;;  %v2720_v39 = vcombine.high %v533_v35, %v537_v36  ;;  %v540_v40 = vld [vmem:[%s3124_s21 + $0x550] sm:$0xff] }
  0xec   : > { %2144 = vmatprep.subr.bf16.mxu0 %v2662_v25  ;;  %2250 = vmatprep.subr.bf16.mxu1 %v2664_v41  ;;  %v544_v25 = vld [vmem:[%s3124_s21 + $0x570] sm:$0xff]  ;;  %v541_v41 = vld [vmem:[%s3124_s21 + $0x558] sm:$0xff] }
  0xed   : > { %v2726_v44 = vcombine.high %v540_v40, %v544_v25  ;;  %v2728_v45 = vcombine.high %v541_v41, %v545_v42  ;;  %v2725_v50 = vcombine.low %v540_v40, %v544_v25  ;;  %v596_v36 = vld [vmem:[%s3124_s21 + $0x710] sm:$0xff] }
  0xef   : > { %2145 = vmatpush1.bf16.msra.mxu0 %v2661_v46  ;;  %2251 = vmatpush1.bf16.msra.mxu1 %v2663_v47  ;;  %v548_v46 = vld [vmem:[%s3124_s21 + $0x590] sm:$0xff] }
  0xf0   : > { %2146 = vmatprep.subr.bf16.mxu0 %v2670_v48  ;;  %2252 = vmatprep.subr.bf16.mxu1 %v2672_v1  ;;  %v552_v47 = vld [vmem:[%s3124_s21 + $0x5b0] sm:$0xff]  ;;  %v549_v48 = vld [vmem:[%s3124_s21 + $0x598] sm:$0xff] }
  0xf1   : > { %v553_v1 = vld [vmem:[%s3124_s21 + $0x5b8] sm:$0xff]  ;;  %v2734_v51 = vcombine.high %v548_v46, %v552_v47 }
  0xf2   : > { %v2736_v52 = vcombine.high %v549_v48, %v553_v1  ;;  %v2735_v58 = vcombine.low %v549_v48, %v553_v1  ;;  %v612_v1 = vld [vmem:[%s3124_s21 + $0x790] sm:$0xff] }
  0xf3   : > { %2147 = vmatpush1.bf16.msra.mxu0 %v2669_v11  ;;  %2253 = vmatpush1.bf16.msra.mxu1 %v2671_v55  ;;  %v560_v11 = vld [vmem:[%s3124_s21 + $0x5f0] sm:$0xff]  ;;  %v557_v55 = vld [vmem:[%s3124_s21 + $0x5d8] sm:$0xff] }
  0xf4   : > { %2148 = vmatprep.subr.bf16.mxu0 %v2678_v56  ;;  %2254 = vmatprep.subr.bf16.mxu1 %v2680_v57  ;;  %v561_v56 = vld [vmem:[%s3124_s21 + $0x5f8] sm:$0xff]  ;;  %v2733_v57 = vcombine.low %v548_v46, %v552_v47  ;;  %v2742_v60 = vcombine.high %v556_v54, %v560_v11 }
  0xf5   : > { %v2744_v3 = vcombine.high %v557_v55, %v561_v56  ;;  %v2743_v61 = vcombine.low %v557_v55, %v561_v56  ;;  %v620_v56 = vld [vmem:[%s3124_s21 + $0x7d0] sm:$0xff] }
  0xf7   : > { %2149 = vmatpush1.bf16.msra.mxu0 %v2677_v5  ;;  %2255 = vmatpush1.bf16.msra.mxu1 %v2679_v6  ;;  %v568_v5 = vld [vmem:[%s3124_s21 + $0x630] sm:$0xff]  ;;  %v565_v6 = vld [vmem:[%s3124_s21 + $0x618] sm:$0xff] }
  0xf8   : > { %2171 = vmatprep.subr.bf16.mxu0 %v2686_v7  ;;  %2277 = vmatprep.subr.bf16.mxu1 %v2688_v8  ;;  %v569_v7 = vld [vmem:[%s3124_s21 + $0x638] sm:$0xff]  ;;  %v2741_v8 = vcombine.low %v556_v54, %v560_v11  ;;  %v2750_v2 = vcombine.high %v564_v4, %v568_v5 }
  0xf9   : > { %v2752_v9 = vcombine.high %v565_v6, %v569_v7 }
  0xfa   : > { %2151 = vmatmul.mubr.bf16.vlgmr.msra.gmra.mrb[8].mxu0 %v3318_v19  ;;  %2257 = vmatmul.mubr.bf16.vlgmr.msra.gmra.mrb[8].mxu1 %v3318_v19  ;;  %v2701_v19 = vcombine.low %v516_v17, %v520_v18  ;;  %v2751_v17 = vcombine.low %v565_v6, %v569_v7 }
  0xfb   : > { %2172 = vmatpush1.bf16.msra.mxu0 %v2685_v13  ;;  %2278 = vmatpush1.bf16.msra.mxu1 %v2687_v14  ;;  %v576_v13 = vld [vmem:[%s3124_s21 + $0x670] sm:$0xff]  ;;  %v573_v14 = vld [vmem:[%s3124_s21 + $0x658] sm:$0xff] }
  0xfc   : > { %2173 = vmatprep.subr.bf16.mxu0 %v2694_v15  ;;  %2279 = vmatprep.subr.bf16.mxu1 %v2696_v16  ;;  %v577_v15 = vld [vmem:[%s3124_s21 + $0x678] sm:$0xff]  ;;  %v2749_v16 = vcombine.low %v564_v4, %v568_v5  ;;  %v2758_v18 = vcombine.high %v572_v59, %v576_v13 }
  0xfd   : > { %2160 = vmatprep.mubr.bf16.mxu0 %v3326_v30  ;;  %2266 = vmatprep.mubr.bf16.mxu1 %v3326_v30  ;;  %v2709_v30 = vcombine.low %v524_v26, %v528_v27  ;;  %v2760_v20 = vcombine.high %v573_v14, %v577_v15  ;;  %v2759_v26 = vcombine.low %v573_v14, %v577_v15 }
  0xff   : > { %2174 = vmatpush1.bf16.msra.mxu0 %v2693_v62  ;;  %2280 = vmatpush1.bf16.msra.mxu1 %v2695_v22  ;;  %v584_v62 = vld [vmem:[%s3124_s21 + $0x6b0] sm:$0xff]  ;;  %v581_v22 = vld [vmem:[%s3124_s21 + $0x698] sm:$0xff] }
 0x100   : > { %2175 = vmatprep.subr.bf16.mxu0 %v2702_v23  ;;  %2281 = vmatprep.subr.bf16.mxu1 %v2704_v24  ;;  %v585_v23 = vld [vmem:[%s3124_s21 + $0x6b8] sm:$0xff]  ;;  %v2757_v24 = vcombine.low %v572_v59, %v576_v13  ;;  %v2766_v27 = vcombine.high %v580_v21, %v584_v62 }
 0x101   : > { %v2768_v28 = vcombine.high %v581_v22, %v585_v23 }
 0x102   : > { %2161 = vmatmul.mubr.bf16.gmra.mrb[12].mxu0 %v3340_v43  ;;  %2267 = vmatmul.mubr.bf16.gmra.mrb[12].mxu1 %v3340_v43  ;;  %v2717_v43 = vcombine.low %v532_v33, %v536_v34  ;;  %v2767_v33 = vcombine.low %v581_v22, %v585_v23 }
 0x103   : > { %2176 = vmatpush1.bf16.msra.mxu0 %v2701_v19  ;;  %2282 = vmatpush1.bf16.msra.mxu1 %v2703_v31  ;;  %v592_v19 = vld [vmem:[%s3124_s21 + $0x6f0] sm:$0xff]  ;;  %v589_v31 = vld [vmem:[%s3124_s21 + $0x6d8] sm:$0xff] }
 0x104   : > { %2177 = vmatprep.subr.bf16.mxu0 %v2710_v32  ;;  %2283 = vmatprep.subr.bf16.mxu1 %v2712_v10  ;;  %v593_v32 = vld [vmem:[%s3124_s21 + $0x6f8] sm:$0xff]  ;;  %v2765_v10 = vcombine.low %v580_v21, %v584_v62  ;;  %v2774_v34 = vcombine.high %v588_v29, %v592_v19 }
 0x105   : > { %2203 = vmatprep.mubr.bf16.mxu0 %v3344_v53  ;;  %2309 = vmatprep.mubr.bf16.mxu1 %v3344_v53  ;;  %v2727_v53 = vcombine.low %v541_v41, %v545_v42  ;;  %v2776_v35 = vcombine.high %v589_v31, %v593_v32  ;;  %v2775_v40 = vcombine.low %v589_v31, %v593_v32  ;;  %v604_v42 = vld [vmem:[%s3124_s21 + $0x750] sm:$0xff] }
 0x107   : > { %2178 = vmatpush1.bf16.msra.mxu0 %v2709_v30  ;;  %2284 = vmatpush1.bf16.msra.mxu1 %v2711_v37  ;;  %v600_v30 = vld [vmem:[%s3124_s21 + $0x730] sm:$0xff]  ;;  %v597_v37 = vld [vmem:[%s3124_s21 + $0x718] sm:$0xff] }
 0x108   : > { %2179 = vmatprep.subr.bf16.mxu0 %v2718_v38  ;;  %2285 = vmatprep.subr.bf16.mxu1 %v2720_v39  ;;  %v601_v38 = vld [vmem:[%s3124_s21 + $0x738] sm:$0xff]  ;;  %v2773_v39 = vcombine.low %v588_v29, %v592_v19  ;;  %v2782_v25 = vcombine.high %v596_v36, %v600_v30 }
 0x109   : > { %v2784_v41 = vcombine.high %v597_v37, %v601_v38  ;;  %v2783_v46 = vcombine.low %v597_v37, %v601_v38 }
 0x10b   : > { %2180 = vmatpush1.bf16.msra.mxu0 %v2717_v43  ;;  %2286 = vmatpush1.bf16.msra.mxu1 %v2719_v0  ;;  %v608_v43 = vld [vmem:[%s3124_s21 + $0x770] sm:$0xff]  ;;  %v605_v0 = vld [vmem:[%s3124_s21 + $0x758] sm:$0xff] }
 0x10c   : > { %2181 = vmatprep.subr.bf16.mxu0 %v2726_v44  ;;  %2287 = vmatprep.subr.bf16.mxu1 %v2728_v45  ;;  %v609_v44 = vld [vmem:[%s3124_s21 + $0x778] sm:$0xff]  ;;  %v2781_v45 = vcombine.low %v596_v36, %v600_v30  ;;  %v2790_v47 = vcombine.high %v604_v42, %v608_v43 }
 0x10d   : > { %v2792_v48 = vcombine.high %v605_v0, %v609_v44  ;;  %v2791_v54 = vcombine.low %v605_v0, %v609_v44 }
 0x10f   : > { %2182 = vmatpush1.bf16.msra.mxu0 %v2725_v50  ;;  %2288 = vmatpush1.bf16.msra.mxu1 %v2727_v53  ;;  %v616_v50 = vld [vmem:[%s3124_s21 + $0x7b0] sm:$0xff]  ;;  %v613_v53 = vld [vmem:[%s3124_s21 + $0x798] sm:$0xff] }
 0x110   : > { %2183 = vmatprep.subr.bf16.mxu0 %v2734_v51  ;;  %2289 = vmatprep.subr.bf16.mxu1 %v2736_v52  ;;  %v617_v51 = vld [vmem:[%s3124_s21 + $0x7b8] sm:$0xff]  ;;  %v2789_v52 = vcombine.low %v604_v42, %v608_v43  ;;  %v2798_v11 = vcombine.high %v612_v1, %v616_v50 }
 0x111   : > { %v2800_v55 = vcombine.high %v613_v53, %v617_v51  ;;  %v2799_v4 = vcombine.low %v613_v53, %v617_v51 }
 0x113   : > { %2184 = vmatpush1.bf16.msra.mxu0 %v2733_v57  ;;  %2290 = vmatpush1.bf16.msra.mxu1 %v2735_v58  ;;  %v624_v57 = vld [vmem:[%s3124_s21 + $0x7f0] sm:$0xff]  ;;  %v621_v58 = vld [vmem:[%s3124_s21 + $0x7d8] sm:$0xff] }
 0x114   : > { %2185 = vmatprep.subr.bf16.mxu0 %v2742_v60  ;;  %2291 = vmatprep.subr.bf16.mxu1 %v2744_v3  ;;  %v625_v60 = vld [vmem:[%s3124_s21 + $0x7f8] sm:$0xff]  ;;  %v2797_v3 = vcombine.low %v612_v1, %v616_v50  ;;  %v2806_v5 = vcombine.high %v620_v56, %v624_v57  ;;  %v2805_v7 = vcombine.low %v620_v56, %v624_v57  ;;  %s2552_s21 = sshll.u32 %s3120_s13, 8  ;;  %s2815_s13 = sshll.u32 (%p3693_p8), %s2978_s18, 6 }
 0x115   : > { %v2808_v6 = vcombine.high %v621_v58, %v625_v60  ;;  %s3559_s12 = scalar_lea.vmem [#allocation4], %s2552_s21  ;;  %s3602_s25 = scalar_lea.vmem (%p3693_p8), %s3687_s4, %s2815_s13 }
 0x117   : > { %2186 = vmatpush1.bf16.msra.mxu0 %v2741_v8  ;;  %2292 = vmatpush1.bf16.msra.mxu1 %v2743_v61  ;;  %v2807_v8 = vcombine.low %v621_v58, %v625_v60 }
 0x118   : > { %2187 = vmatprep.subr.bf16.mxu0 %v2750_v2  ;;  %2293 = vmatprep.subr.bf16.mxu1 %v2752_v9 }
 0x11b   : > { %2188 = vmatpush1.bf16.msra.mxu0 %v2749_v16  ;;  %2294 = vmatpush1.bf16.msra.mxu1 %v2751_v17 }
 0x11c   : > { %2189 = vmatprep.subr.bf16.mxu0 %v2758_v18  ;;  %2295 = vmatprep.subr.bf16.mxu1 %v2760_v20 }
 0x11f   : > { %2190 = vmatpush1.bf16.msra.mxu0 %v2757_v24  ;;  %2296 = vmatpush1.bf16.msra.mxu1 %v2759_v26 }
 0x120   : > { %2191 = vmatprep.subr.bf16.mxu0 %v2766_v27  ;;  %2297 = vmatprep.subr.bf16.mxu1 %v2768_v28 }
 0x123   : > { %2192 = vmatpush1.bf16.msra.mxu0 %v2765_v10  ;;  %2298 = vmatpush1.bf16.msra.mxu1 %v2767_v33 }
 0x124   : > { %2193 = vmatprep.subr.bf16.mxu0 %v2774_v34  ;;  %2299 = vmatprep.subr.bf16.mxu1 %v2776_v35 }
 0x127   : > { %2194 = vmatpush1.bf16.msra.mxu0 %v2773_v39  ;;  %2300 = vmatpush1.bf16.msra.mxu1 %v2775_v40 }
 0x128   : > { %2195 = vmatprep.subr.bf16.mxu0 %v2782_v25  ;;  %2301 = vmatprep.subr.bf16.mxu1 %v2784_v41 }
 0x12b   : > { %2196 = vmatpush1.bf16.msra.mxu0 %v2781_v45  ;;  %2302 = vmatpush1.bf16.msra.mxu1 %v2783_v46 }
 0x12c   : > { %2197 = vmatprep.subr.bf16.mxu0 %v2790_v47  ;;  %2303 = vmatprep.subr.bf16.mxu1 %v2792_v48 }
 0x12f   : > { %2198 = vmatpush1.bf16.msra.mxu0 %v2789_v52  ;;  %2304 = vmatpush1.bf16.msra.mxu1 %v2791_v54 }
 0x130   : > { %2199 = vmatprep.subr.bf16.mxu0 %v2798_v11  ;;  %2305 = vmatprep.subr.bf16.mxu1 %v2800_v55 }
 0x133   : > { %2200 = vmatpush1.bf16.msra.mxu0 %v2797_v3  ;;  %2306 = vmatpush1.bf16.msra.mxu1 %v2799_v4 }
 0x134   : > { %2201 = vmatprep.subr.bf16.mxu0 %v2806_v5  ;;  %2307 = vmatprep.subr.bf16.mxu1 %v2808_v6 }
 0x137   : > { %2202 = vmatpush1.bf16.msra.mxu0 %v2805_v7  ;;  %2308 = vmatpush1.bf16.msra.mxu1 %v2807_v8 }
 0x13a   : > { %2204 = vmatmul.mubr.bf16.vlgmr.msra.gmra.mrb[8].mxu0 %v3289_v49  ;;  %2310 = vmatmul.mubr.bf16.vlgmr.msra.gmra.mrb[8].mxu1 %v3289_v49 }
 0x13b   : > { %2213 = vmatprep.mubr.bf16.mxu0 %v3414_v63  ;;  %2319 = vmatprep.mubr.bf16.mxu1 %v3414_v63 }
 0x142   : > { %2214 = vmatmul.mubr.bf16.gmra.mrb[12].mxu0 %v3312_v12  ;;  %2320 = vmatmul.mubr.bf16.gmra.mrb[12].mxu1 %v3312_v12 }
 0x18d   : > { %v1993_v61 = vpop.f32.mrb[0].mxu0  ;;  %v2099_v49 = vpop.f32.mrb[0].mxu1 }
 0x18e   : > { %2330 = vst [vmem:[%s3559_s12] sm:$0xff] %v1993_v61  ;;  %v1995_v63 = vpop.f32.mrb[1].mxu0  ;;  %2332 = vst [vmem:[%s3559_s12 + $0x10] sm:$0xff] %v2099_v49  ;;  %v2101_v12 = vpop.f32.mrb[1].mxu1 }
 0x18f   : > { %2331 = vst [vmem:[%s3559_s12 + $0x8] sm:$0xff] %v1995_v63  ;;  %v1997_v2 = vpop.f32.mrb[2].mxu0  ;;  %2333 = vst [vmem:[%s3559_s12 + $0x18] sm:$0xff] %v2101_v12  ;;  %v2103_v9 = vpop.f32.mrb[2].mxu1 }
 0x190   : > { %2338 = vst [vmem:[%s3559_s12 + $0x40] sm:$0xff] %v1997_v2  ;;  %v1999_v59 = vpop.f32.mrb[3].mxu0  ;;  %2340 = vst [vmem:[%s3559_s12 + $0x50] sm:$0xff] %v2103_v9  ;;  %v2105_v13 = vpop.f32.mrb[3].mxu1 }
 0x191   : > { %2339 = vst [vmem:[%s3559_s12 + $0x48] sm:$0xff] %v1999_v59  ;;  %2341 = vst [vmem:[%s3559_s12 + $0x58] sm:$0xff] %v2105_v13 }
 0x195   : > { %v2003_v14 = vpop.f32.mrb[4].mxu0  ;;  %v2109_v15 = vpop.f32.mrb[4].mxu1  ;;  %v2387_v37 = vld [vmem:[%s3559_s12] sm:$0xff] (%p3693_p8)  ;;  %v2391_v39 = vld [vmem:[%s3559_s12 + $0x10] sm:$0xff] (%p3693_p8) }
 0x196   : > { %2346 = vst [vmem:[%s3559_s12 + $0x80] sm:$0xff] %v2003_v14  ;;  %v2005_v16 = vpop.f32.mrb[5].mxu0  ;;  %2348 = vst [vmem:[%s3559_s12 + $0x90] sm:$0xff] %v2109_v15  ;;  %v2111_v17 = vpop.f32.mrb[5].mxu1  ;;  %v2389_v38 = vld [vmem:[%s3559_s12 + $0x8] sm:$0xff] (%p3693_p8)  ;;  %v2393_v40 = vld [vmem:[%s3559_s12 + $0x18] sm:$0xff] (%p3693_p8) }
 0x197   : > { %2347 = vst [vmem:[%s3559_s12 + $0x88] sm:$0xff] %v2005_v16  ;;  %v2007_v18 = vpop.f32.mrb[6].mxu0  ;;  %2349 = vst [vmem:[%s3559_s12 + $0x98] sm:$0xff] %v2111_v17  ;;  %v2113_v20 = vpop.f32.mrb[6].mxu1  ;;  %v2403_v0 = vld [vmem:[%s3559_s12 + $0x40] sm:$0xff] (%p3693_p8)  ;;  %v2407_v45 = vld [vmem:[%s3559_s12 + $0x50] sm:$0xff] (%p3693_p8) }
 0x198   : > { %2354 = vst [vmem:[%s3559_s12 + $0xc0] sm:$0xff] %v2007_v18  ;;  %v2009_v21 = vpop.f32.mrb[7].mxu0  ;;  %2356 = vst [vmem:[%s3559_s12 + $0xd0] sm:$0xff] %v2113_v20  ;;  %v2115_v62 = vpop.f32.mrb[7].mxu1  ;;  %v2405_v44 = vld [vmem:[%s3559_s12 + $0x48] sm:$0xff] (%p3693_p8)  ;;  %v2409_v46 = vld [vmem:[%s3559_s12 + $0x58] sm:$0xff] (%p3693_p8) }
 0x199   : > { %2355 = vst [vmem:[%s3559_s12 + $0xc8] sm:$0xff] %v2009_v21  ;;  %2357 = vst [vmem:[%s3559_s12 + $0xd8] sm:$0xff] %v2115_v62 }
 0x19a   : > { %2388 = vst [vmem:[%s3602_s25] sm:$0xff] (%p3693_p8), %v2387_v37  ;;  %2390 = vst [vmem:[%s3602_s25 + $0x8] sm:$0xff] (%p3693_p8), %v2389_v38 }
 0x19b   : > { %2392 = vst [vmem:[%s3602_s25 + $0x10] sm:$0xff] (%p3693_p8), %v2391_v39  ;;  %2394 = vst [vmem:[%s3602_s25 + $0x18] sm:$0xff] (%p3693_p8), %v2393_v40 }
 0x19c   : > { %2404 = vst [vmem:[%s3602_s25 + $0x100] sm:$0xff] (%p3693_p8), %v2403_v0  ;;  %2406 = vst [vmem:[%s3602_s25 + $0x108] sm:$0xff] (%p3693_p8), %v2405_v44 }
 0x19d   : > { %2408 = vst [vmem:[%s3602_s25 + $0x110] sm:$0xff] (%p3693_p8), %v2407_v45  ;;  %2410 = vst [vmem:[%s3602_s25 + $0x118] sm:$0xff] (%p3693_p8), %v2409_v46  ;;  %v2419_v53 = vld [vmem:[%s3559_s12 + $0x80] sm:$0xff] (%p3693_p8)  ;;  %v2423_v52 = vld [vmem:[%s3559_s12 + $0x90] sm:$0xff] (%p3693_p8) }
 0x19e   : > { %v2421_v51 = vld [vmem:[%s3559_s12 + $0x88] sm:$0xff] (%p3693_p8)  ;;  %2420 = vst [vmem:[%s3602_s25 + $0x200] sm:$0xff] (%p3693_p8), %v2419_v53  ;;  %v2425_v54 = vld [vmem:[%s3559_s12 + $0x98] sm:$0xff] (%p3693_p8)  ;;  %2424 = vst [vmem:[%s3602_s25 + $0x210] sm:$0xff] (%p3693_p8), %v2423_v52 }
 0x19f   : > { %2422 = vst [vmem:[%s3602_s25 + $0x208] sm:$0xff] (%p3693_p8), %v2421_v51  ;;  %2426 = vst [vmem:[%s3602_s25 + $0x218] sm:$0xff] (%p3693_p8), %v2425_v54  ;;  %v2435_v58 = vld [vmem:[%s3559_s12 + $0xc0] sm:$0xff] (%p3693_p8)  ;;  %v2439_v3 = vld [vmem:[%s3559_s12 + $0xd0] sm:$0xff] (%p3693_p8) }
 0x1a0   : > { %v2437_v60 = vld [vmem:[%s3559_s12 + $0xc8] sm:$0xff] (%p3693_p8)  ;;  %2436 = vst [vmem:[%s3602_s25 + $0x300] sm:$0xff] (%p3693_p8), %v2435_v58  ;;  %2440 = vst [vmem:[%s3602_s25 + $0x310] sm:$0xff] (%p3693_p8), %v2439_v3  ;;  %v2441_v4 = vld [vmem:[%s3559_s12 + $0xd8] sm:$0xff] (%p3693_p8) }
 0x1a1   : > { %2438 = vst [vmem:[%s3602_s25 + $0x308] sm:$0xff] (%p3693_p8), %v2437_v60  ;;  %2442 = vst [vmem:[%s3602_s25 + $0x318] sm:$0xff] (%p3693_p8), %v2441_v4 }
 0x20d   : > { %v2205_v22 = vpop.f32.mrb[8].mxu0  ;;  %v2311_v23 = vpop.f32.mrb[8].mxu1 }
 0x20e   : > { %2334 = vst [vmem:[%s3559_s12 + $0x20] sm:$0xff] %v2205_v22  ;;  %v2207_v24 = vpop.f32.mrb[9].mxu0  ;;  %2336 = vst [vmem:[%s3559_s12 + $0x30] sm:$0xff] %v2311_v23  ;;  %v2313_v26 = vpop.f32.mrb[9].mxu1 }
 0x20f   : > { %2335 = vst [vmem:[%s3559_s12 + $0x28] sm:$0xff] %v2207_v24  ;;  %v2209_v27 = vpop.f32.mrb[10].mxu0  ;;  %2337 = vst [vmem:[%s3559_s12 + $0x38] sm:$0xff] %v2313_v26  ;;  %v2315_v28 = vpop.f32.mrb[10].mxu1 }
 0x210   : > { %2342 = vst [vmem:[%s3559_s12 + $0x60] sm:$0xff] %v2209_v27  ;;  %v2211_v29 = vpop.f32.mrb[11].mxu0  ;;  %2344 = vst [vmem:[%s3559_s12 + $0x70] sm:$0xff] %v2315_v28  ;;  %v2317_v19 = vpop.f32.mrb[11].mxu1 }
 0x211   : > { %2343 = vst [vmem:[%s3559_s12 + $0x68] sm:$0xff] %v2211_v29  ;;  %2345 = vst [vmem:[%s3559_s12 + $0x78] sm:$0xff] %v2317_v19 }
 0x213   : > { %2368 = sbr.rel (!%p3693_p8) target bundleno = 546 (0x222), region = 44 }
 0x215   : > { %v2215_v31 = vpop.f32.mrb[12].mxu0  ;;  %v2321_v32 = vpop.f32.mrb[12].mxu1  ;;  %v2395_v25 = vld [vmem:[%s3559_s12 + $0x20] sm:$0xff] (%p3693_p8)  ;;  %v2399_v42 = vld [vmem:[%s3559_s12 + $0x30] sm:$0xff] (%p3693_p8) }
 0x216   : > { %2350 = vst [vmem:[%s3559_s12 + $0xa0] sm:$0xff] %v2215_v31  ;;  %v2217_v10 = vpop.f32.mrb[13].mxu0  ;;  %2352 = vst [vmem:[%s3559_s12 + $0xb0] sm:$0xff] %v2321_v32  ;;  %v2323_v33 = vpop.f32.mrb[13].mxu1  ;;  %v2397_v41 = vld [vmem:[%s3559_s12 + $0x28] sm:$0xff] (%p3693_p8)  ;;  %v2401_v43 = vld [vmem:[%s3559_s12 + $0x38] sm:$0xff] (%p3693_p8) }
 0x217   : > { %2351 = vst [vmem:[%s3559_s12 + $0xa8] sm:$0xff] %v2217_v10  ;;  %v2219_v34 = vpop.f32.mrb[14].mxu0  ;;  %2353 = vst [vmem:[%s3559_s12 + $0xb8] sm:$0xff] %v2323_v33  ;;  %v2325_v35 = vpop.f32.mrb[14].mxu1  ;;  %v2411_v47 = vld [vmem:[%s3559_s12 + $0x60] sm:$0xff] (%p3693_p8)  ;;  %v2415_v1 = vld [vmem:[%s3559_s12 + $0x70] sm:$0xff] (%p3693_p8) }
 0x218   : > { %2358 = vst [vmem:[%s3559_s12 + $0xe0] sm:$0xff] %v2219_v34  ;;  %v2221_v36 = vpop.f32.mrb[15].mxu0  ;;  %2360 = vst [vmem:[%s3559_s12 + $0xf0] sm:$0xff] %v2325_v35  ;;  %v2327_v30 = vpop.f32.mrb[15].mxu1  ;;  %v2413_v48 = vld [vmem:[%s3559_s12 + $0x68] sm:$0xff] (%p3693_p8)  ;;  %v2417_v50 = vld [vmem:[%s3559_s12 + $0x78] sm:$0xff] (%p3693_p8) }
 0x219   : > { %2359 = vst [vmem:[%s3559_s12 + $0xe8] sm:$0xff] %v2221_v36  ;;  %2361 = vst [vmem:[%s3559_s12 + $0xf8] sm:$0xff] %v2327_v30 }
 0x21a   : > { %2396 = vst [vmem:[%s3602_s25 + $0x20] sm:$0xff] %v2395_v25  ;;  %2398 = vst [vmem:[%s3602_s25 + $0x28] sm:$0xff] %v2397_v41 }
 0x21b   : > { %2400 = vst [vmem:[%s3602_s25 + $0x30] sm:$0xff] %v2399_v42  ;;  %2402 = vst [vmem:[%s3602_s25 + $0x38] sm:$0xff] %v2401_v43 }
 0x21c   : > { %2412 = vst [vmem:[%s3602_s25 + $0x120] sm:$0xff] %v2411_v47  ;;  %2414 = vst [vmem:[%s3602_s25 + $0x128] sm:$0xff] %v2413_v48 }
 0x21d   : > { %2416 = vst [vmem:[%s3602_s25 + $0x130] sm:$0xff] %v2415_v1  ;;  %2418 = vst [vmem:[%s3602_s25 + $0x138] sm:$0xff] %v2417_v50  ;;  %v2427_v11 = vld [vmem:[%s3559_s12 + $0xa0] sm:$0xff]  ;;  %v2431_v56 = vld [vmem:[%s3559_s12 + $0xb0] sm:$0xff] }
 0x21e   : > { %2428 = vst [vmem:[%s3602_s25 + $0x220] sm:$0xff] %v2427_v11  ;;  %v2429_v55 = vld [vmem:[%s3559_s12 + $0xa8] sm:$0xff]  ;;  %v2433_v57 = vld [vmem:[%s3559_s12 + $0xb8] sm:$0xff]  ;;  %2432 = vst [vmem:[%s3602_s25 + $0x230] sm:$0xff] %v2431_v56 }
 0x21f   : > { %2430 = vst [vmem:[%s3602_s25 + $0x228] sm:$0xff] %v2429_v55  ;;  %2434 = vst [vmem:[%s3602_s25 + $0x238] sm:$0xff] %v2433_v57  ;;  %v2443_v5 = vld [vmem:[%s3559_s12 + $0xe0] sm:$0xff]  ;;  %v2447_v7 = vld [vmem:[%s3559_s12 + $0xf0] sm:$0xff] }
 0x220   : > { %v2445_v6 = vld [vmem:[%s3559_s12 + $0xe8] sm:$0xff]  ;;  %2444 = vst [vmem:[%s3602_s25 + $0x320] sm:$0xff] %v2443_v5  ;;  %v2449_v8 = vld [vmem:[%s3559_s12 + $0xf8] sm:$0xff]  ;;  %2448 = vst [vmem:[%s3602_s25 + $0x330] sm:$0xff] %v2447_v7 }
 0x221   : > { %2446 = vst [vmem:[%s3602_s25 + $0x328] sm:$0xff] %v2445_v6  ;;  %2450 = vst [vmem:[%s3602_s25 + $0x338] sm:$0xff] %v2449_v8 }
 0x222 PF: > { %s17_s20 = sadd.s32 1, %s2986_s20   ;;  %s3694_s15 = smov %s2970_s16 }
 0x223   : > { %p14_p9 = scmp.ge.s32.totalorder %s17_s20, 6   ;;  %s3695_s16 = smov %s2974_s17 }
 0x224   : > { %s3696_s17 = smov %s3065_s27  ;;  %s3697_s18 = smov %s2982_s19 }
 0x225   : > { %s3698_s19 = smov %s3700_s22  ;;  %16 = sbr.rel (!%p14_p9) target bundleno = 4 (0x4), region = 102 }
 0x22c   :  { %2466 = vsyncpa [#allocation3], 1 }
 0x22d   :  { %2468 = vsyncpa [#allocation3 + $0x1], 1 }

// kernel: generator_forward.12
= control target key start
LH: loop header
LB: loop body
LE: loop exit
PB: predicated region body
PF: predicated region fallthrough
CT: control target
= control target key end

     0   :  { %s384_s0 = inlined_call_operand.vmem [shape: f32[128,256], index: 0, kind: input, shape index: {}]   ;;  %s385_s1 = inlined_call_operand.vmem [shape: f32[1,256], index: 1, kind: input, shape index: {}]   ;;  %s386_s3 = inlined_call_operand.vmem [shape: f32[1,256], index: 3, kind: output, shape index: {0}]   ;;  %s387_s2 = inlined_call_operand.vmem [shape: f32[1,256], index: 2, kind: input, shape index: {}]   ;;  %s388_s4 = inlined_call_operand.vmem [shape: f32[1,256], index: 4, kind: output, shape index: {1}]  }
   0x1   :  { %v16_v0 = vld [vmem:[%s384_s0] sm:$0xff]  ;;  %v17_v1 = vld [vmem:[%s384_s0 + $0x8] sm:$0xff]  ;;  %v18_v2 = vld [vmem:[%s384_s0 + $0x10] sm:$0xff] }
   0x2   :  { %v19_v3 = vld [vmem:[%s384_s0 + $0x18] sm:$0xff]  ;;  %v20_v4 = vld [vmem:[%s384_s0 + $0x20] sm:$0xff]  ;;  %v21_v5 = vld [vmem:[%s384_s0 + $0x28] sm:$0xff]  ;;  %v48_v6 = vadd.f32 %v18_v2, %v16_v0  ;;  %v92_v19 = vmul.f32 %v16_v0, %v16_v0  ;;  %v94_v20 = vmul.f32 %v18_v2, %v18_v2  ;;  %v93_v23 = vmul.f32 %v17_v1, %v17_v1 }
   0x3   :  { %v22_v7 = vld [vmem:[%s384_s0 + $0x30] sm:$0xff]  ;;  %v69_v8 = vadd.f32 %v19_v3, %v17_v1  ;;  %v23_v9 = vld [vmem:[%s384_s0 + $0x38] sm:$0xff]  ;;  %v24_v11 = vld [vmem:[%s384_s0 + $0x40] sm:$0xff]  ;;  %v95_v24 = vmul.f32 %v19_v3, %v19_v3  ;;  %v96_v27 = vmul.f32 %v20_v4, %v20_v4  ;;  %v97_v30 = vmul.f32 %v21_v5, %v21_v5 }
   0x4   :  { %v49_v10 = vadd.f32 %v48_v6, %v20_v4  ;;  %v25_v13 = vld [vmem:[%s384_s0 + $0x48] sm:$0xff]  ;;  %v26_v15 = vld [vmem:[%s384_s0 + $0x50] sm:$0xff]  ;;  %v27_v17 = vld [vmem:[%s384_s0 + $0x58] sm:$0xff]  ;;  %v98_v33 = vmul.f32 %v22_v7, %v22_v7  ;;  %v124_v34 = vadd.f32 %v94_v20, %v92_v19  ;;  %v99_v37 = vmul.f32 %v23_v9, %v23_v9 }
   0x5   :  { %v70_v12 = vadd.f32 %v69_v8, %v21_v5  ;;  %v28_v21 = vld [vmem:[%s384_s0 + $0x60] sm:$0xff]  ;;  %v29_v25 = vld [vmem:[%s384_s0 + $0x68] sm:$0xff]  ;;  %v30_v28 = vld [vmem:[%s384_s0 + $0x70] sm:$0xff]  ;;  %v145_v38 = vadd.f32 %v95_v24, %v93_v23  ;;  %v100_v41 = vmul.f32 %v24_v11, %v24_v11  ;;  %v101_v45 = vmul.f32 %v25_v13, %v25_v13 }
   0x6   :  { %v50_v14 = vadd.f32 %v49_v10, %v22_v7  ;;  %v31_v31 = vld [vmem:[%s384_s0 + $0x78] sm:$0xff]  ;;  %v32_v35 = vld [vmem:[%s384_s0 + $0x80] sm:$0xff]  ;;  %v33_v39 = vld [vmem:[%s384_s0 + $0x88] sm:$0xff]  ;;  %v125_v42 = vadd.f32 %v124_v34, %v96_v27  ;;  %v102_v49 = vmul.f32 %v26_v15, %v26_v15  ;;  %v103_v53 = vmul.f32 %v27_v17, %v27_v17 }
   0x7   :  { %v71_v16 = vadd.f32 %v70_v12, %v23_v9  ;;  %v34_v43 = vld [vmem:[%s384_s0 + $0x90] sm:$0xff]  ;;  %v146_v46 = vadd.f32 %v145_v38, %v97_v30  ;;  %v35_v47 = vld [vmem:[%s384_s0 + $0x98] sm:$0xff]  ;;  %v36_v51 = vld [vmem:[%s384_s0 + $0xa0] sm:$0xff]  ;;  %v104_v57 = vmul.f32 %v28_v21, %v28_v21  ;;  %v105_v61 = vmul.f32 %v29_v25, %v29_v25 }
   0x8   :  { %v51_v18 = vadd.f32 %v50_v14, %v24_v11  ;;  %v126_v50 = vadd.f32 %v125_v42, %v98_v33  ;;  %v37_v55 = vld [vmem:[%s384_s0 + $0xa8] sm:$0xff]  ;;  %v38_v59 = vld [vmem:[%s384_s0 + $0xb0] sm:$0xff]  ;;  %v39_v63 = vld [vmem:[%s384_s0 + $0xb8] sm:$0xff]  ;;  %v106_v1 = vmul.f32 %v30_v28, %v30_v28  ;;  %v107_v5 = vmul.f32 %v31_v31, %v31_v31 }
   0x9   :  { %v72_v22 = vadd.f32 %v71_v16, %v25_v13  ;;  %v147_v54 = vadd.f32 %v146_v46, %v99_v37  ;;  %v40_v3 = vld [vmem:[%s384_s0 + $0xc0] sm:$0xff]  ;;  %v41_v7 = vld [vmem:[%s384_s0 + $0xc8] sm:$0xff]  ;;  %v108_v9 = vmul.f32 %v32_v35, %v32_v35  ;;  %v42_v11 = vld [vmem:[%s384_s0 + $0xd0] sm:$0xff]  ;;  %v109_v13 = vmul.f32 %v33_v39, %v33_v39 }
   0xa   :  { %v52_v26 = vadd.f32 %v51_v18, %v26_v15  ;;  %v127_v58 = vadd.f32 %v126_v50, %v100_v41  ;;  %v43_v15 = vld [vmem:[%s384_s0 + $0xd8] sm:$0xff]  ;;  %v44_v19 = vld [vmem:[%s384_s0 + $0xe0] sm:$0xff]  ;;  %v45_v23 = vld [vmem:[%s384_s0 + $0xe8] sm:$0xff]  ;;  %v114_v33 = vmul.f32 %v38_v59, %v38_v59  ;;  %v117_v42 = vmul.f32 %v41_v7, %v41_v7 }
   0xb   :  { %v73_v29 = vadd.f32 %v72_v22, %v27_v17  ;;  %v148_v62 = vadd.f32 %v147_v54, %v101_v45  ;;  %v110_v17 = vmul.f32 %v34_v43, %v34_v43  ;;  %v46_v27 = vld [vmem:[%s384_s0 + $0xf0] sm:$0xff]  ;;  %v118_v45 = vmul.f32 %v42_v11, %v42_v11 }
   0xc   :  { %v53_v32 = vadd.f32 %v52_v26, %v28_v21  ;;  %v128_v2 = vadd.f32 %v127_v58, %v102_v49  ;;  %v111_v21 = vmul.f32 %v35_v47, %v35_v47  ;;  %v121_v54 = vmul.f32 %v45_v23, %v45_v23 }
   0xd   :  { %v74_v36 = vadd.f32 %v73_v29, %v29_v25  ;;  %v149_v6 = vadd.f32 %v148_v62, %v103_v53  ;;  %v112_v25 = vmul.f32 %v36_v51, %v36_v51  ;;  %v113_v29 = vmul.f32 %v37_v55, %v37_v55 }
   0xe   :  { %v54_v40 = vadd.f32 %v53_v32, %v30_v28  ;;  %v129_v10 = vadd.f32 %v128_v2, %v104_v57  ;;  %v122_v57 = vmul.f32 %v46_v27, %v46_v27 }
   0xf   :  { %v75_v44 = vadd.f32 %v74_v36, %v31_v31  ;;  %v150_v14 = vadd.f32 %v149_v6, %v105_v61  ;;  %v47_v31 = vld [vmem:[%s384_s0 + $0xf8] sm:$0xff]  ;;  %v115_v36 = vmul.f32 %v39_v63, %v39_v63 }
  0x10   :  { %v55_v48 = vadd.f32 %v54_v40, %v32_v35  ;;  %v130_v18 = vadd.f32 %v129_v10, %v106_v1 }
  0x11   :  { %v76_v52 = vadd.f32 %v75_v44, %v33_v39  ;;  %v151_v22 = vadd.f32 %v150_v14, %v107_v5  ;;  %v116_v39 = vmul.f32 %v40_v3, %v40_v3 }
  0x12   :  { %v56_v56 = vadd.f32 %v55_v48, %v34_v43  ;;  %v131_v26 = vadd.f32 %v130_v18, %v108_v9  ;;  %v119_v48 = vmul.f32 %v43_v15, %v43_v15 }
  0x13   :  { %v77_v60 = vadd.f32 %v76_v52, %v35_v47  ;;  %v152_v30 = vadd.f32 %v151_v22, %v109_v13 }
  0x14   :  { %v57_v0 = vadd.f32 %v56_v56, %v36_v51  ;;  %v132_v34 = vadd.f32 %v131_v26, %v110_v17  ;;  %v120_v51 = vmul.f32 %v44_v19, %v44_v19 }
  0x15   :  { %v78_v4 = vadd.f32 %v77_v60, %v37_v55  ;;  %v153_v37 = vadd.f32 %v152_v30, %v111_v21  ;;  %v123_v60 = vmul.f32 %v47_v31, %v47_v31 }
  0x16   :  { %v58_v8 = vadd.f32 %v57_v0, %v38_v59  ;;  %v133_v40 = vadd.f32 %v132_v34, %v112_v25  ;;  %v185_v34 = vlaneseq }
  0x17   :  { %v79_v12 = vadd.f32 %v78_v4, %v39_v63  ;;  %v154_v43 = vadd.f32 %v153_v37, %v113_v29 }
  0x18   :  { %v59_v16 = vadd.f32 %v58_v8, %v40_v3  ;;  %v134_v46 = vadd.f32 %v133_v40, %v114_v33  ;;  %vm200_vm0 = vcmp.lt.s32.totalorder %v185_v34, 256 }
  0x19   :  { %v80_v20 = vadd.f32 %v79_v12, %v41_v7  ;;  %v155_v49 = vadd.f32 %v154_v43, %v115_v36  ;;  %v186_v36 = vshrl.u32 %v185_v34, 7 }
  0x1a   :  { %v60_v24 = vadd.f32 %v59_v16, %v42_v11  ;;  %v135_v52 = vadd.f32 %v134_v46, %v116_v39 }
  0x1b   :  { %v81_v28 = vadd.f32 %v80_v20, %v43_v15  ;;  %v156_v55 = vadd.f32 %v155_v49, %v117_v42  ;;  %v174_v42 = vld [vmem:[%s385_s1] sm:$0x3] }
  0x1c   :  { %v61_v32 = vadd.f32 %v60_v24, %v44_v19  ;;  %v136_v58 = vadd.f32 %v135_v52, %v118_v45  ;;  %v211_v45 = vsub.s32 1, %v186_v36 }
  0x1d   :  { %v82_v35 = vadd.f32 %v81_v28, %v45_v23  ;;  %v157_v61 = vadd.f32 %v156_v55, %v119_v48 }
  0x1e   :  { %v62_v38 = vadd.f32 %v61_v32, %v46_v27  ;;  %v137_v63 = vadd.f32 %v136_v58, %v120_v51  ;;  %v250_v32 = vmov 1966171168  }
  0x1f   :  { %v83_v41 = vadd.f32 %v82_v35, %v47_v31  ;;  %v158_v1 = vadd.f32 %v157_v61, %v121_v54  ;;  %v183_v33 = vunpack.c.l.s4 %v250_v32 }
  0x20   :  { %v63_v44 = vrot.slane %v62_v38, 4  ;;  %v138_v3 = vadd.f32 %v137_v63, %v122_v57 }
  0x21   :  { %v84_v47 = vrot.slane %v83_v41, 4  ;;  %v159_v5 = vadd.f32 %v158_v1, %v123_v60  ;;  %v184_v35 = vunpack.c.0.s8 %v183_v33 }
  0x22   :  { %v64_v50 = vadd.f32 %v63_v44, %v62_v38  ;;  %v139_v6 = vrot.slane %v138_v3, 4  ;;  %v207_v44 = vsub.s32 0, %v186_v36 }
  0x23   :  { %v85_v53 = vadd.f32 %v84_v47, %v83_v41  ;;  %v160_v7 = vrot.slane %v159_v5, 4  ;;  %v187_v38 = vsub.s32 %v184_v35, %v186_v36 }
  0x24   :  { %v65_v56 = vrot.slane %v64_v50, 2  ;;  %v140_v9 = vadd.f32 %v139_v6, %v138_v3 }
  0x25   :  { %v86_v59 = vrot.slane %v85_v53, 2  ;;  %v161_v11 = vadd.f32 %v160_v7, %v159_v5 }
  0x26   :  { %v66_v62 = vadd.f32 %v65_v56, %v64_v50  ;;  %v141_v12 = vrot.slane %v140_v9, 2 }
  0x27   :  { %v87_v0 = vadd.f32 %v86_v59, %v85_v53  ;;  %v162_v13 = vrot.slane %v161_v11, 2  ;;  %v203_v53 = vld [vmem:[%s387_s2] sm:$0x3] }
  0x28   :  { %v67_v2 = vrot.slane %v66_v62, 1  ;;  %v142_v15 = vadd.f32 %v141_v12, %v140_v9 }
  0x29   :  { %v88_v4 = vrot.slane %v87_v0, 1  ;;  %v163_v17 = vadd.f32 %v162_v13, %v161_v11 }
  0x2a   :  { %v68_v8 = vadd.f32 %v67_v2, %v66_v62  ;;  %v143_v18 = vrot.slane %v142_v15, 1 }
  0x2b   :  { %v89_v10 = vadd.f32 %v88_v4, %v87_v0  ;;  %v164_v19 = vrot.slane %v163_v17, 1 }
  0x2c   :  { %v90_v14 = vmul.f32 0.0078125, %v68_v8  ;;  %v144_v20 = vadd.f32 %v143_v18, %v142_v15 }
  0x2d   :  { %v91_v16 = vmul.f32 0.0078125, %v89_v10  ;;  %v165_v22 = vadd.f32 %v164_v19, %v163_v17 }
  0x2e   :  { %v168_v21 = vmul.f32 %v90_v14, %v90_v14  ;;  %v166_v24 = vmul.f32 0.0078125, %v144_v20 }
  0x2f   :  { %v169_v23 = vmul.f32 %v91_v16, %v91_v16  ;;  %v167_v25 = vmul.f32 0.0078125, %v165_v22 }
  0x30   :  { %v170_v26 = vsub.f32 %v166_v24, %v168_v21 }
  0x31   :  { %v171_v27 = vsub.f32 %v167_v25, %v169_v23 }
  0x32   :  { %v172_v28 = vmax.f32 %v170_v26, 0.0 }
  0x33   :  { %v173_v29 = vmax.f32 %v171_v27, 0.0 }
  0x34   :  { %v175_v30 = vadd.f32 1e-05, %v172_v28 }
  0x35   :  { %v176_v31 = vadd.f32 1e-05, %v173_v29 }
  0x36   :  { %246 = vrsqrt.f32 %v175_v30 }
  0x37   :  { %248 = vrsqrt.f32 %v176_v31 }
  0x40   :  { %v247_v37 = vpop.eup %246 }
  0x41   :  { %v249_v39 = vpop.eup %248 }
  0x42   :  { %v181_v40 = vcombine.low %v247_v37, %v249_v39 }
  0x44   :  { %v188_v41 = vrot.slane %v181_v40, %v187_v38 }
  0x46   :  { %v195_v43 = vrot.slane %v188_v41, %v187_v38 }
  0x48   :  { %v197_v46 = vmul.f32 %v195_v43, %v174_v42 }
  0x4a   :  { %202 = vst.msk [vmem:[%s386_s3] sm:$0x3] %vm200_vm0, %v197_v46  ;;  %v208_v47 = vrot.slane %v197_v46, %v207_v44  ;;  %v212_v48 = vrot.slane %v197_v46, %v211_v45 }
  0x4c   :  { %v215_v49 = vmul.f32 %v208_v47, %v90_v14  ;;  %v216_v50 = vmul.f32 %v212_v48, %v91_v16 }
  0x4e   :  { %v219_v51 = vcombine.low %v215_v49, %v216_v50 }
  0x50   :  { %v226_v52 = vrot.slane %v219_v51, %v187_v38 }
  0x52   :  { %v233_v54 = vrot.slane %v226_v52, %v187_v38 }
  0x54   :  { %v235_v55 = vsub.f32 %v203_v53, %v233_v54 }
  0x56   :  { %236 = vst.msk [vmem:[%s388_s4] sm:$0x3] %vm200_vm0, %v235_v55 }

// kernel: generator_forward.13
= control target key start
LH: loop header
LB: loop body
LE: loop exit
PB: predicated region body
PF: predicated region fallthrough
CT: control target
= control target key end

     0   :  { %s2642_s15 = smov 0   ;;  %s2644_s16 = smov 0   ;;  %s3804_s0 = inlined_call_operand.vmem [shape: f32[128,256], index: 0, kind: input, shape index: {}]   ;;  %s3805_s1 = inlined_call_operand.vmem [shape: f32[1,256], index: 1, kind: input, shape index: {}]   ;;  %s3806_s2 = inlined_call_operand.vmem [shape: f32[1,256], index: 2, kind: input, shape index: {}]   ;;  %s3807_s3 = inlined_call_operand.vmem [shape: bf16[256,2048], index: 3, kind: input, shape index: {}]   ;;  %s3808_s4 = inlined_call_operand.vmem [shape: f32[128,2048], index: 4, kind: output, shape index: {}]  }
   0x1   :  { %s2646_s17 = smov 0   ;;  %s2648_s18 = smov 0  }
   0x2   :  { %s2650_s19 = smov 0  }
   0x3 LB: > { %s23_s20 = sadd.s32 1, %s2611_s18  ;;  %s2391_s21 = sadd.s32 4294967295, %s2615_s19   ;;  %s2615_s19 = sphi %s2650_s19, %s14_s19   ;;  %s2611_s18 = sphi %s2648_s18, %s3813_s18   ;;  %s2607_s17 = sphi %s2646_s17, %s3812_s17   ;;  %s2603_s16 = sphi %s2644_s16, %s3811_s16   ;;  %s2599_s15 = sphi %s2642_s15, %s3810_s15  }
   0x4   : > { %p24_p0 = scmp.ge.s32.totalorder %s23_s20, 2  ;;  %p108_p1 = scmp.ne.s32.totalorder %s2603_s16, %s2599_s15 }
   0x5   : > { %p109_p2 = scmp.eq.s32.totalorder %s2615_s19, 0  ;;  %p140_p4 = scmp.eq.s32.totalorder %s2391_s21, 1 }
   0x6   : > { %s3815_s20 = smov (%p24_p0, %s23_s20), 0  ;;  %s101_s23 = sadd.s32 1, %s2603_s16 }
   0x7   : > { %p110_p3 = por %p109_p2, %p108_p1  ;;  %s98_s22 = ssub.s32 %s2611_s18, %s3815_s20 }
   0x8   : > { %p99_p5 = scmp.eq.s32.totalorder %s98_s22, 0  ;;  %p2677_p6 = por %p140_p4, %p108_p1 }
   0x9   : > { %p2395_p7 = scmp.ge.s32.totalorder %s2615_s19, 2 }
   0xa   : > { %s2682_s25 = scalar_select %p99_p5, %s2603_s16, %s101_s23  }
   0xb   : > { %178 = sbr.rel (%p2395_p7) target bundleno = 86 (0x56), region = 28 }
  0x12   : > { %181 = sbr.rel (!%p110_p3) target bundleno = 86 (0x56), region = 32  ;;  %s183_s26 = sand.u32 (%p110_p3), 1, %s2603_s16  }
  0x13   : > { %s2535_s27 = sshll.u32 (%p110_p3), %s2611_s18, 5  ;;  %s2396_s28 = sshll.u32 (%p110_p3), %s183_s26, 10 }
  0x14   : > { %s2690_s5 = scalar_lea.vmem (%p110_p3), %s3807_s3, %s2535_s27  ;;  %s2695_s6 = scalar_lea.vmem (%p110_p3), [#allocation2], %s2396_s28 }
  0x15   : > { %v201_v0 = vld [vmem:[%s2690_s5] sm:$0xff] (%p110_p3)  ;;  %v203_v1 = vld [vmem:[%s2690_s5 + $0x8] sm:$0xff] (%p110_p3)  ;;  %v205_v2 = vld [vmem:[%s2690_s5 + $0x10] sm:$0xff] (%p110_p3) }
  0x16   : > { %202 = vst [vmem:[%s2695_s6] sm:$0xff] (%p110_p3), %v201_v0  ;;  %204 = vst [vmem:[%s2695_s6 + $0x8] sm:$0xff] (%p110_p3), %v203_v1  ;;  %v207_v3 = vld [vmem:[%s2690_s5 + $0x18] sm:$0xff] (%p110_p3)  ;;  %v209_v4 = vld [vmem:[%s2690_s5 + $0x40] sm:$0xff] (%p110_p3) }
  0x17   : > { %206 = vst [vmem:[%s2695_s6 + $0x10] sm:$0xff] (%p110_p3), %v205_v2  ;;  %v211_v5 = vld [vmem:[%s2690_s5 + $0x48] sm:$0xff] (%p110_p3)  ;;  %208 = vst [vmem:[%s2695_s6 + $0x18] sm:$0xff] (%p110_p3), %v207_v3  ;;  %v213_v6 = vld [vmem:[%s2690_s5 + $0x50] sm:$0xff] (%p110_p3) }
  0x18   : > { %210 = vst [vmem:[%s2695_s6 + $0x20] sm:$0xff] (%p110_p3), %v209_v4  ;;  %212 = vst [vmem:[%s2695_s6 + $0x28] sm:$0xff] (%p110_p3), %v211_v5  ;;  %v215_v7 = vld [vmem:[%s2690_s5 + $0x58] sm:$0xff] (%p110_p3)  ;;  %v217_v8 = vld [vmem:[%s2690_s5 + $0x80] sm:$0xff] (%p110_p3) }
  0x19   : > { %214 = vst [vmem:[%s2695_s6 + $0x30] sm:$0xff] %v213_v6  ;;  %216 = vst [vmem:[%s2695_s6 + $0x38] sm:$0xff] %v215_v7  ;;  %v219_v9 = vld [vmem:[%s2690_s5 + $0x88] sm:$0xff]  ;;  %v221_v10 = vld [vmem:[%s2690_s5 + $0x90] sm:$0xff] }
  0x1a   : > { %218 = vst [vmem:[%s2695_s6 + $0x40] sm:$0xff] %v217_v8  ;;  %v223_v11 = vld [vmem:[%s2690_s5 + $0x98] sm:$0xff]  ;;  %220 = vst [vmem:[%s2695_s6 + $0x48] sm:$0xff] %v219_v9  ;;  %v225_v12 = vld [vmem:[%s2690_s5 + $0xc0] sm:$0xff] }
  0x1b   : > { %222 = vst [vmem:[%s2695_s6 + $0x50] sm:$0xff] %v221_v10  ;;  %224 = vst [vmem:[%s2695_s6 + $0x58] sm:$0xff] %v223_v11  ;;  %v227_v13 = vld [vmem:[%s2690_s5 + $0xc8] sm:$0xff]  ;;  %v229_v14 = vld [vmem:[%s2690_s5 + $0xd0] sm:$0xff] }
  0x1c   : > { %226 = vst [vmem:[%s2695_s6 + $0x60] sm:$0xff] %v225_v12  ;;  %228 = vst [vmem:[%s2695_s6 + $0x68] sm:$0xff] %v227_v13  ;;  %v231_v15 = vld [vmem:[%s2690_s5 + $0xd8] sm:$0xff]  ;;  %v233_v16 = vld [vmem:[%s2690_s5 + $0x100] sm:$0xff] }
  0x1d   : > { %230 = vst [vmem:[%s2695_s6 + $0x70] sm:$0xff] %v229_v14  ;;  %v235_v17 = vld [vmem:[%s2690_s5 + $0x108] sm:$0xff]  ;;  %232 = vst [vmem:[%s2695_s6 + $0x78] sm:$0xff] %v231_v15  ;;  %v237_v18 = vld [vmem:[%s2690_s5 + $0x110] sm:$0xff] }
  0x1e   : > { %234 = vst [vmem:[%s2695_s6 + $0x80] sm:$0xff] %v233_v16  ;;  %236 = vst [vmem:[%s2695_s6 + $0x88] sm:$0xff] %v235_v17  ;;  %v239_v19 = vld [vmem:[%s2690_s5 + $0x118] sm:$0xff]  ;;  %v241_v20 = vld [vmem:[%s2690_s5 + $0x140] sm:$0xff] }
  0x1f   : > { %238 = vst [vmem:[%s2695_s6 + $0x90] sm:$0xff] %v237_v18  ;;  %240 = vst [vmem:[%s2695_s6 + $0x98] sm:$0xff] %v239_v19  ;;  %v243_v21 = vld [vmem:[%s2690_s5 + $0x148] sm:$0xff]  ;;  %v245_v22 = vld [vmem:[%s2690_s5 + $0x150] sm:$0xff] }
  0x20   : > { %242 = vst [vmem:[%s2695_s6 + $0xa0] sm:$0xff] %v241_v20  ;;  %v247_v23 = vld [vmem:[%s2690_s5 + $0x158] sm:$0xff]  ;;  %244 = vst [vmem:[%s2695_s6 + $0xa8] sm:$0xff] %v243_v21  ;;  %v249_v24 = vld [vmem:[%s2690_s5 + $0x180] sm:$0xff] }
  0x21   : > { %246 = vst [vmem:[%s2695_s6 + $0xb0] sm:$0xff] %v245_v22  ;;  %248 = vst [vmem:[%s2695_s6 + $0xb8] sm:$0xff] %v247_v23  ;;  %v251_v25 = vld [vmem:[%s2690_s5 + $0x188] sm:$0xff]  ;;  %v253_v26 = vld [vmem:[%s2690_s5 + $0x190] sm:$0xff] }
  0x22   : > { %250 = vst [vmem:[%s2695_s6 + $0xc0] sm:$0xff] %v249_v24  ;;  %252 = vst [vmem:[%s2695_s6 + $0xc8] sm:$0xff] %v251_v25  ;;  %v255_v27 = vld [vmem:[%s2690_s5 + $0x198] sm:$0xff]  ;;  %v257_v28 = vld [vmem:[%s2690_s5 + $0x1c0] sm:$0xff] }
  0x23   : > { %254 = vst [vmem:[%s2695_s6 + $0xd0] sm:$0xff] %v253_v26  ;;  %v259_v29 = vld [vmem:[%s2690_s5 + $0x1c8] sm:$0xff]  ;;  %256 = vst [vmem:[%s2695_s6 + $0xd8] sm:$0xff] %v255_v27  ;;  %v261_v30 = vld [vmem:[%s2690_s5 + $0x1d0] sm:$0xff] }
  0x24   : > { %258 = vst [vmem:[%s2695_s6 + $0xe0] sm:$0xff] %v257_v28  ;;  %260 = vst [vmem:[%s2695_s6 + $0xe8] sm:$0xff] %v259_v29  ;;  %v263_v31 = vld [vmem:[%s2690_s5 + $0x1d8] sm:$0xff]  ;;  %v265_v32 = vld [vmem:[%s2690_s5 + $0x200] sm:$0xff] }
  0x25   : > { %262 = vst [vmem:[%s2695_s6 + $0xf0] sm:$0xff] %v261_v30  ;;  %264 = vst [vmem:[%s2695_s6 + $0xf8] sm:$0xff] %v263_v31  ;;  %v267_v33 = vld [vmem:[%s2690_s5 + $0x208] sm:$0xff]  ;;  %v269_v34 = vld [vmem:[%s2690_s5 + $0x210] sm:$0xff] }
  0x26   : > { %266 = vst [vmem:[%s2695_s6 + $0x100] sm:$0xff] %v265_v32  ;;  %v271_v35 = vld [vmem:[%s2690_s5 + $0x218] sm:$0xff]  ;;  %268 = vst [vmem:[%s2695_s6 + $0x108] sm:$0xff] %v267_v33  ;;  %v273_v36 = vld [vmem:[%s2690_s5 + $0x240] sm:$0xff] }
  0x27   : > { %270 = vst [vmem:[%s2695_s6 + $0x110] sm:$0xff] %v269_v34  ;;  %272 = vst [vmem:[%s2695_s6 + $0x118] sm:$0xff] %v271_v35  ;;  %v275_v37 = vld [vmem:[%s2690_s5 + $0x248] sm:$0xff]  ;;  %v277_v38 = vld [vmem:[%s2690_s5 + $0x250] sm:$0xff] }
  0x28   : > { %274 = vst [vmem:[%s2695_s6 + $0x120] sm:$0xff] %v273_v36  ;;  %276 = vst [vmem:[%s2695_s6 + $0x128] sm:$0xff] %v275_v37  ;;  %v279_v39 = vld [vmem:[%s2690_s5 + $0x258] sm:$0xff]  ;;  %v281_v40 = vld [vmem:[%s2690_s5 + $0x280] sm:$0xff] }
  0x29   : > { %278 = vst [vmem:[%s2695_s6 + $0x130] sm:$0xff] %v277_v38  ;;  %v283_v41 = vld [vmem:[%s2690_s5 + $0x288] sm:$0xff]  ;;  %280 = vst [vmem:[%s2695_s6 + $0x138] sm:$0xff] %v279_v39  ;;  %v285_v42 = vld [vmem:[%s2690_s5 + $0x290] sm:$0xff] }
  0x2a   : > { %282 = vst [vmem:[%s2695_s6 + $0x140] sm:$0xff] %v281_v40  ;;  %284 = vst [vmem:[%s2695_s6 + $0x148] sm:$0xff] %v283_v41  ;;  %v287_v43 = vld [vmem:[%s2690_s5 + $0x298] sm:$0xff]  ;;  %v289_v44 = vld [vmem:[%s2690_s5 + $0x2c0] sm:$0xff] }
  0x2b   : > { %286 = vst [vmem:[%s2695_s6 + $0x150] sm:$0xff] %v285_v42  ;;  %288 = vst [vmem:[%s2695_s6 + $0x158] sm:$0xff] %v287_v43  ;;  %v291_v45 = vld [vmem:[%s2690_s5 + $0x2c8] sm:$0xff]  ;;  %v293_v46 = vld [vmem:[%s2690_s5 + $0x2d0] sm:$0xff] }
  0x2c   : > { %290 = vst [vmem:[%s2695_s6 + $0x160] sm:$0xff] %v289_v44  ;;  %v295_v47 = vld [vmem:[%s2690_s5 + $0x2d8] sm:$0xff]  ;;  %292 = vst [vmem:[%s2695_s6 + $0x168] sm:$0xff] %v291_v45  ;;  %v297_v48 = vld [vmem:[%s2690_s5 + $0x300] sm:$0xff] }
  0x2d   : > { %294 = vst [vmem:[%s2695_s6 + $0x170] sm:$0xff] %v293_v46  ;;  %296 = vst [vmem:[%s2695_s6 + $0x178] sm:$0xff] %v295_v47  ;;  %v299_v49 = vld [vmem:[%s2690_s5 + $0x308] sm:$0xff]  ;;  %v301_v50 = vld [vmem:[%s2690_s5 + $0x310] sm:$0xff] }
  0x2e   : > { %298 = vst [vmem:[%s2695_s6 + $0x180] sm:$0xff] %v297_v48  ;;  %300 = vst [vmem:[%s2695_s6 + $0x188] sm:$0xff] %v299_v49  ;;  %v303_v51 = vld [vmem:[%s2690_s5 + $0x318] sm:$0xff]  ;;  %v305_v52 = vld [vmem:[%s2690_s5 + $0x340] sm:$0xff] }
  0x2f   : > { %302 = vst [vmem:[%s2695_s6 + $0x190] sm:$0xff] %v301_v50  ;;  %v307_v53 = vld [vmem:[%s2690_s5 + $0x348] sm:$0xff]  ;;  %304 = vst [vmem:[%s2695_s6 + $0x198] sm:$0xff] %v303_v51  ;;  %v309_v54 = vld [vmem:[%s2690_s5 + $0x350] sm:$0xff] }
  0x30   : > { %306 = vst [vmem:[%s2695_s6 + $0x1a0] sm:$0xff] %v305_v52  ;;  %308 = vst [vmem:[%s2695_s6 + $0x1a8] sm:$0xff] %v307_v53  ;;  %v311_v55 = vld [vmem:[%s2690_s5 + $0x358] sm:$0xff]  ;;  %v313_v56 = vld [vmem:[%s2690_s5 + $0x380] sm:$0xff] }
  0x31   : > { %310 = vst [vmem:[%s2695_s6 + $0x1b0] sm:$0xff] %v309_v54  ;;  %312 = vst [vmem:[%s2695_s6 + $0x1b8] sm:$0xff] %v311_v55  ;;  %v315_v57 = vld [vmem:[%s2690_s5 + $0x388] sm:$0xff]  ;;  %v317_v58 = vld [vmem:[%s2690_s5 + $0x390] sm:$0xff] }
  0x32   : > { %314 = vst [vmem:[%s2695_s6 + $0x1c0] sm:$0xff] %v313_v56  ;;  %v319_v59 = vld [vmem:[%s2690_s5 + $0x398] sm:$0xff]  ;;  %316 = vst [vmem:[%s2695_s6 + $0x1c8] sm:$0xff] %v315_v57  ;;  %v321_v60 = vld [vmem:[%s2690_s5 + $0x3c0] sm:$0xff] }
  0x33   : > { %318 = vst [vmem:[%s2695_s6 + $0x1d0] sm:$0xff] %v317_v58  ;;  %320 = vst [vmem:[%s2695_s6 + $0x1d8] sm:$0xff] %v319_v59  ;;  %v323_v61 = vld [vmem:[%s2690_s5 + $0x3c8] sm:$0xff]  ;;  %v325_v62 = vld [vmem:[%s2690_s5 + $0x3d0] sm:$0xff] }
  0x34   : > { %322 = vst [vmem:[%s2695_s6 + $0x1e0] sm:$0xff] %v321_v60  ;;  %324 = vst [vmem:[%s2695_s6 + $0x1e8] sm:$0xff] %v323_v61  ;;  %v327_v63 = vld [vmem:[%s2690_s5 + $0x3d8] sm:$0xff]  ;;  %v329_v0 = vld [vmem:[%s2690_s5 + $0x400] sm:$0xff] }
  0x35   : > { %326 = vst [vmem:[%s2695_s6 + $0x1f0] sm:$0xff] %v325_v62  ;;  %v331_v1 = vld [vmem:[%s2690_s5 + $0x408] sm:$0xff]  ;;  %328 = vst [vmem:[%s2695_s6 + $0x1f8] sm:$0xff] %v327_v63  ;;  %v333_v2 = vld [vmem:[%s2690_s5 + $0x410] sm:$0xff] }
  0x36   : > { %330 = vst [vmem:[%s2695_s6 + $0x200] sm:$0xff] %v329_v0  ;;  %332 = vst [vmem:[%s2695_s6 + $0x208] sm:$0xff] %v331_v1  ;;  %v335_v3 = vld [vmem:[%s2690_s5 + $0x418] sm:$0xff]  ;;  %v337_v4 = vld [vmem:[%s2690_s5 + $0x440] sm:$0xff] }
  0x37   : > { %334 = vst [vmem:[%s2695_s6 + $0x210] sm:$0xff] %v333_v2  ;;  %336 = vst [vmem:[%s2695_s6 + $0x218] sm:$0xff] %v335_v3  ;;  %v339_v5 = vld [vmem:[%s2690_s5 + $0x448] sm:$0xff]  ;;  %v341_v6 = vld [vmem:[%s2690_s5 + $0x450] sm:$0xff] }
  0x38   : > { %338 = vst [vmem:[%s2695_s6 + $0x220] sm:$0xff] %v337_v4  ;;  %v343_v7 = vld [vmem:[%s2690_s5 + $0x458] sm:$0xff]  ;;  %340 = vst [vmem:[%s2695_s6 + $0x228] sm:$0xff] %v339_v5  ;;  %v345_v8 = vld [vmem:[%s2690_s5 + $0x480] sm:$0xff] }
  0x39   : > { %342 = vst [vmem:[%s2695_s6 + $0x230] sm:$0xff] %v341_v6  ;;  %344 = vst [vmem:[%s2695_s6 + $0x238] sm:$0xff] %v343_v7  ;;  %v347_v9 = vld [vmem:[%s2690_s5 + $0x488] sm:$0xff]  ;;  %v349_v10 = vld [vmem:[%s2690_s5 + $0x490] sm:$0xff] }
  0x3a   : > { %346 = vst [vmem:[%s2695_s6 + $0x240] sm:$0xff] %v345_v8  ;;  %348 = vst [vmem:[%s2695_s6 + $0x248] sm:$0xff] %v347_v9  ;;  %v351_v11 = vld [vmem:[%s2690_s5 + $0x498] sm:$0xff]  ;;  %v353_v12 = vld [vmem:[%s2690_s5 + $0x4c0] sm:$0xff] }
  0x3b   : > { %350 = vst [vmem:[%s2695_s6 + $0x250] sm:$0xff] %v349_v10  ;;  %v355_v13 = vld [vmem:[%s2690_s5 + $0x4c8] sm:$0xff]  ;;  %352 = vst [vmem:[%s2695_s6 + $0x258] sm:$0xff] %v351_v11  ;;  %v357_v14 = vld [vmem:[%s2690_s5 + $0x4d0] sm:$0xff] }
  0x3c   : > { %354 = vst [vmem:[%s2695_s6 + $0x260] sm:$0xff] %v353_v12  ;;  %356 = vst [vmem:[%s2695_s6 + $0x268] sm:$0xff] %v355_v13  ;;  %v359_v15 = vld [vmem:[%s2690_s5 + $0x4d8] sm:$0xff]  ;;  %v361_v16 = vld [vmem:[%s2690_s5 + $0x500] sm:$0xff] }
  0x3d   : > { %358 = vst [vmem:[%s2695_s6 + $0x270] sm:$0xff] %v357_v14  ;;  %360 = vst [vmem:[%s2695_s6 + $0x278] sm:$0xff] %v359_v15  ;;  %v363_v17 = vld [vmem:[%s2690_s5 + $0x508] sm:$0xff]  ;;  %v365_v18 = vld [vmem:[%s2690_s5 + $0x510] sm:$0xff] }
  0x3e   : > { %362 = vst [vmem:[%s2695_s6 + $0x280] sm:$0xff] %v361_v16  ;;  %v367_v19 = vld [vmem:[%s2690_s5 + $0x518] sm:$0xff]  ;;  %364 = vst [vmem:[%s2695_s6 + $0x288] sm:$0xff] %v363_v17  ;;  %v369_v20 = vld [vmem:[%s2690_s5 + $0x540] sm:$0xff] }
  0x3f   : > { %366 = vst [vmem:[%s2695_s6 + $0x290] sm:$0xff] %v365_v18  ;;  %368 = vst [vmem:[%s2695_s6 + $0x298] sm:$0xff] %v367_v19  ;;  %v371_v21 = vld [vmem:[%s2690_s5 + $0x548] sm:$0xff]  ;;  %v373_v22 = vld [vmem:[%s2690_s5 + $0x550] sm:$0xff] }
  0x40   : > { %370 = vst [vmem:[%s2695_s6 + $0x2a0] sm:$0xff] %v369_v20  ;;  %372 = vst [vmem:[%s2695_s6 + $0x2a8] sm:$0xff] %v371_v21  ;;  %v375_v23 = vld [vmem:[%s2690_s5 + $0x558] sm:$0xff]  ;;  %v377_v24 = vld [vmem:[%s2690_s5 + $0x580] sm:$0xff] }
  0x41   : > { %374 = vst [vmem:[%s2695_s6 + $0x2b0] sm:$0xff] %v373_v22  ;;  %v379_v25 = vld [vmem:[%s2690_s5 + $0x588] sm:$0xff]  ;;  %376 = vst [vmem:[%s2695_s6 + $0x2b8] sm:$0xff] %v375_v23  ;;  %v381_v26 = vld [vmem:[%s2690_s5 + $0x590] sm:$0xff] }
  0x42   : > { %378 = vst [vmem:[%s2695_s6 + $0x2c0] sm:$0xff] %v377_v24  ;;  %380 = vst [vmem:[%s2695_s6 + $0x2c8] sm:$0xff] %v379_v25  ;;  %v383_v27 = vld [vmem:[%s2690_s5 + $0x598] sm:$0xff]  ;;  %v385_v28 = vld [vmem:[%s2690_s5 + $0x5c0] sm:$0xff] }
  0x43   : > { %382 = vst [vmem:[%s2695_s6 + $0x2d0] sm:$0xff] %v381_v26  ;;  %384 = vst [vmem:[%s2695_s6 + $0x2d8] sm:$0xff] %v383_v27  ;;  %v387_v29 = vld [vmem:[%s2690_s5 + $0x5c8] sm:$0xff]  ;;  %v389_v30 = vld [vmem:[%s2690_s5 + $0x5d0] sm:$0xff] }
  0x44   : > { %386 = vst [vmem:[%s2695_s6 + $0x2e0] sm:$0xff] %v385_v28  ;;  %v391_v31 = vld [vmem:[%s2690_s5 + $0x5d8] sm:$0xff]  ;;  %388 = vst [vmem:[%s2695_s6 + $0x2e8] sm:$0xff] %v387_v29  ;;  %v393_v32 = vld [vmem:[%s2690_s5 + $0x600] sm:$0xff] }
  0x45   : > { %390 = vst [vmem:[%s2695_s6 + $0x2f0] sm:$0xff] %v389_v30  ;;  %392 = vst [vmem:[%s2695_s6 + $0x2f8] sm:$0xff] %v391_v31  ;;  %v395_v33 = vld [vmem:[%s2690_s5 + $0x608] sm:$0xff]  ;;  %v397_v34 = vld [vmem:[%s2690_s5 + $0x610] sm:$0xff] }
  0x46   : > { %394 = vst [vmem:[%s2695_s6 + $0x300] sm:$0xff] %v393_v32  ;;  %396 = vst [vmem:[%s2695_s6 + $0x308] sm:$0xff] %v395_v33  ;;  %v399_v35 = vld [vmem:[%s2690_s5 + $0x618] sm:$0xff]  ;;  %v401_v36 = vld [vmem:[%s2690_s5 + $0x640] sm:$0xff] }
  0x47   : > { %398 = vst [vmem:[%s2695_s6 + $0x310] sm:$0xff] %v397_v34  ;;  %v403_v37 = vld [vmem:[%s2690_s5 + $0x648] sm:$0xff]  ;;  %400 = vst [vmem:[%s2695_s6 + $0x318] sm:$0xff] %v399_v35  ;;  %v405_v38 = vld [vmem:[%s2690_s5 + $0x650] sm:$0xff] }
  0x48   : > { %402 = vst [vmem:[%s2695_s6 + $0x320] sm:$0xff] %v401_v36  ;;  %404 = vst [vmem:[%s2695_s6 + $0x328] sm:$0xff] %v403_v37  ;;  %v407_v39 = vld [vmem:[%s2690_s5 + $0x658] sm:$0xff]  ;;  %v409_v40 = vld [vmem:[%s2690_s5 + $0x680] sm:$0xff] }
  0x49   : > { %406 = vst [vmem:[%s2695_s6 + $0x330] sm:$0xff] %v405_v38  ;;  %408 = vst [vmem:[%s2695_s6 + $0x338] sm:$0xff] %v407_v39  ;;  %v411_v41 = vld [vmem:[%s2690_s5 + $0x688] sm:$0xff]  ;;  %v413_v42 = vld [vmem:[%s2690_s5 + $0x690] sm:$0xff] }
  0x4a   : > { %410 = vst [vmem:[%s2695_s6 + $0x340] sm:$0xff] %v409_v40  ;;  %v415_v43 = vld [vmem:[%s2690_s5 + $0x698] sm:$0xff]  ;;  %412 = vst [vmem:[%s2695_s6 + $0x348] sm:$0xff] %v411_v41  ;;  %v417_v44 = vld [vmem:[%s2690_s5 + $0x6c0] sm:$0xff] }
  0x4b   : > { %414 = vst [vmem:[%s2695_s6 + $0x350] sm:$0xff] %v413_v42  ;;  %416 = vst [vmem:[%s2695_s6 + $0x358] sm:$0xff] %v415_v43  ;;  %v419_v45 = vld [vmem:[%s2690_s5 + $0x6c8] sm:$0xff]  ;;  %v421_v46 = vld [vmem:[%s2690_s5 + $0x6d0] sm:$0xff] }
  0x4c   : > { %418 = vst [vmem:[%s2695_s6 + $0x360] sm:$0xff] %v417_v44  ;;  %420 = vst [vmem:[%s2695_s6 + $0x368] sm:$0xff] %v419_v45  ;;  %v423_v47 = vld [vmem:[%s2690_s5 + $0x6d8] sm:$0xff]  ;;  %v425_v48 = vld [vmem:[%s2690_s5 + $0x700] sm:$0xff] }
  0x4d   : > { %422 = vst [vmem:[%s2695_s6 + $0x370] sm:$0xff] %v421_v46  ;;  %v427_v49 = vld [vmem:[%s2690_s5 + $0x708] sm:$0xff]  ;;  %424 = vst [vmem:[%s2695_s6 + $0x378] sm:$0xff] %v423_v47  ;;  %v429_v50 = vld [vmem:[%s2690_s5 + $0x710] sm:$0xff] }
  0x4e   : > { %426 = vst [vmem:[%s2695_s6 + $0x380] sm:$0xff] %v425_v48  ;;  %428 = vst [vmem:[%s2695_s6 + $0x388] sm:$0xff] %v427_v49  ;;  %v431_v51 = vld [vmem:[%s2690_s5 + $0x718] sm:$0xff]  ;;  %v433_v52 = vld [vmem:[%s2690_s5 + $0x740] sm:$0xff] }
  0x4f   : > { %430 = vst [vmem:[%s2695_s6 + $0x390] sm:$0xff] %v429_v50  ;;  %432 = vst [vmem:[%s2695_s6 + $0x398] sm:$0xff] %v431_v51  ;;  %v435_v53 = vld [vmem:[%s2690_s5 + $0x748] sm:$0xff]  ;;  %v437_v54 = vld [vmem:[%s2690_s5 + $0x750] sm:$0xff] }
  0x50   : > { %434 = vst [vmem:[%s2695_s6 + $0x3a0] sm:$0xff] %v433_v52  ;;  %v439_v55 = vld [vmem:[%s2690_s5 + $0x758] sm:$0xff]  ;;  %436 = vst [vmem:[%s2695_s6 + $0x3a8] sm:$0xff] %v435_v53  ;;  %v441_v56 = vld [vmem:[%s2690_s5 + $0x780] sm:$0xff] }
  0x51   : > { %438 = vst [vmem:[%s2695_s6 + $0x3b0] sm:$0xff] %v437_v54  ;;  %440 = vst [vmem:[%s2695_s6 + $0x3b8] sm:$0xff] %v439_v55  ;;  %v443_v57 = vld [vmem:[%s2690_s5 + $0x788] sm:$0xff]  ;;  %v445_v58 = vld [vmem:[%s2690_s5 + $0x790] sm:$0xff] }
  0x52   : > { %442 = vst [vmem:[%s2695_s6 + $0x3c0] sm:$0xff] %v441_v56  ;;  %444 = vst [vmem:[%s2695_s6 + $0x3c8] sm:$0xff] %v443_v57  ;;  %v447_v59 = vld [vmem:[%s2690_s5 + $0x798] sm:$0xff]  ;;  %v449_v60 = vld [vmem:[%s2690_s5 + $0x7c0] sm:$0xff] }
  0x53   : > { %446 = vst [vmem:[%s2695_s6 + $0x3d0] sm:$0xff] %v445_v58  ;;  %v451_v61 = vld [vmem:[%s2690_s5 + $0x7c8] sm:$0xff]  ;;  %448 = vst [vmem:[%s2695_s6 + $0x3d8] sm:$0xff] %v447_v59  ;;  %v453_v62 = vld [vmem:[%s2690_s5 + $0x7d0] sm:$0xff] }
  0x54   : > { %450 = vst [vmem:[%s2695_s6 + $0x3e0] sm:$0xff] %v449_v60  ;;  %452 = vst [vmem:[%s2695_s6 + $0x3e8] sm:$0xff] %v451_v61  ;;  %v455_v63 = vld [vmem:[%s2690_s5 + $0x7d8] sm:$0xff] }
  0x55   : > { %454 = vst [vmem:[%s2695_s6 + $0x3f0] sm:$0xff] %v453_v62  ;;  %456 = vst [vmem:[%s2695_s6 + $0x3f8] sm:$0xff] %v455_v63 }
  0x56 PF: > { %p2399_p8 = scmp.ge.s32.totalorder %s2615_s19, 1  ;;  %p461_p9 = scmp.lt.s32.totalorder %s2615_s19, 3 }
  0x58   : > { %p462_p10 = pnand %p2399_p8, %p461_p9 }
  0x59   : > { %s468_s7 = sand.u32 (!%p462_p10), 1, %s2599_s15   ;;  %v542_v0 = vlaneseq (!%p462_p10)  ;;  %v2958_v1 = vld [vmem:[%s3805_s1] sm:$0x3] (!%p462_p10)  ;;  %v509_v25 = vld [vmem:[%s3804_s0 + $0x8] sm:$0xff] (!%p462_p10)  ;;  %v511_v26 = vld [vmem:[%s3804_s0 + $0x18] sm:$0xff] (!%p462_p10) }
  0x5a   : > { %465 = sbr.rel (%p462_p10) target bundleno = 532 (0x214), region = 55  ;;  %s2953_s8 = sshll.u32 (!%p462_p10), %s468_s7, 10  ;;  %v2971_v6 = vld [vmem:[%s3806_s2] sm:$0x3] (!%p462_p10) }
  0x5b   : > { %v2960_v2 = vshrl.u32 (!%p462_p10), %v542_v0, 7  ;;  %s2963_s11 = scalar_lea.vmem (!%p462_p10), [#allocation2], %s2953_s8 }
  0x5c   : > { %v676_v3 = vld [vmem:[%s2963_s11] sm:$0xff] (!%p462_p10)  ;;  %v677_v5 = vld [vmem:[%s2963_s11 + $0x8] sm:$0xff] (!%p462_p10) }
  0x5d   : > { %v680_v4 = vld [vmem:[%s2963_s11 + $0x20] sm:$0xff] (!%p462_p10)  ;;  %v681_v8 = vld [vmem:[%s2963_s11 + $0x28] sm:$0xff] (!%p462_p10)  ;;  %v548_v12 = vsub.s32 (!%p462_p10), 1, %v2960_v2 }
  0x5e   : > { %v2403_v7 = vcombine.high (!%p462_p10), %v676_v3, %v680_v4  ;;  %v2402_v9 = vcombine.low (!%p462_p10), %v676_v3, %v680_v4  ;;  %v684_v10 = vld [vmem:[%s2963_s11 + $0x40] sm:$0xff] (!%p462_p10)  ;;  %v2405_v13 = vcombine.high (!%p462_p10), %v677_v5, %v681_v8  ;;  %v2404_v14 = vcombine.low (!%p462_p10), %v677_v5, %v681_v8  ;;  %v685_v16 = vld [vmem:[%s2963_s11 + $0x48] sm:$0xff] (!%p462_p10) }
  0x5f   : > { %v688_v11 = vld [vmem:[%s2963_s11 + $0x60] sm:$0xff] (!%p462_p10)  ;;  %v689_v17 = vld [vmem:[%s2963_s11 + $0x68] sm:$0xff] (!%p462_p10)  ;;  %v2984_v23 = vrot.slane (!%p462_p10), %v2958_v1, %v548_v12  ;;  %v2993_v29 = vrot.slane (!%p462_p10), %v2971_v6, %v548_v12 }
  0x60   : > { %v2411_v15 = vcombine.high (!%p462_p10), %v684_v10, %v688_v11  ;;  %v692_v18 = vld [vmem:[%s2963_s11 + $0x80] sm:$0xff] (!%p462_p10)  ;;  %1444 = vmatprep.subr.bf16.mxu0 (!%p462_p10), %v2403_v7  ;;  %v2413_v19 = vcombine.high (!%p462_p10), %v685_v16, %v689_v17  ;;  %v693_v21 = vld [vmem:[%s2963_s11 + $0x88] sm:$0xff] (!%p462_p10)  ;;  %1557 = vmatprep.subr.bf16.mxu1 (!%p462_p10), %v2405_v13  ;;  %v2410_v24 = vcombine.low (!%p462_p10), %v684_v10, %v688_v11 }
  0x61   : > { %v696_v20 = vld [vmem:[%s2963_s11 + $0xa0] sm:$0xff]  ;;  %v697_v22 = vld [vmem:[%s2963_s11 + $0xa8] sm:$0xff]  ;;  %1445 = vmatpush1.bf16.msra.mxu0 %v2402_v9  ;;  %1558 = vmatpush1.bf16.msra.mxu1 %v2404_v14  ;;  %v2412_v27 = vcombine.low %v685_v16, %v689_v17  ;;  %v553_v35 = vmul.f32 %v2984_v23, %v509_v25  ;;  %v555_v36 = vmul.f32 %v2984_v23, %v511_v26 }
  0x62   : > { %1446 = vmatprep.subr.bf16.mxu0 %v2411_v15  ;;  %v2419_v28 = vcombine.high %v692_v18, %v696_v20  ;;  %1559 = vmatprep.subr.bf16.mxu1 %v2413_v19  ;;  %v2421_v30 = vcombine.high %v693_v21, %v697_v22  ;;  %v700_v31 = vld [vmem:[%s2963_s11 + $0xc0] sm:$0xff]  ;;  %v701_v33 = vld [vmem:[%s2963_s11 + $0xc8] sm:$0xff]  ;;  %v2418_v37 = vcombine.low %v692_v18, %v696_v20 }
  0x63   : > { %v704_v32 = vld [vmem:[%s2963_s11 + $0xe0] sm:$0xff]  ;;  %v705_v34 = vld [vmem:[%s2963_s11 + $0xe8] sm:$0xff]  ;;  %v2420_v38 = vcombine.low %v693_v21, %v697_v22  ;;  %v597_v40 = vadd.f32 %v2993_v29, %v553_v35  ;;  %v599_v46 = vadd.f32 %v2993_v29, %v555_v36  ;;  %v523_v35 = vld [vmem:[%s3804_s0 + $0x78] sm:$0xff] }
  0x64   : > { %v2427_v39 = vcombine.high %v700_v31, %v704_v32  ;;  %v2429_v41 = vcombine.high %v701_v33, %v705_v34  ;;  %v708_v42 = vld [vmem:[%s2963_s11 + $0x100] sm:$0xff]  ;;  %v709_v44 = vld [vmem:[%s2963_s11 + $0x108] sm:$0xff]  ;;  %v2426_v48 = vcombine.low %v700_v31, %v704_v32  ;;  %v2428_v49 = vcombine.low %v701_v33, %v705_v34 }
  0x65   : > { %1447 = vmatpush1.bf16.msra.mxu0 %v2410_v24  ;;  %1560 = vmatpush1.bf16.msra.mxu1 %v2412_v27  ;;  %v712_v43 = vld [vmem:[%s2963_s11 + $0x120] sm:$0xff]  ;;  %v713_v45 = vld [vmem:[%s2963_s11 + $0x128] sm:$0xff]  ;;  %v629_v47 = vmax.f32 %v597_v40, 0.0  ;;  %v631_v51 = vmax.f32 %v599_v46, 0.0 }
  0x66   : > { %1448 = vmatprep.subr.bf16.mxu0 %v2419_v28  ;;  %1561 = vmatprep.subr.bf16.mxu1 %v2421_v30  ;;  %v2435_v50 = vcombine.high %v708_v42, %v712_v43  ;;  %v2437_v52 = vcombine.high %v709_v44, %v713_v45  ;;  %v716_v53 = vld [vmem:[%s2963_s11 + $0x140] sm:$0xff]  ;;  %v717_v55 = vld [vmem:[%s2963_s11 + $0x148] sm:$0xff]  ;;  %v2434_v58 = vcombine.low %v708_v42, %v712_v43 }
  0x67   : > { %v720_v54 = vld [vmem:[%s2963_s11 + $0x160] sm:$0xff]  ;;  %v721_v56 = vld [vmem:[%s2963_s11 + $0x168] sm:$0xff]  ;;  %v3011_v57 = vpack.c.bf16 %v631_v51, %v629_v47  ;;  %v2436_v59 = vcombine.low %v709_v44, %v713_v45  ;;  %v567_v43 = vmul.f32 %v2984_v23, %v523_v35 }
  0x68   : > { %v2443_v60 = vcombine.high %v716_v53, %v720_v54  ;;  %v2445_v61 = vcombine.high %v717_v55, %v721_v56  ;;  %v724_v62 = vld [vmem:[%s2963_s11 + $0x180] sm:$0xff]  ;;  %v725_v0 = vld [vmem:[%s2963_s11 + $0x188] sm:$0xff]  ;;  %v2442_v4 = vcombine.low %v716_v53, %v720_v54  ;;  %v2444_v5 = vcombine.low %v717_v55, %v721_v56  ;;  %v527_v55 = vld [vmem:[%s3804_s0 + $0x98] sm:$0xff] }
  0x69   : > { %1449 = vmatpush1.bf16.msra.mxu0 %v2418_v37  ;;  %1562 = vmatpush1.bf16.msra.mxu1 %v2420_v38  ;;  %v728_v63 = vld [vmem:[%s2963_s11 + $0x1a0] sm:$0xff]  ;;  %v729_v3 = vld [vmem:[%s2963_s11 + $0x1a8] sm:$0xff]  ;;  %v611_v51 = vadd.f32 %v2993_v29, %v567_v43  ;;  %v544_v53 = vsub.s32 0, %v2960_v2 }
  0x6a   : > { %1450 = vmatprep.subr.bf16.mxu0 %v2427_v39  ;;  %1563 = vmatprep.subr.bf16.mxu1 %v2429_v41  ;;  %v2451_v7 = vcombine.high %v724_v62, %v728_v63  ;;  %v2453_v8 = vcombine.high %v725_v0, %v729_v3  ;;  %v732_v9 = vld [vmem:[%s2963_s11 + $0x1c0] sm:$0xff]  ;;  %v733_v11 = vld [vmem:[%s2963_s11 + $0x1c8] sm:$0xff]  ;;  %v2450_v13 = vcombine.low %v724_v62, %v728_v63 }
  0x6b   : > { %1476 = vmatprep.mubr.bf16.mxu0 %v3011_v57  ;;  %1589 = vmatprep.mubr.bf16.mxu1 %v3011_v57  ;;  %v736_v10 = vld [vmem:[%s2963_s11 + $0x1e0] sm:$0xff]  ;;  %v737_v12 = vld [vmem:[%s2963_s11 + $0x1e8] sm:$0xff]  ;;  %v2452_v14 = vcombine.low %v725_v0, %v729_v3 }
  0x6c   : > { %v2459_v15 = vcombine.high %v732_v9, %v736_v10  ;;  %v2461_v16 = vcombine.high %v733_v11, %v737_v12  ;;  %v740_v17 = vld [vmem:[%s2963_s11 + $0x200] sm:$0xff]  ;;  %v741_v19 = vld [vmem:[%s2963_s11 + $0x208] sm:$0xff]  ;;  %v2458_v21 = vcombine.low %v732_v9, %v736_v10  ;;  %v2460_v22 = vcombine.low %v733_v11, %v737_v12 }
  0x6d   : > { %1451 = vmatpush1.bf16.msra.mxu0 %v2426_v48  ;;  %1564 = vmatpush1.bf16.msra.mxu1 %v2428_v49  ;;  %v744_v18 = vld [vmem:[%s2963_s11 + $0x220] sm:$0xff]  ;;  %v745_v20 = vld [vmem:[%s2963_s11 + $0x228] sm:$0xff] }
  0x6e   : > { %1452 = vmatprep.subr.bf16.mxu0 %v2435_v50  ;;  %1565 = vmatprep.subr.bf16.mxu1 %v2437_v52  ;;  %v2467_v24 = vcombine.high %v740_v17, %v744_v18  ;;  %v2469_v25 = vcombine.high %v741_v19, %v745_v20  ;;  %v748_v26 = vld [vmem:[%s2963_s11 + $0x240] sm:$0xff]  ;;  %v749_v28 = vld [vmem:[%s2963_s11 + $0x248] sm:$0xff]  ;;  %v2466_v31 = vcombine.low %v740_v17, %v744_v18 }
  0x6f   : > { %v752_v27 = vld [vmem:[%s2963_s11 + $0x260] sm:$0xff]  ;;  %v753_v30 = vld [vmem:[%s2963_s11 + $0x268] sm:$0xff]  ;;  %v2468_v32 = vcombine.low %v741_v19, %v745_v20 }
  0x70   : > { %v2475_v33 = vcombine.high %v748_v26, %v752_v27  ;;  %v521_v34 = vld [vmem:[%s3804_s0 + $0x68] sm:$0xff]  ;;  %v2477_v36 = vcombine.high %v749_v28, %v753_v30  ;;  %v756_v37 = vld [vmem:[%s2963_s11 + $0x280] sm:$0xff]  ;;  %v2474_v41 = vcombine.low %v748_v26, %v752_v27  ;;  %v2476_v44 = vcombine.low %v749_v28, %v753_v30 }
  0x71   : > { %1453 = vmatpush1.bf16.msra.mxu0 %v2434_v58  ;;  %1566 = vmatpush1.bf16.msra.mxu1 %v2436_v59  ;;  %v760_v38 = vld [vmem:[%s2963_s11 + $0x2a0] sm:$0xff]  ;;  %v757_v39 = vld [vmem:[%s2963_s11 + $0x288] sm:$0xff]  ;;  %v565_v42 = vmul.f32 %v2984_v23, %v521_v34  ;;  %v643_v59 = vmax.f32 %v611_v51, 0.0 }
  0x72   : > { %1454 = vmatprep.subr.bf16.mxu0 %v2443_v60  ;;  %1567 = vmatprep.subr.bf16.mxu1 %v2445_v61  ;;  %v761_v40 = vld [vmem:[%s2963_s11 + $0x2a8] sm:$0xff]  ;;  %v2483_v45 = vcombine.high %v756_v37, %v760_v38  ;;  %v764_v47 = vld [vmem:[%s2963_s11 + $0x2c0] sm:$0xff]  ;;  %v2482_v56 = vcombine.low %v756_v37, %v760_v38  ;;  %v3104_v38 = vrot.slane %v2971_v6, %v544_v53  ;;  %v515_v6 = vld [vmem:[%s3804_s0 + $0x38] sm:$0xff] }
  0x73   : > { %v2485_v46 = vcombine.high %v757_v39, %v761_v40  ;;  %v768_v48 = vld [vmem:[%s2963_s11 + $0x2e0] sm:$0xff]  ;;  %v765_v49 = vld [vmem:[%s2963_s11 + $0x2c8] sm:$0xff]  ;;  %v609_v50 = vadd.f32 %v2993_v29, %v565_v42  ;;  %v2484_v60 = vcombine.low %v757_v39, %v761_v40 }
  0x74   : > { %v769_v52 = vld [vmem:[%s2963_s11 + $0x2e8] sm:$0xff]  ;;  %v2491_v61 = vcombine.high %v764_v47, %v768_v48  ;;  %v772_v62 = vld [vmem:[%s2963_s11 + $0x300] sm:$0xff]  ;;  %v2490_v9 = vcombine.low %v764_v47, %v768_v48 }
  0x75   : > { %1455 = vmatpush1.bf16.msra.mxu0 %v2442_v4  ;;  %1568 = vmatpush1.bf16.msra.mxu1 %v2444_v5  ;;  %v525_v54 = vld [vmem:[%s3804_s0 + $0x88] sm:$0xff]  ;;  %v641_v58 = vmax.f32 %v609_v50, 0.0  ;;  %v2493_v2 = vcombine.high %v765_v49, %v769_v52  ;;  %v776_v63 = vld [vmem:[%s2963_s11 + $0x320] sm:$0xff]  ;;  %v571_v4 = vmul.f32 %v2984_v23, %v527_v55 }
  0x76   : > { %1456 = vmatprep.subr.bf16.mxu0 %v2451_v7  ;;  %1569 = vmatprep.subr.bf16.mxu1 %v2453_v8  ;;  %v569_v3 = vmul.f32 %v2984_v23, %v525_v54  ;;  %v773_v5 = vld [vmem:[%s2963_s11 + $0x308] sm:$0xff]  ;;  %v3065_v8 = vrot.slane %v2958_v1, %v544_v53  ;;  %v508_v10 = vld [vmem:[%s3804_s0] sm:$0xff]  ;;  %v510_v1 = vld [vmem:[%s3804_s0 + $0x10] sm:$0xff] }
  0x77   : > { %v3058_v0 = vpack.c.bf16 %v643_v59, %v641_v58  ;;  %v777_v7 = vld [vmem:[%s2963_s11 + $0x328] sm:$0xff]  ;;  %v615_v12 = vadd.f32 %v2993_v29, %v571_v4  ;;  %v780_v18 = vld [vmem:[%s2963_s11 + $0x340] sm:$0xff]  ;;  %v559_v58 = vmul.f32 %v2984_v23, %v515_v6  ;;  %v687_v6 = vld [vmem:[%s2963_s11 + $0x58] sm:$0xff] }
  0x78   : > { %v613_v11 = vadd.f32 %v2993_v29, %v569_v3  ;;  %v2501_v17 = vcombine.high %v773_v5, %v777_v7  ;;  %v784_v19 = vld [vmem:[%s2963_s11 + $0x360] sm:$0xff]  ;;  %v552_v26 = vmul.f32 %v3065_v8, %v508_v10  ;;  %v554_v28 = vmul.f32 %v3065_v8, %v510_v1  ;;  %v3101_v37 = vld [vmem:[%s2963_s11 + $0x3a8] sm:$0xff] }
  0x79   : > { %1457 = vmatpush1.bf16.msra.mxu0 %v2450_v13  ;;  %1570 = vmatpush1.bf16.msra.mxu1 %v2452_v14  ;;  %v2492_v13 = vcombine.low %v765_v49, %v769_v52  ;;  %v2499_v14 = vcombine.high %v772_v62, %v776_v63  ;;  %v3087_v27 = vld [vmem:[%s2963_s11 + $0x380] sm:$0xff]  ;;  %v2507_v34 = vcombine.high %v780_v18, %v784_v19  ;;  %v533_v42 = vld [vmem:[%s3804_s0 + $0xc8] sm:$0xff] }
  0x7a   : > { %1458 = vmatprep.subr.bf16.mxu0 %v2459_v15  ;;  %1571 = vmatprep.subr.bf16.mxu1 %v2461_v16  ;;  %v529_v15 = vld [vmem:[%s3804_s0 + $0xa8] sm:$0xff]  ;;  %v531_v16 = vld [vmem:[%s3804_s0 + $0xb8] sm:$0xff]  ;;  %v645_v20 = vmax.f32 %v613_v11, 0.0  ;;  %v3095_v35 = vld [vmem:[%s2963_s11 + $0x3a0] sm:$0xff]  ;;  %v2506_v43 = vcombine.low %v780_v18, %v784_v19  ;;  %v596_v53 = vadd.f32 %v3104_v38, %v552_v26  ;;  %v598_v54 = vadd.f32 %v3104_v38, %v554_v28 }
  0x7b   : > { %v2515_v47 = vcombine.high %v3087_v27, %v3095_v35  ;;  %v3125_v51 = vld [vmem:[%s2963_s11 + $0x3c0] sm:$0xff]  ;;  %v577_v55 = vmul.f32 %v2984_v23, %v533_v42  ;;  %v2514_v4 = vcombine.low %v3087_v27, %v3095_v35  ;;  %v537_v11 = vld [vmem:[%s3804_s0 + $0xe8] sm:$0xff]  ;;  %v519_v27 = vld [vmem:[%s3804_s0 + $0x58] sm:$0xff] }
  0x7c   : > { %v3128_v52 = vld [vmem:[%s2963_s11 + $0x3e0] sm:$0xff]  ;;  %v630_v1 = vmax.f32 %v598_v54, 0.0  ;;  %v517_v26 = vld [vmem:[%s3804_s0 + $0x48] sm:$0xff]  ;;  %v581_v28 = vmul.f32 %v2984_v23, %v537_v11 }
  0x7d   : > { %1459 = vmatpush1.bf16.msra.mxu0 %v2458_v21  ;;  %1572 = vmatpush1.bf16.msra.mxu1 %v2460_v22  ;;  %v647_v21 = vmax.f32 %v615_v12, 0.0  ;;  %v2498_v22 = vcombine.low %v772_v62, %v776_v63  ;;  %v512_v59 = vld [vmem:[%s3804_s0 + $0x20] sm:$0xff]  ;;  %v801_v62 = vld [vmem:[%s2963_s11 + $0x3e8] sm:$0xff]  ;;  %v3144_v63 = vld [vmem:[%s2963_s11 + $0x10] sm:$0xff]  ;;  %v621_v3 = vadd.f32 %v2993_v29, %v577_v55 }
  0x7e   : > { %1460 = vmatprep.subr.bf16.mxu0 %v2467_v24  ;;  %1573 = vmatprep.subr.bf16.mxu1 %v2469_v25  ;;  %v781_v24 = vld [vmem:[%s2963_s11 + $0x348] sm:$0xff]  ;;  %v539_v12 = vld [vmem:[%s3804_s0 + $0xf8] sm:$0xff] }
  0x7f   : > { %v785_v25 = vld [vmem:[%s2963_s11 + $0x368] sm:$0xff]  ;;  %v3090_v30 = vpack.c.bf16 %v647_v21, %v645_v20  ;;  %v653_v18 = vmax.f32 %v621_v3, 0.0  ;;  %v603_v21 = vadd.f32 %v2993_v29, %v559_v58 }
  0x80   : > { %v2509_v39 = vcombine.high %v781_v24, %v785_v25 }
  0x81   : > { %1461 = vmatpush1.bf16.msra.mxu0 %v2466_v31  ;;  %1574 = vmatpush1.bf16.msra.mxu1 %v2468_v32  ;;  %v573_v31 = vmul.f32 %v2984_v23, %v529_v15  ;;  %v575_v32 = vmul.f32 %v2984_v23, %v531_v16  ;;  %v682_v15 = vld [vmem:[%s2963_s11 + $0x30] sm:$0xff]  ;;  %v3167_v16 = vld [vmem:[%s2963_s11 + $0x18] sm:$0xff] }
  0x82   : > { %1462 = vmatprep.subr.bf16.mxu0 %v2475_v33  ;;  %1575 = vmatprep.subr.bf16.mxu1 %v2477_v36  ;;  %v2500_v33 = vcombine.low %v773_v5, %v777_v7  ;;  %v3098_v36 = vld [vmem:[%s2963_s11 + $0x388] sm:$0xff]  ;;  %v2523_v7 = vcombine.high %v3125_v51, %v3128_v52 }
  0x83   : > { %v617_v40 = vadd.f32 %v2993_v29, %v573_v31  ;;  %v2517_v48 = vcombine.high %v3098_v36, %v3101_v37  ;;  %v2516_v5 = vcombine.low %v3098_v36, %v3101_v37  ;;  %v583_v31 = vmul.f32 %v2984_v23, %v539_v12 }
  0x84   : > { %v625_v37 = vadd.f32 %v2993_v29, %v581_v28 }
  0x85   : > { %1463 = vmatpush1.bf16.msra.mxu0 %v2474_v41  ;;  %1576 = vmatpush1.bf16.msra.mxu1 %v2476_v44  ;;  %v619_v41 = vadd.f32 %v2993_v29, %v575_v32  ;;  %v2508_v44 = vcombine.low %v781_v24, %v785_v25  ;;  %v649_v49 = vmax.f32 %v617_v40, 0.0  ;;  %v556_v24 = vmul.f32 %v3065_v8, %v512_v59  ;;  %v686_v40 = vld [vmem:[%s2963_s11 + $0x50] sm:$0xff] }
  0x86   : > { %1464 = vmatprep.subr.bf16.mxu0 %v2483_v45  ;;  %1577 = vmatprep.subr.bf16.mxu1 %v2485_v46  ;;  %v513_v45 = vld [vmem:[%s3804_s0 + $0x28] sm:$0xff]  ;;  %v535_v46 = vld [vmem:[%s3804_s0 + $0xd8] sm:$0xff]  ;;  %v694_v59 = vld [vmem:[%s2963_s11 + $0x90] sm:$0xff] }
  0x87   : > { %v651_v50 = vmax.f32 %v619_v41, 0.0  ;;  %v690_v41 = vld [vmem:[%s2963_s11 + $0x70] sm:$0xff] }
  0x88   : > { %v2415_v54 = vcombine.high %v686_v40, %v690_v41 }
  0x89   : > { %1465 = vmatpush1.bf16.msra.mxu0 %v2482_v56  ;;  %1578 = vmatpush1.bf16.msra.mxu1 %v2484_v60  ;;  %v557_v56 = vmul.f32 %v2984_v23, %v513_v45  ;;  %v3138_v60 = vpack.c.bf16 %v651_v50, %v649_v49  ;;  %v563_v45 = vmul.f32 %v2984_v23, %v519_v27  ;;  %v657_v49 = vmax.f32 %v625_v37, 0.0  ;;  %v711_v37 = vld [vmem:[%s2963_s11 + $0x118] sm:$0xff] }
  0x8a   : > { %1466 = vmatprep.subr.bf16.mxu0 %v2491_v61  ;;  %1579 = vmatprep.subr.bf16.mxu1 %v2493_v2  ;;  %v579_v61 = vmul.f32 %v2984_v23, %v535_v46  ;;  %v797_v2 = vld [vmem:[%s2963_s11 + $0x3c8] sm:$0xff]  ;;  %v691_v46 = vld [vmem:[%s2963_s11 + $0x78] sm:$0xff] }
  0x8b   : > { %v2525_v19 = vcombine.high %v797_v2, %v801_v62  ;;  %v601_v20 = vadd.f32 %v2993_v29, %v557_v56  ;;  %v2524_v32 = vcombine.low %v797_v2, %v801_v62  ;;  %v2417_v56 = vcombine.high %v687_v6, %v691_v46 }
  0x8c   : > { %v623_v10 = vadd.f32 %v2993_v29, %v579_v61  ;;  %v698_v61 = vld [vmem:[%s2963_s11 + $0xb0] sm:$0xff]  ;;  %v607_v62 = vadd.f32 %v2993_v29, %v563_v45 }
  0x8d   : > { %1467 = vmatpush1.bf16.msra.mxu0 %v2490_v9  ;;  %1580 = vmatpush1.bf16.msra.mxu1 %v2492_v13  ;;  %v514_v9 = vld [vmem:[%s3804_s0 + $0x30] sm:$0xff]  ;;  %v2522_v13 = vcombine.low %v3125_v51, %v3128_v52  ;;  %v633_v42 = vmax.f32 %v601_v20, 0.0  ;;  %v2406_v51 = vcombine.low %v3144_v63, %v682_v15  ;;  %v516_v52 = vld [vmem:[%s3804_s0 + $0x40] sm:$0xff]  ;;  %v2423_v11 = vcombine.high %v694_v59, %v698_v61 }
  0x8e   : > { %1468 = vmatprep.subr.bf16.mxu0 %v2499_v14  ;;  %1581 = vmatprep.subr.bf16.mxu1 %v2501_v17  ;;  %v628_v14 = vmax.f32 %v596_v53, 0.0  ;;  %v683_v17 = vld [vmem:[%s2963_s11 + $0x38] sm:$0xff]  ;;  %v558_v25 = vmul.f32 %v3065_v8, %v514_v9 }
  0x8f   : > { %v2408_v53 = vcombine.low %v3167_v16, %v683_v17 }
  0x90   : > { %v3186_v36 = vpack.c.bf16 %v630_v1, %v628_v14  ;;  %v706_v14 = vld [vmem:[%s2963_s11 + $0xf0] sm:$0xff] }
  0x91   : > { %1469 = vmatpush1.bf16.msra.mxu0 %v2498_v22  ;;  %1582 = vmatpush1.bf16.msra.mxu1 %v2500_v33  ;;  %v655_v22 = vmax.f32 %v623_v10, 0.0  ;;  %v2407_v33 = vcombine.high %v3144_v63, %v682_v15  ;;  %v2414_v10 = vcombine.low %v686_v40, %v690_v41  ;;  %v639_v15 = vmax.f32 %v607_v62, 0.0 }
  0x92   : > { %1470 = vmatprep.subr.bf16.mxu0 %v2507_v34  ;;  %1583 = vmatprep.subr.bf16.mxu1 %v2509_v39  ;;  %v2409_v34 = vcombine.high %v3167_v16, %v683_v17  ;;  %v627_v39 = vadd.f32 %v2993_v29, %v583_v31  ;;  %v703_v17 = vld [vmem:[%s2963_s11 + $0xd8] sm:$0xff]  ;;  %v710_v31 = vld [vmem:[%s2963_s11 + $0x110] sm:$0xff] }
  0x93   : > { %v3184_v35 = vpack.c.bf16 %v655_v22, %v653_v18  ;;  %v707_v18 = vld [vmem:[%s2963_s11 + $0xf8] sm:$0xff]  ;;  %v520_v22 = vld [vmem:[%s3804_s0 + $0x60] sm:$0xff] }
  0x94   : > { %v659_v50 = vmax.f32 %v627_v39, 0.0  ;;  %v2433_v27 = vcombine.high %v703_v17, %v707_v18  ;;  %v715_v39 = vld [vmem:[%s2963_s11 + $0x138] sm:$0xff]  ;;  %v564_v40 = vmul.f32 %v3065_v8, %v520_v22 }
  0x95   : > { %1471 = vmatpush1.bf16.msra.mxu0 %v2506_v43  ;;  %1584 = vmatpush1.bf16.msra.mxu1 %v2508_v44  ;;  %v635_v43 = vmax.f32 %v603_v21, 0.0  ;;  %v561_v44 = vmul.f32 %v2984_v23, %v517_v26  ;;  %v518_v23 = vld [vmem:[%s3804_s0 + $0x50] sm:$0xff]  ;;  %v2422_v21 = vcombine.low %v694_v59, %v698_v61  ;;  %v2441_v45 = vcombine.high %v711_v37, %v715_v39 }
  0x96   : > { %1472 = vmatprep.subr.bf16.mxu0 %v2515_v47  ;;  %1585 = vmatprep.subr.bf16.mxu1 %v2517_v48  ;;  %v600_v47 = vadd.f32 %v3104_v38, %v556_v24  ;;  %v602_v48 = vadd.f32 %v3104_v38, %v558_v25  ;;  %v3206_v55 = vpack.c.bf16 %v659_v50, %v657_v49  ;;  %v522_v24 = vld [vmem:[%s3804_s0 + $0x70] sm:$0xff]  ;;  %v723_v49 = vld [vmem:[%s2963_s11 + $0x178] sm:$0xff] }
  0x97   : > { %v3208_v58 = vpack.c.bf16 %v635_v43, %v633_v42  ;;  %v605_v2 = vadd.f32 %v2993_v29, %v561_v44  ;;  %v562_v9 = vmul.f32 %v3065_v8, %v518_v23  ;;  %v2416_v29 = vcombine.low %v687_v6, %v691_v46  ;;  %v718_v6 = vld [vmem:[%s2963_s11 + $0x150] sm:$0xff]  ;;  %v524_v23 = vld [vmem:[%s3804_s0 + $0x80] sm:$0xff] }
  0x98   : > { %v632_v63 = vmax.f32 %v600_v47, 0.0  ;;  %v634_v3 = vmax.f32 %v602_v48, 0.0  ;;  %v566_v41 = vmul.f32 %v3065_v8, %v522_v24  ;;  %v2432_v43 = vcombine.low %v703_v17, %v707_v18  ;;  %v722_v46 = vld [vmem:[%s2963_s11 + $0x170] sm:$0xff]  ;;  %v719_v48 = vld [vmem:[%s2963_s11 + $0x158] sm:$0xff] }
  0x99   : > { %1473 = vmatpush1.bf16.msra.mxu0 %v2514_v4  ;;  %1586 = vmatpush1.bf16.msra.mxu1 %v2516_v5  ;;  %v695_v4 = vld [vmem:[%s2963_s11 + $0x98] sm:$0xff]  ;;  %v637_v1 = vmax.f32 %v605_v2, 0.0  ;;  %v606_v20 = vadd.f32 %v3104_v38, %v562_v9  ;;  %v608_v50 = vadd.f32 %v3104_v38, %v564_v40  ;;  %v2449_v59 = vcombine.high %v719_v48, %v723_v49  ;;  %v726_v61 = vld [vmem:[%s2963_s11 + $0x190] sm:$0xff] }
  0x9a   : > { %1474 = vmatprep.subr.bf16.mxu0 %v2523_v7  ;;  %1587 = vmatprep.subr.bf16.mxu1 %v2525_v19  ;;  %v699_v5 = vld [vmem:[%s2963_s11 + $0xb8] sm:$0xff]  ;;  %v560_v7 = vmul.f32 %v3065_v8, %v516_v52  ;;  %v3224_v16 = vpack.c.bf16 %v634_v3, %v632_v63  ;;  %v730_v2 = vld [vmem:[%s2963_s11 + $0x1b0] sm:$0xff]  ;;  %v2446_v9 = vcombine.low %v718_v6, %v722_v46 }
  0x9b   : > { %v2425_v12 = vcombine.high %v695_v4, %v699_v5  ;;  %v2424_v25 = vcombine.low %v695_v4, %v699_v5  ;;  %v3236_v28 = vpack.c.bf16 %v639_v15, %v637_v1  ;;  %v640_v62 = vmax.f32 %v608_v50, 0.0  ;;  %v727_v3 = vld [vmem:[%s2963_s11 + $0x198] sm:$0xff] }
  0x9c   : > { %v604_v19 = vadd.f32 %v3104_v38, %v560_v7  ;;  %v731_v4 = vld [vmem:[%s2963_s11 + $0x1b8] sm:$0xff]  ;;  %v568_v5 = vmul.f32 %v3065_v8, %v524_v23  ;;  %v534_v23 = vld [vmem:[%s3804_s0 + $0xd0] sm:$0xff] }
  0x9d   : > { %1475 = vmatpush1.bf16.msra.mxu0 %v2522_v13  ;;  %1588 = vmatpush1.bf16.msra.mxu1 %v2524_v32  ;;  %v702_v13 = vld [vmem:[%s2963_s11 + $0xd0] sm:$0xff]  ;;  %v735_v1 = vld [vmem:[%s2963_s11 + $0x1d8] sm:$0xff]  ;;  %v2456_v22 = vcombine.low %v727_v3, %v731_v4 }
  0x9e   : > { %1670 = vmatprep.subr.bf16.mxu0 %v2407_v33  ;;  %1783 = vmatprep.subr.bf16.mxu1 %v2409_v34  ;;  %v2431_v26 = vcombine.high %v702_v13, %v706_v14  ;;  %v714_v32 = vld [vmem:[%s2963_s11 + $0x130] sm:$0xff]  ;;  %v636_v33 = vmax.f32 %v604_v19, 0.0  ;;  %v638_v34 = vmax.f32 %v606_v20, 0.0  ;;  %v2430_v42 = vcombine.low %v702_v13, %v706_v14  ;;  %v739_v15 = vld [vmem:[%s2963_s11 + $0x1f8] sm:$0xff]  ;;  %v528_v20 = vld [vmem:[%s3804_s0 + $0xa0] sm:$0xff] }
  0x9f   : > { %v2439_v44 = vcombine.high %v710_v31, %v714_v32  ;;  %v2438_v52 = vcombine.low %v710_v31, %v714_v32  ;;  %v738_v13 = vld [vmem:[%s2963_s11 + $0x1f0] sm:$0xff]  ;;  %v612_v17 = vadd.f32 %v3104_v38, %v568_v5  ;;  %v2454_v19 = vcombine.low %v726_v61, %v730_v2 }
  0xa0   : > { %1477 = vmatmul.mubr.bf16.vlgmr.msra.gmra.mrb[0].mxu0 %v3186_v36  ;;  %1590 = vmatmul.mubr.bf16.vlgmr.msra.gmra.mrb[0].mxu1 %v3186_v36  ;;  %v3250_v47 = vpack.c.bf16 %v638_v34, %v636_v33  ;;  %v743_v33 = vld [vmem:[%s2963_s11 + $0x218] sm:$0xff]  ;;  %v578_v5 = vmul.f32 %v3065_v8, %v534_v23 }
  0xa1   : > { %1671 = vmatpush1.bf16.msra.mxu0 %v2406_v51  ;;  %1784 = vmatpush1.bf16.msra.mxu1 %v2408_v53  ;;  %v610_v51 = vadd.f32 %v3104_v38, %v566_v41  ;;  %v526_v53 = vld [vmem:[%s3804_s0 + $0x90] sm:$0xff]  ;;  %v644_v31 = vmax.f32 %v612_v17, 0.0  ;;  %v747_v34 = vld [vmem:[%s2963_s11 + $0x238] sm:$0xff]  ;;  %v2464_v41 = vcombine.low %v735_v1, %v739_v15 }
  0xa2   : > { %1672 = vmatprep.subr.bf16.mxu0 %v2415_v54  ;;  %1785 = vmatprep.subr.bf16.mxu1 %v2417_v56  ;;  %v2440_v54 = vcombine.low %v711_v37, %v715_v39  ;;  %v2447_v56 = vcombine.high %v718_v6, %v722_v46  ;;  %v570_v7 = vmul.f32 %v3065_v8, %v526_v53  ;;  %v751_v46 = vld [vmem:[%s2963_s11 + $0x258] sm:$0xff] }
  0xa3   : > { %1486 = vmatprep.mubr.bf16.mxu0 %v3208_v58  ;;  %1599 = vmatprep.mubr.bf16.mxu1 %v3208_v58  ;;  %v642_v63 = vmax.f32 %v610_v51, 0.0  ;;  %v572_v37 = vmul.f32 %v3065_v8, %v528_v20  ;;  %v2472_v53 = vcombine.low %v743_v33, %v747_v34  ;;  %v536_v20 = vld [vmem:[%s3804_s0 + $0xe0] sm:$0xff] }
  0xa4   : > { %v614_v18 = vadd.f32 %v3104_v38, %v570_v7 }
  0xa5   : > { %1673 = vmatpush1.bf16.msra.mxu0 %v2414_v10  ;;  %1786 = vmatpush1.bf16.msra.mxu1 %v2416_v29  ;;  %v2448_v10 = vcombine.low %v719_v48, %v723_v49  ;;  %v2455_v29 = vcombine.high %v726_v61, %v730_v2  ;;  %v3274_v14 = vpack.c.bf16 %v642_v63, %v640_v62  ;;  %v755_v48 = vld [vmem:[%s2963_s11 + $0x278] sm:$0xff]  ;;  %v762_v61 = vld [vmem:[%s2963_s11 + $0x2b0] sm:$0xff] }
  0xa6   : > { %1674 = vmatprep.subr.bf16.mxu0 %v2423_v11  ;;  %1787 = vmatprep.subr.bf16.mxu1 %v2425_v12  ;;  %v2457_v11 = vcombine.high %v727_v3, %v731_v4  ;;  %v734_v12 = vld [vmem:[%s2963_s11 + $0x1d0] sm:$0xff]  ;;  %v646_v32 = vmax.f32 %v614_v18, 0.0  ;;  %v616_v49 = vadd.f32 %v3104_v38, %v572_v37  ;;  %v759_v63 = vld [vmem:[%s2963_s11 + $0x298] sm:$0xff]  ;;  %v622_v18 = vadd.f32 %v3104_v38, %v578_v5 }
  0xa7   : > { %v2463_v24 = vcombine.high %v734_v12, %v738_v13  ;;  %v2462_v40 = vcombine.low %v734_v12, %v738_v13  ;;  %v763_v3 = vld [vmem:[%s2963_s11 + $0x2b8] sm:$0xff]  ;;  %v770_v12 = vld [vmem:[%s2963_s11 + $0x2f0] sm:$0xff]  ;;  %v580_v37 = vmul.f32 %v3065_v8, %v536_v20 }
  0xa8   : > { %1487 = vmatmul.mubr.bf16.gmra.mrb[4].mxu0 %v3224_v16  ;;  %1600 = vmatmul.mubr.bf16.gmra.mrb[4].mxu1 %v3224_v16  ;;  %v3298_v6 = vpack.c.bf16 %v646_v32, %v644_v31  ;;  %v648_v2 = vmax.f32 %v616_v49, 0.0  ;;  %v654_v32 = vmax.f32 %v622_v18, 0.0  ;;  %v798_v5 = vld [vmem:[%s2963_s11 + $0x3d0] sm:$0xff] }
  0xa9   : > { %1675 = vmatpush1.bf16.msra.mxu0 %v2422_v21  ;;  %1788 = vmatpush1.bf16.msra.mxu1 %v2424_v25  ;;  %v530_v21 = vld [vmem:[%s3804_s0 + $0xb0] sm:$0xff]  ;;  %v2465_v25 = vcombine.high %v735_v1, %v739_v15  ;;  %v767_v1 = vld [vmem:[%s2963_s11 + $0x2d8] sm:$0xff]  ;;  %v624_v49 = vadd.f32 %v3104_v38, %v580_v37 }
  0xaa   : > { %1676 = vmatprep.subr.bf16.mxu0 %v2431_v26  ;;  %1789 = vmatprep.subr.bf16.mxu1 %v2433_v27  ;;  %v742_v26 = vld [vmem:[%s2963_s11 + $0x210] sm:$0xff]  ;;  %v574_v39 = vmul.f32 %v3065_v8, %v530_v21  ;;  %v771_v15 = vld [vmem:[%s2963_s11 + $0x2f8] sm:$0xff] }
  0xab   : > { %1496 = vmatprep.mubr.bf16.mxu0 %v3236_v28  ;;  %1609 = vmatprep.mubr.bf16.mxu1 %v3236_v28  ;;  %v746_v27 = vld [vmem:[%s2963_s11 + $0x230] sm:$0xff] }
  0xac   : > { %v618_v50 = vadd.f32 %v3104_v38, %v574_v39  ;;  %v2470_v51 = vcombine.low %v742_v26, %v746_v27  ;;  %v538_v21 = vld [vmem:[%s3804_s0 + $0xf0] sm:$0xff] }
  0xad   : > { %1677 = vmatpush1.bf16.msra.mxu0 %v2430_v42  ;;  %1790 = vmatpush1.bf16.msra.mxu1 %v2432_v43  ;;  %v2471_v42 = vcombine.high %v742_v26, %v746_v27  ;;  %v2473_v43 = vcombine.high %v743_v33, %v747_v34  ;;  %v774_v26 = vld [vmem:[%s2963_s11 + $0x310] sm:$0xff]  ;;  %v775_v33 = vld [vmem:[%s2963_s11 + $0x318] sm:$0xff]  ;;  %v582_v39 = vmul.f32 %v3065_v8, %v538_v21 }
  0xae   : > { %1678 = vmatprep.subr.bf16.mxu0 %v2439_v44  ;;  %1791 = vmatprep.subr.bf16.mxu1 %v2441_v45  ;;  %v750_v44 = vld [vmem:[%s2963_s11 + $0x250] sm:$0xff]  ;;  %v650_v62 = vmax.f32 %v618_v50, 0.0  ;;  %v779_v34 = vld [vmem:[%s2963_s11 + $0x338] sm:$0xff] }
  0xaf   : > { %v754_v45 = vld [vmem:[%s2963_s11 + $0x270] sm:$0xff]  ;;  %v626_v50 = vadd.f32 %v3104_v38, %v582_v39 }
  0xb0   : > { %1497 = vmatmul.mubr.bf16.gmra.mrb[8].mxu0 %v3250_v47  ;;  %1610 = vmatmul.mubr.bf16.gmra.mrb[8].mxu1 %v3250_v47  ;;  %v2478_v7 = vcombine.low %v750_v44, %v754_v45  ;;  %v3322_v13 = vpack.c.bf16 %v650_v62, %v648_v2  ;;  %v778_v27 = vld [vmem:[%s2963_s11 + $0x330] sm:$0xff]  ;;  %v791_v2 = vld [vmem:[%s2963_s11 + $0x398] sm:$0xff] }
  0xb1   : > { %1679 = vmatpush1.bf16.msra.mxu0 %v2438_v52  ;;  %1792 = vmatpush1.bf16.msra.mxu1 %v2440_v54  ;;  %v532_v52 = vld [vmem:[%s3804_s0 + $0xc0] sm:$0xff]  ;;  %v2479_v54 = vcombine.high %v750_v44, %v754_v45  ;;  %v782_v44 = vld [vmem:[%s2963_s11 + $0x350] sm:$0xff]  ;;  %v795_v62 = vld [vmem:[%s2963_s11 + $0x3b8] sm:$0xff] }
  0xb2   : > { %1680 = vmatprep.subr.bf16.mxu0 %v2447_v56  ;;  %1793 = vmatprep.subr.bf16.mxu1 %v2449_v59  ;;  %v2481_v56 = vcombine.high %v751_v46, %v755_v48  ;;  %v758_v59 = vld [vmem:[%s2963_s11 + $0x290] sm:$0xff]  ;;  %v576_v4 = vmul.f32 %v3065_v8, %v532_v52  ;;  %v2504_v52 = vcombine.low %v775_v33, %v779_v34 }
  0xb3   : > { %1506 = vmatprep.mubr.bf16.mxu0 %v3058_v0  ;;  %1619 = vmatprep.mubr.bf16.mxu1 %v3058_v0  ;;  %v786_v45 = vld [vmem:[%s2963_s11 + $0x370] sm:$0xff] }
  0xb4   : > { %v620_v17 = vadd.f32 %v3104_v38, %v576_v4  ;;  %v2511_v23 = vcombine.high %v782_v44, %v786_v45  ;;  %v2510_v38 = vcombine.low %v782_v44, %v786_v45  ;;  %v2521_v4 = vcombine.high %v791_v2, %v795_v62 }
  0xb5   : > { %1681 = vmatpush1.bf16.msra.mxu0 %v2446_v9  ;;  %1794 = vmatpush1.bf16.msra.mxu1 %v2448_v10  ;;  %v2480_v9 = vcombine.low %v751_v46, %v755_v48  ;;  %v2487_v10 = vcombine.high %v758_v59, %v762_v61  ;;  %v783_v46 = vld [vmem:[%s2963_s11 + $0x358] sm:$0xff] }
  0xb6   : > { %1682 = vmatprep.subr.bf16.mxu0 %v2455_v29  ;;  %1795 = vmatprep.subr.bf16.mxu1 %v2457_v11  ;;  %v2489_v29 = vcombine.high %v759_v63, %v763_v3  ;;  %v766_v11 = vld [vmem:[%s2963_s11 + $0x2d0] sm:$0xff]  ;;  %v652_v31 = vmax.f32 %v620_v17, 0.0  ;;  %v787_v48 = vld [vmem:[%s2963_s11 + $0x378] sm:$0xff] }
  0xb8   : > { %1507 = vmatmul.mubr.bf16.gmra.mrb[12].mxu0 %v3274_v14  ;;  %1620 = vmatmul.mubr.bf16.gmra.mrb[12].mxu1 %v3274_v14  ;;  %v3346_v8 = vpack.c.bf16 %v654_v32, %v652_v31 }
  0xb9   : > { %1683 = vmatpush1.bf16.msra.mxu0 %v2454_v19  ;;  %1796 = vmatpush1.bf16.msra.mxu1 %v2456_v22  ;;  %v2486_v19 = vcombine.low %v758_v59, %v762_v61  ;;  %v2488_v22 = vcombine.low %v759_v63, %v763_v3  ;;  %v656_v59 = vmax.f32 %v624_v49, 0.0  ;;  %v658_v61 = vmax.f32 %v626_v50, 0.0 }
  0xba   : > { %1684 = vmatprep.subr.bf16.mxu0 %v2463_v24  ;;  %1797 = vmatprep.subr.bf16.mxu1 %v2465_v25  ;;  %v2495_v24 = vcombine.high %v766_v11, %v770_v12  ;;  %v2497_v25 = vcombine.high %v767_v1, %v771_v15  ;;  %v2512_v63 = vcombine.low %v783_v46, %v787_v48 }
  0xbb   : > { %1516 = vmatprep.mubr.bf16.mxu0 %v3090_v30  ;;  %1629 = vmatprep.mubr.bf16.mxu1 %v3090_v30 }
  0xbd   : > { %1685 = vmatpush1.bf16.msra.mxu0 %v2462_v40  ;;  %1798 = vmatpush1.bf16.msra.mxu1 %v2464_v41  ;;  %v2494_v40 = vcombine.low %v766_v11, %v770_v12  ;;  %v2496_v41 = vcombine.low %v767_v1, %v771_v15  ;;  %v2520_v12 = vcombine.low %v791_v2, %v795_v62 }
  0xbe   : > { %1686 = vmatprep.subr.bf16.mxu0 %v2471_v42  ;;  %1799 = vmatprep.subr.bf16.mxu1 %v2473_v43  ;;  %v2503_v42 = vcombine.high %v774_v26, %v778_v27  ;;  %v2505_v43 = vcombine.high %v775_v33, %v779_v34 }
  0xc0   : > { %1517 = vmatmul.mubr.bf16.gmra.mrb[16].mxu0 %v3298_v6  ;;  %1630 = vmatmul.mubr.bf16.gmra.mrb[16].mxu1 %v3298_v6 }
  0xc1   : > { %1687 = vmatpush1.bf16.msra.mxu0 %v2470_v51  ;;  %1800 = vmatpush1.bf16.msra.mxu1 %v2472_v53  ;;  %v2502_v51 = vcombine.low %v774_v26, %v778_v27  ;;  %v2513_v53 = vcombine.high %v783_v46, %v787_v48 }
  0xc2   : > { %1688 = vmatprep.subr.bf16.mxu0 %v2479_v54  ;;  %1801 = vmatprep.subr.bf16.mxu1 %v2481_v56  ;;  %v790_v54 = vld [vmem:[%s2963_s11 + $0x390] sm:$0xff] }
  0xc3   : > { %1526 = vmatprep.mubr.bf16.mxu0 %v3138_v60  ;;  %1639 = vmatprep.mubr.bf16.mxu1 %v3138_v60  ;;  %v794_v56 = vld [vmem:[%s2963_s11 + $0x3b0] sm:$0xff] }
  0xc4   : > { %v2519_v3 = vcombine.high %v790_v54, %v794_v56  ;;  %v2518_v11 = vcombine.low %v790_v54, %v794_v56 }
  0xc5   : > { %1689 = vmatpush1.bf16.msra.mxu0 %v2478_v7  ;;  %1802 = vmatpush1.bf16.msra.mxu1 %v2480_v9  ;;  %v802_v7 = vld [vmem:[%s2963_s11 + $0x3f0] sm:$0xff]  ;;  %v674_v9 = vpack.c.bf16 %v658_v61, %v656_v59 }
  0xc6   : > { %1690 = vmatprep.subr.bf16.mxu0 %v2487_v10  ;;  %1803 = vmatprep.subr.bf16.mxu1 %v2489_v29  ;;  %v799_v10 = vld [vmem:[%s2963_s11 + $0x3d8] sm:$0xff]  ;;  %v2527_v1 = vcombine.high %v798_v5, %v802_v7  ;;  %v2526_v17 = vcombine.low %v798_v5, %v802_v7 }
  0xc7   : > { %v803_v29 = vld [vmem:[%s2963_s11 + $0x3f8] sm:$0xff]  ;;  %s3395_s11 = scalar_lea.vmem [#allocation3], %s2953_s8  ;;  %s2536_s8 = sshll.u32 (%p2677_p6), %s2607_s17, 6 }
  0xc8   : > { %1527 = vmatmul.mubr.bf16.gmra.mrb[20].mxu0 %v3322_v13  ;;  %1640 = vmatmul.mubr.bf16.gmra.mrb[20].mxu1 %v3322_v13  ;;  %v2529_v15 = vcombine.high %v799_v10, %v803_v29  ;;  %v2528_v18 = vcombine.low %v799_v10, %v803_v29  ;;  %s3534_s12 = scalar_lea.vmem (%p2677_p6), %s3808_s4, %s2536_s8 }
  0xc9   : > { %1691 = vmatpush1.bf16.msra.mxu0 %v2486_v19  ;;  %1804 = vmatpush1.bf16.msra.mxu1 %v2488_v22 }
  0xca   : > { %1692 = vmatprep.subr.bf16.mxu0 %v2495_v24  ;;  %1805 = vmatprep.subr.bf16.mxu1 %v2497_v25 }
  0xcb   : > { %1536 = vmatprep.mubr.bf16.mxu0 %v3184_v35  ;;  %1649 = vmatprep.mubr.bf16.mxu1 %v3184_v35 }
  0xcd   : > { %1693 = vmatpush1.bf16.msra.mxu0 %v2494_v40  ;;  %1806 = vmatpush1.bf16.msra.mxu1 %v2496_v41 }
  0xce   : > { %1694 = vmatprep.subr.bf16.mxu0 %v2503_v42  ;;  %1807 = vmatprep.subr.bf16.mxu1 %v2505_v43 }
  0xd0   : > { %1537 = vmatmul.mubr.bf16.gmra.mrb[24].mxu0 %v3346_v8  ;;  %1650 = vmatmul.mubr.bf16.gmra.mrb[24].mxu1 %v3346_v8 }
  0xd1   : > { %1695 = vmatpush1.bf16.msra.mxu0 %v2502_v51  ;;  %1808 = vmatpush1.bf16.msra.mxu1 %v2504_v52 }
  0xd2   : > { %1696 = vmatprep.subr.bf16.mxu0 %v2511_v23  ;;  %1809 = vmatprep.subr.bf16.mxu1 %v2513_v53 }
  0xd3   : > { %1546 = vmatprep.mubr.bf16.mxu0 %v3206_v55  ;;  %1659 = vmatprep.mubr.bf16.mxu1 %v3206_v55 }
  0xd5   : > { %1697 = vmatpush1.bf16.msra.mxu0 %v2510_v38  ;;  %1810 = vmatpush1.bf16.msra.mxu1 %v2512_v63 }
  0xd6   : > { %1698 = vmatprep.subr.bf16.mxu0 %v2519_v3  ;;  %1811 = vmatprep.subr.bf16.mxu1 %v2521_v4 }
  0xd8   : > { %1547 = vmatmul.mubr.bf16.gmra.mrb[28].mxu0 %v674_v9  ;;  %1660 = vmatmul.mubr.bf16.gmra.mrb[28].mxu1 %v674_v9 }
  0xd9   : > { %1699 = vmatpush1.bf16.msra.mxu0 %v2518_v11  ;;  %1812 = vmatpush1.bf16.msra.mxu1 %v2520_v12 }
  0xda   : > { %1700 = vmatprep.subr.bf16.mxu0 %v2527_v1  ;;  %1813 = vmatprep.subr.bf16.mxu1 %v2529_v15 }
  0xdb   : > { %1702 = vmatprep.mubr.bf16.mxu0 %v3011_v57  ;;  %1815 = vmatprep.mubr.bf16.mxu1 %v3011_v57 }
  0xdd   : > { %1701 = vmatpush1.bf16.msra.mxu0 %v2526_v17  ;;  %1814 = vmatpush1.bf16.msra.mxu1 %v2528_v18 }
  0xe0   : > { %1703 = vmatmul.mubr.bf16.vlgmr.msra.gmra.mrb[32].mxu0 %v3186_v36  ;;  %1816 = vmatmul.mubr.bf16.vlgmr.msra.gmra.mrb[32].mxu1 %v3186_v36 }
  0xe1   : > { %1712 = vmatprep.mubr.bf16.mxu0 %v3208_v58  ;;  %1825 = vmatprep.mubr.bf16.mxu1 %v3208_v58 }
  0xe8   : > { %1713 = vmatmul.mubr.bf16.gmra.mrb[36].mxu0 %v3224_v16  ;;  %1826 = vmatmul.mubr.bf16.gmra.mrb[36].mxu1 %v3224_v16 }
  0xe9   : > { %1722 = vmatprep.mubr.bf16.mxu0 %v3236_v28  ;;  %1835 = vmatprep.mubr.bf16.mxu1 %v3236_v28 }
  0xf0   : > { %1723 = vmatmul.mubr.bf16.gmra.mrb[40].mxu0 %v3250_v47  ;;  %1836 = vmatmul.mubr.bf16.gmra.mrb[40].mxu1 %v3250_v47 }
  0xf1   : > { %1732 = vmatprep.mubr.bf16.mxu0 %v3058_v0  ;;  %1845 = vmatprep.mubr.bf16.mxu1 %v3058_v0 }
  0xf8   : > { %1733 = vmatmul.mubr.bf16.gmra.mrb[44].mxu0 %v3274_v14  ;;  %1846 = vmatmul.mubr.bf16.gmra.mrb[44].mxu1 %v3274_v14 }
  0xf9   : > { %1742 = vmatprep.mubr.bf16.mxu0 %v3090_v30  ;;  %1855 = vmatprep.mubr.bf16.mxu1 %v3090_v30 }
 0x100   : > { %1743 = vmatmul.mubr.bf16.gmra.mrb[48].mxu0 %v3298_v6  ;;  %1856 = vmatmul.mubr.bf16.gmra.mrb[48].mxu1 %v3298_v6 }
 0x101   : > { %1752 = vmatprep.mubr.bf16.mxu0 %v3138_v60  ;;  %1865 = vmatprep.mubr.bf16.mxu1 %v3138_v60 }
 0x108   : > { %1753 = vmatmul.mubr.bf16.gmra.mrb[52].mxu0 %v3322_v13  ;;  %1866 = vmatmul.mubr.bf16.gmra.mrb[52].mxu1 %v3322_v13 }
 0x109   : > { %1762 = vmatprep.mubr.bf16.mxu0 %v3184_v35  ;;  %1875 = vmatprep.mubr.bf16.mxu1 %v3184_v35 }
 0x110   : > { %1763 = vmatmul.mubr.bf16.gmra.mrb[56].mxu0 %v3346_v8  ;;  %1876 = vmatmul.mubr.bf16.gmra.mrb[56].mxu1 %v3346_v8 }
 0x111   : > { %1772 = vmatprep.mubr.bf16.mxu0 %v3206_v55  ;;  %1885 = vmatprep.mubr.bf16.mxu1 %v3206_v55 }
 0x118   : > { %1773 = vmatmul.mubr.bf16.gmra.mrb[60].mxu0 %v674_v9  ;;  %1886 = vmatmul.mubr.bf16.gmra.mrb[60].mxu1 %v674_v9 }
 0x173   : > { %v1478_v57 = vpop.f32.mrb[0].mxu0  ;;  %v1591_v0 = vpop.f32.mrb[0].mxu1 }
 0x174   : > { %1896 = vst [vmem:[%s3395_s11] sm:$0xff] %v1478_v57  ;;  %v1480_v30 = vpop.f32.mrb[1].mxu0  ;;  %1898 = vst [vmem:[%s3395_s11 + $0x10] sm:$0xff] %v1591_v0  ;;  %v1593_v60 = vpop.f32.mrb[1].mxu1 }
 0x175   : > { %1897 = vst [vmem:[%s3395_s11 + $0x8] sm:$0xff] %v1480_v30  ;;  %v1482_v35 = vpop.f32.mrb[2].mxu0  ;;  %1899 = vst [vmem:[%s3395_s11 + $0x18] sm:$0xff] %v1593_v60  ;;  %v1595_v36 = vpop.f32.mrb[2].mxu1 }
 0x176   : > { %1904 = vst [vmem:[%s3395_s11 + $0x40] sm:$0xff] %v1482_v35  ;;  %v1484_v55 = vpop.f32.mrb[3].mxu0  ;;  %1906 = vst [vmem:[%s3395_s11 + $0x50] sm:$0xff] %v1595_v36  ;;  %v1597_v58 = vpop.f32.mrb[3].mxu1 }
 0x177   : > { %1905 = vst [vmem:[%s3395_s11 + $0x48] sm:$0xff] %v1484_v55  ;;  %1907 = vst [vmem:[%s3395_s11 + $0x58] sm:$0xff] %v1597_v58 }
 0x17b   : > { %v1488_v16 = vpop.f32.mrb[4].mxu0  ;;  %v1601_v28 = vpop.f32.mrb[4].mxu1 }
 0x17c   : > { %1912 = vst [vmem:[%s3395_s11 + $0x80] sm:$0xff] %v1488_v16  ;;  %v1490_v47 = vpop.f32.mrb[5].mxu0  ;;  %1914 = vst [vmem:[%s3395_s11 + $0x90] sm:$0xff] %v1601_v28  ;;  %v1603_v14 = vpop.f32.mrb[5].mxu1 }
 0x17d   : > { %1913 = vst [vmem:[%s3395_s11 + $0x88] sm:$0xff] %v1490_v47  ;;  %v1492_v6 = vpop.f32.mrb[6].mxu0  ;;  %1915 = vst [vmem:[%s3395_s11 + $0x98] sm:$0xff] %v1603_v14  ;;  %v1605_v13 = vpop.f32.mrb[6].mxu1 }
 0x17e   : > { %1920 = vst [vmem:[%s3395_s11 + $0xc0] sm:$0xff] %v1492_v6  ;;  %v1494_v19 = vpop.f32.mrb[7].mxu0  ;;  %1922 = vst [vmem:[%s3395_s11 + $0xd0] sm:$0xff] %v1605_v13  ;;  %v1607_v20 = vpop.f32.mrb[7].mxu1 }
 0x17f   : > { %1921 = vst [vmem:[%s3395_s11 + $0xc8] sm:$0xff] %v1494_v19  ;;  %1923 = vst [vmem:[%s3395_s11 + $0xd8] sm:$0xff] %v1607_v20 }
 0x183   : > { %v1498_v21 = vpop.f32.mrb[8].mxu0  ;;  %v1611_v22 = vpop.f32.mrb[8].mxu1 }
 0x184   : > { %1928 = vst [vmem:[%s3395_s11 + $0x100] sm:$0xff] %v1498_v21  ;;  %v1500_v24 = vpop.f32.mrb[9].mxu0  ;;  %1930 = vst [vmem:[%s3395_s11 + $0x110] sm:$0xff] %v1611_v22  ;;  %v1613_v25 = vpop.f32.mrb[9].mxu1 }
 0x185   : > { %1929 = vst [vmem:[%s3395_s11 + $0x108] sm:$0xff] %v1500_v24  ;;  %v1502_v26 = vpop.f32.mrb[10].mxu0  ;;  %1931 = vst [vmem:[%s3395_s11 + $0x118] sm:$0xff] %v1613_v25  ;;  %v1615_v27 = vpop.f32.mrb[10].mxu1 }
 0x186   : > { %1936 = vst [vmem:[%s3395_s11 + $0x140] sm:$0xff] %v1502_v26  ;;  %v1504_v31 = vpop.f32.mrb[11].mxu0  ;;  %1938 = vst [vmem:[%s3395_s11 + $0x150] sm:$0xff] %v1615_v27  ;;  %v1617_v32 = vpop.f32.mrb[11].mxu1 }
 0x187   : > { %1937 = vst [vmem:[%s3395_s11 + $0x148] sm:$0xff] %v1504_v31  ;;  %1939 = vst [vmem:[%s3395_s11 + $0x158] sm:$0xff] %v1617_v32 }
 0x18b   : > { %v1508_v33 = vpop.f32.mrb[12].mxu0  ;;  %v1621_v34 = vpop.f32.mrb[12].mxu1 }
 0x18c   : > { %1944 = vst [vmem:[%s3395_s11 + $0x180] sm:$0xff] %v1508_v33  ;;  %v1510_v37 = vpop.f32.mrb[13].mxu0  ;;  %1946 = vst [vmem:[%s3395_s11 + $0x190] sm:$0xff] %v1621_v34  ;;  %v1623_v39 = vpop.f32.mrb[13].mxu1 }
 0x18d   : > { %1945 = vst [vmem:[%s3395_s11 + $0x188] sm:$0xff] %v1510_v37  ;;  %v1512_v40 = vpop.f32.mrb[14].mxu0  ;;  %1947 = vst [vmem:[%s3395_s11 + $0x198] sm:$0xff] %v1623_v39  ;;  %v1625_v41 = vpop.f32.mrb[14].mxu1 }
 0x18e   : > { %1952 = vst [vmem:[%s3395_s11 + $0x1c0] sm:$0xff] %v1512_v40  ;;  %v1514_v42 = vpop.f32.mrb[15].mxu0  ;;  %1954 = vst [vmem:[%s3395_s11 + $0x1d0] sm:$0xff] %v1625_v41  ;;  %v1627_v43 = vpop.f32.mrb[15].mxu1 }
 0x18f   : > { %1953 = vst [vmem:[%s3395_s11 + $0x1c8] sm:$0xff] %v1514_v42  ;;  %1955 = vst [vmem:[%s3395_s11 + $0x1d8] sm:$0xff] %v1627_v43 }
 0x193   : > { %v1518_v44 = vpop.f32.mrb[16].mxu0  ;;  %v1631_v45 = vpop.f32.mrb[16].mxu1 }
 0x194   : > { %1960 = vst [vmem:[%s3395_s11 + $0x200] sm:$0xff] %v1518_v44  ;;  %v1520_v8 = vpop.f32.mrb[17].mxu0  ;;  %1962 = vst [vmem:[%s3395_s11 + $0x210] sm:$0xff] %v1631_v45  ;;  %v1633_v46 = vpop.f32.mrb[17].mxu1 }
 0x195   : > { %1961 = vst [vmem:[%s3395_s11 + $0x208] sm:$0xff] %v1520_v8  ;;  %v1522_v48 = vpop.f32.mrb[18].mxu0  ;;  %1963 = vst [vmem:[%s3395_s11 + $0x218] sm:$0xff] %v1633_v46  ;;  %v1635_v49 = vpop.f32.mrb[18].mxu1 }
 0x196   : > { %1968 = vst [vmem:[%s3395_s11 + $0x240] sm:$0xff] %v1522_v48  ;;  %v1524_v50 = vpop.f32.mrb[19].mxu0  ;;  %1970 = vst [vmem:[%s3395_s11 + $0x250] sm:$0xff] %v1635_v49  ;;  %v1637_v51 = vpop.f32.mrb[19].mxu1 }
 0x197   : > { %1969 = vst [vmem:[%s3395_s11 + $0x248] sm:$0xff] %v1524_v50  ;;  %1971 = vst [vmem:[%s3395_s11 + $0x258] sm:$0xff] %v1637_v51 }
 0x19b   : > { %v1528_v52 = vpop.f32.mrb[20].mxu0  ;;  %v1641_v23 = vpop.f32.mrb[20].mxu1 }
 0x19c   : > { %1976 = vst [vmem:[%s3395_s11 + $0x280] sm:$0xff] %v1528_v52  ;;  %v1530_v53 = vpop.f32.mrb[21].mxu0  ;;  %1978 = vst [vmem:[%s3395_s11 + $0x290] sm:$0xff] %v1641_v23  ;;  %v1643_v54 = vpop.f32.mrb[21].mxu1 }
 0x19d   : > { %1977 = vst [vmem:[%s3395_s11 + $0x288] sm:$0xff] %v1530_v53  ;;  %v1532_v56 = vpop.f32.mrb[22].mxu0  ;;  %1979 = vst [vmem:[%s3395_s11 + $0x298] sm:$0xff] %v1643_v54  ;;  %v1645_v59 = vpop.f32.mrb[22].mxu1 }
 0x19e   : > { %1984 = vst [vmem:[%s3395_s11 + $0x2c0] sm:$0xff] %v1532_v56  ;;  %v1534_v61 = vpop.f32.mrb[23].mxu0  ;;  %1986 = vst [vmem:[%s3395_s11 + $0x2d0] sm:$0xff] %v1645_v59  ;;  %v1647_v2 = vpop.f32.mrb[23].mxu1 }
 0x19f   : > { %1985 = vst [vmem:[%s3395_s11 + $0x2c8] sm:$0xff] %v1534_v61  ;;  %1987 = vst [vmem:[%s3395_s11 + $0x2d8] sm:$0xff] %v1647_v2 }
 0x1a3   : > { %v1538_v62 = vpop.f32.mrb[24].mxu0  ;;  %v1651_v38 = vpop.f32.mrb[24].mxu1 }
 0x1a4   : > { %1992 = vst [vmem:[%s3395_s11 + $0x300] sm:$0xff] %v1538_v62  ;;  %v1540_v63 = vpop.f32.mrb[25].mxu0  ;;  %1994 = vst [vmem:[%s3395_s11 + $0x310] sm:$0xff] %v1651_v38  ;;  %v1653_v3 = vpop.f32.mrb[25].mxu1 }
 0x1a5   : > { %1993 = vst [vmem:[%s3395_s11 + $0x308] sm:$0xff] %v1540_v63  ;;  %v1542_v4 = vpop.f32.mrb[26].mxu0  ;;  %1995 = vst [vmem:[%s3395_s11 + $0x318] sm:$0xff] %v1653_v3  ;;  %v1655_v5 = vpop.f32.mrb[26].mxu1 }
 0x1a6   : > { %2000 = vst [vmem:[%s3395_s11 + $0x340] sm:$0xff] %v1542_v4  ;;  %v1544_v7 = vpop.f32.mrb[27].mxu0  ;;  %2002 = vst [vmem:[%s3395_s11 + $0x350] sm:$0xff] %v1655_v5  ;;  %v1657_v9 = vpop.f32.mrb[27].mxu1 }
 0x1a7   : > { %2001 = vst [vmem:[%s3395_s11 + $0x348] sm:$0xff] %v1544_v7  ;;  %2003 = vst [vmem:[%s3395_s11 + $0x358] sm:$0xff] %v1657_v9 }
 0x1ab   : > { %v1548_v10 = vpop.f32.mrb[28].mxu0  ;;  %v1661_v29 = vpop.f32.mrb[28].mxu1 }
 0x1ac   : > { %2008 = vst [vmem:[%s3395_s11 + $0x380] sm:$0xff] %v1548_v10  ;;  %v1550_v11 = vpop.f32.mrb[29].mxu0  ;;  %2010 = vst [vmem:[%s3395_s11 + $0x390] sm:$0xff] %v1661_v29  ;;  %v1663_v12 = vpop.f32.mrb[29].mxu1 }
 0x1ad   : > { %2009 = vst [vmem:[%s3395_s11 + $0x388] sm:$0xff] %v1550_v11  ;;  %v1552_v1 = vpop.f32.mrb[30].mxu0  ;;  %2011 = vst [vmem:[%s3395_s11 + $0x398] sm:$0xff] %v1663_v12  ;;  %v1665_v15 = vpop.f32.mrb[30].mxu1 }
 0x1ae   : > { %2016 = vst [vmem:[%s3395_s11 + $0x3c0] sm:$0xff] %v1552_v1  ;;  %v1554_v17 = vpop.f32.mrb[31].mxu0  ;;  %2018 = vst [vmem:[%s3395_s11 + $0x3d0] sm:$0xff] %v1665_v15  ;;  %v1667_v18 = vpop.f32.mrb[31].mxu1 }
 0x1af   : > { %2017 = vst [vmem:[%s3395_s11 + $0x3c8] sm:$0xff] %v1554_v17  ;;  %2019 = vst [vmem:[%s3395_s11 + $0x3d8] sm:$0xff] %v1667_v18 }
 0x1b3   : > { %v1704_v57 = vpop.f32.mrb[32].mxu0  ;;  %v1817_v0 = vpop.f32.mrb[32].mxu1 }
 0x1b4   : > { %1900 = vst [vmem:[%s3395_s11 + $0x20] sm:$0xff] %v1704_v57  ;;  %v1706_v30 = vpop.f32.mrb[33].mxu0  ;;  %1902 = vst [vmem:[%s3395_s11 + $0x30] sm:$0xff] %v1817_v0  ;;  %v1819_v60 = vpop.f32.mrb[33].mxu1  ;;  %v2049_v57 = vld [vmem:[%s3395_s11] sm:$0xff] (%p2677_p6)  ;;  %v2051_v0 = vld [vmem:[%s3395_s11 + $0x8] sm:$0xff] (%p2677_p6) }
 0x1b5   : > { %1901 = vst [vmem:[%s3395_s11 + $0x28] sm:$0xff] %v1706_v30  ;;  %v1708_v35 = vpop.f32.mrb[34].mxu0  ;;  %1903 = vst [vmem:[%s3395_s11 + $0x38] sm:$0xff] %v1819_v60  ;;  %v1821_v36 = vpop.f32.mrb[34].mxu1  ;;  %v2053_v30 = vld [vmem:[%s3395_s11 + $0x10] sm:$0xff] (%p2677_p6)  ;;  %v2055_v60 = vld [vmem:[%s3395_s11 + $0x18] sm:$0xff] (%p2677_p6) }
 0x1b6   : > { %1908 = vst [vmem:[%s3395_s11 + $0x60] sm:$0xff] %v1708_v35  ;;  %v1710_v55 = vpop.f32.mrb[35].mxu0  ;;  %1910 = vst [vmem:[%s3395_s11 + $0x70] sm:$0xff] %v1821_v36  ;;  %v1823_v58 = vpop.f32.mrb[35].mxu1 }
 0x1b7   : > { %1909 = vst [vmem:[%s3395_s11 + $0x68] sm:$0xff] %v1710_v55  ;;  %1911 = vst [vmem:[%s3395_s11 + $0x78] sm:$0xff] %v1823_v58 }
 0x1b8   : > { %2050 = vst [vmem:[%s3534_s12] sm:$0xff] (%p2677_p6), %v2049_v57  ;;  %2052 = vst [vmem:[%s3534_s12 + $0x8] sm:$0xff] (%p2677_p6), %v2051_v0  ;;  %v2177_v57 = vld [vmem:[%s3395_s11 + $0x200] sm:$0xff] (%p2677_p6)  ;;  %v2179_v0 = vld [vmem:[%s3395_s11 + $0x208] sm:$0xff] (%p2677_p6) }
 0x1b9   : > { %2054 = vst [vmem:[%s3534_s12 + $0x10] sm:$0xff] (%p2677_p6), %v2053_v30  ;;  %2056 = vst [vmem:[%s3534_s12 + $0x18] sm:$0xff] (%p2677_p6), %v2055_v60  ;;  %v2181_v30 = vld [vmem:[%s3395_s11 + $0x210] sm:$0xff] (%p2677_p6)  ;;  %v2183_v60 = vld [vmem:[%s3395_s11 + $0x218] sm:$0xff] (%p2677_p6) }
 0x1ba   : > { %2178 = vst [vmem:[%s3534_s12 + $0x400] sm:$0xff] (%p2677_p6), %v2177_v57  ;;  %2180 = vst [vmem:[%s3534_s12 + $0x408] sm:$0xff] (%p2677_p6), %v2179_v0 }
 0x1bb   : > { %v1714_v16 = vpop.f32.mrb[36].mxu0  ;;  %v1827_v28 = vpop.f32.mrb[36].mxu1  ;;  %v2057_v35 = vld [vmem:[%s3395_s11 + $0x20] sm:$0xff] (%p2677_p6)  ;;  %v2061_v55 = vld [vmem:[%s3395_s11 + $0x30] sm:$0xff] (%p2677_p6)  ;;  %2182 = vst [vmem:[%s3534_s12 + $0x410] sm:$0xff] (%p2677_p6), %v2181_v30  ;;  %2184 = vst [vmem:[%s3534_s12 + $0x418] sm:$0xff] (%p2677_p6), %v2183_v60 }
 0x1bc   : > { %1916 = vst [vmem:[%s3395_s11 + $0xa0] sm:$0xff] %v1714_v16  ;;  %v1716_v47 = vpop.f32.mrb[37].mxu0  ;;  %1918 = vst [vmem:[%s3395_s11 + $0xb0] sm:$0xff] %v1827_v28  ;;  %v1829_v14 = vpop.f32.mrb[37].mxu1  ;;  %v2059_v36 = vld [vmem:[%s3395_s11 + $0x28] sm:$0xff] (%p2677_p6)  ;;  %v2063_v58 = vld [vmem:[%s3395_s11 + $0x38] sm:$0xff] (%p2677_p6) }
 0x1bd   : > { %1917 = vst [vmem:[%s3395_s11 + $0xa8] sm:$0xff] %v1716_v47  ;;  %v1718_v6 = vpop.f32.mrb[38].mxu0  ;;  %1919 = vst [vmem:[%s3395_s11 + $0xb8] sm:$0xff] %v1829_v14  ;;  %v1831_v13 = vpop.f32.mrb[38].mxu1  ;;  %v2065_v16 = vld [vmem:[%s3395_s11 + $0x40] sm:$0xff] (%p2677_p6)  ;;  %v2067_v28 = vld [vmem:[%s3395_s11 + $0x48] sm:$0xff] (%p2677_p6) }
 0x1be   : > { %1924 = vst [vmem:[%s3395_s11 + $0xe0] sm:$0xff] %v1718_v6  ;;  %v1720_v19 = vpop.f32.mrb[39].mxu0  ;;  %1926 = vst [vmem:[%s3395_s11 + $0xf0] sm:$0xff] %v1831_v13  ;;  %v1833_v20 = vpop.f32.mrb[39].mxu1  ;;  %v2069_v47 = vld [vmem:[%s3395_s11 + $0x50] sm:$0xff] (%p2677_p6)  ;;  %v2071_v14 = vld [vmem:[%s3395_s11 + $0x58] sm:$0xff] (%p2677_p6) }
 0x1bf   : > { %1925 = vst [vmem:[%s3395_s11 + $0xe8] sm:$0xff] %v1720_v19  ;;  %1927 = vst [vmem:[%s3395_s11 + $0xf8] sm:$0xff] %v1833_v20  ;;  %v2073_v6 = vld [vmem:[%s3395_s11 + $0x60] sm:$0xff] (%p2677_p6)  ;;  %v2075_v13 = vld [vmem:[%s3395_s11 + $0x68] sm:$0xff] (%p2677_p6) }
 0x1c0   : > { %2058 = vst [vmem:[%s3534_s12 + $0x20] sm:$0xff] (%p2677_p6), %v2057_v35  ;;  %2060 = vst [vmem:[%s3534_s12 + $0x28] sm:$0xff] (%p2677_p6), %v2059_v36  ;;  %v2077_v19 = vld [vmem:[%s3395_s11 + $0x70] sm:$0xff] (%p2677_p6)  ;;  %v2079_v20 = vld [vmem:[%s3395_s11 + $0x78] sm:$0xff] (%p2677_p6) }
 0x1c1   : > { %2062 = vst [vmem:[%s3534_s12 + $0x30] sm:$0xff] (%p2677_p6), %v2061_v55  ;;  %2064 = vst [vmem:[%s3534_s12 + $0x38] sm:$0xff] (%p2677_p6), %v2063_v58 }
 0x1c2   : > { %2066 = vst [vmem:[%s3534_s12 + $0x80] sm:$0xff] (%p2677_p6), %v2065_v16  ;;  %2068 = vst [vmem:[%s3534_s12 + $0x88] sm:$0xff] (%p2677_p6), %v2067_v28  ;;  %v2193_v16 = vld [vmem:[%s3395_s11 + $0x240] sm:$0xff] (%p2677_p6)  ;;  %v2195_v28 = vld [vmem:[%s3395_s11 + $0x248] sm:$0xff] (%p2677_p6) }
 0x1c3   : > { %v1724_v21 = vpop.f32.mrb[40].mxu0  ;;  %v1837_v22 = vpop.f32.mrb[40].mxu1  ;;  %2070 = vst [vmem:[%s3534_s12 + $0x90] sm:$0xff] (%p2677_p6), %v2069_v47  ;;  %2072 = vst [vmem:[%s3534_s12 + $0x98] sm:$0xff] (%p2677_p6), %v2071_v14  ;;  %v2197_v47 = vld [vmem:[%s3395_s11 + $0x250] sm:$0xff] (%p2677_p6)  ;;  %v2199_v14 = vld [vmem:[%s3395_s11 + $0x258] sm:$0xff] (%p2677_p6) }
 0x1c4   : > { %1932 = vst [vmem:[%s3395_s11 + $0x120] sm:$0xff] %v1724_v21  ;;  %v1726_v24 = vpop.f32.mrb[41].mxu0  ;;  %1934 = vst [vmem:[%s3395_s11 + $0x130] sm:$0xff] %v1837_v22  ;;  %v1839_v25 = vpop.f32.mrb[41].mxu1  ;;  %v2081_v21 = vld [vmem:[%s3395_s11 + $0x80] sm:$0xff] (%p2677_p6)  ;;  %v2083_v22 = vld [vmem:[%s3395_s11 + $0x88] sm:$0xff] (%p2677_p6) }
 0x1c5   : > { %1933 = vst [vmem:[%s3395_s11 + $0x128] sm:$0xff] %v1726_v24  ;;  %v1728_v26 = vpop.f32.mrb[42].mxu0  ;;  %1935 = vst [vmem:[%s3395_s11 + $0x138] sm:$0xff] %v1839_v25  ;;  %v1841_v27 = vpop.f32.mrb[42].mxu1  ;;  %v2085_v24 = vld [vmem:[%s3395_s11 + $0x90] sm:$0xff] (%p2677_p6)  ;;  %v2087_v25 = vld [vmem:[%s3395_s11 + $0x98] sm:$0xff] (%p2677_p6) }
 0x1c6   : > { %1940 = vst [vmem:[%s3395_s11 + $0x160] sm:$0xff] %v1728_v26  ;;  %v1730_v31 = vpop.f32.mrb[43].mxu0  ;;  %1942 = vst [vmem:[%s3395_s11 + $0x170] sm:$0xff] %v1841_v27  ;;  %v1843_v32 = vpop.f32.mrb[43].mxu1  ;;  %v2089_v26 = vld [vmem:[%s3395_s11 + $0xa0] sm:$0xff] (%p2677_p6)  ;;  %v2091_v27 = vld [vmem:[%s3395_s11 + $0xa8] sm:$0xff] (%p2677_p6) }
 0x1c7   : > { %1941 = vst [vmem:[%s3395_s11 + $0x168] sm:$0xff] %v1730_v31  ;;  %1943 = vst [vmem:[%s3395_s11 + $0x178] sm:$0xff] %v1843_v32  ;;  %v2093_v31 = vld [vmem:[%s3395_s11 + $0xb0] sm:$0xff] (%p2677_p6)  ;;  %v2095_v32 = vld [vmem:[%s3395_s11 + $0xb8] sm:$0xff] (%p2677_p6) }
 0x1c8   : > { %2074 = vst [vmem:[%s3534_s12 + $0xa0] sm:$0xff] (%p2677_p6), %v2073_v6  ;;  %2076 = vst [vmem:[%s3534_s12 + $0xa8] sm:$0xff] (%p2677_p6), %v2075_v13 }
 0x1c9   : > { %2078 = vst [vmem:[%s3534_s12 + $0xb0] sm:$0xff] (%p2677_p6), %v2077_v19  ;;  %2080 = vst [vmem:[%s3534_s12 + $0xb8] sm:$0xff] (%p2677_p6), %v2079_v20 }
 0x1ca   : > { %2082 = vst [vmem:[%s3534_s12 + $0x100] sm:$0xff] (%p2677_p6), %v2081_v21  ;;  %2084 = vst [vmem:[%s3534_s12 + $0x108] sm:$0xff] (%p2677_p6), %v2083_v22  ;;  %v2209_v21 = vld [vmem:[%s3395_s11 + $0x280] sm:$0xff] (%p2677_p6)  ;;  %v2211_v22 = vld [vmem:[%s3395_s11 + $0x288] sm:$0xff] (%p2677_p6) }
 0x1cb   : > { %v1734_v33 = vpop.f32.mrb[44].mxu0  ;;  %v1847_v34 = vpop.f32.mrb[44].mxu1  ;;  %2086 = vst [vmem:[%s3534_s12 + $0x110] sm:$0xff] (%p2677_p6), %v2085_v24  ;;  %2088 = vst [vmem:[%s3534_s12 + $0x118] sm:$0xff] (%p2677_p6), %v2087_v25  ;;  %v2213_v24 = vld [vmem:[%s3395_s11 + $0x290] sm:$0xff] (%p2677_p6)  ;;  %v2215_v25 = vld [vmem:[%s3395_s11 + $0x298] sm:$0xff] (%p2677_p6) }
 0x1cc   : > { %1948 = vst [vmem:[%s3395_s11 + $0x1a0] sm:$0xff] %v1734_v33  ;;  %v1736_v37 = vpop.f32.mrb[45].mxu0  ;;  %1950 = vst [vmem:[%s3395_s11 + $0x1b0] sm:$0xff] %v1847_v34  ;;  %v1849_v39 = vpop.f32.mrb[45].mxu1  ;;  %v2097_v33 = vld [vmem:[%s3395_s11 + $0xc0] sm:$0xff] (%p2677_p6)  ;;  %v2099_v34 = vld [vmem:[%s3395_s11 + $0xc8] sm:$0xff] (%p2677_p6) }
 0x1cd   : > { %1949 = vst [vmem:[%s3395_s11 + $0x1a8] sm:$0xff] %v1736_v37  ;;  %v1738_v40 = vpop.f32.mrb[46].mxu0  ;;  %1951 = vst [vmem:[%s3395_s11 + $0x1b8] sm:$0xff] %v1849_v39  ;;  %v1851_v41 = vpop.f32.mrb[46].mxu1  ;;  %v2101_v37 = vld [vmem:[%s3395_s11 + $0xd0] sm:$0xff] (%p2677_p6)  ;;  %v2103_v39 = vld [vmem:[%s3395_s11 + $0xd8] sm:$0xff] (%p2677_p6) }
 0x1ce   : > { %1956 = vst [vmem:[%s3395_s11 + $0x1e0] sm:$0xff] %v1738_v40  ;;  %v1740_v42 = vpop.f32.mrb[47].mxu0  ;;  %1958 = vst [vmem:[%s3395_s11 + $0x1f0] sm:$0xff] %v1851_v41  ;;  %v1853_v43 = vpop.f32.mrb[47].mxu1  ;;  %v2105_v40 = vld [vmem:[%s3395_s11 + $0xe0] sm:$0xff] (%p2677_p6)  ;;  %v2107_v41 = vld [vmem:[%s3395_s11 + $0xe8] sm:$0xff] (%p2677_p6) }
 0x1cf   : > { %1957 = vst [vmem:[%s3395_s11 + $0x1e8] sm:$0xff] %v1740_v42  ;;  %1959 = vst [vmem:[%s3395_s11 + $0x1f8] sm:$0xff] %v1853_v43  ;;  %v2109_v42 = vld [vmem:[%s3395_s11 + $0xf0] sm:$0xff] (%p2677_p6)  ;;  %v2111_v43 = vld [vmem:[%s3395_s11 + $0xf8] sm:$0xff] (%p2677_p6) }
 0x1d0   : > { %2090 = vst [vmem:[%s3534_s12 + $0x120] sm:$0xff] (%p2677_p6), %v2089_v26  ;;  %2092 = vst [vmem:[%s3534_s12 + $0x128] sm:$0xff] (%p2677_p6), %v2091_v27 }
 0x1d1   : > { %2094 = vst [vmem:[%s3534_s12 + $0x130] sm:$0xff] (%p2677_p6), %v2093_v31  ;;  %2096 = vst [vmem:[%s3534_s12 + $0x138] sm:$0xff] (%p2677_p6), %v2095_v32 }
 0x1d2   : > { %2098 = vst [vmem:[%s3534_s12 + $0x180] sm:$0xff] (%p2677_p6), %v2097_v33  ;;  %2100 = vst [vmem:[%s3534_s12 + $0x188] sm:$0xff] (%p2677_p6), %v2099_v34  ;;  %v2225_v33 = vld [vmem:[%s3395_s11 + $0x2c0] sm:$0xff] (%p2677_p6)  ;;  %v2227_v34 = vld [vmem:[%s3395_s11 + $0x2c8] sm:$0xff] (%p2677_p6) }
 0x1d3   : > { %v1744_v44 = vpop.f32.mrb[48].mxu0  ;;  %v1857_v45 = vpop.f32.mrb[48].mxu1  ;;  %2102 = vst [vmem:[%s3534_s12 + $0x190] sm:$0xff] (%p2677_p6), %v2101_v37  ;;  %2104 = vst [vmem:[%s3534_s12 + $0x198] sm:$0xff] (%p2677_p6), %v2103_v39  ;;  %v2229_v37 = vld [vmem:[%s3395_s11 + $0x2d0] sm:$0xff] (%p2677_p6)  ;;  %v2231_v39 = vld [vmem:[%s3395_s11 + $0x2d8] sm:$0xff] (%p2677_p6) }
 0x1d4   : > { %1964 = vst [vmem:[%s3395_s11 + $0x220] sm:$0xff] %v1744_v44  ;;  %v1746_v8 = vpop.f32.mrb[49].mxu0  ;;  %1966 = vst [vmem:[%s3395_s11 + $0x230] sm:$0xff] %v1857_v45  ;;  %v1859_v46 = vpop.f32.mrb[49].mxu1  ;;  %v2113_v44 = vld [vmem:[%s3395_s11 + $0x100] sm:$0xff] (%p2677_p6)  ;;  %v2115_v45 = vld [vmem:[%s3395_s11 + $0x108] sm:$0xff] (%p2677_p6) }
 0x1d5   : > { %1965 = vst [vmem:[%s3395_s11 + $0x228] sm:$0xff] %v1746_v8  ;;  %v1748_v48 = vpop.f32.mrb[50].mxu0  ;;  %1967 = vst [vmem:[%s3395_s11 + $0x238] sm:$0xff] %v1859_v46  ;;  %v1861_v49 = vpop.f32.mrb[50].mxu1  ;;  %v2117_v8 = vld [vmem:[%s3395_s11 + $0x110] sm:$0xff] (%p2677_p6)  ;;  %v2119_v46 = vld [vmem:[%s3395_s11 + $0x118] sm:$0xff] (%p2677_p6) }
 0x1d6   : > { %1972 = vst [vmem:[%s3395_s11 + $0x260] sm:$0xff] %v1748_v48  ;;  %v1750_v50 = vpop.f32.mrb[51].mxu0  ;;  %1974 = vst [vmem:[%s3395_s11 + $0x270] sm:$0xff] %v1861_v49  ;;  %v1863_v51 = vpop.f32.mrb[51].mxu1  ;;  %v2121_v48 = vld [vmem:[%s3395_s11 + $0x120] sm:$0xff] (%p2677_p6)  ;;  %v2123_v49 = vld [vmem:[%s3395_s11 + $0x128] sm:$0xff] (%p2677_p6) }
 0x1d7   : > { %1973 = vst [vmem:[%s3395_s11 + $0x268] sm:$0xff] %v1750_v50  ;;  %1975 = vst [vmem:[%s3395_s11 + $0x278] sm:$0xff] %v1863_v51  ;;  %v2125_v50 = vld [vmem:[%s3395_s11 + $0x130] sm:$0xff] (%p2677_p6)  ;;  %v2127_v51 = vld [vmem:[%s3395_s11 + $0x138] sm:$0xff] (%p2677_p6) }
 0x1d8   : > { %2106 = vst [vmem:[%s3534_s12 + $0x1a0] sm:$0xff] (%p2677_p6), %v2105_v40  ;;  %2108 = vst [vmem:[%s3534_s12 + $0x1a8] sm:$0xff] (%p2677_p6), %v2107_v41 }
 0x1d9   : > { %2110 = vst [vmem:[%s3534_s12 + $0x1b0] sm:$0xff] (%p2677_p6), %v2109_v42  ;;  %2112 = vst [vmem:[%s3534_s12 + $0x1b8] sm:$0xff] (%p2677_p6), %v2111_v43 }
 0x1da   : > { %2114 = vst [vmem:[%s3534_s12 + $0x200] sm:$0xff] (%p2677_p6), %v2113_v44  ;;  %2116 = vst [vmem:[%s3534_s12 + $0x208] sm:$0xff] (%p2677_p6), %v2115_v45  ;;  %v2241_v44 = vld [vmem:[%s3395_s11 + $0x300] sm:$0xff] (%p2677_p6)  ;;  %v2243_v45 = vld [vmem:[%s3395_s11 + $0x308] sm:$0xff] (%p2677_p6) }
 0x1db   : > { %v1754_v52 = vpop.f32.mrb[52].mxu0  ;;  %v1867_v23 = vpop.f32.mrb[52].mxu1  ;;  %2118 = vst [vmem:[%s3534_s12 + $0x210] sm:$0xff] (%p2677_p6), %v2117_v8  ;;  %2120 = vst [vmem:[%s3534_s12 + $0x218] sm:$0xff] (%p2677_p6), %v2119_v46  ;;  %v2185_v35 = vld [vmem:[%s3395_s11 + $0x220] sm:$0xff] (%p2677_p6)  ;;  %v2189_v55 = vld [vmem:[%s3395_s11 + $0x230] sm:$0xff] (%p2677_p6) }
 0x1dc   : > { %1980 = vst [vmem:[%s3395_s11 + $0x2a0] sm:$0xff] %v1754_v52  ;;  %v1756_v53 = vpop.f32.mrb[53].mxu0  ;;  %1982 = vst [vmem:[%s3395_s11 + $0x2b0] sm:$0xff] %v1867_v23  ;;  %v1869_v54 = vpop.f32.mrb[53].mxu1  ;;  %v2129_v52 = vld [vmem:[%s3395_s11 + $0x140] sm:$0xff] (%p2677_p6)  ;;  %v2131_v23 = vld [vmem:[%s3395_s11 + $0x148] sm:$0xff] (%p2677_p6) }
 0x1dd   : > { %1981 = vst [vmem:[%s3395_s11 + $0x2a8] sm:$0xff] %v1756_v53  ;;  %v1758_v56 = vpop.f32.mrb[54].mxu0  ;;  %1983 = vst [vmem:[%s3395_s11 + $0x2b8] sm:$0xff] %v1869_v54  ;;  %v1871_v59 = vpop.f32.mrb[54].mxu1  ;;  %v2133_v53 = vld [vmem:[%s3395_s11 + $0x150] sm:$0xff] (%p2677_p6)  ;;  %v2135_v54 = vld [vmem:[%s3395_s11 + $0x158] sm:$0xff] (%p2677_p6) }
 0x1de   : > { %1988 = vst [vmem:[%s3395_s11 + $0x2e0] sm:$0xff] %v1758_v56  ;;  %v1760_v61 = vpop.f32.mrb[55].mxu0  ;;  %1990 = vst [vmem:[%s3395_s11 + $0x2f0] sm:$0xff] %v1871_v59  ;;  %v1873_v2 = vpop.f32.mrb[55].mxu1  ;;  %v2137_v56 = vld [vmem:[%s3395_s11 + $0x160] sm:$0xff] (%p2677_p6)  ;;  %v2139_v59 = vld [vmem:[%s3395_s11 + $0x168] sm:$0xff] (%p2677_p6) }
 0x1df   : > { %1989 = vst [vmem:[%s3395_s11 + $0x2e8] sm:$0xff] %v1760_v61  ;;  %1991 = vst [vmem:[%s3395_s11 + $0x2f8] sm:$0xff] %v1873_v2  ;;  %v2141_v61 = vld [vmem:[%s3395_s11 + $0x170] sm:$0xff] (%p2677_p6)  ;;  %v2143_v2 = vld [vmem:[%s3395_s11 + $0x178] sm:$0xff] (%p2677_p6) }
 0x1e0   : > { %2122 = vst [vmem:[%s3534_s12 + $0x220] sm:$0xff] (%p2677_p6), %v2121_v48  ;;  %2124 = vst [vmem:[%s3534_s12 + $0x228] sm:$0xff] (%p2677_p6), %v2123_v49  ;;  %v2187_v36 = vld [vmem:[%s3395_s11 + $0x228] sm:$0xff] (%p2677_p6)  ;;  %v2191_v58 = vld [vmem:[%s3395_s11 + $0x238] sm:$0xff] (%p2677_p6) }
 0x1e1   : > { %2126 = vst [vmem:[%s3534_s12 + $0x230] sm:$0xff] (%p2677_p6), %v2125_v50  ;;  %2128 = vst [vmem:[%s3534_s12 + $0x238] sm:$0xff] (%p2677_p6), %v2127_v51  ;;  %v2201_v6 = vld [vmem:[%s3395_s11 + $0x260] sm:$0xff] (%p2677_p6)  ;;  %v2203_v13 = vld [vmem:[%s3395_s11 + $0x268] sm:$0xff] (%p2677_p6) }
 0x1e2   : > { %2130 = vst [vmem:[%s3534_s12 + $0x280] sm:$0xff] (%p2677_p6), %v2129_v52  ;;  %2132 = vst [vmem:[%s3534_s12 + $0x288] sm:$0xff] (%p2677_p6), %v2131_v23  ;;  %v2205_v19 = vld [vmem:[%s3395_s11 + $0x270] sm:$0xff] (%p2677_p6)  ;;  %v2207_v20 = vld [vmem:[%s3395_s11 + $0x278] sm:$0xff] (%p2677_p6) }
 0x1e3   : > { %v1764_v62 = vpop.f32.mrb[56].mxu0  ;;  %v1877_v38 = vpop.f32.mrb[56].mxu1  ;;  %2134 = vst [vmem:[%s3534_s12 + $0x290] sm:$0xff] (%p2677_p6), %v2133_v53  ;;  %2136 = vst [vmem:[%s3534_s12 + $0x298] sm:$0xff] (%p2677_p6), %v2135_v54  ;;  %v2217_v26 = vld [vmem:[%s3395_s11 + $0x2a0] sm:$0xff] (%p2677_p6)  ;;  %v2221_v31 = vld [vmem:[%s3395_s11 + $0x2b0] sm:$0xff] (%p2677_p6) }
 0x1e4   : > { %1996 = vst [vmem:[%s3395_s11 + $0x320] sm:$0xff] %v1764_v62  ;;  %v1766_v63 = vpop.f32.mrb[57].mxu0  ;;  %1998 = vst [vmem:[%s3395_s11 + $0x330] sm:$0xff] %v1877_v38  ;;  %v1879_v3 = vpop.f32.mrb[57].mxu1  ;;  %v2145_v62 = vld [vmem:[%s3395_s11 + $0x180] sm:$0xff] (%p2677_p6)  ;;  %v2147_v38 = vld [vmem:[%s3395_s11 + $0x188] sm:$0xff] (%p2677_p6) }
 0x1e5   : > { %1997 = vst [vmem:[%s3395_s11 + $0x328] sm:$0xff] %v1766_v63  ;;  %v1768_v4 = vpop.f32.mrb[58].mxu0  ;;  %1999 = vst [vmem:[%s3395_s11 + $0x338] sm:$0xff] %v1879_v3  ;;  %v1881_v5 = vpop.f32.mrb[58].mxu1  ;;  %v2149_v63 = vld [vmem:[%s3395_s11 + $0x190] sm:$0xff] (%p2677_p6)  ;;  %v2151_v3 = vld [vmem:[%s3395_s11 + $0x198] sm:$0xff] (%p2677_p6) }
 0x1e6   : > { %2004 = vst [vmem:[%s3395_s11 + $0x360] sm:$0xff] %v1768_v4  ;;  %v1770_v7 = vpop.f32.mrb[59].mxu0  ;;  %2006 = vst [vmem:[%s3395_s11 + $0x370] sm:$0xff] %v1881_v5  ;;  %v1883_v9 = vpop.f32.mrb[59].mxu1  ;;  %v2153_v4 = vld [vmem:[%s3395_s11 + $0x1a0] sm:$0xff] (%p2677_p6)  ;;  %v2155_v5 = vld [vmem:[%s3395_s11 + $0x1a8] sm:$0xff] (%p2677_p6) }
 0x1e7   : > { %2005 = vst [vmem:[%s3395_s11 + $0x368] sm:$0xff] %v1770_v7  ;;  %2007 = vst [vmem:[%s3395_s11 + $0x378] sm:$0xff] %v1883_v9  ;;  %v2157_v7 = vld [vmem:[%s3395_s11 + $0x1b0] sm:$0xff] (%p2677_p6)  ;;  %v2159_v9 = vld [vmem:[%s3395_s11 + $0x1b8] sm:$0xff] (%p2677_p6) }
 0x1e8   : > { %2138 = vst [vmem:[%s3534_s12 + $0x2a0] sm:$0xff] (%p2677_p6), %v2137_v56  ;;  %2140 = vst [vmem:[%s3534_s12 + $0x2a8] sm:$0xff] (%p2677_p6), %v2139_v59  ;;  %v2219_v27 = vld [vmem:[%s3395_s11 + $0x2a8] sm:$0xff] (%p2677_p6)  ;;  %v2223_v32 = vld [vmem:[%s3395_s11 + $0x2b8] sm:$0xff] (%p2677_p6) }
 0x1e9   : > { %2030 = sbr.rel (!%p2677_p6) target bundleno = 532 (0x214), region = 63  ;;  %2142 = vst [vmem:[%s3534_s12 + $0x2b0] sm:$0xff] (%p2677_p6), %v2141_v61  ;;  %2144 = vst [vmem:[%s3534_s12 + $0x2b8] sm:$0xff] (%p2677_p6), %v2143_v2  ;;  %v2233_v40 = vld [vmem:[%s3395_s11 + $0x2e0] sm:$0xff] (%p2677_p6)  ;;  %v2235_v41 = vld [vmem:[%s3395_s11 + $0x2e8] sm:$0xff] (%p2677_p6) }
 0x1ea   : > { %2146 = vst [vmem:[%s3534_s12 + $0x300] sm:$0xff] (%p2677_p6), %v2145_v62  ;;  %2148 = vst [vmem:[%s3534_s12 + $0x308] sm:$0xff] (%p2677_p6), %v2147_v38  ;;  %v2237_v42 = vld [vmem:[%s3395_s11 + $0x2f0] sm:$0xff] (%p2677_p6)  ;;  %v2239_v43 = vld [vmem:[%s3395_s11 + $0x2f8] sm:$0xff] (%p2677_p6) }
 0x1eb   : > { %v1774_v10 = vpop.f32.mrb[60].mxu0  ;;  %v1887_v29 = vpop.f32.mrb[60].mxu1  ;;  %2150 = vst [vmem:[%s3534_s12 + $0x310] sm:$0xff] (%p2677_p6), %v2149_v63  ;;  %2152 = vst [vmem:[%s3534_s12 + $0x318] sm:$0xff] (%p2677_p6), %v2151_v3  ;;  %v2245_v8 = vld [vmem:[%s3395_s11 + $0x310] sm:$0xff] (%p2677_p6)  ;;  %v2247_v46 = vld [vmem:[%s3395_s11 + $0x318] sm:$0xff] (%p2677_p6) }
 0x1ec   : > { %2012 = vst [vmem:[%s3395_s11 + $0x3a0] sm:$0xff] %v1774_v10  ;;  %v1776_v11 = vpop.f32.mrb[61].mxu0  ;;  %2014 = vst [vmem:[%s3395_s11 + $0x3b0] sm:$0xff] %v1887_v29  ;;  %v1889_v12 = vpop.f32.mrb[61].mxu1  ;;  %v2161_v10 = vld [vmem:[%s3395_s11 + $0x1c0] sm:$0xff] (%p2677_p6)  ;;  %v2163_v29 = vld [vmem:[%s3395_s11 + $0x1c8] sm:$0xff] (%p2677_p6) }
 0x1ed   : > { %2013 = vst [vmem:[%s3395_s11 + $0x3a8] sm:$0xff] %v1776_v11  ;;  %v1778_v1 = vpop.f32.mrb[62].mxu0  ;;  %2015 = vst [vmem:[%s3395_s11 + $0x3b8] sm:$0xff] %v1889_v12  ;;  %v1891_v15 = vpop.f32.mrb[62].mxu1  ;;  %v2165_v11 = vld [vmem:[%s3395_s11 + $0x1d0] sm:$0xff] (%p2677_p6)  ;;  %v2167_v12 = vld [vmem:[%s3395_s11 + $0x1d8] sm:$0xff] (%p2677_p6) }
 0x1ee   : > { %2020 = vst [vmem:[%s3395_s11 + $0x3e0] sm:$0xff] %v1778_v1  ;;  %v1780_v17 = vpop.f32.mrb[63].mxu0  ;;  %2022 = vst [vmem:[%s3395_s11 + $0x3f0] sm:$0xff] %v1891_v15  ;;  %v1893_v18 = vpop.f32.mrb[63].mxu1  ;;  %v2169_v1 = vld [vmem:[%s3395_s11 + $0x1e0] sm:$0xff] (%p2677_p6)  ;;  %v2171_v15 = vld [vmem:[%s3395_s11 + $0x1e8] sm:$0xff] (%p2677_p6) }
 0x1ef   : > { %2021 = vst [vmem:[%s3395_s11 + $0x3e8] sm:$0xff] %v1780_v17  ;;  %2023 = vst [vmem:[%s3395_s11 + $0x3f8] sm:$0xff] %v1893_v18  ;;  %v2173_v17 = vld [vmem:[%s3395_s11 + $0x1f0] sm:$0xff] (%p2677_p6)  ;;  %v2175_v18 = vld [vmem:[%s3395_s11 + $0x1f8] sm:$0xff] (%p2677_p6) }
 0x1f0   : > { %2154 = vst [vmem:[%s3534_s12 + $0x320] sm:$0xff] %v2153_v4  ;;  %2156 = vst [vmem:[%s3534_s12 + $0x328] sm:$0xff] %v2155_v5  ;;  %v2249_v48 = vld [vmem:[%s3395_s11 + $0x320] sm:$0xff]  ;;  %v2251_v49 = vld [vmem:[%s3395_s11 + $0x328] sm:$0xff] }
 0x1f1   : > { %2158 = vst [vmem:[%s3534_s12 + $0x330] sm:$0xff] %v2157_v7  ;;  %2160 = vst [vmem:[%s3534_s12 + $0x338] sm:$0xff] %v2159_v9  ;;  %v2253_v50 = vld [vmem:[%s3395_s11 + $0x330] sm:$0xff]  ;;  %v2255_v51 = vld [vmem:[%s3395_s11 + $0x338] sm:$0xff] }
 0x1f2   : > { %2162 = vst [vmem:[%s3534_s12 + $0x380] sm:$0xff] %v2161_v10  ;;  %2164 = vst [vmem:[%s3534_s12 + $0x388] sm:$0xff] %v2163_v29  ;;  %v2257_v52 = vld [vmem:[%s3395_s11 + $0x340] sm:$0xff]  ;;  %v2259_v23 = vld [vmem:[%s3395_s11 + $0x348] sm:$0xff] }
 0x1f3   : > { %2166 = vst [vmem:[%s3534_s12 + $0x390] sm:$0xff] %v2165_v11  ;;  %2168 = vst [vmem:[%s3534_s12 + $0x398] sm:$0xff] %v2167_v12  ;;  %v2261_v53 = vld [vmem:[%s3395_s11 + $0x350] sm:$0xff]  ;;  %v2263_v54 = vld [vmem:[%s3395_s11 + $0x358] sm:$0xff] }
 0x1f4   : > { %2170 = vst [vmem:[%s3534_s12 + $0x3a0] sm:$0xff] %v2169_v1  ;;  %2172 = vst [vmem:[%s3534_s12 + $0x3a8] sm:$0xff] %v2171_v15  ;;  %v2265_v56 = vld [vmem:[%s3395_s11 + $0x360] sm:$0xff]  ;;  %v2267_v59 = vld [vmem:[%s3395_s11 + $0x368] sm:$0xff] }
 0x1f5   : > { %2174 = vst [vmem:[%s3534_s12 + $0x3b0] sm:$0xff] %v2173_v17  ;;  %2176 = vst [vmem:[%s3534_s12 + $0x3b8] sm:$0xff] %v2175_v18  ;;  %v2269_v61 = vld [vmem:[%s3395_s11 + $0x370] sm:$0xff]  ;;  %v2271_v2 = vld [vmem:[%s3395_s11 + $0x378] sm:$0xff] }
 0x1f6   : > { %2186 = vst [vmem:[%s3534_s12 + $0x420] sm:$0xff] %v2185_v35  ;;  %2188 = vst [vmem:[%s3534_s12 + $0x428] sm:$0xff] %v2187_v36  ;;  %v2273_v62 = vld [vmem:[%s3395_s11 + $0x380] sm:$0xff]  ;;  %v2275_v38 = vld [vmem:[%s3395_s11 + $0x388] sm:$0xff] }
 0x1f7   : > { %2190 = vst [vmem:[%s3534_s12 + $0x430] sm:$0xff] %v2189_v55  ;;  %2192 = vst [vmem:[%s3534_s12 + $0x438] sm:$0xff] %v2191_v58  ;;  %v2277_v63 = vld [vmem:[%s3395_s11 + $0x390] sm:$0xff]  ;;  %v2279_v3 = vld [vmem:[%s3395_s11 + $0x398] sm:$0xff] }
 0x1f8   : > { %2194 = vst [vmem:[%s3534_s12 + $0x480] sm:$0xff] %v2193_v16  ;;  %2196 = vst [vmem:[%s3534_s12 + $0x488] sm:$0xff] %v2195_v28  ;;  %v2281_v4 = vld [vmem:[%s3395_s11 + $0x3a0] sm:$0xff]  ;;  %v2283_v5 = vld [vmem:[%s3395_s11 + $0x3a8] sm:$0xff] }
 0x1f9   : > { %2198 = vst [vmem:[%s3534_s12 + $0x490] sm:$0xff] %v2197_v47  ;;  %2200 = vst [vmem:[%s3534_s12 + $0x498] sm:$0xff] %v2199_v14  ;;  %v2285_v7 = vld [vmem:[%s3395_s11 + $0x3b0] sm:$0xff]  ;;  %v2287_v9 = vld [vmem:[%s3395_s11 + $0x3b8] sm:$0xff] }
 0x1fa   : > { %2202 = vst [vmem:[%s3534_s12 + $0x4a0] sm:$0xff] %v2201_v6  ;;  %2204 = vst [vmem:[%s3534_s12 + $0x4a8] sm:$0xff] %v2203_v13  ;;  %v2289_v10 = vld [vmem:[%s3395_s11 + $0x3c0] sm:$0xff]  ;;  %v2291_v29 = vld [vmem:[%s3395_s11 + $0x3c8] sm:$0xff] }
 0x1fb   : > { %2206 = vst [vmem:[%s3534_s12 + $0x4b0] sm:$0xff] %v2205_v19  ;;  %2208 = vst [vmem:[%s3534_s12 + $0x4b8] sm:$0xff] %v2207_v20  ;;  %v2293_v11 = vld [vmem:[%s3395_s11 + $0x3d0] sm:$0xff]  ;;  %v2295_v12 = vld [vmem:[%s3395_s11 + $0x3d8] sm:$0xff] }
 0x1fc   : > { %2210 = vst [vmem:[%s3534_s12 + $0x500] sm:$0xff] %v2209_v21  ;;  %2212 = vst [vmem:[%s3534_s12 + $0x508] sm:$0xff] %v2211_v22  ;;  %v2297_v1 = vld [vmem:[%s3395_s11 + $0x3e0] sm:$0xff]  ;;  %v2299_v15 = vld [vmem:[%s3395_s11 + $0x3e8] sm:$0xff] }
 0x1fd   : > { %2214 = vst [vmem:[%s3534_s12 + $0x510] sm:$0xff] %v2213_v24  ;;  %2216 = vst [vmem:[%s3534_s12 + $0x518] sm:$0xff] %v2215_v25  ;;  %v2301_v17 = vld [vmem:[%s3395_s11 + $0x3f0] sm:$0xff]  ;;  %v2303_v18 = vld [vmem:[%s3395_s11 + $0x3f8] sm:$0xff] }
 0x1fe   : > { %2218 = vst [vmem:[%s3534_s12 + $0x520] sm:$0xff] %v2217_v26  ;;  %2220 = vst [vmem:[%s3534_s12 + $0x528] sm:$0xff] %v2219_v27 }
 0x1ff   : > { %2222 = vst [vmem:[%s3534_s12 + $0x530] sm:$0xff] %v2221_v31  ;;  %2224 = vst [vmem:[%s3534_s12 + $0x538] sm:$0xff] %v2223_v32 }
 0x200   : > { %2226 = vst [vmem:[%s3534_s12 + $0x580] sm:$0xff] %v2225_v33  ;;  %2228 = vst [vmem:[%s3534_s12 + $0x588] sm:$0xff] %v2227_v34 }
 0x201   : > { %2230 = vst [vmem:[%s3534_s12 + $0x590] sm:$0xff] %v2229_v37  ;;  %2232 = vst [vmem:[%s3534_s12 + $0x598] sm:$0xff] %v2231_v39 }
 0x202   : > { %2234 = vst [vmem:[%s3534_s12 + $0x5a0] sm:$0xff] %v2233_v40  ;;  %2236 = vst [vmem:[%s3534_s12 + $0x5a8] sm:$0xff] %v2235_v41 }
 0x203   : > { %2238 = vst [vmem:[%s3534_s12 + $0x5b0] sm:$0xff] %v2237_v42  ;;  %2240 = vst [vmem:[%s3534_s12 + $0x5b8] sm:$0xff] %v2239_v43 }
 0x204   : > { %2242 = vst [vmem:[%s3534_s12 + $0x600] sm:$0xff] %v2241_v44  ;;  %2244 = vst [vmem:[%s3534_s12 + $0x608] sm:$0xff] %v2243_v45 }
 0x205   : > { %2246 = vst [vmem:[%s3534_s12 + $0x610] sm:$0xff] %v2245_v8  ;;  %2248 = vst [vmem:[%s3534_s12 + $0x618] sm:$0xff] %v2247_v46 }
 0x206   : > { %2250 = vst [vmem:[%s3534_s12 + $0x620] sm:$0xff] %v2249_v48  ;;  %2252 = vst [vmem:[%s3534_s12 + $0x628] sm:$0xff] %v2251_v49 }
 0x207   : > { %2254 = vst [vmem:[%s3534_s12 + $0x630] sm:$0xff] %v2253_v50  ;;  %2256 = vst [vmem:[%s3534_s12 + $0x638] sm:$0xff] %v2255_v51 }
 0x208   : > { %2258 = vst [vmem:[%s3534_s12 + $0x680] sm:$0xff] %v2257_v52  ;;  %2260 = vst [vmem:[%s3534_s12 + $0x688] sm:$0xff] %v2259_v23 }
 0x209   : > { %2262 = vst [vmem:[%s3534_s12 + $0x690] sm:$0xff] %v2261_v53  ;;  %2264 = vst [vmem:[%s3534_s12 + $0x698] sm:$0xff] %v2263_v54 }
 0x20a   : > { %2266 = vst [vmem:[%s3534_s12 + $0x6a0] sm:$0xff] %v2265_v56  ;;  %2268 = vst [vmem:[%s3534_s12 + $0x6a8] sm:$0xff] %v2267_v59 }
 0x20b   : > { %2270 = vst [vmem:[%s3534_s12 + $0x6b0] sm:$0xff] %v2269_v61  ;;  %2272 = vst [vmem:[%s3534_s12 + $0x6b8] sm:$0xff] %v2271_v2 }
 0x20c   : > { %2274 = vst [vmem:[%s3534_s12 + $0x700] sm:$0xff] %v2273_v62  ;;  %2276 = vst [vmem:[%s3534_s12 + $0x708] sm:$0xff] %v2275_v38 }
 0x20d   : > { %2278 = vst [vmem:[%s3534_s12 + $0x710] sm:$0xff] %v2277_v63  ;;  %2280 = vst [vmem:[%s3534_s12 + $0x718] sm:$0xff] %v2279_v3 }
 0x20e   : > { %2282 = vst [vmem:[%s3534_s12 + $0x720] sm:$0xff] %v2281_v4  ;;  %2284 = vst [vmem:[%s3534_s12 + $0x728] sm:$0xff] %v2283_v5 }
 0x20f   : > { %2286 = vst [vmem:[%s3534_s12 + $0x730] sm:$0xff] %v2285_v7  ;;  %2288 = vst [vmem:[%s3534_s12 + $0x738] sm:$0xff] %v2287_v9 }
 0x210   : > { %2290 = vst [vmem:[%s3534_s12 + $0x780] sm:$0xff] %v2289_v10  ;;  %2292 = vst [vmem:[%s3534_s12 + $0x788] sm:$0xff] %v2291_v29 }
 0x211   : > { %2294 = vst [vmem:[%s3534_s12 + $0x790] sm:$0xff] %v2293_v11  ;;  %2296 = vst [vmem:[%s3534_s12 + $0x798] sm:$0xff] %v2295_v12 }
 0x212   : > { %2298 = vst [vmem:[%s3534_s12 + $0x7a0] sm:$0xff] %v2297_v1  ;;  %2300 = vst [vmem:[%s3534_s12 + $0x7a8] sm:$0xff] %v2299_v15 }
 0x213   : > { %2302 = vst [vmem:[%s3534_s12 + $0x7b0] sm:$0xff] %v2301_v17  ;;  %2304 = vst [vmem:[%s3534_s12 + $0x7b8] sm:$0xff] %v2303_v18 }
 0x214 PF: > { %s14_s19 = sadd.s32 1, %s2615_s19   ;;  %s3810_s15 = smov %s2603_s16 }
 0x215   : > { %p11_p11 = scmp.ge.s32.totalorder %s14_s19, 4   ;;  %s3811_s16 = smov %s2682_s25 }
 0x216   : > { %s3812_s17 = smov %s2611_s18  ;;  %s3813_s18 = smov %s3815_s20 }
 0x217   :  { %13 = sbr.rel (!%p11_p11) target bundleno = 3 (0x3), region = 120 }

// kernel: generator_forward.14
= control target key start
LH: loop header
LB: loop body
LE: loop exit
PB: predicated region body
PF: predicated region fallthrough
CT: control target
= control target key end

     0   :  { %s535_s0 = inlined_call_operand.vmem [shape: f32[512,128], index: 0, kind: input, shape index: {}]   ;;  %s536_s1 = inlined_call_operand.vmem [shape: f32[1,128], index: 1, kind: input, shape index: {}]   ;;  %s537_s2 = inlined_call_operand.vmem [shape: f32[1,128], index: 2, kind: input, shape index: {}]   ;;  %s538_s3 = inlined_call_operand.vmem [shape: f32[1,128], index: 3, kind: output, shape index: {0}]   ;;  %s539_s4 = inlined_call_operand.vmem [shape: f32[1,128], index: 4, kind: output, shape index: {1}]  }
   0x1   :  { %v16_v0 = vld [vmem:[%s535_s0] sm:$0xff]  ;;  %v17_v1 = vld [vmem:[%s535_s0 + $0x8] sm:$0xff]  ;;  %v18_v2 = vld [vmem:[%s535_s0 + $0x10] sm:$0xff] }
   0x2   :  { %v19_v3 = vld [vmem:[%s535_s0 + $0x18] sm:$0xff]  ;;  %v80_v4 = vadd.f32 %v17_v1, %v16_v0  ;;  %v150_v5 = vmul.f32 %v16_v0, %v16_v0  ;;  %v151_v6 = vmul.f32 %v17_v1, %v17_v1  ;;  %v152_v7 = vmul.f32 %v18_v2, %v18_v2  ;;  %v20_v8 = vld [vmem:[%s535_s0 + $0x20] sm:$0xff]  ;;  %v21_v12 = vld [vmem:[%s535_s0 + $0x28] sm:$0xff] }
   0x3   :  { %v153_v10 = vmul.f32 %v19_v3, %v19_v3  ;;  %v154_v14 = vmul.f32 %v20_v8, %v20_v8  ;;  %v22_v16 = vld [vmem:[%s535_s0 + $0x30] sm:$0xff]  ;;  %v155_v18 = vmul.f32 %v21_v12, %v21_v12  ;;  %v23_v20 = vld [vmem:[%s535_s0 + $0x38] sm:$0xff]  ;;  %v24_v24 = vld [vmem:[%s535_s0 + $0x40] sm:$0xff] }
   0x4   :  { %v81_v9 = vadd.f32 %v80_v4, %v18_v2  ;;  %v214_v11 = vadd.f32 %v151_v6, %v150_v5  ;;  %v156_v22 = vmul.f32 %v22_v16, %v22_v16  ;;  %v157_v26 = vmul.f32 %v23_v20, %v23_v20  ;;  %v25_v28 = vld [vmem:[%s535_s0 + $0x48] sm:$0xff]  ;;  %v26_v32 = vld [vmem:[%s535_s0 + $0x50] sm:$0xff]  ;;  %v27_v36 = vld [vmem:[%s535_s0 + $0x58] sm:$0xff] }
   0x5   :  { %v158_v30 = vmul.f32 %v24_v24, %v24_v24  ;;  %v159_v34 = vmul.f32 %v25_v28, %v25_v28  ;;  %v160_v38 = vmul.f32 %v26_v32, %v26_v32  ;;  %v28_v40 = vld [vmem:[%s535_s0 + $0x60] sm:$0xff]  ;;  %v161_v42 = vmul.f32 %v27_v36, %v27_v36  ;;  %v29_v44 = vld [vmem:[%s535_s0 + $0x68] sm:$0xff]  ;;  %v30_v48 = vld [vmem:[%s535_s0 + $0x70] sm:$0xff] }
   0x6   :  { %v82_v13 = vadd.f32 %v81_v9, %v19_v3  ;;  %v215_v15 = vadd.f32 %v214_v11, %v152_v7  ;;  %v162_v46 = vmul.f32 %v28_v40, %v28_v40  ;;  %v163_v50 = vmul.f32 %v29_v44, %v29_v44  ;;  %v31_v52 = vld [vmem:[%s535_s0 + $0x78] sm:$0xff]  ;;  %v32_v56 = vld [vmem:[%s535_s0 + $0x80] sm:$0xff]  ;;  %v33_v60 = vld [vmem:[%s535_s0 + $0x88] sm:$0xff] }
   0x7   :  { %v164_v54 = vmul.f32 %v30_v48, %v30_v48  ;;  %v165_v58 = vmul.f32 %v31_v52, %v31_v52  ;;  %v166_v62 = vmul.f32 %v32_v56, %v32_v56  ;;  %v34_v0 = vld [vmem:[%s535_s0 + $0x90] sm:$0xff]  ;;  %v167_v2 = vmul.f32 %v33_v60, %v33_v60  ;;  %v35_v4 = vld [vmem:[%s535_s0 + $0x98] sm:$0xff] }
   0x8   :  { %v83_v17 = vadd.f32 %v82_v13, %v20_v8  ;;  %v216_v19 = vadd.f32 %v215_v15, %v153_v10  ;;  %v168_v6 = vmul.f32 %v34_v0, %v34_v0  ;;  %v36_v8 = vld [vmem:[%s535_s0 + $0xa0] sm:$0xff]  ;;  %v169_v10 = vmul.f32 %v35_v4, %v35_v4 }
   0xa   :  { %v84_v21 = vadd.f32 %v83_v17, %v21_v12  ;;  %v217_v23 = vadd.f32 %v216_v19, %v154_v14  ;;  %v37_v12 = vld [vmem:[%s535_s0 + $0xa8] sm:$0xff]  ;;  %v170_v14 = vmul.f32 %v36_v8, %v36_v8 }
   0xc   :  { %v85_v25 = vadd.f32 %v84_v21, %v22_v16  ;;  %v218_v27 = vadd.f32 %v217_v23, %v155_v18  ;;  %v38_v16 = vld [vmem:[%s535_s0 + $0xb0] sm:$0xff]  ;;  %v171_v18 = vmul.f32 %v37_v12, %v37_v12 }
   0xe   :  { %v86_v29 = vadd.f32 %v85_v25, %v23_v20  ;;  %v219_v31 = vadd.f32 %v218_v27, %v156_v22  ;;  %v39_v20 = vld [vmem:[%s535_s0 + $0xb8] sm:$0xff]  ;;  %v172_v22 = vmul.f32 %v38_v16, %v38_v16 }
  0x10   :  { %v87_v33 = vadd.f32 %v86_v29, %v24_v24  ;;  %v220_v35 = vadd.f32 %v219_v31, %v157_v26  ;;  %v40_v24 = vld [vmem:[%s535_s0 + $0xc0] sm:$0xff]  ;;  %v173_v26 = vmul.f32 %v39_v20, %v39_v20 }
  0x12   :  { %v88_v37 = vadd.f32 %v87_v33, %v25_v28  ;;  %v221_v39 = vadd.f32 %v220_v35, %v158_v30  ;;  %v41_v28 = vld [vmem:[%s535_s0 + $0xc8] sm:$0xff]  ;;  %v174_v30 = vmul.f32 %v40_v24, %v40_v24 }
  0x14   :  { %v89_v41 = vadd.f32 %v88_v37, %v26_v32  ;;  %v222_v43 = vadd.f32 %v221_v39, %v159_v34  ;;  %v42_v32 = vld [vmem:[%s535_s0 + $0xd0] sm:$0xff]  ;;  %v175_v34 = vmul.f32 %v41_v28, %v41_v28 }
  0x16   :  { %v90_v45 = vadd.f32 %v89_v41, %v27_v36  ;;  %v223_v47 = vadd.f32 %v222_v43, %v160_v38  ;;  %v43_v36 = vld [vmem:[%s535_s0 + $0xd8] sm:$0xff]  ;;  %v176_v38 = vmul.f32 %v42_v32, %v42_v32 }
  0x18   :  { %v91_v49 = vadd.f32 %v90_v45, %v28_v40  ;;  %v224_v51 = vadd.f32 %v223_v47, %v161_v42  ;;  %v44_v40 = vld [vmem:[%s535_s0 + $0xe0] sm:$0xff]  ;;  %v177_v42 = vmul.f32 %v43_v36, %v43_v36 }
  0x1a   :  { %v92_v53 = vadd.f32 %v91_v49, %v29_v44  ;;  %v225_v55 = vadd.f32 %v224_v51, %v162_v46  ;;  %v45_v44 = vld [vmem:[%s535_s0 + $0xe8] sm:$0xff]  ;;  %v178_v46 = vmul.f32 %v44_v40, %v44_v40 }
  0x1c   :  { %v93_v57 = vadd.f32 %v92_v53, %v30_v48  ;;  %v226_v59 = vadd.f32 %v225_v55, %v163_v50  ;;  %v46_v48 = vld [vmem:[%s535_s0 + $0xf0] sm:$0xff]  ;;  %v179_v50 = vmul.f32 %v45_v44, %v45_v44 }
  0x1e   :  { %v94_v61 = vadd.f32 %v93_v57, %v31_v52  ;;  %v227_v63 = vadd.f32 %v226_v59, %v164_v54  ;;  %v47_v52 = vld [vmem:[%s535_s0 + $0xf8] sm:$0xff]  ;;  %v180_v54 = vmul.f32 %v46_v48, %v46_v48 }
  0x20   :  { %v95_v1 = vadd.f32 %v94_v61, %v32_v56  ;;  %v228_v3 = vadd.f32 %v227_v63, %v165_v58  ;;  %v48_v56 = vld [vmem:[%s535_s0 + $0x100] sm:$0xff]  ;;  %v181_v58 = vmul.f32 %v47_v52, %v47_v52 }
  0x22   :  { %v96_v5 = vadd.f32 %v95_v1, %v33_v60  ;;  %v229_v7 = vadd.f32 %v228_v3, %v166_v62  ;;  %v49_v60 = vld [vmem:[%s535_s0 + $0x108] sm:$0xff]  ;;  %v182_v62 = vmul.f32 %v48_v56, %v48_v56 }
  0x24   :  { %v97_v9 = vadd.f32 %v96_v5, %v34_v0  ;;  %v230_v11 = vadd.f32 %v229_v7, %v167_v2  ;;  %v50_v0 = vld [vmem:[%s535_s0 + $0x110] sm:$0xff]  ;;  %v183_v2 = vmul.f32 %v49_v60, %v49_v60 }
  0x26   :  { %v98_v13 = vadd.f32 %v97_v9, %v35_v4  ;;  %v231_v15 = vadd.f32 %v230_v11, %v168_v6  ;;  %v51_v4 = vld [vmem:[%s535_s0 + $0x118] sm:$0xff]  ;;  %v184_v6 = vmul.f32 %v50_v0, %v50_v0 }
  0x28   :  { %v99_v17 = vadd.f32 %v98_v13, %v36_v8  ;;  %v232_v19 = vadd.f32 %v231_v15, %v169_v10  ;;  %v52_v8 = vld [vmem:[%s535_s0 + $0x120] sm:$0xff]  ;;  %v185_v10 = vmul.f32 %v51_v4, %v51_v4 }
  0x2a   :  { %v100_v21 = vadd.f32 %v99_v17, %v37_v12  ;;  %v233_v23 = vadd.f32 %v232_v19, %v170_v14  ;;  %v53_v12 = vld [vmem:[%s535_s0 + $0x128] sm:$0xff]  ;;  %v186_v14 = vmul.f32 %v52_v8, %v52_v8 }
  0x2c   :  { %v101_v25 = vadd.f32 %v100_v21, %v38_v16  ;;  %v234_v27 = vadd.f32 %v233_v23, %v171_v18  ;;  %v54_v16 = vld [vmem:[%s535_s0 + $0x130] sm:$0xff]  ;;  %v187_v18 = vmul.f32 %v53_v12, %v53_v12 }
  0x2e   :  { %v102_v29 = vadd.f32 %v101_v25, %v39_v20  ;;  %v235_v31 = vadd.f32 %v234_v27, %v172_v22  ;;  %v55_v20 = vld [vmem:[%s535_s0 + $0x138] sm:$0xff]  ;;  %v188_v22 = vmul.f32 %v54_v16, %v54_v16 }
  0x30   :  { %v103_v33 = vadd.f32 %v102_v29, %v40_v24  ;;  %v236_v35 = vadd.f32 %v235_v31, %v173_v26  ;;  %v56_v24 = vld [vmem:[%s535_s0 + $0x140] sm:$0xff]  ;;  %v189_v26 = vmul.f32 %v55_v20, %v55_v20 }
  0x32   :  { %v104_v37 = vadd.f32 %v103_v33, %v41_v28  ;;  %v237_v39 = vadd.f32 %v236_v35, %v174_v30  ;;  %v57_v28 = vld [vmem:[%s535_s0 + $0x148] sm:$0xff]  ;;  %v190_v30 = vmul.f32 %v56_v24, %v56_v24 }
  0x34   :  { %v105_v41 = vadd.f32 %v104_v37, %v42_v32  ;;  %v238_v43 = vadd.f32 %v237_v39, %v175_v34  ;;  %v58_v32 = vld [vmem:[%s535_s0 + $0x150] sm:$0xff]  ;;  %v191_v34 = vmul.f32 %v57_v28, %v57_v28 }
  0x36   :  { %v106_v45 = vadd.f32 %v105_v41, %v43_v36  ;;  %v239_v47 = vadd.f32 %v238_v43, %v176_v38  ;;  %v59_v36 = vld [vmem:[%s535_s0 + $0x158] sm:$0xff]  ;;  %v192_v38 = vmul.f32 %v58_v32, %v58_v32 }
  0x38   :  { %v107_v49 = vadd.f32 %v106_v45, %v44_v40  ;;  %v240_v51 = vadd.f32 %v239_v47, %v177_v42  ;;  %v60_v40 = vld [vmem:[%s535_s0 + $0x160] sm:$0xff]  ;;  %v193_v42 = vmul.f32 %v59_v36, %v59_v36 }
  0x3a   :  { %v108_v53 = vadd.f32 %v107_v49, %v45_v44  ;;  %v241_v55 = vadd.f32 %v240_v51, %v178_v46  ;;  %v61_v44 = vld [vmem:[%s535_s0 + $0x168] sm:$0xff]  ;;  %v194_v46 = vmul.f32 %v60_v40, %v60_v40 }
  0x3c   :  { %v109_v57 = vadd.f32 %v108_v53, %v46_v48  ;;  %v242_v59 = vadd.f32 %v241_v55, %v179_v50  ;;  %v62_v48 = vld [vmem:[%s535_s0 + $0x170] sm:$0xff]  ;;  %v195_v50 = vmul.f32 %v61_v44, %v61_v44 }
  0x3e   :  { %v110_v61 = vadd.f32 %v109_v57, %v47_v52  ;;  %v243_v63 = vadd.f32 %v242_v59, %v180_v54  ;;  %v63_v52 = vld [vmem:[%s535_s0 + $0x178] sm:$0xff]  ;;  %v196_v54 = vmul.f32 %v62_v48, %v62_v48 }
  0x40   :  { %v111_v1 = vadd.f32 %v110_v61, %v48_v56  ;;  %v244_v3 = vadd.f32 %v243_v63, %v181_v58  ;;  %v64_v56 = vld [vmem:[%s535_s0 + $0x180] sm:$0xff]  ;;  %v197_v58 = vmul.f32 %v63_v52, %v63_v52 }
  0x42   :  { %v112_v5 = vadd.f32 %v111_v1, %v49_v60  ;;  %v245_v7 = vadd.f32 %v244_v3, %v182_v62  ;;  %v65_v60 = vld [vmem:[%s535_s0 + $0x188] sm:$0xff]  ;;  %v198_v62 = vmul.f32 %v64_v56, %v64_v56 }
  0x44   :  { %v113_v9 = vadd.f32 %v112_v5, %v50_v0  ;;  %v246_v11 = vadd.f32 %v245_v7, %v183_v2  ;;  %v66_v0 = vld [vmem:[%s535_s0 + $0x190] sm:$0xff]  ;;  %v199_v2 = vmul.f32 %v65_v60, %v65_v60 }
  0x46   :  { %v114_v13 = vadd.f32 %v113_v9, %v51_v4  ;;  %v247_v15 = vadd.f32 %v246_v11, %v184_v6  ;;  %v67_v4 = vld [vmem:[%s535_s0 + $0x198] sm:$0xff]  ;;  %v200_v6 = vmul.f32 %v66_v0, %v66_v0 }
  0x48   :  { %v115_v17 = vadd.f32 %v114_v13, %v52_v8  ;;  %v248_v19 = vadd.f32 %v247_v15, %v185_v10  ;;  %v68_v8 = vld [vmem:[%s535_s0 + $0x1a0] sm:$0xff]  ;;  %v201_v10 = vmul.f32 %v67_v4, %v67_v4 }
  0x4a   :  { %v116_v21 = vadd.f32 %v115_v17, %v53_v12  ;;  %v249_v23 = vadd.f32 %v248_v19, %v186_v14  ;;  %v69_v12 = vld [vmem:[%s535_s0 + $0x1a8] sm:$0xff]  ;;  %v202_v14 = vmul.f32 %v68_v8, %v68_v8 }
  0x4c   :  { %v117_v25 = vadd.f32 %v116_v21, %v54_v16  ;;  %v250_v27 = vadd.f32 %v249_v23, %v187_v18  ;;  %v70_v16 = vld [vmem:[%s535_s0 + $0x1b0] sm:$0xff]  ;;  %v203_v18 = vmul.f32 %v69_v12, %v69_v12 }
  0x4e   :  { %v118_v29 = vadd.f32 %v117_v25, %v55_v20  ;;  %v251_v31 = vadd.f32 %v250_v27, %v188_v22  ;;  %v71_v20 = vld [vmem:[%s535_s0 + $0x1b8] sm:$0xff]  ;;  %v204_v22 = vmul.f32 %v70_v16, %v70_v16 }
  0x50   :  { %v119_v33 = vadd.f32 %v118_v29, %v56_v24  ;;  %v252_v35 = vadd.f32 %v251_v31, %v189_v26  ;;  %v72_v24 = vld [vmem:[%s535_s0 + $0x1c0] sm:$0xff]  ;;  %v205_v26 = vmul.f32 %v71_v20, %v71_v20 }
  0x52   :  { %v120_v37 = vadd.f32 %v119_v33, %v57_v28  ;;  %v253_v39 = vadd.f32 %v252_v35, %v190_v30  ;;  %v73_v28 = vld [vmem:[%s535_s0 + $0x1c8] sm:$0xff]  ;;  %v206_v30 = vmul.f32 %v72_v24, %v72_v24 }
  0x54   :  { %v121_v41 = vadd.f32 %v120_v37, %v58_v32  ;;  %v254_v43 = vadd.f32 %v253_v39, %v191_v34  ;;  %v74_v32 = vld [vmem:[%s535_s0 + $0x1d0] sm:$0xff]  ;;  %v207_v34 = vmul.f32 %v73_v28, %v73_v28 }
  0x56   :  { %v122_v45 = vadd.f32 %v121_v41, %v59_v36  ;;  %v255_v47 = vadd.f32 %v254_v43, %v192_v38  ;;  %v75_v36 = vld [vmem:[%s535_s0 + $0x1d8] sm:$0xff]  ;;  %v208_v38 = vmul.f32 %v74_v32, %v74_v32 }
  0x58   :  { %v123_v49 = vadd.f32 %v122_v45, %v60_v40  ;;  %v256_v51 = vadd.f32 %v255_v47, %v193_v42  ;;  %v76_v40 = vld [vmem:[%s535_s0 + $0x1e0] sm:$0xff]  ;;  %v209_v42 = vmul.f32 %v75_v36, %v75_v36 }
  0x5a   :  { %v124_v53 = vadd.f32 %v123_v49, %v61_v44  ;;  %v257_v55 = vadd.f32 %v256_v51, %v194_v46  ;;  %v77_v44 = vld [vmem:[%s535_s0 + $0x1e8] sm:$0xff]  ;;  %v210_v46 = vmul.f32 %v76_v40, %v76_v40 }
  0x5c   :  { %v125_v57 = vadd.f32 %v124_v53, %v62_v48  ;;  %v258_v59 = vadd.f32 %v257_v55, %v195_v50  ;;  %v78_v48 = vld [vmem:[%s535_s0 + $0x1f0] sm:$0xff]  ;;  %v211_v50 = vmul.f32 %v77_v44, %v77_v44 }
  0x5e   :  { %v126_v61 = vadd.f32 %v125_v57, %v63_v52  ;;  %v259_v63 = vadd.f32 %v258_v59, %v196_v54  ;;  %v79_v52 = vld [vmem:[%s535_s0 + $0x1f8] sm:$0xff]  ;;  %v212_v54 = vmul.f32 %v78_v48, %v78_v48 }
  0x5f   :  { %v213_v57 = vmul.f32 %v79_v52, %v79_v52 }
  0x60   :  { %v127_v1 = vadd.f32 %v126_v61, %v64_v56  ;;  %v260_v3 = vadd.f32 %v259_v63, %v197_v58 }
  0x62   :  { %v128_v5 = vadd.f32 %v127_v1, %v65_v60  ;;  %v261_v7 = vadd.f32 %v260_v3, %v198_v62 }
  0x64   :  { %v129_v9 = vadd.f32 %v128_v5, %v66_v0  ;;  %v262_v11 = vadd.f32 %v261_v7, %v199_v2 }
  0x66   :  { %v130_v13 = vadd.f32 %v129_v9, %v67_v4  ;;  %v263_v15 = vadd.f32 %v262_v11, %v200_v6 }
  0x68   :  { %v131_v17 = vadd.f32 %v130_v13, %v68_v8  ;;  %v264_v19 = vadd.f32 %v263_v15, %v201_v10 }
  0x6a   :  { %v132_v21 = vadd.f32 %v131_v17, %v69_v12  ;;  %v265_v23 = vadd.f32 %v264_v19, %v202_v14  ;;  %v292_v19 = vld [vmem:[%s537_s2] sm:$0x1] }
  0x6c   :  { %v133_v25 = vadd.f32 %v132_v21, %v70_v16  ;;  %v266_v27 = vadd.f32 %v265_v23, %v203_v18  ;;  %v287_v16 = vld [vmem:[%s536_s1] sm:$0x1] }
  0x6e   :  { %v134_v29 = vadd.f32 %v133_v25, %v71_v20  ;;  %v267_v31 = vadd.f32 %v266_v27, %v204_v22 }
  0x70   :  { %v135_v33 = vadd.f32 %v134_v29, %v72_v24  ;;  %v268_v35 = vadd.f32 %v267_v31, %v205_v26 }
  0x72   :  { %v136_v37 = vadd.f32 %v135_v33, %v73_v28  ;;  %v269_v39 = vadd.f32 %v268_v35, %v206_v30 }
  0x74   :  { %v137_v41 = vadd.f32 %v136_v37, %v74_v32  ;;  %v270_v43 = vadd.f32 %v269_v39, %v207_v34 }
  0x76   :  { %v138_v45 = vadd.f32 %v137_v41, %v75_v36  ;;  %v271_v47 = vadd.f32 %v270_v43, %v208_v38 }
  0x78   :  { %v139_v49 = vadd.f32 %v138_v45, %v76_v40  ;;  %v272_v51 = vadd.f32 %v271_v47, %v209_v42 }
  0x7a   :  { %v140_v53 = vadd.f32 %v139_v49, %v77_v44  ;;  %v273_v55 = vadd.f32 %v272_v51, %v210_v46 }
  0x7c   :  { %v141_v56 = vadd.f32 %v140_v53, %v78_v48  ;;  %v274_v58 = vadd.f32 %v273_v55, %v211_v50 }
  0x7e   :  { %v142_v59 = vadd.f32 %v141_v56, %v79_v52  ;;  %v275_v60 = vadd.f32 %v274_v58, %v212_v54 }
  0x80   :  { %v143_v61 = vrot.slane %v142_v59, 4  ;;  %v276_v62 = vadd.f32 %v275_v60, %v213_v57 }
  0x82   :  { %v144_v63 = vadd.f32 %v143_v61, %v142_v59  ;;  %v277_v0 = vrot.slane %v276_v62, 4 }
  0x84   :  { %v145_v1 = vrot.slane %v144_v63, 2  ;;  %v278_v2 = vadd.f32 %v277_v0, %v276_v62 }
  0x86   :  { %v146_v3 = vadd.f32 %v145_v1, %v144_v63  ;;  %v279_v4 = vrot.slane %v278_v2, 2 }
  0x88   :  { %v147_v5 = vrot.slane %v146_v3, 1  ;;  %v280_v6 = vadd.f32 %v279_v4, %v278_v2 }
  0x8a   :  { %v148_v7 = vadd.f32 %v147_v5, %v146_v3  ;;  %v281_v8 = vrot.slane %v280_v6, 1 }
  0x8c   :  { %v149_v9 = vmul.f32 0.001953125, %v148_v7  ;;  %v282_v10 = vadd.f32 %v281_v8, %v280_v6 }
  0x8e   :  { %v284_v11 = vmul.f32 %v149_v9, %v149_v9  ;;  %v283_v12 = vmul.f32 0.001953125, %v282_v10 }
  0x90   :  { %v285_v13 = vsub.f32 %v283_v12, %v284_v11 }
  0x92   :  { %v286_v14 = vmax.f32 %v285_v13, 0.0 }
  0x94   :  { %v288_v15 = vadd.f32 1e-05, %v286_v14 }
  0x96   :  { %304 = vrsqrt.f32 %v288_v15 }
  0xa0   :  { %v305_v17 = vpop.eup %304 }
  0xa1   :  { %v290_v18 = vmul.f32 %v305_v17, %v287_v16 }
  0xa3   :  { %291 = vst [vmem:[%s538_s3] sm:$0x1] %v290_v18  ;;  %v293_v20 = vmul.f32 %v290_v18, %v149_v9 }
  0xa5   :  { %v294_v21 = vsub.f32 %v292_v19, %v293_v20 }
  0xa7   :  { %295 = vst [vmem:[%s539_s4] sm:$0x1] %v294_v21 }

// kernel: generator_forward.15
= control target key start
LH: loop header
LB: loop body
LE: loop exit
PB: predicated region body
PF: predicated region fallthrough
CT: control target
= control target key end

     0   :  { %s2600_s15 = smov 0   ;;  %s2602_s16 = smov 0   ;;  %s3944_s0 = inlined_call_operand.vmem [shape: f32[512,128], index: 0, kind: input, shape index: {}]   ;;  %s3945_s1 = inlined_call_operand.vmem [shape: f32[1,128], index: 1, kind: input, shape index: {}]   ;;  %s3946_s2 = inlined_call_operand.vmem [shape: f32[1,128], index: 2, kind: input, shape index: {}]   ;;  %s3947_s3 = inlined_call_operand.vmem [shape: bf16[128,1024], index: 3, kind: input, shape index: {}]   ;;  %s3948_s4 = inlined_call_operand.vmem [shape: f32[512,1024], index: 4, kind: output, shape index: {}]  }
   0x1   :  { %s2604_s17 = smov 0   ;;  %s2606_s18 = smov 0  }
   0x2   :  { %s2608_s19 = smov 0  }
   0x3 LB: > { %s23_s20 = sadd.s32 1, %s2568_s18  ;;  %s2393_s21 = sadd.s32 4294967295, %s2572_s19   ;;  %s2572_s19 = sphi %s2608_s19, %s14_s19   ;;  %s2568_s18 = sphi %s2606_s18, %s3953_s18   ;;  %s2564_s17 = sphi %s2604_s17, %s3952_s17   ;;  %s2560_s16 = sphi %s2602_s16, %s3951_s16   ;;  %s2556_s15 = sphi %s2600_s15, %s3950_s15  }
   0x4   : > { %p24_p0 = scmp.ge.s32.totalorder %s23_s20, 2  ;;  %p108_p1 = scmp.ne.s32.totalorder %s2560_s16, %s2556_s15 }
   0x5   : > { %p109_p2 = scmp.eq.s32.totalorder %s2572_s19, 0  ;;  %p140_p4 = scmp.eq.s32.totalorder %s2393_s21, 1 }
   0x6   : > { %s3955_s20 = smov (%p24_p0, %s23_s20), 0  ;;  %s101_s23 = sadd.s32 1, %s2560_s16 }
   0x7   : > { %p110_p3 = por %p109_p2, %p108_p1  ;;  %s98_s22 = ssub.s32 %s2568_s18, %s3955_s20 }
   0x8   : > { %p99_p5 = scmp.eq.s32.totalorder %s98_s22, 0  ;;  %p2635_p6 = por %p140_p4, %p108_p1 }
   0x9   : > { %p2397_p7 = scmp.ge.s32.totalorder %s2572_s19, 2 }
   0xa   : > { %s2640_s25 = scalar_select %p99_p5, %s2560_s16, %s101_s23  }
   0xb   : > { %177 = sbr.rel (%p2397_p7) target bundleno = 38 (0x26), region = 28 }
  0x12   : > { %180 = sbr.rel (!%p110_p3) target bundleno = 38 (0x26), region = 32  ;;  %s182_s26 = sand.u32 (%p110_p3), 1, %s2560_s16  }
  0x13   : > { %s2443_s27 = sshll.u32 (%p110_p3), %s2568_s18, 4  ;;  %s2398_s28 = sshll.u32 (%p110_p3), %s182_s26, 8 }
  0x14   : > { %s2648_s5 = scalar_lea.vmem (%p110_p3), %s3947_s3, %s2443_s27  ;;  %s2653_s6 = scalar_lea.vmem (%p110_p3), [#allocation2], %s2398_s28 }
  0x15   : > { %v200_v0 = vld [vmem:[%s2648_s5] sm:$0xff] (%p110_p3)  ;;  %v202_v1 = vld [vmem:[%s2648_s5 + $0x8] sm:$0xff] (%p110_p3) }
  0x16   : > { %v204_v2 = vld [vmem:[%s2648_s5 + $0x20] sm:$0xff] (%p110_p3)  ;;  %201 = vst [vmem:[%s2653_s6] sm:$0xff] (%p110_p3), %v200_v0  ;;  %203 = vst [vmem:[%s2653_s6 + $0x8] sm:$0xff] (%p110_p3), %v202_v1  ;;  %v206_v3 = vld [vmem:[%s2648_s5 + $0x28] sm:$0xff] (%p110_p3) }
  0x17   : > { %205 = vst [vmem:[%s2653_s6 + $0x10] sm:$0xff] (%p110_p3), %v204_v2  ;;  %v208_v4 = vld [vmem:[%s2648_s5 + $0x40] sm:$0xff] (%p110_p3)  ;;  %v210_v5 = vld [vmem:[%s2648_s5 + $0x48] sm:$0xff] (%p110_p3)  ;;  %207 = vst [vmem:[%s2653_s6 + $0x18] sm:$0xff] (%p110_p3), %v206_v3 }
  0x18   : > { %209 = vst [vmem:[%s2653_s6 + $0x20] sm:$0xff] (%p110_p3), %v208_v4  ;;  %211 = vst [vmem:[%s2653_s6 + $0x28] sm:$0xff] (%p110_p3), %v210_v5  ;;  %v212_v6 = vld [vmem:[%s2648_s5 + $0x60] sm:$0xff] (%p110_p3)  ;;  %v214_v7 = vld [vmem:[%s2648_s5 + $0x68] sm:$0xff] (%p110_p3) }
  0x19   : > { %v216_v8 = vld [vmem:[%s2648_s5 + $0x80] sm:$0xff]  ;;  %213 = vst [vmem:[%s2653_s6 + $0x30] sm:$0xff] %v212_v6  ;;  %215 = vst [vmem:[%s2653_s6 + $0x38] sm:$0xff] %v214_v7  ;;  %v218_v9 = vld [vmem:[%s2648_s5 + $0x88] sm:$0xff] }
  0x1a   : > { %217 = vst [vmem:[%s2653_s6 + $0x40] sm:$0xff] %v216_v8  ;;  %v220_v10 = vld [vmem:[%s2648_s5 + $0xa0] sm:$0xff]  ;;  %v222_v11 = vld [vmem:[%s2648_s5 + $0xa8] sm:$0xff]  ;;  %219 = vst [vmem:[%s2653_s6 + $0x48] sm:$0xff] %v218_v9 }
  0x1b   : > { %221 = vst [vmem:[%s2653_s6 + $0x50] sm:$0xff] %v220_v10  ;;  %223 = vst [vmem:[%s2653_s6 + $0x58] sm:$0xff] %v222_v11  ;;  %v224_v12 = vld [vmem:[%s2648_s5 + $0xc0] sm:$0xff]  ;;  %v226_v13 = vld [vmem:[%s2648_s5 + $0xc8] sm:$0xff] }
  0x1c   : > { %v228_v14 = vld [vmem:[%s2648_s5 + $0xe0] sm:$0xff]  ;;  %225 = vst [vmem:[%s2653_s6 + $0x60] sm:$0xff] %v224_v12  ;;  %227 = vst [vmem:[%s2653_s6 + $0x68] sm:$0xff] %v226_v13  ;;  %v230_v15 = vld [vmem:[%s2648_s5 + $0xe8] sm:$0xff] }
  0x1d   : > { %229 = vst [vmem:[%s2653_s6 + $0x70] sm:$0xff] %v228_v14  ;;  %v232_v16 = vld [vmem:[%s2648_s5 + $0x100] sm:$0xff]  ;;  %v234_v17 = vld [vmem:[%s2648_s5 + $0x108] sm:$0xff]  ;;  %231 = vst [vmem:[%s2653_s6 + $0x78] sm:$0xff] %v230_v15 }
  0x1e   : > { %233 = vst [vmem:[%s2653_s6 + $0x80] sm:$0xff] %v232_v16  ;;  %235 = vst [vmem:[%s2653_s6 + $0x88] sm:$0xff] %v234_v17  ;;  %v236_v18 = vld [vmem:[%s2648_s5 + $0x120] sm:$0xff]  ;;  %v238_v19 = vld [vmem:[%s2648_s5 + $0x128] sm:$0xff] }
  0x1f   : > { %v240_v20 = vld [vmem:[%s2648_s5 + $0x140] sm:$0xff]  ;;  %237 = vst [vmem:[%s2653_s6 + $0x90] sm:$0xff] %v236_v18  ;;  %239 = vst [vmem:[%s2653_s6 + $0x98] sm:$0xff] %v238_v19  ;;  %v242_v21 = vld [vmem:[%s2648_s5 + $0x148] sm:$0xff] }
  0x20   : > { %241 = vst [vmem:[%s2653_s6 + $0xa0] sm:$0xff] %v240_v20  ;;  %v244_v22 = vld [vmem:[%s2648_s5 + $0x160] sm:$0xff]  ;;  %v246_v23 = vld [vmem:[%s2648_s5 + $0x168] sm:$0xff]  ;;  %243 = vst [vmem:[%s2653_s6 + $0xa8] sm:$0xff] %v242_v21 }
  0x21   : > { %245 = vst [vmem:[%s2653_s6 + $0xb0] sm:$0xff] %v244_v22  ;;  %247 = vst [vmem:[%s2653_s6 + $0xb8] sm:$0xff] %v246_v23  ;;  %v248_v24 = vld [vmem:[%s2648_s5 + $0x180] sm:$0xff]  ;;  %v250_v25 = vld [vmem:[%s2648_s5 + $0x188] sm:$0xff] }
  0x22   : > { %v252_v26 = vld [vmem:[%s2648_s5 + $0x1a0] sm:$0xff]  ;;  %249 = vst [vmem:[%s2653_s6 + $0xc0] sm:$0xff] %v248_v24  ;;  %251 = vst [vmem:[%s2653_s6 + $0xc8] sm:$0xff] %v250_v25  ;;  %v254_v27 = vld [vmem:[%s2648_s5 + $0x1a8] sm:$0xff] }
  0x23   : > { %253 = vst [vmem:[%s2653_s6 + $0xd0] sm:$0xff] %v252_v26  ;;  %v256_v28 = vld [vmem:[%s2648_s5 + $0x1c0] sm:$0xff]  ;;  %v258_v29 = vld [vmem:[%s2648_s5 + $0x1c8] sm:$0xff]  ;;  %255 = vst [vmem:[%s2653_s6 + $0xd8] sm:$0xff] %v254_v27 }
  0x24   : > { %257 = vst [vmem:[%s2653_s6 + $0xe0] sm:$0xff] %v256_v28  ;;  %259 = vst [vmem:[%s2653_s6 + $0xe8] sm:$0xff] %v258_v29  ;;  %v260_v30 = vld [vmem:[%s2648_s5 + $0x1e0] sm:$0xff]  ;;  %v262_v31 = vld [vmem:[%s2648_s5 + $0x1e8] sm:$0xff] }
  0x25   : > { %261 = vst [vmem:[%s2653_s6 + $0xf0] sm:$0xff] %v260_v30  ;;  %263 = vst [vmem:[%s2653_s6 + $0xf8] sm:$0xff] %v262_v31 }
  0x26 PF: > { %p2401_p8 = scmp.ge.s32.totalorder %s2572_s19, 1  ;;  %p268_p9 = scmp.lt.s32.totalorder %s2572_s19, 3 }
  0x28   : > { %p269_p10 = pnand %p2401_p8, %p268_p9 }
  0x29   : > { %s275_s7 = sand.u32 (!%p269_p10), 1, %s2556_s15   ;;  %v2574_v32 = vmov (!%p269_p10), 0   ;;  %v314_v51 = vld [vmem:[%s3944_s0] sm:$0xff] (!%p269_p10)  ;;  %v315_v52 = vld [vmem:[%s3944_s0 + $0x8] sm:$0xff] (!%p269_p10)  ;;  %v316_v3 = vld [vmem:[%s3944_s0 + $0x10] sm:$0xff] (!%p269_p10) }
  0x2a   : > { %272 = sbr.rel (%p269_p10) target bundleno = 641 (0x281), region = 55  ;;  %s2402_s8 = sshll.u32 (!%p269_p10), %s275_s7, 8  ;;  %840 = vmatprep.mubr.bf16.mxu0 (!%p269_p10), %v2574_v32  ;;  %1193 = vmatprep.mubr.bf16.mxu1 (!%p269_p10), %v2574_v32  ;;  %v2754_v55 = vld [vmem:[%s3945_s1] ss:$0 sm:$0xff] (!%p269_p10)  ;;  %v317_v6 = vld [vmem:[%s3944_s0 + $0x18] sm:$0xff] (!%p269_p10)  ;;  %v319_v19 = vld [vmem:[%s3944_s0 + $0x28] sm:$0xff] (!%p269_p10) }
  0x2b   : > { %s2723_s9 = scalar_lea.vmem (!%p269_p10), [#allocation2], %s2402_s8  ;;  %v385_v58 = vmul.f32 (!%p269_p10), %v2754_v55, %v314_v51  ;;  %v386_v59 = vmul.f32 (!%p269_p10), %v2754_v55, %v315_v52  ;;  %v2763_v60 = vld [vmem:[%s3946_s2] ss:$0 sm:$0xff] (!%p269_p10)  ;;  %v387_v11 = vmul.f32 (!%p269_p10), %v2754_v55, %v316_v3  ;;  %v388_v12 = vmul.f32 (!%p269_p10), %v2754_v55, %v317_v6  ;;  %v320_v27 = vld [vmem:[%s3944_s0 + $0x30] sm:$0xff] (!%p269_p10)  ;;  %v321_v28 = vld [vmem:[%s3944_s0 + $0x38] sm:$0xff] (!%p269_p10)  ;;  %s2403_s11 = sshll.u32 (!%p269_p10), %s275_s7, 11 }
  0x2c   : > { %v2486_v33 = vld [vmem:[%s2723_s9 + $0x4] ss:$16 sps:$4 sm:$0xff] (!%p269_p10)   ;;  %v2488_v34 = vld [vmem:[%s2723_s9 + $0xc] ss:$16 sps:$4 sm:$0xff] (!%p269_p10)   ;;  %v2490_v35 = vld [vmem:[%s2723_s9] ss:$16 sps:$4 sm:$0xff] (!%p269_p10)   ;;  %v390_v23 = vmul.f32 (!%p269_p10), %v2754_v55, %v319_v19  ;;  %v391_v31 = vmul.f32 (!%p269_p10), %v2754_v55, %v320_v27 }
  0x2d   : > { %808 = vmatprep.subr.bf16.mxu0 (!%p269_p10), %v2486_v33  ;;  %v2491_v36 = vld [vmem:[%s2723_s9 + $0x8] ss:$16 sps:$4 sm:$0xff] (!%p269_p10)   ;;  %1161 = vmatprep.subr.bf16.mxu1 (!%p269_p10), %v2488_v34  ;;  %v2492_v37 = vld [vmem:[%s2723_s9 + $0x24] ss:$16 sps:$4 sm:$0xff] (!%p269_p10)   ;;  %v2494_v38 = vld [vmem:[%s2723_s9 + $0x2c] ss:$16 sps:$4 sm:$0xff] (!%p269_p10)   ;;  %v456_v1 = vadd.f32 (!%p269_p10), %v2763_v60, %v385_v58  ;;  %v457_v2 = vadd.f32 (!%p269_p10), %v2763_v60, %v386_v59  ;;  %v458_v16 = vadd.f32 (!%p269_p10), %v2763_v60, %v387_v11 }
  0x2e   : > { %809 = vmatpush1.bf16.msra.mxu0 (!%p269_p10), %v2490_v35  ;;  %1162 = vmatpush1.bf16.msra.mxu1 (!%p269_p10), %v2491_v36  ;;  %v2496_v39 = vld [vmem:[%s2723_s9 + $0x20] ss:$16 sps:$4 sm:$0xff] (!%p269_p10)   ;;  %v2497_v40 = vld [vmem:[%s2723_s9 + $0x28] ss:$16 sps:$4 sm:$0xff] (!%p269_p10)   ;;  %v2498_v41 = vld [vmem:[%s2723_s9 + $0x44] ss:$16 sps:$4 sm:$0xff] (!%p269_p10)   ;;  %v459_v17 = vadd.f32 (!%p269_p10), %v2763_v60, %v388_v12  ;;  %v461_v26 = vadd.f32 (!%p269_p10), %v2763_v60, %v390_v23  ;;  %v392_v33 = vmul.f32 (!%p269_p10), %v2754_v55, %v321_v28 }
  0x2f   : > { %810 = vmatprep.subr.bf16.mxu0 (!%p269_p10), %v2492_v37  ;;  %1163 = vmatprep.subr.bf16.mxu1 (!%p269_p10), %v2494_v38  ;;  %v2500_v42 = vld [vmem:[%s2723_s9 + $0x4c] ss:$16 sps:$4 sm:$0xff] (!%p269_p10)   ;;  %v2502_v43 = vld [vmem:[%s2723_s9 + $0x40] ss:$16 sps:$4 sm:$0xff] (!%p269_p10)   ;;  %v2503_v44 = vld [vmem:[%s2723_s9 + $0x48] ss:$16 sps:$4 sm:$0xff] (!%p269_p10)   ;;  %v462_v35 = vadd.f32 (!%p269_p10), %v2763_v60, %v391_v31 }
  0x30   : > { %v2504_v45 = vld [vmem:[%s2723_s9 + $0x64] ss:$16 sps:$4 sm:$0xff] (!%p269_p10)   ;;  %v2506_v46 = vld [vmem:[%s2723_s9 + $0x6c] ss:$16 sps:$4 sm:$0xff] (!%p269_p10)   ;;  %v2508_v47 = vld [vmem:[%s2723_s9 + $0x60] ss:$16 sps:$4 sm:$0xff] (!%p269_p10)   ;;  %v463_v36 = vadd.f32 (!%p269_p10), %v2763_v60, %v392_v33 }
  0x31   : > { %v2509_v48 = vld [vmem:[%s2723_s9 + $0x68] ss:$16 sps:$4 sm:$0xff]   ;;  %v2510_v49 = vld [vmem:[%s2723_s9 + $0x84] ss:$16 sps:$4 sm:$0xff]   ;;  %v2512_v50 = vld [vmem:[%s2723_s9 + $0x8c] ss:$16 sps:$4 sm:$0xff]  }
  0x32   : > { %811 = vmatpush1.bf16.msra.mxu0 %v2496_v39  ;;  %1164 = vmatpush1.bf16.msra.mxu1 %v2497_v40  ;;  %v2514_v53 = vld [vmem:[%s2723_s9 + $0x80] ss:$16 sps:$4 sm:$0xff]   ;;  %v2515_v54 = vld [vmem:[%s2723_s9 + $0x88] ss:$16 sps:$4 sm:$0xff]   ;;  %v2516_v56 = vld [vmem:[%s2723_s9 + $0xa4] ss:$16 sps:$4 sm:$0xff]  }
  0x33   : > { %812 = vmatprep.subr.bf16.mxu0 %v2498_v41  ;;  %1165 = vmatprep.subr.bf16.mxu1 %v2500_v42  ;;  %v2518_v57 = vld [vmem:[%s2723_s9 + $0xac] ss:$16 sps:$4 sm:$0xff]   ;;  %v2520_v61 = vld [vmem:[%s2723_s9 + $0xa0] ss:$16 sps:$4 sm:$0xff]   ;;  %v2521_v62 = vld [vmem:[%s2723_s9 + $0xa8] ss:$16 sps:$4 sm:$0xff]  }
  0x34   : > { %v2522_v63 = vld [vmem:[%s2723_s9 + $0xc4] ss:$16 sps:$4 sm:$0xff]   ;;  %v2524_v0 = vld [vmem:[%s2723_s9 + $0xcc] ss:$16 sps:$4 sm:$0xff]   ;;  %v2526_v4 = vld [vmem:[%s2723_s9 + $0xc0] ss:$16 sps:$4 sm:$0xff]  }
  0x35   : > { %v2527_v5 = vld [vmem:[%s2723_s9 + $0xc8] ss:$16 sps:$4 sm:$0xff]   ;;  %v2528_v7 = vld [vmem:[%s2723_s9 + $0xe4] ss:$16 sps:$4 sm:$0xff]   ;;  %v2530_v8 = vld [vmem:[%s2723_s9 + $0xec] ss:$16 sps:$4 sm:$0xff]  }
  0x36   : > { %813 = vmatpush1.bf16.msra.mxu0 %v2502_v43  ;;  %1166 = vmatpush1.bf16.msra.mxu1 %v2503_v44  ;;  %v520_v9 = vmax.f32 %v456_v1, 0.0  ;;  %v521_v10 = vmax.f32 %v457_v2, 0.0  ;;  %v2532_v13 = vld [vmem:[%s2723_s9 + $0xe0] ss:$16 sps:$4 sm:$0xff]   ;;  %v2533_v14 = vld [vmem:[%s2723_s9 + $0xe8] ss:$16 sps:$4 sm:$0xff]  }
  0x37   : > { %814 = vmatprep.subr.bf16.mxu0 %v2504_v45  ;;  %1167 = vmatprep.subr.bf16.mxu1 %v2506_v46  ;;  %v318_v18 = vld [vmem:[%s3944_s0 + $0x20] sm:$0xff]  ;;  %v522_v20 = vmax.f32 %v458_v16, 0.0  ;;  %v523_v21 = vmax.f32 %v459_v17, 0.0  ;;  %v525_v30 = vmax.f32 %v461_v26, 0.0  ;;  %v323_v38 = vld [vmem:[%s3944_s0 + $0x48] sm:$0xff]  ;;  %v526_v39 = vmax.f32 %v462_v35, 0.0 }
  0x38   : > { %v584_v15 = vpack.c.bf16 %v521_v10, %v520_v9  ;;  %v389_v22 = vmul.f32 %v2754_v55, %v318_v18  ;;  %v322_v37 = vld [vmem:[%s3944_s0 + $0x40] sm:$0xff]  ;;  %v527_v40 = vmax.f32 %v463_v36, 0.0  ;;  %v394_v42 = vmul.f32 %v2754_v55, %v323_v38  ;;  %v324_v46 = vld [vmem:[%s3944_s0 + $0x50] sm:$0xff]  ;;  %v329_v3 = vld [vmem:[%s3944_s0 + $0x78] sm:$0xff]  ;;  %s3111_s12 = scalar_lea.vmem [#allocation3], %s2403_s11  ;;  %s2444_s5 = sshll.u32 (%p2635_p6), %s2564_s17, 5 }
  0x39   : > { %v585_v24 = vpack.c.bf16 %v523_v21, %v522_v20  ;;  %v393_v41 = vmul.f32 %v2754_v55, %v322_v37  ;;  %v328_v2 = vld [vmem:[%s3944_s0 + $0x70] sm:$0xff]  ;;  %v330_v11 = vld [vmem:[%s3944_s0 + $0x80] sm:$0xff]  ;;  %v331_v12 = vld [vmem:[%s3944_s0 + $0x88] sm:$0xff]  ;;  %s3418_s9 = scalar_lea.vmem (%p2635_p6), %s3948_s4, %s2444_s5 }
  0x3a   : > { %815 = vmatpush1.bf16.msra.mxu0 %v2508_v47  ;;  %1168 = vmatpush1.bf16.msra.mxu1 %v2509_v48  ;;  %v460_v25 = vadd.f32 %v2763_v60, %v389_v22  ;;  %v587_v43 = vpack.c.bf16 %v527_v40, %v526_v39  ;;  %v465_v45 = vadd.f32 %v2763_v60, %v394_v42  ;;  %v325_v47 = vld [vmem:[%s3944_s0 + $0x58] sm:$0xff]  ;;  %v332_v20 = vld [vmem:[%s3944_s0 + $0x90] sm:$0xff] }
  0x3b   : > { %816 = vmatprep.subr.bf16.mxu0 %v2510_v49  ;;  %1169 = vmatprep.subr.bf16.mxu1 %v2512_v50  ;;  %v464_v44 = vadd.f32 %v2763_v60, %v393_v41  ;;  %v395_v50 = vmul.f32 %v2754_v55, %v324_v46  ;;  %v396_v51 = vmul.f32 %v2754_v55, %v325_v47  ;;  %v333_v21 = vld [vmem:[%s3944_s0 + $0x98] sm:$0xff]  ;;  %v336_v39 = vld [vmem:[%s3944_s0 + $0xb0] sm:$0xff] }
  0x3c   : > { %v524_v29 = vmax.f32 %v460_v25, 0.0  ;;  %v529_v49 = vmax.f32 %v465_v45, 0.0  ;;  %v399_v6 = vmul.f32 %v2754_v55, %v328_v2  ;;  %v402_v16 = vmul.f32 %v2754_v55, %v331_v12  ;;  %v337_v40 = vld [vmem:[%s3944_s0 + $0xb8] sm:$0xff] }
  0x3d   : > { %v528_v48 = vmax.f32 %v464_v44, 0.0  ;;  %v404_v25 = vmul.f32 %v2754_v55, %v333_v21  ;;  %v408_v44 = vmul.f32 %v2754_v55, %v337_v40 }
  0x3e   : > { %817 = vmatpush1.bf16.msra.mxu0 %v2514_v53  ;;  %1170 = vmatpush1.bf16.msra.mxu1 %v2515_v54  ;;  %v586_v34 = vpack.c.bf16 %v525_v30, %v524_v29  ;;  %v466_v53 = vadd.f32 %v2763_v60, %v395_v50  ;;  %v467_v54 = vadd.f32 %v2763_v60, %v396_v51  ;;  %v334_v29 = vld [vmem:[%s3944_s0 + $0xa0] sm:$0xff]  ;;  %v335_v30 = vld [vmem:[%s3944_s0 + $0xa8] sm:$0xff] }
  0x3f   : > { %818 = vmatprep.subr.bf16.mxu0 %v2516_v56  ;;  %1171 = vmatprep.subr.bf16.mxu1 %v2518_v57  ;;  %v588_v52 = vpack.c.bf16 %v529_v49, %v528_v48  ;;  %v326_v56 = vld [vmem:[%s3944_s0 + $0x60] sm:$0xff]  ;;  %v327_v57 = vld [vmem:[%s3944_s0 + $0x68] sm:$0xff]  ;;  %v470_v9 = vadd.f32 %v2763_v60, %v399_v6  ;;  %v473_v19 = vadd.f32 %v2763_v60, %v402_v16 }
  0x40   : > { %v530_v58 = vmax.f32 %v466_v53, 0.0  ;;  %v531_v59 = vmax.f32 %v467_v54, 0.0  ;;  %v475_v28 = vadd.f32 %v2763_v60, %v404_v25  ;;  %v406_v35 = vmul.f32 %v2754_v55, %v335_v30  ;;  %v338_v48 = vld [vmem:[%s3944_s0 + $0xc0] sm:$0xff]  ;;  %v339_v49 = vld [vmem:[%s3944_s0 + $0xc8] sm:$0xff] }
  0x41   : > { %v537_v23 = vmax.f32 %v473_v19, 0.0  ;;  %v479_v47 = vadd.f32 %v2763_v60, %v408_v44  ;;  %v410_v53 = vmul.f32 %v2754_v55, %v339_v49 }
  0x42   : > { %819 = vmatpush1.bf16.msra.mxu0 %v2520_v61  ;;  %1172 = vmatpush1.bf16.msra.mxu1 %v2521_v62  ;;  %v397_v61 = vmul.f32 %v2754_v55, %v326_v56  ;;  %v398_v62 = vmul.f32 %v2754_v55, %v327_v57  ;;  %v539_v33 = vmax.f32 %v475_v28, 0.0  ;;  %v477_v38 = vadd.f32 %v2763_v60, %v406_v35 }
  0x43   : > { %820 = vmatprep.subr.bf16.mxu0 %v2522_v63  ;;  %1173 = vmatprep.subr.bf16.mxu1 %v2524_v0  ;;  %v589_v63 = vpack.c.bf16 %v531_v59, %v530_v58  ;;  %v543_v51 = vmax.f32 %v479_v47, 0.0  ;;  %v481_v57 = vadd.f32 %v2763_v60, %v410_v53  ;;  %v340_v58 = vld [vmem:[%s3944_s0 + $0xd0] sm:$0xff]  ;;  %v341_v59 = vld [vmem:[%s3944_s0 + $0xd8] sm:$0xff] }
  0x44   : > { %v468_v0 = vadd.f32 %v2763_v60, %v397_v61  ;;  %v469_v1 = vadd.f32 %v2763_v60, %v398_v62  ;;  %v541_v42 = vmax.f32 %v477_v38, 0.0 }
  0x45   : > { %v545_v62 = vmax.f32 %v481_v57, 0.0 }
  0x46   : > { %821 = vmatpush1.bf16.msra.mxu0 %v2526_v4  ;;  %1174 = vmatpush1.bf16.msra.mxu1 %v2527_v5  ;;  %v532_v4 = vmax.f32 %v468_v0, 0.0  ;;  %v533_v5 = vmax.f32 %v469_v1, 0.0  ;;  %v412_v0 = vmul.f32 %v2754_v55, %v341_v59 }
  0x47   : > { %822 = vmatprep.subr.bf16.mxu0 %v2528_v7  ;;  %1175 = vmatprep.subr.bf16.mxu1 %v2530_v8  ;;  %v400_v7 = vmul.f32 %v2754_v55, %v329_v3 }
  0x48   : > { %v590_v8 = vpack.c.bf16 %v533_v5, %v532_v4  ;;  %v483_v3 = vadd.f32 %v2763_v60, %v412_v0  ;;  %v342_v4 = vld [vmem:[%s3944_s0 + $0xe0] sm:$0xff]  ;;  %v343_v5 = vld [vmem:[%s3944_s0 + $0xe8] sm:$0xff] }
  0x49   : > { %v471_v10 = vadd.f32 %v2763_v60, %v400_v7 }
  0x4a   : > { %823 = vmatpush1.bf16.msra.mxu0 %v2532_v13  ;;  %1176 = vmatpush1.bf16.msra.mxu1 %v2533_v14  ;;  %v534_v13 = vmax.f32 %v470_v9, 0.0  ;;  %v547_v7 = vmax.f32 %v483_v3, 0.0  ;;  %v414_v9 = vmul.f32 %v2754_v55, %v343_v5 }
  0x4b   : > { %v535_v14 = vmax.f32 %v471_v10, 0.0 }
  0x4c   : > { %v485_v12 = vadd.f32 %v2763_v60, %v414_v9 }
  0x4d   : > { %841 = vmatmul.mubr.bf16.vlgmr.msra.gmra.mrb[0].mxu0 %v584_v15  ;;  %1194 = vmatmul.mubr.bf16.vlgmr.msra.gmra.mrb[0].mxu1 %v584_v15  ;;  %v401_v15 = vmul.f32 %v2754_v55, %v330_v11  ;;  %v591_v17 = vpack.c.bf16 %v535_v14, %v534_v13  ;;  %v344_v13 = vld [vmem:[%s3944_s0 + $0xf0] sm:$0xff]  ;;  %v345_v14 = vld [vmem:[%s3944_s0 + $0xf8] sm:$0xff] }
  0x4e   : > { %850 = vmatprep.mubr.bf16.mxu0 %v2574_v32  ;;  %1203 = vmatprep.mubr.bf16.mxu1 %v2574_v32  ;;  %v549_v16 = vmax.f32 %v485_v12, 0.0 }
  0x4f   : > { %v472_v18 = vadd.f32 %v2763_v60, %v401_v15 }
  0x51   : > { %v536_v22 = vmax.f32 %v472_v18, 0.0  ;;  %v416_v18 = vmul.f32 %v2754_v55, %v345_v14 }
  0x53   : > { %v592_v26 = vpack.c.bf16 %v537_v23, %v536_v22  ;;  %v487_v21 = vadd.f32 %v2763_v60, %v416_v18  ;;  %v346_v22 = vld [vmem:[%s3944_s0 + $0x100] sm:$0xff]  ;;  %v347_v23 = vld [vmem:[%s3944_s0 + $0x108] sm:$0xff] }
  0x55   : > { %851 = vmatmul.mubr.bf16.gmra.mrb[4].mxu0 %v585_v24  ;;  %1204 = vmatmul.mubr.bf16.gmra.mrb[4].mxu1 %v585_v24  ;;  %v403_v24 = vmul.f32 %v2754_v55, %v332_v20  ;;  %v551_v25 = vmax.f32 %v487_v21, 0.0 }
  0x56   : > { %860 = vmatprep.mubr.bf16.mxu0 %v2574_v32  ;;  %1213 = vmatprep.mubr.bf16.mxu1 %v2574_v32 }
  0x57   : > { %v474_v27 = vadd.f32 %v2763_v60, %v403_v24 }
  0x59   : > { %v538_v31 = vmax.f32 %v474_v27, 0.0  ;;  %v418_v27 = vmul.f32 %v2754_v55, %v347_v23 }
  0x5b   : > { %v593_v36 = vpack.c.bf16 %v539_v33, %v538_v31  ;;  %v489_v30 = vadd.f32 %v2763_v60, %v418_v27  ;;  %v348_v31 = vld [vmem:[%s3944_s0 + $0x110] sm:$0xff]  ;;  %v349_v33 = vld [vmem:[%s3944_s0 + $0x118] sm:$0xff] }
  0x5d   : > { %861 = vmatmul.mubr.bf16.gmra.mrb[8].mxu0 %v586_v34  ;;  %1214 = vmatmul.mubr.bf16.gmra.mrb[8].mxu1 %v586_v34  ;;  %v405_v34 = vmul.f32 %v2754_v55, %v334_v29  ;;  %v553_v35 = vmax.f32 %v489_v30, 0.0 }
  0x5e   : > { %870 = vmatprep.mubr.bf16.mxu0 %v2574_v32  ;;  %1223 = vmatprep.mubr.bf16.mxu1 %v2574_v32 }
  0x5f   : > { %v476_v37 = vadd.f32 %v2763_v60, %v405_v34 }
  0x61   : > { %v540_v41 = vmax.f32 %v476_v37, 0.0  ;;  %v420_v37 = vmul.f32 %v2754_v55, %v349_v33 }
  0x63   : > { %v594_v45 = vpack.c.bf16 %v541_v42, %v540_v41  ;;  %v491_v40 = vadd.f32 %v2763_v60, %v420_v37  ;;  %v350_v41 = vld [vmem:[%s3944_s0 + $0x120] sm:$0xff]  ;;  %v351_v42 = vld [vmem:[%s3944_s0 + $0x128] sm:$0xff] }
  0x65   : > { %871 = vmatmul.mubr.bf16.gmra.mrb[12].mxu0 %v587_v43  ;;  %1224 = vmatmul.mubr.bf16.gmra.mrb[12].mxu1 %v587_v43  ;;  %v407_v43 = vmul.f32 %v2754_v55, %v336_v39  ;;  %v555_v44 = vmax.f32 %v491_v40, 0.0 }
  0x66   : > { %880 = vmatprep.mubr.bf16.mxu0 %v2574_v32  ;;  %1233 = vmatprep.mubr.bf16.mxu1 %v2574_v32 }
  0x67   : > { %v478_v46 = vadd.f32 %v2763_v60, %v407_v43 }
  0x69   : > { %v542_v50 = vmax.f32 %v478_v46, 0.0  ;;  %v422_v46 = vmul.f32 %v2754_v55, %v351_v42 }
  0x6b   : > { %v595_v54 = vpack.c.bf16 %v543_v51, %v542_v50  ;;  %v493_v49 = vadd.f32 %v2763_v60, %v422_v46  ;;  %v352_v50 = vld [vmem:[%s3944_s0 + $0x130] sm:$0xff]  ;;  %v353_v51 = vld [vmem:[%s3944_s0 + $0x138] sm:$0xff] }
  0x6d   : > { %881 = vmatmul.mubr.bf16.gmra.mrb[16].mxu0 %v588_v52  ;;  %1234 = vmatmul.mubr.bf16.gmra.mrb[16].mxu1 %v588_v52  ;;  %v409_v52 = vmul.f32 %v2754_v55, %v338_v48  ;;  %v557_v53 = vmax.f32 %v493_v49, 0.0 }
  0x6e   : > { %890 = vmatprep.mubr.bf16.mxu0 %v2574_v32  ;;  %1243 = vmatprep.mubr.bf16.mxu1 %v2574_v32 }
  0x6f   : > { %v480_v56 = vadd.f32 %v2763_v60, %v409_v52 }
  0x71   : > { %v544_v61 = vmax.f32 %v480_v56, 0.0  ;;  %v424_v56 = vmul.f32 %v2754_v55, %v353_v51 }
  0x73   : > { %v596_v1 = vpack.c.bf16 %v545_v62, %v544_v61  ;;  %v495_v59 = vadd.f32 %v2763_v60, %v424_v56  ;;  %v354_v61 = vld [vmem:[%s3944_s0 + $0x140] sm:$0xff]  ;;  %v355_v62 = vld [vmem:[%s3944_s0 + $0x148] sm:$0xff] }
  0x75   : > { %891 = vmatmul.mubr.bf16.gmra.mrb[20].mxu0 %v589_v63  ;;  %1244 = vmatmul.mubr.bf16.gmra.mrb[20].mxu1 %v589_v63  ;;  %v411_v63 = vmul.f32 %v2754_v55, %v340_v58  ;;  %v559_v0 = vmax.f32 %v495_v59, 0.0 }
  0x76   : > { %900 = vmatprep.mubr.bf16.mxu0 %v2574_v32  ;;  %1253 = vmatprep.mubr.bf16.mxu1 %v2574_v32 }
  0x77   : > { %v482_v2 = vadd.f32 %v2763_v60, %v411_v63 }
  0x79   : > { %v546_v6 = vmax.f32 %v482_v2, 0.0  ;;  %v426_v2 = vmul.f32 %v2754_v55, %v355_v62 }
  0x7b   : > { %v597_v10 = vpack.c.bf16 %v547_v7, %v546_v6  ;;  %v497_v5 = vadd.f32 %v2763_v60, %v426_v2  ;;  %v356_v6 = vld [vmem:[%s3944_s0 + $0x150] sm:$0xff]  ;;  %v357_v7 = vld [vmem:[%s3944_s0 + $0x158] sm:$0xff] }
  0x7d   : > { %901 = vmatmul.mubr.bf16.gmra.mrb[24].mxu0 %v590_v8  ;;  %1254 = vmatmul.mubr.bf16.gmra.mrb[24].mxu1 %v590_v8  ;;  %v413_v8 = vmul.f32 %v2754_v55, %v342_v4  ;;  %v561_v9 = vmax.f32 %v497_v5, 0.0 }
  0x7e   : > { %910 = vmatprep.mubr.bf16.mxu0 %v2574_v32  ;;  %1263 = vmatprep.mubr.bf16.mxu1 %v2574_v32 }
  0x7f   : > { %v484_v11 = vadd.f32 %v2763_v60, %v413_v8 }
  0x81   : > { %v548_v15 = vmax.f32 %v484_v11, 0.0  ;;  %v428_v11 = vmul.f32 %v2754_v55, %v357_v7 }
  0x83   : > { %v598_v19 = vpack.c.bf16 %v549_v16, %v548_v15  ;;  %v499_v14 = vadd.f32 %v2763_v60, %v428_v11  ;;  %v358_v15 = vld [vmem:[%s3944_s0 + $0x160] sm:$0xff]  ;;  %v359_v16 = vld [vmem:[%s3944_s0 + $0x168] sm:$0xff] }
  0x85   : > { %911 = vmatmul.mubr.bf16.gmra.mrb[28].mxu0 %v591_v17  ;;  %1264 = vmatmul.mubr.bf16.gmra.mrb[28].mxu1 %v591_v17  ;;  %v415_v17 = vmul.f32 %v2754_v55, %v344_v13  ;;  %v563_v18 = vmax.f32 %v499_v14, 0.0 }
  0x86   : > { %920 = vmatprep.mubr.bf16.mxu0 %v2574_v32  ;;  %1273 = vmatprep.mubr.bf16.mxu1 %v2574_v32 }
  0x87   : > { %v486_v20 = vadd.f32 %v2763_v60, %v415_v17 }
  0x89   : > { %v550_v24 = vmax.f32 %v486_v20, 0.0  ;;  %v430_v20 = vmul.f32 %v2754_v55, %v359_v16 }
  0x8b   : > { %v599_v28 = vpack.c.bf16 %v551_v25, %v550_v24  ;;  %v501_v23 = vadd.f32 %v2763_v60, %v430_v20  ;;  %v360_v24 = vld [vmem:[%s3944_s0 + $0x170] sm:$0xff]  ;;  %v361_v25 = vld [vmem:[%s3944_s0 + $0x178] sm:$0xff] }
  0x8d   : > { %921 = vmatmul.mubr.bf16.gmra.mrb[32].mxu0 %v592_v26  ;;  %1274 = vmatmul.mubr.bf16.gmra.mrb[32].mxu1 %v592_v26  ;;  %v417_v26 = vmul.f32 %v2754_v55, %v346_v22  ;;  %v565_v27 = vmax.f32 %v501_v23, 0.0  ;;  %v372_v23 = vld [vmem:[%s3944_s0 + $0x1d0] sm:$0xff] }
  0x8e   : > { %930 = vmatprep.mubr.bf16.mxu0 %v2574_v32  ;;  %1283 = vmatprep.mubr.bf16.mxu1 %v2574_v32 }
  0x8f   : > { %v488_v29 = vadd.f32 %v2763_v60, %v417_v26 }
  0x91   : > { %v552_v34 = vmax.f32 %v488_v29, 0.0  ;;  %v432_v29 = vmul.f32 %v2754_v55, %v361_v25 }
  0x93   : > { %v600_v38 = vpack.c.bf16 %v553_v35, %v552_v34  ;;  %v503_v33 = vadd.f32 %v2763_v60, %v432_v29  ;;  %v362_v34 = vld [vmem:[%s3944_s0 + $0x180] sm:$0xff]  ;;  %v363_v35 = vld [vmem:[%s3944_s0 + $0x188] sm:$0xff]  ;;  %v443_v29 = vmul.f32 %v2754_v55, %v372_v23 }
  0x95   : > { %931 = vmatmul.mubr.bf16.gmra.mrb[36].mxu0 %v593_v36  ;;  %1284 = vmatmul.mubr.bf16.gmra.mrb[36].mxu1 %v593_v36  ;;  %v419_v36 = vmul.f32 %v2754_v55, %v348_v31  ;;  %v567_v37 = vmax.f32 %v503_v33, 0.0 }
  0x96   : > { %940 = vmatprep.mubr.bf16.mxu0 %v2574_v32  ;;  %1293 = vmatprep.mubr.bf16.mxu1 %v2574_v32 }
  0x97   : > { %v490_v39 = vadd.f32 %v2763_v60, %v419_v36 }
  0x99   : > { %v554_v43 = vmax.f32 %v490_v39, 0.0  ;;  %v434_v39 = vmul.f32 %v2754_v55, %v363_v35 }
  0x9b   : > { %v601_v47 = vpack.c.bf16 %v555_v44, %v554_v43  ;;  %v505_v42 = vadd.f32 %v2763_v60, %v434_v39  ;;  %v364_v43 = vld [vmem:[%s3944_s0 + $0x190] sm:$0xff]  ;;  %v365_v44 = vld [vmem:[%s3944_s0 + $0x198] sm:$0xff] }
  0x9d   : > { %941 = vmatmul.mubr.bf16.gmra.mrb[40].mxu0 %v594_v45  ;;  %1294 = vmatmul.mubr.bf16.gmra.mrb[40].mxu1 %v594_v45  ;;  %v421_v45 = vmul.f32 %v2754_v55, %v350_v41  ;;  %v569_v46 = vmax.f32 %v505_v42, 0.0  ;;  %v375_v42 = vld [vmem:[%s3944_s0 + $0x1e8] sm:$0xff] }
  0x9e   : > { %950 = vmatprep.mubr.bf16.mxu0 %v2574_v32  ;;  %1303 = vmatprep.mubr.bf16.mxu1 %v2574_v32 }
  0x9f   : > { %v492_v48 = vadd.f32 %v2763_v60, %v421_v45 }
  0xa1   : > { %v556_v52 = vmax.f32 %v492_v48, 0.0  ;;  %v436_v48 = vmul.f32 %v2754_v55, %v365_v44 }
  0xa3   : > { %v602_v57 = vpack.c.bf16 %v557_v53, %v556_v52  ;;  %v507_v51 = vadd.f32 %v2763_v60, %v436_v48  ;;  %v366_v52 = vld [vmem:[%s3944_s0 + $0x1a0] sm:$0xff]  ;;  %v367_v53 = vld [vmem:[%s3944_s0 + $0x1a8] sm:$0xff]  ;;  %v446_v48 = vmul.f32 %v2754_v55, %v375_v42 }
  0xa5   : > { %951 = vmatmul.mubr.bf16.gmra.mrb[44].mxu0 %v595_v54  ;;  %1304 = vmatmul.mubr.bf16.gmra.mrb[44].mxu1 %v595_v54  ;;  %v423_v54 = vmul.f32 %v2754_v55, %v352_v50  ;;  %v571_v56 = vmax.f32 %v507_v51, 0.0 }
  0xa6   : > { %960 = vmatprep.mubr.bf16.mxu0 %v2574_v32  ;;  %1313 = vmatprep.mubr.bf16.mxu1 %v2574_v32 }
  0xa7   : > { %v494_v58 = vadd.f32 %v2763_v60, %v423_v54 }
  0xa9   : > { %v558_v63 = vmax.f32 %v494_v58, 0.0  ;;  %v438_v58 = vmul.f32 %v2754_v55, %v367_v53 }
  0xab   : > { %v603_v3 = vpack.c.bf16 %v559_v0, %v558_v63  ;;  %v509_v62 = vadd.f32 %v2763_v60, %v438_v58  ;;  %v368_v63 = vld [vmem:[%s3944_s0 + $0x1b0] sm:$0xff]  ;;  %v369_v0 = vld [vmem:[%s3944_s0 + $0x1b8] sm:$0xff] }
  0xad   : > { %961 = vmatmul.mubr.bf16.gmra.mrb[48].mxu0 %v596_v1  ;;  %1314 = vmatmul.mubr.bf16.gmra.mrb[48].mxu1 %v596_v1  ;;  %v425_v1 = vmul.f32 %v2754_v55, %v354_v61  ;;  %v573_v2 = vmax.f32 %v509_v62, 0.0 }
  0xae   : > { %970 = vmatprep.mubr.bf16.mxu0 %v2574_v32  ;;  %1323 = vmatprep.mubr.bf16.mxu1 %v2574_v32 }
  0xaf   : > { %v496_v4 = vadd.f32 %v2763_v60, %v425_v1 }
  0xb1   : > { %v560_v8 = vmax.f32 %v496_v4, 0.0  ;;  %v440_v4 = vmul.f32 %v2754_v55, %v369_v0 }
  0xb3   : > { %v604_v12 = vpack.c.bf16 %v561_v9, %v560_v8  ;;  %v511_v7 = vadd.f32 %v2763_v60, %v440_v4  ;;  %v370_v8 = vld [vmem:[%s3944_s0 + $0x1c0] sm:$0xff]  ;;  %v371_v9 = vld [vmem:[%s3944_s0 + $0x1c8] sm:$0xff] }
  0xb5   : > { %971 = vmatmul.mubr.bf16.gmra.mrb[52].mxu0 %v597_v10  ;;  %1324 = vmatmul.mubr.bf16.gmra.mrb[52].mxu1 %v597_v10  ;;  %v427_v10 = vmul.f32 %v2754_v55, %v356_v6  ;;  %v575_v11 = vmax.f32 %v511_v7, 0.0 }
  0xb6   : > { %980 = vmatprep.mubr.bf16.mxu0 %v2574_v32  ;;  %1333 = vmatprep.mubr.bf16.mxu1 %v2574_v32 }
  0xb7   : > { %v498_v13 = vadd.f32 %v2763_v60, %v427_v10 }
  0xb9   : > { %v562_v17 = vmax.f32 %v498_v13, 0.0  ;;  %v442_v13 = vmul.f32 %v2754_v55, %v371_v9 }
  0xbb   : > { %v605_v21 = vpack.c.bf16 %v563_v18, %v562_v17  ;;  %v513_v20 = vadd.f32 %v2763_v60, %v442_v13 }
  0xbd   : > { %981 = vmatmul.mubr.bf16.gmra.mrb[56].mxu0 %v598_v19  ;;  %1334 = vmatmul.mubr.bf16.gmra.mrb[56].mxu1 %v598_v19  ;;  %v429_v19 = vmul.f32 %v2754_v55, %v358_v15 }
  0xbe   : > { %990 = vmatprep.mubr.bf16.mxu0 %v2574_v32  ;;  %1343 = vmatprep.mubr.bf16.mxu1 %v2574_v32 }
  0xbf   : > { %v500_v22 = vadd.f32 %v2763_v60, %v429_v19 }
  0xc1   : > { %v564_v26 = vmax.f32 %v500_v22, 0.0 }
  0xc3   : > { %v606_v30 = vpack.c.bf16 %v565_v27, %v564_v26 }
  0xc5   : > { %991 = vmatmul.mubr.bf16.gmra.mrb[60].mxu0 %v599_v28  ;;  %1344 = vmatmul.mubr.bf16.gmra.mrb[60].mxu1 %v599_v28  ;;  %v431_v28 = vmul.f32 %v2754_v55, %v360_v24  ;;  %v373_v24 = vld [vmem:[%s3944_s0 + $0x1d8] sm:$0xff] }
  0xc6   : > { %1000 = vmatprep.mubr.bf16.mxu0 %v2574_v32  ;;  %1353 = vmatprep.mubr.bf16.mxu1 %v2574_v32 }
  0xc7   : > { %v502_v31 = vadd.f32 %v2763_v60, %v431_v28  ;;  %v577_v28 = vmax.f32 %v513_v20, 0.0 }
  0xc9   : > { %v566_v36 = vmax.f32 %v502_v31, 0.0 }
  0xcb   : > { %v607_v40 = vpack.c.bf16 %v567_v37, %v566_v36  ;;  %v514_v37 = vadd.f32 %v2763_v60, %v443_v29 }
  0xcd   : > { %1001 = vmatmul.mubr.bf16.gmra.mrb[64].mxu0 %v600_v38  ;;  %1354 = vmatmul.mubr.bf16.gmra.mrb[64].mxu1 %v600_v38  ;;  %v433_v38 = vmul.f32 %v2754_v55, %v362_v34 }
  0xce   : > { %1010 = vmatprep.mubr.bf16.mxu0 %v2574_v32  ;;  %1363 = vmatprep.mubr.bf16.mxu1 %v2574_v32 }
  0xcf   : > { %v504_v41 = vadd.f32 %v2763_v60, %v433_v38 }
  0xd1   : > { %v568_v45 = vmax.f32 %v504_v41, 0.0  ;;  %v374_v41 = vld [vmem:[%s3944_s0 + $0x1e0] sm:$0xff] }
  0xd3   : > { %v608_v49 = vpack.c.bf16 %v569_v46, %v568_v45  ;;  %v578_v45 = vmax.f32 %v514_v37, 0.0 }
  0xd5   : > { %1011 = vmatmul.mubr.bf16.gmra.mrb[68].mxu0 %v601_v47  ;;  %1364 = vmatmul.mubr.bf16.gmra.mrb[68].mxu1 %v601_v47  ;;  %v435_v47 = vmul.f32 %v2754_v55, %v364_v43 }
  0xd6   : > { %1020 = vmatprep.mubr.bf16.mxu0 %v2574_v32  ;;  %1373 = vmatprep.mubr.bf16.mxu1 %v2574_v32 }
  0xd7   : > { %v506_v50 = vadd.f32 %v2763_v60, %v435_v47  ;;  %v445_v47 = vmul.f32 %v2754_v55, %v374_v41 }
  0xd9   : > { %v570_v54 = vmax.f32 %v506_v50, 0.0 }
  0xdb   : > { %v609_v59 = vpack.c.bf16 %v571_v56, %v570_v54  ;;  %v516_v54 = vadd.f32 %v2763_v60, %v445_v47  ;;  %v517_v56 = vadd.f32 %v2763_v60, %v446_v48 }
  0xdd   : > { %1021 = vmatmul.mubr.bf16.gmra.mrb[72].mxu0 %v602_v57  ;;  %1374 = vmatmul.mubr.bf16.gmra.mrb[72].mxu1 %v602_v57  ;;  %v437_v57 = vmul.f32 %v2754_v55, %v366_v52  ;;  %v580_v0 = vmax.f32 %v516_v54, 0.0 }
  0xde   : > { %1030 = vmatprep.mubr.bf16.mxu0 %v2574_v32  ;;  %1383 = vmatprep.mubr.bf16.mxu1 %v2574_v32 }
  0xdf   : > { %v508_v61 = vadd.f32 %v2763_v60, %v437_v57 }
  0xe1   : > { %v572_v1 = vmax.f32 %v508_v61, 0.0  ;;  %v377_v61 = vld [vmem:[%s3944_s0 + $0x1f8] sm:$0xff] }
  0xe3   : > { %v610_v5 = vpack.c.bf16 %v573_v2, %v572_v1  ;;  %v581_v1 = vmax.f32 %v517_v56, 0.0 }
  0xe5   : > { %1031 = vmatmul.mubr.bf16.gmra.mrb[76].mxu0 %v603_v3  ;;  %1384 = vmatmul.mubr.bf16.gmra.mrb[76].mxu1 %v603_v3  ;;  %v439_v3 = vmul.f32 %v2754_v55, %v368_v63 }
  0xe6   : > { %1040 = vmatprep.mubr.bf16.mxu0 %v2574_v32  ;;  %1393 = vmatprep.mubr.bf16.mxu1 %v2574_v32 }
  0xe7   : > { %v510_v6 = vadd.f32 %v2763_v60, %v439_v3  ;;  %v448_v3 = vmul.f32 %v2754_v55, %v377_v61 }
  0xe9   : > { %v574_v10 = vmax.f32 %v510_v6, 0.0 }
  0xeb   : > { %v611_v18 = vpack.c.bf16 %v575_v11, %v574_v10  ;;  %v519_v10 = vadd.f32 %v2763_v60, %v448_v3 }
  0xed   : > { %1041 = vmatmul.mubr.bf16.gmra.mrb[80].mxu0 %v604_v12  ;;  %1394 = vmatmul.mubr.bf16.gmra.mrb[80].mxu1 %v604_v12  ;;  %v441_v12 = vmul.f32 %v2754_v55, %v370_v8  ;;  %v614_v8 = vpack.c.bf16 %v581_v1, %v580_v0 }
  0xee   : > { %1050 = vmatprep.mubr.bf16.mxu0 %v2574_v32  ;;  %1403 = vmatprep.mubr.bf16.mxu1 %v2574_v32 }
  0xef   : > { %v512_v19 = vadd.f32 %v2763_v60, %v441_v12 }
  0xf1   : > { %v576_v27 = vmax.f32 %v512_v19, 0.0 }
  0xf3   : > { %v612_v36 = vpack.c.bf16 %v577_v28, %v576_v27 }
  0xf5   : > { %1051 = vmatmul.mubr.bf16.gmra.mrb[84].mxu0 %v605_v21  ;;  %1404 = vmatmul.mubr.bf16.gmra.mrb[84].mxu1 %v605_v21 }
  0xf6   : > { %1060 = vmatprep.mubr.bf16.mxu0 %v2574_v32  ;;  %1413 = vmatprep.mubr.bf16.mxu1 %v2574_v32 }
  0xfd   : > { %1061 = vmatmul.mubr.bf16.gmra.mrb[88].mxu0 %v606_v30  ;;  %1414 = vmatmul.mubr.bf16.gmra.mrb[88].mxu1 %v606_v30  ;;  %v444_v30 = vmul.f32 %v2754_v55, %v373_v24 }
  0xfe   : > { %1070 = vmatprep.mubr.bf16.mxu0 %v2574_v32  ;;  %1423 = vmatprep.mubr.bf16.mxu1 %v2574_v32 }
  0xff   : > { %v515_v38 = vadd.f32 %v2763_v60, %v444_v30 }
 0x101   : > { %v579_v46 = vmax.f32 %v515_v38, 0.0 }
 0x103   : > { %v613_v53 = vpack.c.bf16 %v579_v46, %v578_v45 }
 0x105   : > { %1071 = vmatmul.mubr.bf16.gmra.mrb[92].mxu0 %v607_v40  ;;  %1424 = vmatmul.mubr.bf16.gmra.mrb[92].mxu1 %v607_v40 }
 0x106   : > { %1080 = vmatprep.mubr.bf16.mxu0 %v2574_v32  ;;  %1433 = vmatprep.mubr.bf16.mxu1 %v2574_v32 }
 0x10d   : > { %1081 = vmatmul.mubr.bf16.gmra.mrb[96].mxu0 %v608_v49  ;;  %1434 = vmatmul.mubr.bf16.gmra.mrb[96].mxu1 %v608_v49 }
 0x10e   : > { %1090 = vmatprep.mubr.bf16.mxu0 %v2574_v32  ;;  %1443 = vmatprep.mubr.bf16.mxu1 %v2574_v32 }
 0x115   : > { %1091 = vmatmul.mubr.bf16.gmra.mrb[100].mxu0 %v609_v59  ;;  %1444 = vmatmul.mubr.bf16.gmra.mrb[100].mxu1 %v609_v59  ;;  %v376_v59 = vld [vmem:[%s3944_s0 + $0x1f0] sm:$0xff] }
 0x116   : > { %1100 = vmatprep.mubr.bf16.mxu0 %v2574_v32  ;;  %1453 = vmatprep.mubr.bf16.mxu1 %v2574_v32  ;;  %v447_v2 = vmul.f32 %v2754_v55, %v376_v59 }
 0x118   : > { %v518_v9 = vadd.f32 %v2763_v60, %v447_v2  ;;  %v583_v60 = vmax.f32 %v519_v10, 0.0 }
 0x11d   : > { %1101 = vmatmul.mubr.bf16.gmra.mrb[104].mxu0 %v610_v5  ;;  %1454 = vmatmul.mubr.bf16.gmra.mrb[104].mxu1 %v610_v5 }
 0x11e   : > { %1110 = vmatprep.mubr.bf16.mxu0 %v2574_v32  ;;  %1463 = vmatprep.mubr.bf16.mxu1 %v2574_v32 }
 0x120   : > { %v842_v14 = vpop.f32.mrb[0].mxu0  ;;  %v1195_v15 = vpop.f32.mrb[0].mxu1 }
 0x121   : > { %1514 = vst [vmem:[%s3111_s12] sm:$0xff] %v842_v14  ;;  %1516 = vst [vmem:[%s3111_s12 + $0x10] sm:$0xff] %v1195_v15  ;;  %v844_v16 = vpop.f32.mrb[1].mxu0  ;;  %v1197_v17 = vpop.f32.mrb[1].mxu1  ;;  %v582_v14 = vmax.f32 %v518_v9, 0.0 }
 0x122   : > { %1515 = vst [vmem:[%s3111_s12 + $0x8] sm:$0xff] %v844_v16  ;;  %1517 = vst [vmem:[%s3111_s12 + $0x18] sm:$0xff] %v1197_v17  ;;  %v846_v21 = vpop.f32.mrb[2].mxu0  ;;  %v1199_v22 = vpop.f32.mrb[2].mxu1 }
 0x123   : > { %1518 = vst [vmem:[%s3111_s12 + $0x20] sm:$0xff] %v846_v21  ;;  %1520 = vst [vmem:[%s3111_s12 + $0x30] sm:$0xff] %v1199_v22  ;;  %v848_v25 = vpop.f32.mrb[3].mxu0  ;;  %v1201_v26 = vpop.f32.mrb[3].mxu1  ;;  %v615_v19 = vpack.c.bf16 %v583_v60, %v582_v14 }
 0x124   : > { %1519 = vst [vmem:[%s3111_s12 + $0x28] sm:$0xff] %v848_v25  ;;  %1521 = vst [vmem:[%s3111_s12 + $0x38] sm:$0xff] %v1201_v26 }
 0x125   : > { %1111 = vmatmul.mubr.bf16.gmra.mrb[108].mxu0 %v611_v18  ;;  %1464 = vmatmul.mubr.bf16.gmra.mrb[108].mxu1 %v611_v18 }
 0x126   : > { %1120 = vmatprep.mubr.bf16.mxu0 %v2574_v32  ;;  %1473 = vmatprep.mubr.bf16.mxu1 %v2574_v32 }
 0x128   : > { %v852_v31 = vpop.f32.mrb[4].mxu0  ;;  %v1205_v33 = vpop.f32.mrb[4].mxu1 }
 0x129   : > { %1522 = vst [vmem:[%s3111_s12 + $0x40] sm:$0xff] %v852_v31  ;;  %1524 = vst [vmem:[%s3111_s12 + $0x50] sm:$0xff] %v1205_v33  ;;  %v854_v34 = vpop.f32.mrb[5].mxu0  ;;  %v1207_v35 = vpop.f32.mrb[5].mxu1 }
 0x12a   : > { %1523 = vst [vmem:[%s3111_s12 + $0x48] sm:$0xff] %v854_v34  ;;  %1525 = vst [vmem:[%s3111_s12 + $0x58] sm:$0xff] %v1207_v35  ;;  %v856_v39 = vpop.f32.mrb[6].mxu0  ;;  %v1209_v40 = vpop.f32.mrb[6].mxu1 }
 0x12b   : > { %1526 = vst [vmem:[%s3111_s12 + $0x60] sm:$0xff] %v856_v39  ;;  %1528 = vst [vmem:[%s3111_s12 + $0x70] sm:$0xff] %v1209_v40  ;;  %v858_v43 = vpop.f32.mrb[7].mxu0  ;;  %v1211_v44 = vpop.f32.mrb[7].mxu1 }
 0x12c   : > { %1527 = vst [vmem:[%s3111_s12 + $0x68] sm:$0xff] %v858_v43  ;;  %1529 = vst [vmem:[%s3111_s12 + $0x78] sm:$0xff] %v1211_v44 }
 0x12d   : > { %1121 = vmatmul.mubr.bf16.gmra.mrb[112].mxu0 %v612_v36  ;;  %1474 = vmatmul.mubr.bf16.gmra.mrb[112].mxu1 %v612_v36 }
 0x12e   : > { %1130 = vmatprep.mubr.bf16.mxu0 %v2574_v32  ;;  %1483 = vmatprep.mubr.bf16.mxu1 %v2574_v32 }
 0x130   : > { %v862_v49 = vpop.f32.mrb[8].mxu0  ;;  %v1215_v50 = vpop.f32.mrb[8].mxu1 }
 0x131   : > { %1530 = vst [vmem:[%s3111_s12 + $0x80] sm:$0xff] %v862_v49  ;;  %1532 = vst [vmem:[%s3111_s12 + $0x90] sm:$0xff] %v1215_v50  ;;  %v864_v51 = vpop.f32.mrb[9].mxu0  ;;  %v1217_v52 = vpop.f32.mrb[9].mxu1 }
 0x132   : > { %1531 = vst [vmem:[%s3111_s12 + $0x88] sm:$0xff] %v864_v51  ;;  %1533 = vst [vmem:[%s3111_s12 + $0x98] sm:$0xff] %v1217_v52  ;;  %v866_v57 = vpop.f32.mrb[10].mxu0  ;;  %v1219_v58 = vpop.f32.mrb[10].mxu1 }
 0x133   : > { %1534 = vst [vmem:[%s3111_s12 + $0xa0] sm:$0xff] %v866_v57  ;;  %1536 = vst [vmem:[%s3111_s12 + $0xb0] sm:$0xff] %v1219_v58  ;;  %v868_v62 = vpop.f32.mrb[11].mxu0  ;;  %v1221_v63 = vpop.f32.mrb[11].mxu1 }
 0x134   : > { %1535 = vst [vmem:[%s3111_s12 + $0xa8] sm:$0xff] %v868_v62  ;;  %1537 = vst [vmem:[%s3111_s12 + $0xb8] sm:$0xff] %v1221_v63 }
 0x135   : > { %1131 = vmatmul.mubr.bf16.gmra.mrb[116].mxu0 %v613_v53  ;;  %1484 = vmatmul.mubr.bf16.gmra.mrb[116].mxu1 %v613_v53 }
 0x136   : > { %1140 = vmatprep.mubr.bf16.mxu0 %v2574_v32  ;;  %1493 = vmatprep.mubr.bf16.mxu1 %v2574_v32 }
 0x138   : > { %v872_v4 = vpop.f32.mrb[12].mxu0  ;;  %v1225_v5 = vpop.f32.mrb[12].mxu1 }
 0x139   : > { %1538 = vst [vmem:[%s3111_s12 + $0xc0] sm:$0xff] %v872_v4  ;;  %1540 = vst [vmem:[%s3111_s12 + $0xd0] sm:$0xff] %v1225_v5  ;;  %v874_v6 = vpop.f32.mrb[13].mxu0  ;;  %v1227_v7 = vpop.f32.mrb[13].mxu1 }
 0x13a   : > { %1539 = vst [vmem:[%s3111_s12 + $0xc8] sm:$0xff] %v874_v6  ;;  %1541 = vst [vmem:[%s3111_s12 + $0xd8] sm:$0xff] %v1227_v7  ;;  %v876_v55 = vpop.f32.mrb[14].mxu0  ;;  %v1229_v11 = vpop.f32.mrb[14].mxu1 }
 0x13b   : > { %1542 = vst [vmem:[%s3111_s12 + $0xe0] sm:$0xff] %v876_v55  ;;  %1544 = vst [vmem:[%s3111_s12 + $0xf0] sm:$0xff] %v1229_v11  ;;  %v878_v12 = vpop.f32.mrb[15].mxu0  ;;  %v1231_v13 = vpop.f32.mrb[15].mxu1 }
 0x13c   : > { %1543 = vst [vmem:[%s3111_s12 + $0xe8] sm:$0xff] %v878_v12  ;;  %1545 = vst [vmem:[%s3111_s12 + $0xf8] sm:$0xff] %v1231_v13 }
 0x13d   : > { %1141 = vmatmul.mubr.bf16.gmra.mrb[120].mxu0 %v614_v8  ;;  %1494 = vmatmul.mubr.bf16.gmra.mrb[120].mxu1 %v614_v8 }
 0x13e   : > { %1150 = vmatprep.mubr.bf16.mxu0 %v2574_v32  ;;  %1503 = vmatprep.mubr.bf16.mxu1 %v2574_v32 }
 0x140   : > { %v882_v15 = vpop.f32.mrb[16].mxu0  ;;  %v1235_v16 = vpop.f32.mrb[16].mxu1 }
 0x141   : > { %1546 = vst [vmem:[%s3111_s12 + $0x100] sm:$0xff] %v882_v15  ;;  %1548 = vst [vmem:[%s3111_s12 + $0x110] sm:$0xff] %v1235_v16  ;;  %v884_v17 = vpop.f32.mrb[17].mxu0  ;;  %v1237_v18 = vpop.f32.mrb[17].mxu1 }
 0x142   : > { %1547 = vst [vmem:[%s3111_s12 + $0x108] sm:$0xff] %v884_v17  ;;  %1549 = vst [vmem:[%s3111_s12 + $0x118] sm:$0xff] %v1237_v18  ;;  %v886_v20 = vpop.f32.mrb[18].mxu0  ;;  %v1239_v21 = vpop.f32.mrb[18].mxu1 }
 0x143   : > { %1550 = vst [vmem:[%s3111_s12 + $0x120] sm:$0xff] %v886_v20  ;;  %1552 = vst [vmem:[%s3111_s12 + $0x130] sm:$0xff] %v1239_v21  ;;  %v888_v32 = vpop.f32.mrb[19].mxu0  ;;  %v1241_v22 = vpop.f32.mrb[19].mxu1 }
 0x144   : > { %1551 = vst [vmem:[%s3111_s12 + $0x128] sm:$0xff] %v888_v32  ;;  %1553 = vst [vmem:[%s3111_s12 + $0x138] sm:$0xff] %v1241_v22 }
 0x145   : > { %1151 = vmatmul.mubr.bf16.gmra.mrb[124].mxu0 %v615_v19  ;;  %1504 = vmatmul.mubr.bf16.gmra.mrb[124].mxu1 %v615_v19 }
 0x148   : > { %v892_v23 = vpop.f32.mrb[20].mxu0  ;;  %v1245_v24 = vpop.f32.mrb[20].mxu1 }
 0x149   : > { %1554 = vst [vmem:[%s3111_s12 + $0x140] sm:$0xff] %v892_v23  ;;  %1556 = vst [vmem:[%s3111_s12 + $0x150] sm:$0xff] %v1245_v24  ;;  %v894_v25 = vpop.f32.mrb[21].mxu0  ;;  %v1247_v26 = vpop.f32.mrb[21].mxu1 }
 0x14a   : > { %1555 = vst [vmem:[%s3111_s12 + $0x148] sm:$0xff] %v894_v25  ;;  %1557 = vst [vmem:[%s3111_s12 + $0x158] sm:$0xff] %v1247_v26  ;;  %v896_v27 = vpop.f32.mrb[22].mxu0  ;;  %v1249_v28 = vpop.f32.mrb[22].mxu1 }
 0x14b   : > { %1558 = vst [vmem:[%s3111_s12 + $0x160] sm:$0xff] %v896_v27  ;;  %1560 = vst [vmem:[%s3111_s12 + $0x170] sm:$0xff] %v1249_v28  ;;  %v898_v29 = vpop.f32.mrb[23].mxu0  ;;  %v1251_v30 = vpop.f32.mrb[23].mxu1 }
 0x14c   : > { %1559 = vst [vmem:[%s3111_s12 + $0x168] sm:$0xff] %v898_v29  ;;  %1561 = vst [vmem:[%s3111_s12 + $0x178] sm:$0xff] %v1251_v30 }
 0x150   : > { %v902_v31 = vpop.f32.mrb[24].mxu0  ;;  %v1255_v33 = vpop.f32.mrb[24].mxu1 }
 0x151   : > { %1562 = vst [vmem:[%s3111_s12 + $0x180] sm:$0xff] %v902_v31  ;;  %1564 = vst [vmem:[%s3111_s12 + $0x190] sm:$0xff] %v1255_v33  ;;  %v904_v34 = vpop.f32.mrb[25].mxu0  ;;  %v1257_v35 = vpop.f32.mrb[25].mxu1 }
 0x152   : > { %1563 = vst [vmem:[%s3111_s12 + $0x188] sm:$0xff] %v904_v34  ;;  %1565 = vst [vmem:[%s3111_s12 + $0x198] sm:$0xff] %v1257_v35  ;;  %v906_v36 = vpop.f32.mrb[26].mxu0  ;;  %v1259_v37 = vpop.f32.mrb[26].mxu1 }
 0x153   : > { %1566 = vst [vmem:[%s3111_s12 + $0x1a0] sm:$0xff] %v906_v36  ;;  %1568 = vst [vmem:[%s3111_s12 + $0x1b0] sm:$0xff] %v1259_v37  ;;  %v908_v38 = vpop.f32.mrb[27].mxu0  ;;  %v1261_v39 = vpop.f32.mrb[27].mxu1 }
 0x154   : > { %1567 = vst [vmem:[%s3111_s12 + $0x1a8] sm:$0xff] %v908_v38  ;;  %1569 = vst [vmem:[%s3111_s12 + $0x1b8] sm:$0xff] %v1261_v39 }
 0x158   : > { %v912_v40 = vpop.f32.mrb[28].mxu0  ;;  %v1265_v41 = vpop.f32.mrb[28].mxu1 }
 0x159   : > { %1570 = vst [vmem:[%s3111_s12 + $0x1c0] sm:$0xff] %v912_v40  ;;  %1572 = vst [vmem:[%s3111_s12 + $0x1d0] sm:$0xff] %v1265_v41  ;;  %v914_v42 = vpop.f32.mrb[29].mxu0  ;;  %v1267_v43 = vpop.f32.mrb[29].mxu1 }
 0x15a   : > { %1571 = vst [vmem:[%s3111_s12 + $0x1c8] sm:$0xff] %v914_v42  ;;  %1573 = vst [vmem:[%s3111_s12 + $0x1d8] sm:$0xff] %v1267_v43  ;;  %v916_v44 = vpop.f32.mrb[30].mxu0  ;;  %v1269_v45 = vpop.f32.mrb[30].mxu1 }
 0x15b   : > { %1574 = vst [vmem:[%s3111_s12 + $0x1e0] sm:$0xff] %v916_v44  ;;  %1576 = vst [vmem:[%s3111_s12 + $0x1f0] sm:$0xff] %v1269_v45  ;;  %v918_v46 = vpop.f32.mrb[31].mxu0  ;;  %v1271_v47 = vpop.f32.mrb[31].mxu1 }
 0x15c   : > { %1575 = vst [vmem:[%s3111_s12 + $0x1e8] sm:$0xff] %v918_v46  ;;  %1577 = vst [vmem:[%s3111_s12 + $0x1f8] sm:$0xff] %v1271_v47 }
 0x160   : > { %v922_v48 = vpop.f32.mrb[32].mxu0  ;;  %v1275_v49 = vpop.f32.mrb[32].mxu1 }
 0x161   : > { %1578 = vst [vmem:[%s3111_s12 + $0x200] sm:$0xff] %v922_v48  ;;  %1580 = vst [vmem:[%s3111_s12 + $0x210] sm:$0xff] %v1275_v49  ;;  %v924_v50 = vpop.f32.mrb[33].mxu0  ;;  %v1277_v51 = vpop.f32.mrb[33].mxu1 }
 0x162   : > { %1579 = vst [vmem:[%s3111_s12 + $0x208] sm:$0xff] %v924_v50  ;;  %1581 = vst [vmem:[%s3111_s12 + $0x218] sm:$0xff] %v1277_v51  ;;  %v926_v52 = vpop.f32.mrb[34].mxu0  ;;  %v1279_v53 = vpop.f32.mrb[34].mxu1 }
 0x163   : > { %1582 = vst [vmem:[%s3111_s12 + $0x220] sm:$0xff] %v926_v52  ;;  %1584 = vst [vmem:[%s3111_s12 + $0x230] sm:$0xff] %v1279_v53  ;;  %v928_v54 = vpop.f32.mrb[35].mxu0  ;;  %v1281_v56 = vpop.f32.mrb[35].mxu1 }
 0x164   : > { %1583 = vst [vmem:[%s3111_s12 + $0x228] sm:$0xff] %v928_v54  ;;  %1585 = vst [vmem:[%s3111_s12 + $0x238] sm:$0xff] %v1281_v56 }
 0x168   : > { %v932_v57 = vpop.f32.mrb[36].mxu0  ;;  %v1285_v58 = vpop.f32.mrb[36].mxu1 }
 0x169   : > { %1586 = vst [vmem:[%s3111_s12 + $0x240] sm:$0xff] %v932_v57  ;;  %1588 = vst [vmem:[%s3111_s12 + $0x250] sm:$0xff] %v1285_v58  ;;  %v934_v59 = vpop.f32.mrb[37].mxu0  ;;  %v1287_v61 = vpop.f32.mrb[37].mxu1 }
 0x16a   : > { %1587 = vst [vmem:[%s3111_s12 + $0x248] sm:$0xff] %v934_v59  ;;  %1589 = vst [vmem:[%s3111_s12 + $0x258] sm:$0xff] %v1287_v61  ;;  %v936_v62 = vpop.f32.mrb[38].mxu0  ;;  %v1289_v63 = vpop.f32.mrb[38].mxu1 }
 0x16b   : > { %1590 = vst [vmem:[%s3111_s12 + $0x260] sm:$0xff] %v936_v62  ;;  %1592 = vst [vmem:[%s3111_s12 + $0x270] sm:$0xff] %v1289_v63  ;;  %v938_v0 = vpop.f32.mrb[39].mxu0  ;;  %v1291_v1 = vpop.f32.mrb[39].mxu1 }
 0x16c   : > { %1591 = vst [vmem:[%s3111_s12 + $0x268] sm:$0xff] %v938_v0  ;;  %1593 = vst [vmem:[%s3111_s12 + $0x278] sm:$0xff] %v1291_v1 }
 0x170   : > { %v942_v2 = vpop.f32.mrb[40].mxu0  ;;  %v1295_v3 = vpop.f32.mrb[40].mxu1 }
 0x171   : > { %1594 = vst [vmem:[%s3111_s12 + $0x280] sm:$0xff] %v942_v2  ;;  %1596 = vst [vmem:[%s3111_s12 + $0x290] sm:$0xff] %v1295_v3  ;;  %v944_v4 = vpop.f32.mrb[41].mxu0  ;;  %v1297_v5 = vpop.f32.mrb[41].mxu1 }
 0x172   : > { %1595 = vst [vmem:[%s3111_s12 + $0x288] sm:$0xff] %v944_v4  ;;  %1597 = vst [vmem:[%s3111_s12 + $0x298] sm:$0xff] %v1297_v5  ;;  %v946_v6 = vpop.f32.mrb[42].mxu0  ;;  %v1299_v7 = vpop.f32.mrb[42].mxu1 }
 0x173   : > { %1598 = vst [vmem:[%s3111_s12 + $0x2a0] sm:$0xff] %v946_v6  ;;  %1600 = vst [vmem:[%s3111_s12 + $0x2b0] sm:$0xff] %v1299_v7  ;;  %v948_v8 = vpop.f32.mrb[43].mxu0  ;;  %v1301_v9 = vpop.f32.mrb[43].mxu1 }
 0x174   : > { %1599 = vst [vmem:[%s3111_s12 + $0x2a8] sm:$0xff] %v948_v8  ;;  %1601 = vst [vmem:[%s3111_s12 + $0x2b8] sm:$0xff] %v1301_v9 }
 0x178   : > { %v952_v10 = vpop.f32.mrb[44].mxu0  ;;  %v1305_v55 = vpop.f32.mrb[44].mxu1 }
 0x179   : > { %1602 = vst [vmem:[%s3111_s12 + $0x2c0] sm:$0xff] %v952_v10  ;;  %1604 = vst [vmem:[%s3111_s12 + $0x2d0] sm:$0xff] %v1305_v55  ;;  %v954_v11 = vpop.f32.mrb[45].mxu0  ;;  %v1307_v12 = vpop.f32.mrb[45].mxu1 }
 0x17a   : > { %1603 = vst [vmem:[%s3111_s12 + $0x2c8] sm:$0xff] %v954_v11  ;;  %1605 = vst [vmem:[%s3111_s12 + $0x2d8] sm:$0xff] %v1307_v12  ;;  %v956_v13 = vpop.f32.mrb[46].mxu0  ;;  %v1309_v14 = vpop.f32.mrb[46].mxu1 }
 0x17b   : > { %1606 = vst [vmem:[%s3111_s12 + $0x2e0] sm:$0xff] %v956_v13  ;;  %1608 = vst [vmem:[%s3111_s12 + $0x2f0] sm:$0xff] %v1309_v14  ;;  %v958_v60 = vpop.f32.mrb[47].mxu0  ;;  %v1311_v15 = vpop.f32.mrb[47].mxu1 }
 0x17c   : > { %1607 = vst [vmem:[%s3111_s12 + $0x2e8] sm:$0xff] %v958_v60  ;;  %1609 = vst [vmem:[%s3111_s12 + $0x2f8] sm:$0xff] %v1311_v15 }
 0x180   : > { %v962_v16 = vpop.f32.mrb[48].mxu0  ;;  %v1315_v17 = vpop.f32.mrb[48].mxu1 }
 0x181   : > { %1610 = vst [vmem:[%s3111_s12 + $0x300] sm:$0xff] %v962_v16  ;;  %1612 = vst [vmem:[%s3111_s12 + $0x310] sm:$0xff] %v1315_v17  ;;  %v964_v18 = vpop.f32.mrb[49].mxu0  ;;  %v1317_v19 = vpop.f32.mrb[49].mxu1 }
 0x182   : > { %1611 = vst [vmem:[%s3111_s12 + $0x308] sm:$0xff] %v964_v18  ;;  %1613 = vst [vmem:[%s3111_s12 + $0x318] sm:$0xff] %v1317_v19  ;;  %v966_v20 = vpop.f32.mrb[50].mxu0  ;;  %v1319_v21 = vpop.f32.mrb[50].mxu1 }
 0x183   : > { %1614 = vst [vmem:[%s3111_s12 + $0x320] sm:$0xff] %v966_v20  ;;  %1616 = vst [vmem:[%s3111_s12 + $0x330] sm:$0xff] %v1319_v21  ;;  %v968_v32 = vpop.f32.mrb[51].mxu0  ;;  %v1321_v22 = vpop.f32.mrb[51].mxu1 }
 0x184   : > { %1615 = vst [vmem:[%s3111_s12 + $0x328] sm:$0xff] %v968_v32  ;;  %1617 = vst [vmem:[%s3111_s12 + $0x338] sm:$0xff] %v1321_v22 }
 0x188   : > { %v972_v23 = vpop.f32.mrb[52].mxu0  ;;  %v1325_v24 = vpop.f32.mrb[52].mxu1 }
 0x189   : > { %1618 = vst [vmem:[%s3111_s12 + $0x340] sm:$0xff] %v972_v23  ;;  %1620 = vst [vmem:[%s3111_s12 + $0x350] sm:$0xff] %v1325_v24  ;;  %v974_v25 = vpop.f32.mrb[53].mxu0  ;;  %v1327_v26 = vpop.f32.mrb[53].mxu1 }
 0x18a   : > { %1619 = vst [vmem:[%s3111_s12 + $0x348] sm:$0xff] %v974_v25  ;;  %1621 = vst [vmem:[%s3111_s12 + $0x358] sm:$0xff] %v1327_v26  ;;  %v976_v27 = vpop.f32.mrb[54].mxu0  ;;  %v1329_v28 = vpop.f32.mrb[54].mxu1 }
 0x18b   : > { %1622 = vst [vmem:[%s3111_s12 + $0x360] sm:$0xff] %v976_v27  ;;  %1624 = vst [vmem:[%s3111_s12 + $0x370] sm:$0xff] %v1329_v28  ;;  %v978_v29 = vpop.f32.mrb[55].mxu0  ;;  %v1331_v30 = vpop.f32.mrb[55].mxu1 }
 0x18c   : > { %1623 = vst [vmem:[%s3111_s12 + $0x368] sm:$0xff] %v978_v29  ;;  %1625 = vst [vmem:[%s3111_s12 + $0x378] sm:$0xff] %v1331_v30 }
 0x190   : > { %v982_v31 = vpop.f32.mrb[56].mxu0  ;;  %v1335_v33 = vpop.f32.mrb[56].mxu1 }
 0x191   : > { %1626 = vst [vmem:[%s3111_s12 + $0x380] sm:$0xff] %v982_v31  ;;  %1628 = vst [vmem:[%s3111_s12 + $0x390] sm:$0xff] %v1335_v33  ;;  %v984_v34 = vpop.f32.mrb[57].mxu0  ;;  %v1337_v35 = vpop.f32.mrb[57].mxu1 }
 0x192   : > { %1627 = vst [vmem:[%s3111_s12 + $0x388] sm:$0xff] %v984_v34  ;;  %1629 = vst [vmem:[%s3111_s12 + $0x398] sm:$0xff] %v1337_v35  ;;  %v986_v36 = vpop.f32.mrb[58].mxu0  ;;  %v1339_v37 = vpop.f32.mrb[58].mxu1 }
 0x193   : > { %1630 = vst [vmem:[%s3111_s12 + $0x3a0] sm:$0xff] %v986_v36  ;;  %1632 = vst [vmem:[%s3111_s12 + $0x3b0] sm:$0xff] %v1339_v37  ;;  %v988_v38 = vpop.f32.mrb[59].mxu0  ;;  %v1341_v39 = vpop.f32.mrb[59].mxu1 }
 0x194   : > { %1631 = vst [vmem:[%s3111_s12 + $0x3a8] sm:$0xff] %v988_v38  ;;  %1633 = vst [vmem:[%s3111_s12 + $0x3b8] sm:$0xff] %v1341_v39 }
 0x198   : > { %v992_v40 = vpop.f32.mrb[60].mxu0  ;;  %v1345_v41 = vpop.f32.mrb[60].mxu1 }
 0x199   : > { %1634 = vst [vmem:[%s3111_s12 + $0x3c0] sm:$0xff] %v992_v40  ;;  %1636 = vst [vmem:[%s3111_s12 + $0x3d0] sm:$0xff] %v1345_v41  ;;  %v994_v42 = vpop.f32.mrb[61].mxu0  ;;  %v1347_v43 = vpop.f32.mrb[61].mxu1 }
 0x19a   : > { %1635 = vst [vmem:[%s3111_s12 + $0x3c8] sm:$0xff] %v994_v42  ;;  %1637 = vst [vmem:[%s3111_s12 + $0x3d8] sm:$0xff] %v1347_v43  ;;  %v996_v44 = vpop.f32.mrb[62].mxu0  ;;  %v1349_v45 = vpop.f32.mrb[62].mxu1 }
 0x19b   : > { %1638 = vst [vmem:[%s3111_s12 + $0x3e0] sm:$0xff] %v996_v44  ;;  %1640 = vst [vmem:[%s3111_s12 + $0x3f0] sm:$0xff] %v1349_v45  ;;  %v998_v46 = vpop.f32.mrb[63].mxu0  ;;  %v1351_v47 = vpop.f32.mrb[63].mxu1 }
 0x19c   : > { %1639 = vst [vmem:[%s3111_s12 + $0x3e8] sm:$0xff] %v998_v46  ;;  %1641 = vst [vmem:[%s3111_s12 + $0x3f8] sm:$0xff] %v1351_v47 }
 0x1a0   : > { %v1002_v48 = vpop.f32.mrb[64].mxu0  ;;  %v1355_v49 = vpop.f32.mrb[64].mxu1 }
 0x1a1   : > { %1642 = vst [vmem:[%s3111_s12 + $0x400] sm:$0xff] %v1002_v48  ;;  %1644 = vst [vmem:[%s3111_s12 + $0x410] sm:$0xff] %v1355_v49  ;;  %v1004_v50 = vpop.f32.mrb[65].mxu0  ;;  %v1357_v51 = vpop.f32.mrb[65].mxu1 }
 0x1a2   : > { %1643 = vst [vmem:[%s3111_s12 + $0x408] sm:$0xff] %v1004_v50  ;;  %1645 = vst [vmem:[%s3111_s12 + $0x418] sm:$0xff] %v1357_v51  ;;  %v1006_v52 = vpop.f32.mrb[66].mxu0  ;;  %v1359_v53 = vpop.f32.mrb[66].mxu1 }
 0x1a3   : > { %1646 = vst [vmem:[%s3111_s12 + $0x420] sm:$0xff] %v1006_v52  ;;  %1648 = vst [vmem:[%s3111_s12 + $0x430] sm:$0xff] %v1359_v53  ;;  %v1008_v54 = vpop.f32.mrb[67].mxu0  ;;  %v1361_v56 = vpop.f32.mrb[67].mxu1 }
 0x1a4   : > { %1647 = vst [vmem:[%s3111_s12 + $0x428] sm:$0xff] %v1008_v54  ;;  %1649 = vst [vmem:[%s3111_s12 + $0x438] sm:$0xff] %v1361_v56 }
 0x1a8   : > { %v1012_v57 = vpop.f32.mrb[68].mxu0  ;;  %v1365_v58 = vpop.f32.mrb[68].mxu1 }
 0x1a9   : > { %1650 = vst [vmem:[%s3111_s12 + $0x440] sm:$0xff] %v1012_v57  ;;  %1652 = vst [vmem:[%s3111_s12 + $0x450] sm:$0xff] %v1365_v58  ;;  %v1014_v59 = vpop.f32.mrb[69].mxu0  ;;  %v1367_v61 = vpop.f32.mrb[69].mxu1 }
 0x1aa   : > { %1651 = vst [vmem:[%s3111_s12 + $0x448] sm:$0xff] %v1014_v59  ;;  %1653 = vst [vmem:[%s3111_s12 + $0x458] sm:$0xff] %v1367_v61  ;;  %v1016_v62 = vpop.f32.mrb[70].mxu0  ;;  %v1369_v63 = vpop.f32.mrb[70].mxu1 }
 0x1ab   : > { %1654 = vst [vmem:[%s3111_s12 + $0x460] sm:$0xff] %v1016_v62  ;;  %1656 = vst [vmem:[%s3111_s12 + $0x470] sm:$0xff] %v1369_v63  ;;  %v1018_v0 = vpop.f32.mrb[71].mxu0  ;;  %v1371_v1 = vpop.f32.mrb[71].mxu1 }
 0x1ac   : > { %1655 = vst [vmem:[%s3111_s12 + $0x468] sm:$0xff] %v1018_v0  ;;  %1657 = vst [vmem:[%s3111_s12 + $0x478] sm:$0xff] %v1371_v1 }
 0x1b0   : > { %v1022_v2 = vpop.f32.mrb[72].mxu0  ;;  %v1375_v3 = vpop.f32.mrb[72].mxu1 }
 0x1b1   : > { %1658 = vst [vmem:[%s3111_s12 + $0x480] sm:$0xff] %v1022_v2  ;;  %1660 = vst [vmem:[%s3111_s12 + $0x490] sm:$0xff] %v1375_v3  ;;  %v1024_v4 = vpop.f32.mrb[73].mxu0  ;;  %v1377_v5 = vpop.f32.mrb[73].mxu1 }
 0x1b2   : > { %1659 = vst [vmem:[%s3111_s12 + $0x488] sm:$0xff] %v1024_v4  ;;  %1661 = vst [vmem:[%s3111_s12 + $0x498] sm:$0xff] %v1377_v5  ;;  %v1026_v6 = vpop.f32.mrb[74].mxu0  ;;  %v1379_v7 = vpop.f32.mrb[74].mxu1 }
 0x1b3   : > { %1662 = vst [vmem:[%s3111_s12 + $0x4a0] sm:$0xff] %v1026_v6  ;;  %1664 = vst [vmem:[%s3111_s12 + $0x4b0] sm:$0xff] %v1379_v7  ;;  %v1028_v8 = vpop.f32.mrb[75].mxu0  ;;  %v1381_v9 = vpop.f32.mrb[75].mxu1 }
 0x1b4   : > { %1663 = vst [vmem:[%s3111_s12 + $0x4a8] sm:$0xff] %v1028_v8  ;;  %1665 = vst [vmem:[%s3111_s12 + $0x4b8] sm:$0xff] %v1381_v9 }
 0x1b8   : > { %v1032_v10 = vpop.f32.mrb[76].mxu0  ;;  %v1385_v55 = vpop.f32.mrb[76].mxu1 }
 0x1b9   : > { %1666 = vst [vmem:[%s3111_s12 + $0x4c0] sm:$0xff] %v1032_v10  ;;  %1668 = vst [vmem:[%s3111_s12 + $0x4d0] sm:$0xff] %v1385_v55  ;;  %v1034_v11 = vpop.f32.mrb[77].mxu0  ;;  %v1387_v12 = vpop.f32.mrb[77].mxu1 }
 0x1ba   : > { %1667 = vst [vmem:[%s3111_s12 + $0x4c8] sm:$0xff] %v1034_v11  ;;  %1669 = vst [vmem:[%s3111_s12 + $0x4d8] sm:$0xff] %v1387_v12  ;;  %v1036_v13 = vpop.f32.mrb[78].mxu0  ;;  %v1389_v14 = vpop.f32.mrb[78].mxu1 }
 0x1bb   : > { %1670 = vst [vmem:[%s3111_s12 + $0x4e0] sm:$0xff] %v1036_v13  ;;  %1672 = vst [vmem:[%s3111_s12 + $0x4f0] sm:$0xff] %v1389_v14  ;;  %v1038_v60 = vpop.f32.mrb[79].mxu0  ;;  %v1391_v15 = vpop.f32.mrb[79].mxu1 }
 0x1bc   : > { %1671 = vst [vmem:[%s3111_s12 + $0x4e8] sm:$0xff] %v1038_v60  ;;  %1673 = vst [vmem:[%s3111_s12 + $0x4f8] sm:$0xff] %v1391_v15 }
 0x1c0   : > { %v1042_v16 = vpop.f32.mrb[80].mxu0  ;;  %v1395_v17 = vpop.f32.mrb[80].mxu1 }
 0x1c1   : > { %1674 = vst [vmem:[%s3111_s12 + $0x500] sm:$0xff] %v1042_v16  ;;  %1676 = vst [vmem:[%s3111_s12 + $0x510] sm:$0xff] %v1395_v17  ;;  %v1044_v18 = vpop.f32.mrb[81].mxu0  ;;  %v1397_v19 = vpop.f32.mrb[81].mxu1 }
 0x1c2   : > { %1675 = vst [vmem:[%s3111_s12 + $0x508] sm:$0xff] %v1044_v18  ;;  %1677 = vst [vmem:[%s3111_s12 + $0x518] sm:$0xff] %v1397_v19  ;;  %v1046_v20 = vpop.f32.mrb[82].mxu0  ;;  %v1399_v21 = vpop.f32.mrb[82].mxu1 }
 0x1c3   : > { %1678 = vst [vmem:[%s3111_s12 + $0x520] sm:$0xff] %v1046_v20  ;;  %1680 = vst [vmem:[%s3111_s12 + $0x530] sm:$0xff] %v1399_v21  ;;  %v1048_v32 = vpop.f32.mrb[83].mxu0  ;;  %v1401_v22 = vpop.f32.mrb[83].mxu1 }
 0x1c4   : > { %1679 = vst [vmem:[%s3111_s12 + $0x528] sm:$0xff] %v1048_v32  ;;  %1681 = vst [vmem:[%s3111_s12 + $0x538] sm:$0xff] %v1401_v22 }
 0x1c8   : > { %v1052_v23 = vpop.f32.mrb[84].mxu0  ;;  %v1405_v24 = vpop.f32.mrb[84].mxu1 }
 0x1c9   : > { %1682 = vst [vmem:[%s3111_s12 + $0x540] sm:$0xff] %v1052_v23  ;;  %1684 = vst [vmem:[%s3111_s12 + $0x550] sm:$0xff] %v1405_v24  ;;  %v1054_v25 = vpop.f32.mrb[85].mxu0  ;;  %v1407_v26 = vpop.f32.mrb[85].mxu1 }
 0x1ca   : > { %1683 = vst [vmem:[%s3111_s12 + $0x548] sm:$0xff] %v1054_v25  ;;  %1685 = vst [vmem:[%s3111_s12 + $0x558] sm:$0xff] %v1407_v26  ;;  %v1056_v27 = vpop.f32.mrb[86].mxu0  ;;  %v1409_v28 = vpop.f32.mrb[86].mxu1 }
 0x1cb   : > { %1686 = vst [vmem:[%s3111_s12 + $0x560] sm:$0xff] %v1056_v27  ;;  %1688 = vst [vmem:[%s3111_s12 + $0x570] sm:$0xff] %v1409_v28  ;;  %v1058_v29 = vpop.f32.mrb[87].mxu0  ;;  %v1411_v30 = vpop.f32.mrb[87].mxu1 }
 0x1cc   : > { %1687 = vst [vmem:[%s3111_s12 + $0x568] sm:$0xff] %v1058_v29  ;;  %1689 = vst [vmem:[%s3111_s12 + $0x578] sm:$0xff] %v1411_v30 }
 0x1d0   : > { %v1062_v31 = vpop.f32.mrb[88].mxu0  ;;  %v1415_v33 = vpop.f32.mrb[88].mxu1 }
 0x1d1   : > { %1690 = vst [vmem:[%s3111_s12 + $0x580] sm:$0xff] %v1062_v31  ;;  %1692 = vst [vmem:[%s3111_s12 + $0x590] sm:$0xff] %v1415_v33  ;;  %v1064_v34 = vpop.f32.mrb[89].mxu0  ;;  %v1417_v35 = vpop.f32.mrb[89].mxu1 }
 0x1d2   : > { %1691 = vst [vmem:[%s3111_s12 + $0x588] sm:$0xff] %v1064_v34  ;;  %1693 = vst [vmem:[%s3111_s12 + $0x598] sm:$0xff] %v1417_v35  ;;  %v1066_v36 = vpop.f32.mrb[90].mxu0  ;;  %v1419_v37 = vpop.f32.mrb[90].mxu1 }
 0x1d3   : > { %1694 = vst [vmem:[%s3111_s12 + $0x5a0] sm:$0xff] %v1066_v36  ;;  %1696 = vst [vmem:[%s3111_s12 + $0x5b0] sm:$0xff] %v1419_v37  ;;  %v1068_v38 = vpop.f32.mrb[91].mxu0  ;;  %v1421_v39 = vpop.f32.mrb[91].mxu1 }
 0x1d4   : > { %1695 = vst [vmem:[%s3111_s12 + $0x5a8] sm:$0xff] %v1068_v38  ;;  %1697 = vst [vmem:[%s3111_s12 + $0x5b8] sm:$0xff] %v1421_v39 }
 0x1d8   : > { %v1072_v40 = vpop.f32.mrb[92].mxu0  ;;  %v1425_v41 = vpop.f32.mrb[92].mxu1 }
 0x1d9   : > { %1698 = vst [vmem:[%s3111_s12 + $0x5c0] sm:$0xff] %v1072_v40  ;;  %1700 = vst [vmem:[%s3111_s12 + $0x5d0] sm:$0xff] %v1425_v41  ;;  %v1074_v42 = vpop.f32.mrb[93].mxu0  ;;  %v1427_v43 = vpop.f32.mrb[93].mxu1 }
 0x1da   : > { %1699 = vst [vmem:[%s3111_s12 + $0x5c8] sm:$0xff] %v1074_v42  ;;  %1701 = vst [vmem:[%s3111_s12 + $0x5d8] sm:$0xff] %v1427_v43  ;;  %v1076_v44 = vpop.f32.mrb[94].mxu0  ;;  %v1429_v45 = vpop.f32.mrb[94].mxu1 }
 0x1db   : > { %1702 = vst [vmem:[%s3111_s12 + $0x5e0] sm:$0xff] %v1076_v44  ;;  %1704 = vst [vmem:[%s3111_s12 + $0x5f0] sm:$0xff] %v1429_v45  ;;  %v1078_v46 = vpop.f32.mrb[95].mxu0  ;;  %v1431_v47 = vpop.f32.mrb[95].mxu1 }
 0x1dc   : > { %1703 = vst [vmem:[%s3111_s12 + $0x5e8] sm:$0xff] %v1078_v46  ;;  %1705 = vst [vmem:[%s3111_s12 + $0x5f8] sm:$0xff] %v1431_v47 }
 0x1e0   : > { %v1082_v48 = vpop.f32.mrb[96].mxu0  ;;  %v1435_v49 = vpop.f32.mrb[96].mxu1 }
 0x1e1   : > { %1706 = vst [vmem:[%s3111_s12 + $0x600] sm:$0xff] %v1082_v48  ;;  %1708 = vst [vmem:[%s3111_s12 + $0x610] sm:$0xff] %v1435_v49  ;;  %v1084_v50 = vpop.f32.mrb[97].mxu0  ;;  %v1437_v51 = vpop.f32.mrb[97].mxu1  ;;  %v1795_v48 = vld [vmem:[%s3111_s12] sm:$0xff] (%p2635_p6)  ;;  %v1797_v49 = vld [vmem:[%s3111_s12 + $0x8] sm:$0xff] (%p2635_p6) }
 0x1e2   : > { %1707 = vst [vmem:[%s3111_s12 + $0x608] sm:$0xff] %v1084_v50  ;;  %1709 = vst [vmem:[%s3111_s12 + $0x618] sm:$0xff] %v1437_v51  ;;  %v1086_v52 = vpop.f32.mrb[98].mxu0  ;;  %v1439_v53 = vpop.f32.mrb[98].mxu1  ;;  %v1799_v50 = vld [vmem:[%s3111_s12 + $0x10] sm:$0xff] (%p2635_p6)  ;;  %v1801_v51 = vld [vmem:[%s3111_s12 + $0x18] sm:$0xff] (%p2635_p6) }
 0x1e3   : > { %1710 = vst [vmem:[%s3111_s12 + $0x620] sm:$0xff] %v1086_v52  ;;  %1712 = vst [vmem:[%s3111_s12 + $0x630] sm:$0xff] %v1439_v53  ;;  %v1088_v54 = vpop.f32.mrb[99].mxu0  ;;  %v1441_v56 = vpop.f32.mrb[99].mxu1  ;;  %v1803_v52 = vld [vmem:[%s3111_s12 + $0x20] sm:$0xff] (%p2635_p6)  ;;  %v1805_v53 = vld [vmem:[%s3111_s12 + $0x28] sm:$0xff] (%p2635_p6) }
 0x1e4   : > { %1711 = vst [vmem:[%s3111_s12 + $0x628] sm:$0xff] %v1088_v54  ;;  %1713 = vst [vmem:[%s3111_s12 + $0x638] sm:$0xff] %v1441_v56  ;;  %v1807_v54 = vld [vmem:[%s3111_s12 + $0x30] sm:$0xff] (%p2635_p6)  ;;  %v1809_v56 = vld [vmem:[%s3111_s12 + $0x38] sm:$0xff] (%p2635_p6) }
 0x1e5   : > { %1796 = vst [vmem:[%s3418_s9] sm:$0xff] (%p2635_p6), %v1795_v48  ;;  %1798 = vst [vmem:[%s3418_s9 + $0x8] sm:$0xff] (%p2635_p6), %v1797_v49  ;;  %v1923_v48 = vld [vmem:[%s3111_s12 + $0x200] sm:$0xff] (%p2635_p6)  ;;  %v1925_v49 = vld [vmem:[%s3111_s12 + $0x208] sm:$0xff] (%p2635_p6) }
 0x1e6   : > { %1800 = vst [vmem:[%s3418_s9 + $0x10] sm:$0xff] (%p2635_p6), %v1799_v50  ;;  %1802 = vst [vmem:[%s3418_s9 + $0x18] sm:$0xff] (%p2635_p6), %v1801_v51  ;;  %v1927_v50 = vld [vmem:[%s3111_s12 + $0x210] sm:$0xff] (%p2635_p6)  ;;  %v1929_v51 = vld [vmem:[%s3111_s12 + $0x218] sm:$0xff] (%p2635_p6) }
 0x1e7   : > { %1804 = vst [vmem:[%s3418_s9 + $0x40] sm:$0xff] (%p2635_p6), %v1803_v52  ;;  %1806 = vst [vmem:[%s3418_s9 + $0x48] sm:$0xff] (%p2635_p6), %v1805_v53  ;;  %v1931_v52 = vld [vmem:[%s3111_s12 + $0x220] sm:$0xff] (%p2635_p6)  ;;  %v1933_v53 = vld [vmem:[%s3111_s12 + $0x228] sm:$0xff] (%p2635_p6) }
 0x1e8   : > { %v1092_v57 = vpop.f32.mrb[100].mxu0  ;;  %v1445_v58 = vpop.f32.mrb[100].mxu1  ;;  %1808 = vst [vmem:[%s3418_s9 + $0x50] sm:$0xff] (%p2635_p6), %v1807_v54  ;;  %1810 = vst [vmem:[%s3418_s9 + $0x58] sm:$0xff] (%p2635_p6), %v1809_v56  ;;  %v1935_v54 = vld [vmem:[%s3111_s12 + $0x230] sm:$0xff] (%p2635_p6)  ;;  %v1937_v56 = vld [vmem:[%s3111_s12 + $0x238] sm:$0xff] (%p2635_p6) }
 0x1e9   : > { %1714 = vst [vmem:[%s3111_s12 + $0x640] sm:$0xff] %v1092_v57  ;;  %1716 = vst [vmem:[%s3111_s12 + $0x650] sm:$0xff] %v1445_v58  ;;  %v1094_v59 = vpop.f32.mrb[101].mxu0  ;;  %v1447_v61 = vpop.f32.mrb[101].mxu1  ;;  %v1811_v57 = vld [vmem:[%s3111_s12 + $0x40] sm:$0xff] (%p2635_p6)  ;;  %v1813_v58 = vld [vmem:[%s3111_s12 + $0x48] sm:$0xff] (%p2635_p6) }
 0x1ea   : > { %1715 = vst [vmem:[%s3111_s12 + $0x648] sm:$0xff] %v1094_v59  ;;  %1717 = vst [vmem:[%s3111_s12 + $0x658] sm:$0xff] %v1447_v61  ;;  %v1096_v62 = vpop.f32.mrb[102].mxu0  ;;  %v1449_v63 = vpop.f32.mrb[102].mxu1  ;;  %v1815_v59 = vld [vmem:[%s3111_s12 + $0x50] sm:$0xff] (%p2635_p6)  ;;  %v1817_v61 = vld [vmem:[%s3111_s12 + $0x58] sm:$0xff] (%p2635_p6) }
 0x1eb   : > { %1718 = vst [vmem:[%s3111_s12 + $0x660] sm:$0xff] %v1096_v62  ;;  %1720 = vst [vmem:[%s3111_s12 + $0x670] sm:$0xff] %v1449_v63  ;;  %v1098_v0 = vpop.f32.mrb[103].mxu0  ;;  %v1451_v1 = vpop.f32.mrb[103].mxu1  ;;  %v1819_v62 = vld [vmem:[%s3111_s12 + $0x60] sm:$0xff] (%p2635_p6)  ;;  %v1821_v63 = vld [vmem:[%s3111_s12 + $0x68] sm:$0xff] (%p2635_p6) }
 0x1ec   : > { %1719 = vst [vmem:[%s3111_s12 + $0x668] sm:$0xff] %v1098_v0  ;;  %1721 = vst [vmem:[%s3111_s12 + $0x678] sm:$0xff] %v1451_v1  ;;  %v1823_v0 = vld [vmem:[%s3111_s12 + $0x70] sm:$0xff] (%p2635_p6)  ;;  %v1825_v1 = vld [vmem:[%s3111_s12 + $0x78] sm:$0xff] (%p2635_p6) }
 0x1ed   : > { %1812 = vst [vmem:[%s3418_s9 + $0x80] sm:$0xff] (%p2635_p6), %v1811_v57  ;;  %1814 = vst [vmem:[%s3418_s9 + $0x88] sm:$0xff] (%p2635_p6), %v1813_v58  ;;  %v1939_v57 = vld [vmem:[%s3111_s12 + $0x240] sm:$0xff] (%p2635_p6)  ;;  %v1941_v58 = vld [vmem:[%s3111_s12 + $0x248] sm:$0xff] (%p2635_p6) }
 0x1ee   : > { %1816 = vst [vmem:[%s3418_s9 + $0x90] sm:$0xff] (%p2635_p6), %v1815_v59  ;;  %1818 = vst [vmem:[%s3418_s9 + $0x98] sm:$0xff] (%p2635_p6), %v1817_v61  ;;  %v1943_v59 = vld [vmem:[%s3111_s12 + $0x250] sm:$0xff] (%p2635_p6)  ;;  %v1945_v61 = vld [vmem:[%s3111_s12 + $0x258] sm:$0xff] (%p2635_p6) }
 0x1ef   : > { %1820 = vst [vmem:[%s3418_s9 + $0xc0] sm:$0xff] (%p2635_p6), %v1819_v62  ;;  %1822 = vst [vmem:[%s3418_s9 + $0xc8] sm:$0xff] (%p2635_p6), %v1821_v63  ;;  %v1947_v62 = vld [vmem:[%s3111_s12 + $0x260] sm:$0xff] (%p2635_p6)  ;;  %v1949_v63 = vld [vmem:[%s3111_s12 + $0x268] sm:$0xff] (%p2635_p6) }
 0x1f0   : > { %v1102_v2 = vpop.f32.mrb[104].mxu0  ;;  %v1455_v3 = vpop.f32.mrb[104].mxu1  ;;  %1824 = vst [vmem:[%s3418_s9 + $0xd0] sm:$0xff] (%p2635_p6), %v1823_v0  ;;  %1826 = vst [vmem:[%s3418_s9 + $0xd8] sm:$0xff] (%p2635_p6), %v1825_v1  ;;  %v1951_v0 = vld [vmem:[%s3111_s12 + $0x270] sm:$0xff] (%p2635_p6)  ;;  %v1953_v1 = vld [vmem:[%s3111_s12 + $0x278] sm:$0xff] (%p2635_p6) }
 0x1f1   : > { %1722 = vst [vmem:[%s3111_s12 + $0x680] sm:$0xff] %v1102_v2  ;;  %1724 = vst [vmem:[%s3111_s12 + $0x690] sm:$0xff] %v1455_v3  ;;  %v1104_v4 = vpop.f32.mrb[105].mxu0  ;;  %v1457_v5 = vpop.f32.mrb[105].mxu1  ;;  %v1827_v2 = vld [vmem:[%s3111_s12 + $0x80] sm:$0xff] (%p2635_p6)  ;;  %v1829_v3 = vld [vmem:[%s3111_s12 + $0x88] sm:$0xff] (%p2635_p6) }
 0x1f2   : > { %1723 = vst [vmem:[%s3111_s12 + $0x688] sm:$0xff] %v1104_v4  ;;  %1725 = vst [vmem:[%s3111_s12 + $0x698] sm:$0xff] %v1457_v5  ;;  %v1106_v6 = vpop.f32.mrb[106].mxu0  ;;  %v1459_v7 = vpop.f32.mrb[106].mxu1  ;;  %v1831_v4 = vld [vmem:[%s3111_s12 + $0x90] sm:$0xff] (%p2635_p6)  ;;  %v1833_v5 = vld [vmem:[%s3111_s12 + $0x98] sm:$0xff] (%p2635_p6) }
 0x1f3   : > { %1726 = vst [vmem:[%s3111_s12 + $0x6a0] sm:$0xff] %v1106_v6  ;;  %1728 = vst [vmem:[%s3111_s12 + $0x6b0] sm:$0xff] %v1459_v7  ;;  %v1108_v8 = vpop.f32.mrb[107].mxu0  ;;  %v1461_v9 = vpop.f32.mrb[107].mxu1  ;;  %v1835_v6 = vld [vmem:[%s3111_s12 + $0xa0] sm:$0xff] (%p2635_p6)  ;;  %v1837_v7 = vld [vmem:[%s3111_s12 + $0xa8] sm:$0xff] (%p2635_p6) }
 0x1f4   : > { %1727 = vst [vmem:[%s3111_s12 + $0x6a8] sm:$0xff] %v1108_v8  ;;  %1729 = vst [vmem:[%s3111_s12 + $0x6b8] sm:$0xff] %v1461_v9  ;;  %v1839_v8 = vld [vmem:[%s3111_s12 + $0xb0] sm:$0xff] (%p2635_p6)  ;;  %v1841_v9 = vld [vmem:[%s3111_s12 + $0xb8] sm:$0xff] (%p2635_p6) }
 0x1f5   : > { %1828 = vst [vmem:[%s3418_s9 + $0x100] sm:$0xff] (%p2635_p6), %v1827_v2  ;;  %1830 = vst [vmem:[%s3418_s9 + $0x108] sm:$0xff] (%p2635_p6), %v1829_v3  ;;  %v1955_v2 = vld [vmem:[%s3111_s12 + $0x280] sm:$0xff] (%p2635_p6)  ;;  %v1957_v3 = vld [vmem:[%s3111_s12 + $0x288] sm:$0xff] (%p2635_p6) }
 0x1f6   : > { %1832 = vst [vmem:[%s3418_s9 + $0x110] sm:$0xff] (%p2635_p6), %v1831_v4  ;;  %1834 = vst [vmem:[%s3418_s9 + $0x118] sm:$0xff] (%p2635_p6), %v1833_v5  ;;  %v1959_v4 = vld [vmem:[%s3111_s12 + $0x290] sm:$0xff] (%p2635_p6)  ;;  %v1961_v5 = vld [vmem:[%s3111_s12 + $0x298] sm:$0xff] (%p2635_p6) }
 0x1f7   : > { %1836 = vst [vmem:[%s3418_s9 + $0x140] sm:$0xff] (%p2635_p6), %v1835_v6  ;;  %1838 = vst [vmem:[%s3418_s9 + $0x148] sm:$0xff] (%p2635_p6), %v1837_v7  ;;  %v1963_v6 = vld [vmem:[%s3111_s12 + $0x2a0] sm:$0xff] (%p2635_p6)  ;;  %v1965_v7 = vld [vmem:[%s3111_s12 + $0x2a8] sm:$0xff] (%p2635_p6) }
 0x1f8   : > { %v1112_v10 = vpop.f32.mrb[108].mxu0  ;;  %v1465_v55 = vpop.f32.mrb[108].mxu1  ;;  %1840 = vst [vmem:[%s3418_s9 + $0x150] sm:$0xff] (%p2635_p6), %v1839_v8  ;;  %1842 = vst [vmem:[%s3418_s9 + $0x158] sm:$0xff] (%p2635_p6), %v1841_v9  ;;  %v1967_v8 = vld [vmem:[%s3111_s12 + $0x2b0] sm:$0xff] (%p2635_p6)  ;;  %v1969_v9 = vld [vmem:[%s3111_s12 + $0x2b8] sm:$0xff] (%p2635_p6) }
 0x1f9   : > { %1730 = vst [vmem:[%s3111_s12 + $0x6c0] sm:$0xff] %v1112_v10  ;;  %1732 = vst [vmem:[%s3111_s12 + $0x6d0] sm:$0xff] %v1465_v55  ;;  %v1114_v11 = vpop.f32.mrb[109].mxu0  ;;  %v1467_v12 = vpop.f32.mrb[109].mxu1  ;;  %v1843_v10 = vld [vmem:[%s3111_s12 + $0xc0] sm:$0xff] (%p2635_p6)  ;;  %v1845_v55 = vld [vmem:[%s3111_s12 + $0xc8] sm:$0xff] (%p2635_p6) }
 0x1fa   : > { %1731 = vst [vmem:[%s3111_s12 + $0x6c8] sm:$0xff] %v1114_v11  ;;  %1733 = vst [vmem:[%s3111_s12 + $0x6d8] sm:$0xff] %v1467_v12  ;;  %v1116_v13 = vpop.f32.mrb[110].mxu0  ;;  %v1469_v14 = vpop.f32.mrb[110].mxu1  ;;  %v1847_v11 = vld [vmem:[%s3111_s12 + $0xd0] sm:$0xff] (%p2635_p6)  ;;  %v1849_v12 = vld [vmem:[%s3111_s12 + $0xd8] sm:$0xff] (%p2635_p6) }
 0x1fb   : > { %1734 = vst [vmem:[%s3111_s12 + $0x6e0] sm:$0xff] %v1116_v13  ;;  %1736 = vst [vmem:[%s3111_s12 + $0x6f0] sm:$0xff] %v1469_v14  ;;  %v1118_v60 = vpop.f32.mrb[111].mxu0  ;;  %v1471_v15 = vpop.f32.mrb[111].mxu1  ;;  %v1851_v13 = vld [vmem:[%s3111_s12 + $0xe0] sm:$0xff] (%p2635_p6)  ;;  %v1853_v14 = vld [vmem:[%s3111_s12 + $0xe8] sm:$0xff] (%p2635_p6) }
 0x1fc   : > { %1735 = vst [vmem:[%s3111_s12 + $0x6e8] sm:$0xff] %v1118_v60  ;;  %1737 = vst [vmem:[%s3111_s12 + $0x6f8] sm:$0xff] %v1471_v15  ;;  %v1855_v60 = vld [vmem:[%s3111_s12 + $0xf0] sm:$0xff] (%p2635_p6)  ;;  %v1857_v15 = vld [vmem:[%s3111_s12 + $0xf8] sm:$0xff] (%p2635_p6) }
 0x1fd   : > { %1844 = vst [vmem:[%s3418_s9 + $0x180] sm:$0xff] (%p2635_p6), %v1843_v10  ;;  %1846 = vst [vmem:[%s3418_s9 + $0x188] sm:$0xff] (%p2635_p6), %v1845_v55  ;;  %v1971_v10 = vld [vmem:[%s3111_s12 + $0x2c0] sm:$0xff] (%p2635_p6)  ;;  %v1973_v55 = vld [vmem:[%s3111_s12 + $0x2c8] sm:$0xff] (%p2635_p6) }
 0x1fe   : > { %1848 = vst [vmem:[%s3418_s9 + $0x190] sm:$0xff] (%p2635_p6), %v1847_v11  ;;  %1850 = vst [vmem:[%s3418_s9 + $0x198] sm:$0xff] (%p2635_p6), %v1849_v12  ;;  %v1975_v11 = vld [vmem:[%s3111_s12 + $0x2d0] sm:$0xff] (%p2635_p6)  ;;  %v1977_v12 = vld [vmem:[%s3111_s12 + $0x2d8] sm:$0xff] (%p2635_p6) }
 0x1ff   : > { %1852 = vst [vmem:[%s3418_s9 + $0x1c0] sm:$0xff] (%p2635_p6), %v1851_v13  ;;  %1854 = vst [vmem:[%s3418_s9 + $0x1c8] sm:$0xff] (%p2635_p6), %v1853_v14  ;;  %v1979_v13 = vld [vmem:[%s3111_s12 + $0x2e0] sm:$0xff] (%p2635_p6)  ;;  %v1981_v14 = vld [vmem:[%s3111_s12 + $0x2e8] sm:$0xff] (%p2635_p6) }
 0x200   : > { %v1122_v16 = vpop.f32.mrb[112].mxu0  ;;  %v1475_v17 = vpop.f32.mrb[112].mxu1  ;;  %1856 = vst [vmem:[%s3418_s9 + $0x1d0] sm:$0xff] (%p2635_p6), %v1855_v60  ;;  %1858 = vst [vmem:[%s3418_s9 + $0x1d8] sm:$0xff] (%p2635_p6), %v1857_v15  ;;  %v1983_v60 = vld [vmem:[%s3111_s12 + $0x2f0] sm:$0xff] (%p2635_p6)  ;;  %v1985_v15 = vld [vmem:[%s3111_s12 + $0x2f8] sm:$0xff] (%p2635_p6) }
 0x201   : > { %1738 = vst [vmem:[%s3111_s12 + $0x700] sm:$0xff] %v1122_v16  ;;  %1740 = vst [vmem:[%s3111_s12 + $0x710] sm:$0xff] %v1475_v17  ;;  %v1124_v18 = vpop.f32.mrb[113].mxu0  ;;  %v1477_v19 = vpop.f32.mrb[113].mxu1  ;;  %v1859_v16 = vld [vmem:[%s3111_s12 + $0x100] sm:$0xff] (%p2635_p6)  ;;  %v1861_v17 = vld [vmem:[%s3111_s12 + $0x108] sm:$0xff] (%p2635_p6) }
 0x202   : > { %1739 = vst [vmem:[%s3111_s12 + $0x708] sm:$0xff] %v1124_v18  ;;  %1741 = vst [vmem:[%s3111_s12 + $0x718] sm:$0xff] %v1477_v19  ;;  %v1126_v20 = vpop.f32.mrb[114].mxu0  ;;  %v1479_v21 = vpop.f32.mrb[114].mxu1  ;;  %v1863_v18 = vld [vmem:[%s3111_s12 + $0x110] sm:$0xff] (%p2635_p6)  ;;  %v1865_v19 = vld [vmem:[%s3111_s12 + $0x118] sm:$0xff] (%p2635_p6) }
 0x203   : > { %1742 = vst [vmem:[%s3111_s12 + $0x720] sm:$0xff] %v1126_v20  ;;  %1744 = vst [vmem:[%s3111_s12 + $0x730] sm:$0xff] %v1479_v21  ;;  %v1128_v32 = vpop.f32.mrb[115].mxu0  ;;  %v1481_v22 = vpop.f32.mrb[115].mxu1  ;;  %v1867_v20 = vld [vmem:[%s3111_s12 + $0x120] sm:$0xff] (%p2635_p6)  ;;  %v1869_v21 = vld [vmem:[%s3111_s12 + $0x128] sm:$0xff] (%p2635_p6) }
 0x204   : > { %1743 = vst [vmem:[%s3111_s12 + $0x728] sm:$0xff] %v1128_v32  ;;  %1745 = vst [vmem:[%s3111_s12 + $0x738] sm:$0xff] %v1481_v22  ;;  %v1871_v32 = vld [vmem:[%s3111_s12 + $0x130] sm:$0xff] (%p2635_p6)  ;;  %v1873_v22 = vld [vmem:[%s3111_s12 + $0x138] sm:$0xff] (%p2635_p6) }
 0x205   : > { %1860 = vst [vmem:[%s3418_s9 + $0x200] sm:$0xff] (%p2635_p6), %v1859_v16  ;;  %1862 = vst [vmem:[%s3418_s9 + $0x208] sm:$0xff] (%p2635_p6), %v1861_v17  ;;  %v1987_v16 = vld [vmem:[%s3111_s12 + $0x300] sm:$0xff] (%p2635_p6)  ;;  %v1989_v17 = vld [vmem:[%s3111_s12 + $0x308] sm:$0xff] (%p2635_p6) }
 0x206   : > { %1864 = vst [vmem:[%s3418_s9 + $0x210] sm:$0xff] (%p2635_p6), %v1863_v18  ;;  %1866 = vst [vmem:[%s3418_s9 + $0x218] sm:$0xff] (%p2635_p6), %v1865_v19  ;;  %v1991_v18 = vld [vmem:[%s3111_s12 + $0x310] sm:$0xff] (%p2635_p6)  ;;  %v1993_v19 = vld [vmem:[%s3111_s12 + $0x318] sm:$0xff] (%p2635_p6) }
 0x207   : > { %1868 = vst [vmem:[%s3418_s9 + $0x240] sm:$0xff] (%p2635_p6), %v1867_v20  ;;  %1870 = vst [vmem:[%s3418_s9 + $0x248] sm:$0xff] (%p2635_p6), %v1869_v21  ;;  %v1995_v20 = vld [vmem:[%s3111_s12 + $0x320] sm:$0xff] (%p2635_p6)  ;;  %v1997_v21 = vld [vmem:[%s3111_s12 + $0x328] sm:$0xff] (%p2635_p6) }
 0x208   : > { %v1132_v23 = vpop.f32.mrb[116].mxu0  ;;  %v1485_v24 = vpop.f32.mrb[116].mxu1  ;;  %1872 = vst [vmem:[%s3418_s9 + $0x250] sm:$0xff] (%p2635_p6), %v1871_v32  ;;  %1874 = vst [vmem:[%s3418_s9 + $0x258] sm:$0xff] (%p2635_p6), %v1873_v22  ;;  %v1999_v32 = vld [vmem:[%s3111_s12 + $0x330] sm:$0xff] (%p2635_p6)  ;;  %v2001_v22 = vld [vmem:[%s3111_s12 + $0x338] sm:$0xff] (%p2635_p6) }
 0x209   : > { %1746 = vst [vmem:[%s3111_s12 + $0x740] sm:$0xff] %v1132_v23  ;;  %1748 = vst [vmem:[%s3111_s12 + $0x750] sm:$0xff] %v1485_v24  ;;  %v1134_v25 = vpop.f32.mrb[117].mxu0  ;;  %v1487_v26 = vpop.f32.mrb[117].mxu1  ;;  %v1875_v23 = vld [vmem:[%s3111_s12 + $0x140] sm:$0xff] (%p2635_p6)  ;;  %v1877_v24 = vld [vmem:[%s3111_s12 + $0x148] sm:$0xff] (%p2635_p6) }
 0x20a   : > { %1747 = vst [vmem:[%s3111_s12 + $0x748] sm:$0xff] %v1134_v25  ;;  %1749 = vst [vmem:[%s3111_s12 + $0x758] sm:$0xff] %v1487_v26  ;;  %v1136_v27 = vpop.f32.mrb[118].mxu0  ;;  %v1489_v28 = vpop.f32.mrb[118].mxu1  ;;  %v1879_v25 = vld [vmem:[%s3111_s12 + $0x150] sm:$0xff] (%p2635_p6)  ;;  %v1881_v26 = vld [vmem:[%s3111_s12 + $0x158] sm:$0xff] (%p2635_p6) }
 0x20b   : > { %1750 = vst [vmem:[%s3111_s12 + $0x760] sm:$0xff] %v1136_v27  ;;  %1752 = vst [vmem:[%s3111_s12 + $0x770] sm:$0xff] %v1489_v28  ;;  %v1138_v29 = vpop.f32.mrb[119].mxu0  ;;  %v1491_v30 = vpop.f32.mrb[119].mxu1  ;;  %v1883_v27 = vld [vmem:[%s3111_s12 + $0x160] sm:$0xff] (%p2635_p6)  ;;  %v1885_v28 = vld [vmem:[%s3111_s12 + $0x168] sm:$0xff] (%p2635_p6) }
 0x20c   : > { %1751 = vst [vmem:[%s3111_s12 + $0x768] sm:$0xff] %v1138_v29  ;;  %1753 = vst [vmem:[%s3111_s12 + $0x778] sm:$0xff] %v1491_v30  ;;  %v1887_v29 = vld [vmem:[%s3111_s12 + $0x170] sm:$0xff] (%p2635_p6)  ;;  %v1889_v30 = vld [vmem:[%s3111_s12 + $0x178] sm:$0xff] (%p2635_p6) }
 0x20d   : > { %1876 = vst [vmem:[%s3418_s9 + $0x280] sm:$0xff] (%p2635_p6), %v1875_v23  ;;  %1878 = vst [vmem:[%s3418_s9 + $0x288] sm:$0xff] (%p2635_p6), %v1877_v24  ;;  %v2003_v23 = vld [vmem:[%s3111_s12 + $0x340] sm:$0xff] (%p2635_p6)  ;;  %v2005_v24 = vld [vmem:[%s3111_s12 + $0x348] sm:$0xff] (%p2635_p6) }
 0x20e   : > { %1880 = vst [vmem:[%s3418_s9 + $0x290] sm:$0xff] (%p2635_p6), %v1879_v25  ;;  %1882 = vst [vmem:[%s3418_s9 + $0x298] sm:$0xff] (%p2635_p6), %v1881_v26  ;;  %v2007_v25 = vld [vmem:[%s3111_s12 + $0x350] sm:$0xff] (%p2635_p6)  ;;  %v2009_v26 = vld [vmem:[%s3111_s12 + $0x358] sm:$0xff] (%p2635_p6) }
 0x20f   : > { %1884 = vst [vmem:[%s3418_s9 + $0x2c0] sm:$0xff] (%p2635_p6), %v1883_v27  ;;  %1886 = vst [vmem:[%s3418_s9 + $0x2c8] sm:$0xff] (%p2635_p6), %v1885_v28  ;;  %v2011_v27 = vld [vmem:[%s3111_s12 + $0x360] sm:$0xff] (%p2635_p6)  ;;  %v2013_v28 = vld [vmem:[%s3111_s12 + $0x368] sm:$0xff] (%p2635_p6) }
 0x210   : > { %v1142_v31 = vpop.f32.mrb[120].mxu0  ;;  %v1495_v33 = vpop.f32.mrb[120].mxu1  ;;  %1888 = vst [vmem:[%s3418_s9 + $0x2d0] sm:$0xff] (%p2635_p6), %v1887_v29  ;;  %1890 = vst [vmem:[%s3418_s9 + $0x2d8] sm:$0xff] (%p2635_p6), %v1889_v30  ;;  %v2015_v29 = vld [vmem:[%s3111_s12 + $0x370] sm:$0xff] (%p2635_p6)  ;;  %v2017_v30 = vld [vmem:[%s3111_s12 + $0x378] sm:$0xff] (%p2635_p6) }
 0x211   : > { %1754 = vst [vmem:[%s3111_s12 + $0x780] sm:$0xff] %v1142_v31  ;;  %1756 = vst [vmem:[%s3111_s12 + $0x790] sm:$0xff] %v1495_v33  ;;  %v1144_v34 = vpop.f32.mrb[121].mxu0  ;;  %v1497_v35 = vpop.f32.mrb[121].mxu1  ;;  %v1891_v31 = vld [vmem:[%s3111_s12 + $0x180] sm:$0xff] (%p2635_p6)  ;;  %v1893_v33 = vld [vmem:[%s3111_s12 + $0x188] sm:$0xff] (%p2635_p6) }
 0x212   : > { %1755 = vst [vmem:[%s3111_s12 + $0x788] sm:$0xff] %v1144_v34  ;;  %1757 = vst [vmem:[%s3111_s12 + $0x798] sm:$0xff] %v1497_v35  ;;  %v1146_v36 = vpop.f32.mrb[122].mxu0  ;;  %v1499_v37 = vpop.f32.mrb[122].mxu1  ;;  %v1895_v34 = vld [vmem:[%s3111_s12 + $0x190] sm:$0xff] (%p2635_p6)  ;;  %v1897_v35 = vld [vmem:[%s3111_s12 + $0x198] sm:$0xff] (%p2635_p6) }
 0x213   : > { %1758 = vst [vmem:[%s3111_s12 + $0x7a0] sm:$0xff] %v1146_v36  ;;  %1760 = vst [vmem:[%s3111_s12 + $0x7b0] sm:$0xff] %v1499_v37  ;;  %v1148_v38 = vpop.f32.mrb[123].mxu0  ;;  %v1501_v39 = vpop.f32.mrb[123].mxu1  ;;  %v1899_v36 = vld [vmem:[%s3111_s12 + $0x1a0] sm:$0xff] (%p2635_p6)  ;;  %v1901_v37 = vld [vmem:[%s3111_s12 + $0x1a8] sm:$0xff] (%p2635_p6) }
 0x214   : > { %1759 = vst [vmem:[%s3111_s12 + $0x7a8] sm:$0xff] %v1148_v38  ;;  %1761 = vst [vmem:[%s3111_s12 + $0x7b8] sm:$0xff] %v1501_v39  ;;  %v1903_v38 = vld [vmem:[%s3111_s12 + $0x1b0] sm:$0xff] (%p2635_p6)  ;;  %v1905_v39 = vld [vmem:[%s3111_s12 + $0x1b8] sm:$0xff] (%p2635_p6) }
 0x215   : > { %1892 = vst [vmem:[%s3418_s9 + $0x300] sm:$0xff] (%p2635_p6), %v1891_v31  ;;  %1894 = vst [vmem:[%s3418_s9 + $0x308] sm:$0xff] (%p2635_p6), %v1893_v33  ;;  %v2019_v31 = vld [vmem:[%s3111_s12 + $0x380] sm:$0xff] (%p2635_p6)  ;;  %v2021_v33 = vld [vmem:[%s3111_s12 + $0x388] sm:$0xff] (%p2635_p6) }
 0x216   : > { %1776 = sbr.rel (!%p2635_p6) target bundleno = 641 (0x281), region = 63  ;;  %1896 = vst [vmem:[%s3418_s9 + $0x310] sm:$0xff] (%p2635_p6), %v1895_v34  ;;  %1898 = vst [vmem:[%s3418_s9 + $0x318] sm:$0xff] (%p2635_p6), %v1897_v35  ;;  %v2023_v34 = vld [vmem:[%s3111_s12 + $0x390] sm:$0xff] (%p2635_p6)  ;;  %v2025_v35 = vld [vmem:[%s3111_s12 + $0x398] sm:$0xff] (%p2635_p6) }
 0x217   : > { %1900 = vst [vmem:[%s3418_s9 + $0x340] sm:$0xff] (%p2635_p6), %v1899_v36  ;;  %1902 = vst [vmem:[%s3418_s9 + $0x348] sm:$0xff] (%p2635_p6), %v1901_v37  ;;  %v2027_v36 = vld [vmem:[%s3111_s12 + $0x3a0] sm:$0xff] (%p2635_p6)  ;;  %v2029_v37 = vld [vmem:[%s3111_s12 + $0x3a8] sm:$0xff] (%p2635_p6) }
 0x218   : > { %v1152_v40 = vpop.f32.mrb[124].mxu0  ;;  %v1505_v41 = vpop.f32.mrb[124].mxu1  ;;  %1904 = vst [vmem:[%s3418_s9 + $0x350] sm:$0xff] (%p2635_p6), %v1903_v38  ;;  %1906 = vst [vmem:[%s3418_s9 + $0x358] sm:$0xff] (%p2635_p6), %v1905_v39  ;;  %v2031_v38 = vld [vmem:[%s3111_s12 + $0x3b0] sm:$0xff] (%p2635_p6)  ;;  %v2033_v39 = vld [vmem:[%s3111_s12 + $0x3b8] sm:$0xff] (%p2635_p6) }
 0x219   : > { %1762 = vst [vmem:[%s3111_s12 + $0x7c0] sm:$0xff] %v1152_v40  ;;  %1764 = vst [vmem:[%s3111_s12 + $0x7d0] sm:$0xff] %v1505_v41  ;;  %v1154_v42 = vpop.f32.mrb[125].mxu0  ;;  %v1507_v43 = vpop.f32.mrb[125].mxu1  ;;  %v1907_v40 = vld [vmem:[%s3111_s12 + $0x1c0] sm:$0xff] (%p2635_p6)  ;;  %v1909_v41 = vld [vmem:[%s3111_s12 + $0x1c8] sm:$0xff] (%p2635_p6) }
 0x21a   : > { %1763 = vst [vmem:[%s3111_s12 + $0x7c8] sm:$0xff] %v1154_v42  ;;  %1765 = vst [vmem:[%s3111_s12 + $0x7d8] sm:$0xff] %v1507_v43  ;;  %v1156_v44 = vpop.f32.mrb[126].mxu0  ;;  %v1509_v45 = vpop.f32.mrb[126].mxu1  ;;  %v1911_v42 = vld [vmem:[%s3111_s12 + $0x1d0] sm:$0xff] (%p2635_p6)  ;;  %v1913_v43 = vld [vmem:[%s3111_s12 + $0x1d8] sm:$0xff] (%p2635_p6) }
 0x21b   : > { %1766 = vst [vmem:[%s3111_s12 + $0x7e0] sm:$0xff] %v1156_v44  ;;  %1768 = vst [vmem:[%s3111_s12 + $0x7f0] sm:$0xff] %v1509_v45  ;;  %v1158_v46 = vpop.f32.mrb[127].mxu0  ;;  %v1511_v47 = vpop.f32.mrb[127].mxu1  ;;  %v1915_v44 = vld [vmem:[%s3111_s12 + $0x1e0] sm:$0xff] (%p2635_p6)  ;;  %v1917_v45 = vld [vmem:[%s3111_s12 + $0x1e8] sm:$0xff] (%p2635_p6) }
 0x21c   : > { %1767 = vst [vmem:[%s3111_s12 + $0x7e8] sm:$0xff] %v1158_v46  ;;  %1769 = vst [vmem:[%s3111_s12 + $0x7f8] sm:$0xff] %v1511_v47  ;;  %v1919_v46 = vld [vmem:[%s3111_s12 + $0x1f0] sm:$0xff] (%p2635_p6)  ;;  %v1921_v47 = vld [vmem:[%s3111_s12 + $0x1f8] sm:$0xff] (%p2635_p6) }
 0x21d   : > { %1908 = vst [vmem:[%s3418_s9 + $0x380] sm:$0xff] %v1907_v40  ;;  %1910 = vst [vmem:[%s3418_s9 + $0x388] sm:$0xff] %v1909_v41  ;;  %v2035_v40 = vld [vmem:[%s3111_s12 + $0x3c0] sm:$0xff]  ;;  %v2037_v41 = vld [vmem:[%s3111_s12 + $0x3c8] sm:$0xff] }
 0x21e   : > { %1912 = vst [vmem:[%s3418_s9 + $0x390] sm:$0xff] %v1911_v42  ;;  %1914 = vst [vmem:[%s3418_s9 + $0x398] sm:$0xff] %v1913_v43  ;;  %v2039_v42 = vld [vmem:[%s3111_s12 + $0x3d0] sm:$0xff]  ;;  %v2041_v43 = vld [vmem:[%s3111_s12 + $0x3d8] sm:$0xff] }
 0x21f   : > { %1916 = vst [vmem:[%s3418_s9 + $0x3c0] sm:$0xff] %v1915_v44  ;;  %1918 = vst [vmem:[%s3418_s9 + $0x3c8] sm:$0xff] %v1917_v45  ;;  %v2043_v44 = vld [vmem:[%s3111_s12 + $0x3e0] sm:$0xff]  ;;  %v2045_v45 = vld [vmem:[%s3111_s12 + $0x3e8] sm:$0xff] }
 0x220   : > { %1920 = vst [vmem:[%s3418_s9 + $0x3d0] sm:$0xff] %v1919_v46  ;;  %1922 = vst [vmem:[%s3418_s9 + $0x3d8] sm:$0xff] %v1921_v47  ;;  %v2047_v46 = vld [vmem:[%s3111_s12 + $0x3f0] sm:$0xff]  ;;  %v2049_v47 = vld [vmem:[%s3111_s12 + $0x3f8] sm:$0xff] }
 0x221   : > { %1924 = vst [vmem:[%s3418_s9 + $0x400] sm:$0xff] %v1923_v48  ;;  %1926 = vst [vmem:[%s3418_s9 + $0x408] sm:$0xff] %v1925_v49  ;;  %v2051_v48 = vld [vmem:[%s3111_s12 + $0x400] sm:$0xff]  ;;  %v2053_v49 = vld [vmem:[%s3111_s12 + $0x408] sm:$0xff] }
 0x222   : > { %1928 = vst [vmem:[%s3418_s9 + $0x410] sm:$0xff] %v1927_v50  ;;  %1930 = vst [vmem:[%s3418_s9 + $0x418] sm:$0xff] %v1929_v51  ;;  %v2055_v50 = vld [vmem:[%s3111_s12 + $0x410] sm:$0xff]  ;;  %v2057_v51 = vld [vmem:[%s3111_s12 + $0x418] sm:$0xff] }
 0x223   : > { %1932 = vst [vmem:[%s3418_s9 + $0x440] sm:$0xff] %v1931_v52  ;;  %1934 = vst [vmem:[%s3418_s9 + $0x448] sm:$0xff] %v1933_v53  ;;  %v2059_v52 = vld [vmem:[%s3111_s12 + $0x420] sm:$0xff]  ;;  %v2061_v53 = vld [vmem:[%s3111_s12 + $0x428] sm:$0xff] }
 0x224   : > { %1936 = vst [vmem:[%s3418_s9 + $0x450] sm:$0xff] %v1935_v54  ;;  %1938 = vst [vmem:[%s3418_s9 + $0x458] sm:$0xff] %v1937_v56  ;;  %v2063_v54 = vld [vmem:[%s3111_s12 + $0x430] sm:$0xff]  ;;  %v2065_v56 = vld [vmem:[%s3111_s12 + $0x438] sm:$0xff] }
 0x225   : > { %1940 = vst [vmem:[%s3418_s9 + $0x480] sm:$0xff] %v1939_v57  ;;  %1942 = vst [vmem:[%s3418_s9 + $0x488] sm:$0xff] %v1941_v58  ;;  %v2067_v57 = vld [vmem:[%s3111_s12 + $0x440] sm:$0xff]  ;;  %v2069_v58 = vld [vmem:[%s3111_s12 + $0x448] sm:$0xff] }
 0x226   : > { %1944 = vst [vmem:[%s3418_s9 + $0x490] sm:$0xff] %v1943_v59  ;;  %1946 = vst [vmem:[%s3418_s9 + $0x498] sm:$0xff] %v1945_v61  ;;  %v2071_v59 = vld [vmem:[%s3111_s12 + $0x450] sm:$0xff]  ;;  %v2073_v61 = vld [vmem:[%s3111_s12 + $0x458] sm:$0xff] }
 0x227   : > { %1948 = vst [vmem:[%s3418_s9 + $0x4c0] sm:$0xff] %v1947_v62  ;;  %1950 = vst [vmem:[%s3418_s9 + $0x4c8] sm:$0xff] %v1949_v63  ;;  %v2075_v62 = vld [vmem:[%s3111_s12 + $0x460] sm:$0xff]  ;;  %v2077_v63 = vld [vmem:[%s3111_s12 + $0x468] sm:$0xff] }
 0x228   : > { %1952 = vst [vmem:[%s3418_s9 + $0x4d0] sm:$0xff] %v1951_v0  ;;  %1954 = vst [vmem:[%s3418_s9 + $0x4d8] sm:$0xff] %v1953_v1  ;;  %v2079_v0 = vld [vmem:[%s3111_s12 + $0x470] sm:$0xff]  ;;  %v2081_v1 = vld [vmem:[%s3111_s12 + $0x478] sm:$0xff] }
 0x229   : > { %1956 = vst [vmem:[%s3418_s9 + $0x500] sm:$0xff] %v1955_v2  ;;  %1958 = vst [vmem:[%s3418_s9 + $0x508] sm:$0xff] %v1957_v3  ;;  %v2083_v2 = vld [vmem:[%s3111_s12 + $0x480] sm:$0xff]  ;;  %v2085_v3 = vld [vmem:[%s3111_s12 + $0x488] sm:$0xff] }
 0x22a   : > { %1960 = vst [vmem:[%s3418_s9 + $0x510] sm:$0xff] %v1959_v4  ;;  %1962 = vst [vmem:[%s3418_s9 + $0x518] sm:$0xff] %v1961_v5  ;;  %v2087_v4 = vld [vmem:[%s3111_s12 + $0x490] sm:$0xff]  ;;  %v2089_v5 = vld [vmem:[%s3111_s12 + $0x498] sm:$0xff] }
 0x22b   : > { %1964 = vst [vmem:[%s3418_s9 + $0x540] sm:$0xff] %v1963_v6  ;;  %1966 = vst [vmem:[%s3418_s9 + $0x548] sm:$0xff] %v1965_v7  ;;  %v2091_v6 = vld [vmem:[%s3111_s12 + $0x4a0] sm:$0xff]  ;;  %v2093_v7 = vld [vmem:[%s3111_s12 + $0x4a8] sm:$0xff] }
 0x22c   : > { %1968 = vst [vmem:[%s3418_s9 + $0x550] sm:$0xff] %v1967_v8  ;;  %1970 = vst [vmem:[%s3418_s9 + $0x558] sm:$0xff] %v1969_v9  ;;  %v2095_v8 = vld [vmem:[%s3111_s12 + $0x4b0] sm:$0xff]  ;;  %v2097_v9 = vld [vmem:[%s3111_s12 + $0x4b8] sm:$0xff] }
 0x22d   : > { %1972 = vst [vmem:[%s3418_s9 + $0x580] sm:$0xff] %v1971_v10  ;;  %1974 = vst [vmem:[%s3418_s9 + $0x588] sm:$0xff] %v1973_v55  ;;  %v2099_v10 = vld [vmem:[%s3111_s12 + $0x4c0] sm:$0xff]  ;;  %v2101_v55 = vld [vmem:[%s3111_s12 + $0x4c8] sm:$0xff] }
 0x22e   : > { %1976 = vst [vmem:[%s3418_s9 + $0x590] sm:$0xff] %v1975_v11  ;;  %1978 = vst [vmem:[%s3418_s9 + $0x598] sm:$0xff] %v1977_v12  ;;  %v2103_v11 = vld [vmem:[%s3111_s12 + $0x4d0] sm:$0xff]  ;;  %v2105_v12 = vld [vmem:[%s3111_s12 + $0x4d8] sm:$0xff] }
 0x22f   : > { %1980 = vst [vmem:[%s3418_s9 + $0x5c0] sm:$0xff] %v1979_v13  ;;  %1982 = vst [vmem:[%s3418_s9 + $0x5c8] sm:$0xff] %v1981_v14  ;;  %v2107_v13 = vld [vmem:[%s3111_s12 + $0x4e0] sm:$0xff]  ;;  %v2109_v14 = vld [vmem:[%s3111_s12 + $0x4e8] sm:$0xff] }
 0x230   : > { %1984 = vst [vmem:[%s3418_s9 + $0x5d0] sm:$0xff] %v1983_v60  ;;  %1986 = vst [vmem:[%s3418_s9 + $0x5d8] sm:$0xff] %v1985_v15  ;;  %v2111_v60 = vld [vmem:[%s3111_s12 + $0x4f0] sm:$0xff]  ;;  %v2113_v15 = vld [vmem:[%s3111_s12 + $0x4f8] sm:$0xff] }
 0x231   : > { %1988 = vst [vmem:[%s3418_s9 + $0x600] sm:$0xff] %v1987_v16  ;;  %1990 = vst [vmem:[%s3418_s9 + $0x608] sm:$0xff] %v1989_v17  ;;  %v2115_v16 = vld [vmem:[%s3111_s12 + $0x500] sm:$0xff]  ;;  %v2117_v17 = vld [vmem:[%s3111_s12 + $0x508] sm:$0xff] }
 0x232   : > { %1992 = vst [vmem:[%s3418_s9 + $0x610] sm:$0xff] %v1991_v18  ;;  %1994 = vst [vmem:[%s3418_s9 + $0x618] sm:$0xff] %v1993_v19  ;;  %v2119_v18 = vld [vmem:[%s3111_s12 + $0x510] sm:$0xff]  ;;  %v2121_v19 = vld [vmem:[%s3111_s12 + $0x518] sm:$0xff] }
 0x233   : > { %1996 = vst [vmem:[%s3418_s9 + $0x640] sm:$0xff] %v1995_v20  ;;  %1998 = vst [vmem:[%s3418_s9 + $0x648] sm:$0xff] %v1997_v21  ;;  %v2123_v20 = vld [vmem:[%s3111_s12 + $0x520] sm:$0xff]  ;;  %v2125_v21 = vld [vmem:[%s3111_s12 + $0x528] sm:$0xff] }
 0x234   : > { %2000 = vst [vmem:[%s3418_s9 + $0x650] sm:$0xff] %v1999_v32  ;;  %2002 = vst [vmem:[%s3418_s9 + $0x658] sm:$0xff] %v2001_v22  ;;  %v2127_v32 = vld [vmem:[%s3111_s12 + $0x530] sm:$0xff]  ;;  %v2129_v22 = vld [vmem:[%s3111_s12 + $0x538] sm:$0xff] }
 0x235   : > { %2004 = vst [vmem:[%s3418_s9 + $0x680] sm:$0xff] %v2003_v23  ;;  %2006 = vst [vmem:[%s3418_s9 + $0x688] sm:$0xff] %v2005_v24  ;;  %v2131_v23 = vld [vmem:[%s3111_s12 + $0x540] sm:$0xff]  ;;  %v2133_v24 = vld [vmem:[%s3111_s12 + $0x548] sm:$0xff] }
 0x236   : > { %2008 = vst [vmem:[%s3418_s9 + $0x690] sm:$0xff] %v2007_v25  ;;  %2010 = vst [vmem:[%s3418_s9 + $0x698] sm:$0xff] %v2009_v26  ;;  %v2135_v25 = vld [vmem:[%s3111_s12 + $0x550] sm:$0xff]  ;;  %v2137_v26 = vld [vmem:[%s3111_s12 + $0x558] sm:$0xff] }
 0x237   : > { %2012 = vst [vmem:[%s3418_s9 + $0x6c0] sm:$0xff] %v2011_v27  ;;  %2014 = vst [vmem:[%s3418_s9 + $0x6c8] sm:$0xff] %v2013_v28  ;;  %v2139_v27 = vld [vmem:[%s3111_s12 + $0x560] sm:$0xff]  ;;  %v2141_v28 = vld [vmem:[%s3111_s12 + $0x568] sm:$0xff] }
 0x238   : > { %2016 = vst [vmem:[%s3418_s9 + $0x6d0] sm:$0xff] %v2015_v29  ;;  %2018 = vst [vmem:[%s3418_s9 + $0x6d8] sm:$0xff] %v2017_v30  ;;  %v2143_v29 = vld [vmem:[%s3111_s12 + $0x570] sm:$0xff]  ;;  %v2145_v30 = vld [vmem:[%s3111_s12 + $0x578] sm:$0xff] }
 0x239   : > { %2020 = vst [vmem:[%s3418_s9 + $0x700] sm:$0xff] %v2019_v31  ;;  %2022 = vst [vmem:[%s3418_s9 + $0x708] sm:$0xff] %v2021_v33  ;;  %v2147_v31 = vld [vmem:[%s3111_s12 + $0x580] sm:$0xff]  ;;  %v2149_v33 = vld [vmem:[%s3111_s12 + $0x588] sm:$0xff] }
 0x23a   : > { %2024 = vst [vmem:[%s3418_s9 + $0x710] sm:$0xff] %v2023_v34  ;;  %2026 = vst [vmem:[%s3418_s9 + $0x718] sm:$0xff] %v2025_v35  ;;  %v2151_v34 = vld [vmem:[%s3111_s12 + $0x590] sm:$0xff]  ;;  %v2153_v35 = vld [vmem:[%s3111_s12 + $0x598] sm:$0xff] }
 0x23b   : > { %2028 = vst [vmem:[%s3418_s9 + $0x740] sm:$0xff] %v2027_v36  ;;  %2030 = vst [vmem:[%s3418_s9 + $0x748] sm:$0xff] %v2029_v37  ;;  %v2155_v36 = vld [vmem:[%s3111_s12 + $0x5a0] sm:$0xff]  ;;  %v2157_v37 = vld [vmem:[%s3111_s12 + $0x5a8] sm:$0xff] }
 0x23c   : > { %2032 = vst [vmem:[%s3418_s9 + $0x750] sm:$0xff] %v2031_v38  ;;  %2034 = vst [vmem:[%s3418_s9 + $0x758] sm:$0xff] %v2033_v39  ;;  %v2159_v38 = vld [vmem:[%s3111_s12 + $0x5b0] sm:$0xff]  ;;  %v2161_v39 = vld [vmem:[%s3111_s12 + $0x5b8] sm:$0xff] }
 0x23d   : > { %2036 = vst [vmem:[%s3418_s9 + $0x780] sm:$0xff] %v2035_v40  ;;  %2038 = vst [vmem:[%s3418_s9 + $0x788] sm:$0xff] %v2037_v41  ;;  %v2163_v40 = vld [vmem:[%s3111_s12 + $0x5c0] sm:$0xff]  ;;  %v2165_v41 = vld [vmem:[%s3111_s12 + $0x5c8] sm:$0xff] }
 0x23e   : > { %2040 = vst [vmem:[%s3418_s9 + $0x790] sm:$0xff] %v2039_v42  ;;  %2042 = vst [vmem:[%s3418_s9 + $0x798] sm:$0xff] %v2041_v43  ;;  %v2167_v42 = vld [vmem:[%s3111_s12 + $0x5d0] sm:$0xff]  ;;  %v2169_v43 = vld [vmem:[%s3111_s12 + $0x5d8] sm:$0xff] }
 0x23f   : > { %2044 = vst [vmem:[%s3418_s9 + $0x7c0] sm:$0xff] %v2043_v44  ;;  %2046 = vst [vmem:[%s3418_s9 + $0x7c8] sm:$0xff] %v2045_v45  ;;  %v2171_v44 = vld [vmem:[%s3111_s12 + $0x5e0] sm:$0xff]  ;;  %v2173_v45 = vld [vmem:[%s3111_s12 + $0x5e8] sm:$0xff] }
 0x240   : > { %2048 = vst [vmem:[%s3418_s9 + $0x7d0] sm:$0xff] %v2047_v46  ;;  %2050 = vst [vmem:[%s3418_s9 + $0x7d8] sm:$0xff] %v2049_v47  ;;  %v2175_v46 = vld [vmem:[%s3111_s12 + $0x5f0] sm:$0xff]  ;;  %v2177_v47 = vld [vmem:[%s3111_s12 + $0x5f8] sm:$0xff] }
 0x241   : > { %2052 = vst [vmem:[%s3418_s9 + $0x800] sm:$0xff] %v2051_v48  ;;  %2054 = vst [vmem:[%s3418_s9 + $0x808] sm:$0xff] %v2053_v49  ;;  %v2179_v48 = vld [vmem:[%s3111_s12 + $0x600] sm:$0xff]  ;;  %v2181_v49 = vld [vmem:[%s3111_s12 + $0x608] sm:$0xff] }
 0x242   : > { %2056 = vst [vmem:[%s3418_s9 + $0x810] sm:$0xff] %v2055_v50  ;;  %2058 = vst [vmem:[%s3418_s9 + $0x818] sm:$0xff] %v2057_v51  ;;  %v2183_v50 = vld [vmem:[%s3111_s12 + $0x610] sm:$0xff]  ;;  %v2185_v51 = vld [vmem:[%s3111_s12 + $0x618] sm:$0xff] }
 0x243   : > { %2060 = vst [vmem:[%s3418_s9 + $0x840] sm:$0xff] %v2059_v52  ;;  %2062 = vst [vmem:[%s3418_s9 + $0x848] sm:$0xff] %v2061_v53  ;;  %v2187_v52 = vld [vmem:[%s3111_s12 + $0x620] sm:$0xff]  ;;  %v2189_v53 = vld [vmem:[%s3111_s12 + $0x628] sm:$0xff] }
 0x244   : > { %2064 = vst [vmem:[%s3418_s9 + $0x850] sm:$0xff] %v2063_v54  ;;  %2066 = vst [vmem:[%s3418_s9 + $0x858] sm:$0xff] %v2065_v56  ;;  %v2191_v54 = vld [vmem:[%s3111_s12 + $0x630] sm:$0xff]  ;;  %v2193_v56 = vld [vmem:[%s3111_s12 + $0x638] sm:$0xff] }
 0x245   : > { %2068 = vst [vmem:[%s3418_s9 + $0x880] sm:$0xff] %v2067_v57  ;;  %2070 = vst [vmem:[%s3418_s9 + $0x888] sm:$0xff] %v2069_v58  ;;  %v2195_v57 = vld [vmem:[%s3111_s12 + $0x640] sm:$0xff]  ;;  %v2197_v58 = vld [vmem:[%s3111_s12 + $0x648] sm:$0xff] }
 0x246   : > { %2072 = vst [vmem:[%s3418_s9 + $0x890] sm:$0xff] %v2071_v59  ;;  %2074 = vst [vmem:[%s3418_s9 + $0x898] sm:$0xff] %v2073_v61  ;;  %v2199_v59 = vld [vmem:[%s3111_s12 + $0x650] sm:$0xff]  ;;  %v2201_v61 = vld [vmem:[%s3111_s12 + $0x658] sm:$0xff] }
 0x247   : > { %2076 = vst [vmem:[%s3418_s9 + $0x8c0] sm:$0xff] %v2075_v62  ;;  %2078 = vst [vmem:[%s3418_s9 + $0x8c8] sm:$0xff] %v2077_v63  ;;  %v2203_v62 = vld [vmem:[%s3111_s12 + $0x660] sm:$0xff]  ;;  %v2205_v63 = vld [vmem:[%s3111_s12 + $0x668] sm:$0xff] }
 0x248   : > { %2080 = vst [vmem:[%s3418_s9 + $0x8d0] sm:$0xff] %v2079_v0  ;;  %2082 = vst [vmem:[%s3418_s9 + $0x8d8] sm:$0xff] %v2081_v1  ;;  %v2207_v0 = vld [vmem:[%s3111_s12 + $0x670] sm:$0xff]  ;;  %v2209_v1 = vld [vmem:[%s3111_s12 + $0x678] sm:$0xff] }
 0x249   : > { %2084 = vst [vmem:[%s3418_s9 + $0x900] sm:$0xff] %v2083_v2  ;;  %2086 = vst [vmem:[%s3418_s9 + $0x908] sm:$0xff] %v2085_v3  ;;  %v2211_v2 = vld [vmem:[%s3111_s12 + $0x680] sm:$0xff]  ;;  %v2213_v3 = vld [vmem:[%s3111_s12 + $0x688] sm:$0xff] }
 0x24a   : > { %2088 = vst [vmem:[%s3418_s9 + $0x910] sm:$0xff] %v2087_v4  ;;  %2090 = vst [vmem:[%s3418_s9 + $0x918] sm:$0xff] %v2089_v5  ;;  %v2215_v4 = vld [vmem:[%s3111_s12 + $0x690] sm:$0xff]  ;;  %v2217_v5 = vld [vmem:[%s3111_s12 + $0x698] sm:$0xff] }
 0x24b   : > { %2092 = vst [vmem:[%s3418_s9 + $0x940] sm:$0xff] %v2091_v6  ;;  %2094 = vst [vmem:[%s3418_s9 + $0x948] sm:$0xff] %v2093_v7  ;;  %v2219_v6 = vld [vmem:[%s3111_s12 + $0x6a0] sm:$0xff]  ;;  %v2221_v7 = vld [vmem:[%s3111_s12 + $0x6a8] sm:$0xff] }
 0x24c   : > { %2096 = vst [vmem:[%s3418_s9 + $0x950] sm:$0xff] %v2095_v8  ;;  %2098 = vst [vmem:[%s3418_s9 + $0x958] sm:$0xff] %v2097_v9  ;;  %v2223_v8 = vld [vmem:[%s3111_s12 + $0x6b0] sm:$0xff]  ;;  %v2225_v9 = vld [vmem:[%s3111_s12 + $0x6b8] sm:$0xff] }
 0x24d   : > { %2100 = vst [vmem:[%s3418_s9 + $0x980] sm:$0xff] %v2099_v10  ;;  %2102 = vst [vmem:[%s3418_s9 + $0x988] sm:$0xff] %v2101_v55  ;;  %v2227_v10 = vld [vmem:[%s3111_s12 + $0x6c0] sm:$0xff]  ;;  %v2229_v55 = vld [vmem:[%s3111_s12 + $0x6c8] sm:$0xff] }
 0x24e   : > { %2104 = vst [vmem:[%s3418_s9 + $0x990] sm:$0xff] %v2103_v11  ;;  %2106 = vst [vmem:[%s3418_s9 + $0x998] sm:$0xff] %v2105_v12  ;;  %v2231_v11 = vld [vmem:[%s3111_s12 + $0x6d0] sm:$0xff]  ;;  %v2233_v12 = vld [vmem:[%s3111_s12 + $0x6d8] sm:$0xff] }
 0x24f   : > { %2108 = vst [vmem:[%s3418_s9 + $0x9c0] sm:$0xff] %v2107_v13  ;;  %2110 = vst [vmem:[%s3418_s9 + $0x9c8] sm:$0xff] %v2109_v14  ;;  %v2235_v13 = vld [vmem:[%s3111_s12 + $0x6e0] sm:$0xff]  ;;  %v2237_v14 = vld [vmem:[%s3111_s12 + $0x6e8] sm:$0xff] }
 0x250   : > { %2112 = vst [vmem:[%s3418_s9 + $0x9d0] sm:$0xff] %v2111_v60  ;;  %2114 = vst [vmem:[%s3418_s9 + $0x9d8] sm:$0xff] %v2113_v15  ;;  %v2239_v60 = vld [vmem:[%s3111_s12 + $0x6f0] sm:$0xff]  ;;  %v2241_v15 = vld [vmem:[%s3111_s12 + $0x6f8] sm:$0xff] }
 0x251   : > { %2116 = vst [vmem:[%s3418_s9 + $0xa00] sm:$0xff] %v2115_v16  ;;  %2118 = vst [vmem:[%s3418_s9 + $0xa08] sm:$0xff] %v2117_v17  ;;  %v2243_v16 = vld [vmem:[%s3111_s12 + $0x700] sm:$0xff]  ;;  %v2245_v17 = vld [vmem:[%s3111_s12 + $0x708] sm:$0xff] }
 0x252   : > { %2120 = vst [vmem:[%s3418_s9 + $0xa10] sm:$0xff] %v2119_v18  ;;  %2122 = vst [vmem:[%s3418_s9 + $0xa18] sm:$0xff] %v2121_v19  ;;  %v2247_v18 = vld [vmem:[%s3111_s12 + $0x710] sm:$0xff]  ;;  %v2249_v19 = vld [vmem:[%s3111_s12 + $0x718] sm:$0xff] }
 0x253   : > { %2124 = vst [vmem:[%s3418_s9 + $0xa40] sm:$0xff] %v2123_v20  ;;  %2126 = vst [vmem:[%s3418_s9 + $0xa48] sm:$0xff] %v2125_v21  ;;  %v2251_v20 = vld [vmem:[%s3111_s12 + $0x720] sm:$0xff]  ;;  %v2253_v21 = vld [vmem:[%s3111_s12 + $0x728] sm:$0xff] }
 0x254   : > { %2128 = vst [vmem:[%s3418_s9 + $0xa50] sm:$0xff] %v2127_v32  ;;  %2130 = vst [vmem:[%s3418_s9 + $0xa58] sm:$0xff] %v2129_v22  ;;  %v2255_v32 = vld [vmem:[%s3111_s12 + $0x730] sm:$0xff]  ;;  %v2257_v22 = vld [vmem:[%s3111_s12 + $0x738] sm:$0xff] }
 0x255   : > { %2132 = vst [vmem:[%s3418_s9 + $0xa80] sm:$0xff] %v2131_v23  ;;  %2134 = vst [vmem:[%s3418_s9 + $0xa88] sm:$0xff] %v2133_v24  ;;  %v2259_v23 = vld [vmem:[%s3111_s12 + $0x740] sm:$0xff]  ;;  %v2261_v24 = vld [vmem:[%s3111_s12 + $0x748] sm:$0xff] }
 0x256   : > { %2136 = vst [vmem:[%s3418_s9 + $0xa90] sm:$0xff] %v2135_v25  ;;  %2138 = vst [vmem:[%s3418_s9 + $0xa98] sm:$0xff] %v2137_v26  ;;  %v2263_v25 = vld [vmem:[%s3111_s12 + $0x750] sm:$0xff]  ;;  %v2265_v26 = vld [vmem:[%s3111_s12 + $0x758] sm:$0xff] }
 0x257   : > { %2140 = vst [vmem:[%s3418_s9 + $0xac0] sm:$0xff] %v2139_v27  ;;  %2142 = vst [vmem:[%s3418_s9 + $0xac8] sm:$0xff] %v2141_v28  ;;  %v2267_v27 = vld [vmem:[%s3111_s12 + $0x760] sm:$0xff]  ;;  %v2269_v28 = vld [vmem:[%s3111_s12 + $0x768] sm:$0xff] }
 0x258   : > { %2144 = vst [vmem:[%s3418_s9 + $0xad0] sm:$0xff] %v2143_v29  ;;  %2146 = vst [vmem:[%s3418_s9 + $0xad8] sm:$0xff] %v2145_v30  ;;  %v2271_v29 = vld [vmem:[%s3111_s12 + $0x770] sm:$0xff]  ;;  %v2273_v30 = vld [vmem:[%s3111_s12 + $0x778] sm:$0xff] }
 0x259   : > { %2148 = vst [vmem:[%s3418_s9 + $0xb00] sm:$0xff] %v2147_v31  ;;  %2150 = vst [vmem:[%s3418_s9 + $0xb08] sm:$0xff] %v2149_v33  ;;  %v2275_v31 = vld [vmem:[%s3111_s12 + $0x780] sm:$0xff]  ;;  %v2277_v33 = vld [vmem:[%s3111_s12 + $0x788] sm:$0xff] }
 0x25a   : > { %2152 = vst [vmem:[%s3418_s9 + $0xb10] sm:$0xff] %v2151_v34  ;;  %2154 = vst [vmem:[%s3418_s9 + $0xb18] sm:$0xff] %v2153_v35  ;;  %v2279_v34 = vld [vmem:[%s3111_s12 + $0x790] sm:$0xff]  ;;  %v2281_v35 = vld [vmem:[%s3111_s12 + $0x798] sm:$0xff] }
 0x25b   : > { %2156 = vst [vmem:[%s3418_s9 + $0xb40] sm:$0xff] %v2155_v36  ;;  %2158 = vst [vmem:[%s3418_s9 + $0xb48] sm:$0xff] %v2157_v37  ;;  %v2283_v36 = vld [vmem:[%s3111_s12 + $0x7a0] sm:$0xff]  ;;  %v2285_v37 = vld [vmem:[%s3111_s12 + $0x7a8] sm:$0xff] }
 0x25c   : > { %2160 = vst [vmem:[%s3418_s9 + $0xb50] sm:$0xff] %v2159_v38  ;;  %2162 = vst [vmem:[%s3418_s9 + $0xb58] sm:$0xff] %v2161_v39  ;;  %v2287_v38 = vld [vmem:[%s3111_s12 + $0x7b0] sm:$0xff]  ;;  %v2289_v39 = vld [vmem:[%s3111_s12 + $0x7b8] sm:$0xff] }
 0x25d   : > { %2164 = vst [vmem:[%s3418_s9 + $0xb80] sm:$0xff] %v2163_v40  ;;  %2166 = vst [vmem:[%s3418_s9 + $0xb88] sm:$0xff] %v2165_v41  ;;  %v2291_v40 = vld [vmem:[%s3111_s12 + $0x7c0] sm:$0xff]  ;;  %v2293_v41 = vld [vmem:[%s3111_s12 + $0x7c8] sm:$0xff] }
 0x25e   : > { %2168 = vst [vmem:[%s3418_s9 + $0xb90] sm:$0xff] %v2167_v42  ;;  %2170 = vst [vmem:[%s3418_s9 + $0xb98] sm:$0xff] %v2169_v43  ;;  %v2295_v42 = vld [vmem:[%s3111_s12 + $0x7d0] sm:$0xff]  ;;  %v2297_v43 = vld [vmem:[%s3111_s12 + $0x7d8] sm:$0xff] }
 0x25f   : > { %2172 = vst [vmem:[%s3418_s9 + $0xbc0] sm:$0xff] %v2171_v44  ;;  %2174 = vst [vmem:[%s3418_s9 + $0xbc8] sm:$0xff] %v2173_v45  ;;  %v2299_v44 = vld [vmem:[%s3111_s12 + $0x7e0] sm:$0xff]  ;;  %v2301_v45 = vld [vmem:[%s3111_s12 + $0x7e8] sm:$0xff] }
 0x260   : > { %2176 = vst [vmem:[%s3418_s9 + $0xbd0] sm:$0xff] %v2175_v46  ;;  %2178 = vst [vmem:[%s3418_s9 + $0xbd8] sm:$0xff] %v2177_v47  ;;  %v2303_v46 = vld [vmem:[%s3111_s12 + $0x7f0] sm:$0xff]  ;;  %v2305_v47 = vld [vmem:[%s3111_s12 + $0x7f8] sm:$0xff] }
 0x261   : > { %2180 = vst [vmem:[%s3418_s9 + $0xc00] sm:$0xff] %v2179_v48  ;;  %2182 = vst [vmem:[%s3418_s9 + $0xc08] sm:$0xff] %v2181_v49 }
 0x262   : > { %2184 = vst [vmem:[%s3418_s9 + $0xc10] sm:$0xff] %v2183_v50  ;;  %2186 = vst [vmem:[%s3418_s9 + $0xc18] sm:$0xff] %v2185_v51 }
 0x263   : > { %2188 = vst [vmem:[%s3418_s9 + $0xc40] sm:$0xff] %v2187_v52  ;;  %2190 = vst [vmem:[%s3418_s9 + $0xc48] sm:$0xff] %v2189_v53 }
 0x264   : > { %2192 = vst [vmem:[%s3418_s9 + $0xc50] sm:$0xff] %v2191_v54  ;;  %2194 = vst [vmem:[%s3418_s9 + $0xc58] sm:$0xff] %v2193_v56 }
 0x265   : > { %2196 = vst [vmem:[%s3418_s9 + $0xc80] sm:$0xff] %v2195_v57  ;;  %2198 = vst [vmem:[%s3418_s9 + $0xc88] sm:$0xff] %v2197_v58 }
 0x266   : > { %2200 = vst [vmem:[%s3418_s9 + $0xc90] sm:$0xff] %v2199_v59  ;;  %2202 = vst [vmem:[%s3418_s9 + $0xc98] sm:$0xff] %v2201_v61 }
 0x267   : > { %2204 = vst [vmem:[%s3418_s9 + $0xcc0] sm:$0xff] %v2203_v62  ;;  %2206 = vst [vmem:[%s3418_s9 + $0xcc8] sm:$0xff] %v2205_v63 }
 0x268   : > { %2208 = vst [vmem:[%s3418_s9 + $0xcd0] sm:$0xff] %v2207_v0  ;;  %2210 = vst [vmem:[%s3418_s9 + $0xcd8] sm:$0xff] %v2209_v1 }
 0x269   : > { %2212 = vst [vmem:[%s3418_s9 + $0xd00] sm:$0xff] %v2211_v2  ;;  %2214 = vst [vmem:[%s3418_s9 + $0xd08] sm:$0xff] %v2213_v3 }
 0x26a   : > { %2216 = vst [vmem:[%s3418_s9 + $0xd10] sm:$0xff] %v2215_v4  ;;  %2218 = vst [vmem:[%s3418_s9 + $0xd18] sm:$0xff] %v2217_v5 }
 0x26b   : > { %2220 = vst [vmem:[%s3418_s9 + $0xd40] sm:$0xff] %v2219_v6  ;;  %2222 = vst [vmem:[%s3418_s9 + $0xd48] sm:$0xff] %v2221_v7 }
 0x26c   : > { %2224 = vst [vmem:[%s3418_s9 + $0xd50] sm:$0xff] %v2223_v8  ;;  %2226 = vst [vmem:[%s3418_s9 + $0xd58] sm:$0xff] %v2225_v9 }
 0x26d   : > { %2228 = vst [vmem:[%s3418_s9 + $0xd80] sm:$0xff] %v2227_v10  ;;  %2230 = vst [vmem:[%s3418_s9 + $0xd88] sm:$0xff] %v2229_v55 }
 0x26e   : > { %2232 = vst [vmem:[%s3418_s9 + $0xd90] sm:$0xff] %v2231_v11  ;;  %2234 = vst [vmem:[%s3418_s9 + $0xd98] sm:$0xff] %v2233_v12 }
 0x26f   : > { %2236 = vst [vmem:[%s3418_s9 + $0xdc0] sm:$0xff] %v2235_v13  ;;  %2238 = vst [vmem:[%s3418_s9 + $0xdc8] sm:$0xff] %v2237_v14 }
 0x270   : > { %2240 = vst [vmem:[%s3418_s9 + $0xdd0] sm:$0xff] %v2239_v60  ;;  %2242 = vst [vmem:[%s3418_s9 + $0xdd8] sm:$0xff] %v2241_v15 }
 0x271   : > { %2244 = vst [vmem:[%s3418_s9 + $0xe00] sm:$0xff] %v2243_v16  ;;  %2246 = vst [vmem:[%s3418_s9 + $0xe08] sm:$0xff] %v2245_v17 }
 0x272   : > { %2248 = vst [vmem:[%s3418_s9 + $0xe10] sm:$0xff] %v2247_v18  ;;  %2250 = vst [vmem:[%s3418_s9 + $0xe18] sm:$0xff] %v2249_v19 }
 0x273   : > { %2252 = vst [vmem:[%s3418_s9 + $0xe40] sm:$0xff] %v2251_v20  ;;  %2254 = vst [vmem:[%s3418_s9 + $0xe48] sm:$0xff] %v2253_v21 }
 0x274   : > { %2256 = vst [vmem:[%s3418_s9 + $0xe50] sm:$0xff] %v2255_v32  ;;  %2258 = vst [vmem:[%s3418_s9 + $0xe58] sm:$0xff] %v2257_v22 }
 0x275   : > { %2260 = vst [vmem:[%s3418_s9 + $0xe80] sm:$0xff] %v2259_v23  ;;  %2262 = vst [vmem:[%s3418_s9 + $0xe88] sm:$0xff] %v2261_v24 }
 0x276   : > { %2264 = vst [vmem:[%s3418_s9 + $0xe90] sm:$0xff] %v2263_v25  ;;  %2266 = vst [vmem:[%s3418_s9 + $0xe98] sm:$0xff] %v2265_v26 }
 0x277   : > { %2268 = vst [vmem:[%s3418_s9 + $0xec0] sm:$0xff] %v2267_v27  ;;  %2270 = vst [vmem:[%s3418_s9 + $0xec8] sm:$0xff] %v2269_v28 }
 0x278   : > { %2272 = vst [vmem:[%s3418_s9 + $0xed0] sm:$0xff] %v2271_v29  ;;  %2274 = vst [vmem:[%s3418_s9 + $0xed8] sm:$0xff] %v2273_v30 }
 0x279   : > { %2276 = vst [vmem:[%s3418_s9 + $0xf00] sm:$0xff] %v2275_v31  ;;  %2278 = vst [vmem:[%s3418_s9 + $0xf08] sm:$0xff] %v2277_v33 }
 0x27a   : > { %2280 = vst [vmem:[%s3418_s9 + $0xf10] sm:$0xff] %v2279_v34  ;;  %2282 = vst [vmem:[%s3418_s9 + $0xf18] sm:$0xff] %v2281_v35 }
 0x27b   : > { %2284 = vst [vmem:[%s3418_s9 + $0xf40] sm:$0xff] %v2283_v36  ;;  %2286 = vst [vmem:[%s3418_s9 + $0xf48] sm:$0xff] %v2285_v37 }
 0x27c   : > { %2288 = vst [vmem:[%s3418_s9 + $0xf50] sm:$0xff] %v2287_v38  ;;  %2290 = vst [vmem:[%s3418_s9 + $0xf58] sm:$0xff] %v2289_v39 }
 0x27d   : > { %2292 = vst [vmem:[%s3418_s9 + $0xf80] sm:$0xff] %v2291_v40  ;;  %2294 = vst [vmem:[%s3418_s9 + $0xf88] sm:$0xff] %v2293_v41 }
 0x27e   : > { %2296 = vst [vmem:[%s3418_s9 + $0xf90] sm:$0xff] %v2295_v42  ;;  %2298 = vst [vmem:[%s3418_s9 + $0xf98] sm:$0xff] %v2297_v43 }
 0x27f   : > { %2300 = vst [vmem:[%s3418_s9 + $0xfc0] sm:$0xff] %v2299_v44  ;;  %2302 = vst [vmem:[%s3418_s9 + $0xfc8] sm:$0xff] %v2301_v45 }
 0x280   : > { %2304 = vst [vmem:[%s3418_s9 + $0xfd0] sm:$0xff] %v2303_v46  ;;  %2306 = vst [vmem:[%s3418_s9 + $0xfd8] sm:$0xff] %v2305_v47 }
 0x281 PF: > { %s14_s19 = sadd.s32 1, %s2572_s19   ;;  %s3950_s15 = smov %s2560_s16 }
 0x282   : > { %p11_p11 = scmp.ge.s32.totalorder %s14_s19, 4   ;;  %s3951_s16 = smov %s2640_s25 }
 0x283   : > { %s3952_s17 = smov %s2568_s18  ;;  %s3953_s18 = smov %s3955_s20 }
 0x284   :  { %13 = sbr.rel (!%p11_p11) target bundleno = 3 (0x3), region = 120 }

// kernel: generator_forward.17
= control target key start
LH: loop header
LB: loop body
LE: loop exit
PB: predicated region body
PF: predicated region fallthrough
CT: control target
= control target key end

     0   :  { %s1287_s15 = smov 0   ;;  %s1289_s16 = smov 0   ;;  %s1662_s0 = inlined_call_operand.vmem [shape: f32[2048,128], index: 0, kind: input, shape index: {}]   ;;  %s1663_s1 = inlined_call_operand.vmem [shape: f32[1,128], index: 1, kind: input, shape index: {}]   ;;  %s1664_s2 = inlined_call_operand.vmem [shape: f32[1,128], index: 2, kind: input, shape index: {}]   ;;  %s1665_s3 = inlined_call_operand.vmem [shape: bf16[128,128], index: 3, kind: input, shape index: {}]   ;;  %s1666_s4 = inlined_call_operand.vmem [shape: f32[2048,128], index: 4, kind: output, shape index: {}]  }
   0x1   :  { %s1291_s17 = smov 0  }
   0x2 LB: > { %s26_s18 = sadd.s32 1, %s1256_s16  ;;  %p1053_p0 = scmp.ge.s32.totalorder %s1260_s17, 1  ;;  %s1260_s17 = sphi %s1291_s17, %s14_s17   ;;  %s1256_s16 = sphi %s1289_s16, %s1668_s16   ;;  %s1252_s15 = sphi %s1287_s15, %s1667_s15  }
   0x3   : > { %p28_p1 = scmp.ge.s32.totalorder %s26_s18, 4  ;;  %p186_p2 = scmp.lt.s32.totalorder %s1260_s17, 5 }
   0x5   : > { %s1670_s18 = smov (%p28_p1, %s26_s18), 0  ;;  %p187_p3 = pnand %p1053_p0, %p186_p2 }
   0x6   : > { %v1230_v0 = vld [vmem:[%s1665_s3] sm:$0xff] (!%p187_p3)   ;;  %s1054_s21 = sshll.u32 (!%p187_p3), %s1252_s15, 6  ;;  %v1231_v1 = vld [vmem:[%s1665_s3 + $0x8] sm:$0xff] (!%p187_p3)   ;;  %v1232_v2 = vld [vmem:[%s1665_s3 + $0x10] sm:$0xff] (!%p187_p3)  }
   0x7   : > { %190 = sbr.rel (%p187_p3) target bundleno = 312 (0x138), region = 36  ;;  %p220_p4 = scmp.lt.s32.totalorder (!%p187_p3), %s1054_s21, 255  ;;  %1110 = vmatprep.subr.bf16.mxu0 (!%p187_p3), %v1230_v0  ;;  %1190 = vmatprep.subr.bf16.mxu1 (!%p187_p3), %v1230_v0  ;;  %v1233_v3 = vld [vmem:[%s1665_s3 + $0x18] sm:$0xff] (!%p187_p3)   ;;  %v1332_v6 = vld [vmem:[%s1663_s1] ss:$0 sm:$0xff] (!%p187_p3)  ;;  %v1235_v39 = vld [vmem:[%s1665_s3 + $0x28] sm:$0xff] (!%p187_p3)  }
   0x8   : > { %1111 = vmatpush3.bf16.msra.mxu0 (!%p187_p3), %v1230_v0  ;;  %1198 = vmatpush3.bf16.msra.mxu1 (!%p187_p3), %v1230_v0  ;;  %v1339_v9 = vld [vmem:[%s1664_s2] ss:$0 sm:$0xff] (!%p187_p3)  ;;  %v1236_v56 = vld [vmem:[%s1665_s3 + $0x30] sm:$0xff] (!%p187_p3)  }
   0x9   : > { %1112 = vmatprep.subr.bf16.mxu0 (!%p187_p3), %v1231_v1  ;;  %1191 = vmatprep.subr.bf16.mxu1 (!%p187_p3), %v1231_v1  ;;  %v1234_v21 = vld [vmem:[%s1665_s3 + $0x20] sm:$0xff] (!%p187_p3)  }
   0xc   : > { %1113 = vmatpush3.bf16.msra.mxu0 (!%p187_p3), %v1231_v1  ;;  %1199 = vmatpush3.bf16.msra.mxu1 (!%p187_p3), %v1231_v1 }
   0xd   : > { %1114 = vmatprep.subr.bf16.mxu0 (!%p187_p3), %v1232_v2  ;;  %1192 = vmatprep.subr.bf16.mxu1 (!%p187_p3), %v1232_v2 }
   0xe   : > { %s1672_s21 = smov (!%p220_p4, %s1054_s21), 255 }
   0xf   : > { %s1055_s26 = sshll.u32 %s1672_s21, 3 }
  0x10   : > { %s1322_s29 = scalar_lea.vmem %s1662_s0, %s1055_s26  ;;  %1115 = vmatpush3.bf16.msra.mxu0 %v1232_v2  ;;  %1200 = vmatpush3.bf16.msra.mxu1 %v1232_v2  ;;  %s1587_s24 = scalar_lea.vmem %s1666_s4, %s1055_s26 }
  0x11   : > { %v239_v4 = vld [vmem:[%s1322_s29] sm:$0xff]  ;;  %v240_v5 = vld [vmem:[%s1322_s29 + $0x8] sm:$0xff]  ;;  %v241_v14 = vld [vmem:[%s1322_s29 + $0x10] sm:$0xff]  ;;  %1116 = vmatprep.subr.bf16.mxu0 %v1233_v3  ;;  %1193 = vmatprep.subr.bf16.mxu1 %v1233_v3 }
  0x12   : > { %v310_v7 = vmul.f32 %v1332_v6, %v239_v4  ;;  %v311_v8 = vmul.f32 %v1332_v6, %v240_v5  ;;  %v271_v10 = vld [vmem:[%s1322_s29 + $0x100] sm:$0xff]  ;;  %v272_v11 = vld [vmem:[%s1322_s29 + $0x108] sm:$0xff]  ;;  %v242_v15 = vld [vmem:[%s1322_s29 + $0x18] sm:$0xff]  ;;  %v312_v19 = vmul.f32 %v1332_v6, %v241_v14 }
  0x13   : > { %v342_v12 = vmul.f32 %v1332_v6, %v271_v10  ;;  %v343_v13 = vmul.f32 %v1332_v6, %v272_v11  ;;  %v273_v16 = vld [vmem:[%s1322_s29 + $0x110] sm:$0xff]  ;;  %v274_v20 = vld [vmem:[%s1322_s29 + $0x118] sm:$0xff]  ;;  %v313_v24 = vmul.f32 %v1332_v6, %v242_v15  ;;  %v243_v25 = vld [vmem:[%s1322_s29 + $0x20] sm:$0xff] }
  0x14   : > { %v381_v17 = vadd.f32 %v1339_v9, %v310_v7  ;;  %v382_v18 = vadd.f32 %v1339_v9, %v311_v8  ;;  %v344_v28 = vmul.f32 %v1332_v6, %v273_v16  ;;  %v244_v29 = vld [vmem:[%s1322_s29 + $0x28] sm:$0xff]  ;;  %v345_v32 = vmul.f32 %v1332_v6, %v274_v20  ;;  %v275_v33 = vld [vmem:[%s1322_s29 + $0x120] sm:$0xff]  ;;  %1117 = vmatpush3.bf16.msra.mxu0 %v1233_v3  ;;  %v245_v38 = vld [vmem:[%s1322_s29 + $0x30] sm:$0xff] }
  0x15   : > { %v413_v22 = vadd.f32 %v1339_v9, %v342_v12  ;;  %v414_v23 = vadd.f32 %v1339_v9, %v343_v13  ;;  %v276_v34 = vld [vmem:[%s1322_s29 + $0x128] sm:$0xff]  ;;  %1201 = vmatpush3.bf16.msra.mxu1 %v1233_v3  ;;  %v383_v36 = vadd.f32 %v1339_v9, %v312_v19  ;;  %v314_v37 = vmul.f32 %v1332_v6, %v243_v25  ;;  %v246_v43 = vld [vmem:[%s1322_s29 + $0x38] sm:$0xff]  ;;  %v277_v47 = vld [vmem:[%s1322_s29 + $0x130] sm:$0xff] }
  0x16   : > { %v445_v26 = vmax.f32 %v381_v17, 0.0  ;;  %v446_v27 = vmax.f32 %v382_v18, 0.0  ;;  %1118 = vmatprep.subr.bf16.mxu0 %v1234_v21  ;;  %1194 = vmatprep.subr.bf16.mxu1 %v1234_v21  ;;  %v384_v41 = vadd.f32 %v1339_v9, %v313_v24  ;;  %v315_v42 = vmul.f32 %v1332_v6, %v244_v29  ;;  %v278_v52 = vld [vmem:[%s1322_s29 + $0x138] sm:$0xff]  ;;  %v247_v61 = vld [vmem:[%s1322_s29 + $0x40] sm:$0xff]  ;;  %v248_v1 = vld [vmem:[%s1322_s29 + $0x48] sm:$0xff] }
  0x17   : > { %v477_v30 = vmax.f32 %v413_v22, 0.0  ;;  %v478_v31 = vmax.f32 %v414_v23, 0.0  ;;  %v415_v44 = vadd.f32 %v1339_v9, %v344_v28  ;;  %v346_v45 = vmul.f32 %v1332_v6, %v275_v33  ;;  %v279_v7 = vld [vmem:[%s1322_s29 + $0x140] sm:$0xff]  ;;  %v280_v8 = vld [vmem:[%s1322_s29 + $0x148] sm:$0xff]  ;;  %v249_v14 = vld [vmem:[%s1322_s29 + $0x50] sm:$0xff] }
  0x18   : > { %v509_v35 = vpack.c.bf16 %v446_v27, %v445_v26  ;;  %v347_v46 = vmul.f32 %v1332_v6, %v276_v34  ;;  %v416_v48 = vadd.f32 %v1339_v9, %v345_v32  ;;  %v385_v49 = vadd.f32 %v1339_v9, %v314_v37  ;;  %1119 = vmatpush3.bf16.msra.mxu0 %v1234_v21  ;;  %v250_v15 = vld [vmem:[%s1322_s29 + $0x58] sm:$0xff] }
  0x19   : > { %v525_v40 = vpack.c.bf16 %v478_v31, %v477_v30  ;;  %v386_v50 = vadd.f32 %v1339_v9, %v315_v42  ;;  %v316_v51 = vmul.f32 %v1332_v6, %v245_v38  ;;  %1202 = vmatpush3.bf16.msra.mxu1 %v1234_v21  ;;  %v417_v53 = vadd.f32 %v1339_v9, %v346_v45  ;;  %v1237_v16 = vld [vmem:[%s1665_s3 + $0x38] sm:$0xff]   ;;  %v281_v21 = vld [vmem:[%s1322_s29 + $0x150] sm:$0xff]  ;;  %v251_v31 = vld [vmem:[%s1322_s29 + $0x60] sm:$0xff] }
  0x1a   : > { %1126 = vmatprep.mubr.bf16.mxu0 %v509_v35  ;;  %v418_v54 = vadd.f32 %v1339_v9, %v347_v46  ;;  %v317_v55 = vmul.f32 %v1332_v6, %v246_v43  ;;  %1120 = vmatprep.subr.bf16.mxu0 %v1235_v39  ;;  %v447_v57 = vmax.f32 %v383_v36, 0.0  ;;  %v448_v58 = vmax.f32 %v384_v41, 0.0  ;;  %v282_v26 = vld [vmem:[%s1322_s29 + $0x158] sm:$0xff]  ;;  %v252_v35 = vld [vmem:[%s1322_s29 + $0x68] sm:$0xff]  ;;  %v253_v45 = vld [vmem:[%s1322_s29 + $0x70] sm:$0xff] }
  0x1b   : > { %1158 = vmatprep.mubr.bf16.mxu1 %v525_v40  ;;  %1195 = vmatprep.subr.bf16.mxu1 %v1235_v39  ;;  %v387_v59 = vadd.f32 %v1339_v9, %v316_v51  ;;  %v348_v60 = vmul.f32 %v1332_v6, %v277_v47  ;;  %v479_v62 = vmax.f32 %v415_v44, 0.0  ;;  %v349_v0 = vmul.f32 %v1332_v6, %v278_v52  ;;  %v284_v40 = vld [vmem:[%s1322_s29 + $0x168] sm:$0xff] }
  0x1c   : > { %v388_v63 = vadd.f32 %v1339_v9, %v317_v55  ;;  %v480_v2 = vmax.f32 %v416_v48, 0.0  ;;  %v449_v3 = vmax.f32 %v385_v49, 0.0  ;;  %v450_v4 = vmax.f32 %v386_v50, 0.0  ;;  %1121 = vmatpush3.bf16.msra.mxu0 %v1235_v39  ;;  %v254_v50 = vld [vmem:[%s1322_s29 + $0x78] sm:$0xff] }
  0x1d   : > { %v419_v5 = vadd.f32 %v1339_v9, %v348_v60  ;;  %1203 = vmatpush3.bf16.msra.mxu1 %v1235_v39  ;;  %v481_v10 = vmax.f32 %v417_v53, 0.0  ;;  %v482_v11 = vmax.f32 %v418_v54, 0.0  ;;  %v420_v12 = vadd.f32 %v1339_v9, %v349_v0  ;;  %1122 = vmatprep.subr.bf16.mxu0 %v1236_v56  ;;  %v283_v39 = vld [vmem:[%s1322_s29 + $0x160] sm:$0xff] }
  0x1e   : > { %v318_v13 = vmul.f32 %v1332_v6, %v247_v61  ;;  %1196 = vmatprep.subr.bf16.mxu1 %v1236_v56  ;;  %v510_v17 = vpack.c.bf16 %v448_v58, %v447_v57  ;;  %v451_v18 = vmax.f32 %v387_v59, 0.0  ;;  %v452_v19 = vmax.f32 %v388_v63, 0.0  ;;  %v285_v59 = vld [vmem:[%s1322_s29 + $0x170] sm:$0xff] }
  0x1f   : > { %v319_v20 = vmul.f32 %v1332_v6, %v248_v1  ;;  %v483_v22 = vmax.f32 %v419_v5, 0.0  ;;  %v484_v23 = vmax.f32 %v420_v12, 0.0  ;;  %v350_v24 = vmul.f32 %v1332_v6, %v279_v7  ;;  %v255_v5 = vld [vmem:[%s1322_s29 + $0x80] sm:$0xff]  ;;  %v256_v12 = vld [vmem:[%s1322_s29 + $0x88] sm:$0xff] }
  0x20   : > { %v351_v25 = vmul.f32 %v1332_v6, %v280_v8  ;;  %v526_v27 = vpack.c.bf16 %v480_v2, %v479_v62  ;;  %v511_v28 = vpack.c.bf16 %v450_v4, %v449_v3  ;;  %v320_v29 = vmul.f32 %v1332_v6, %v249_v14  ;;  %1123 = vmatpush3.bf16.msra.mxu0 %v1236_v56  ;;  %v286_v4 = vld [vmem:[%s1322_s29 + $0x178] sm:$0xff] }
  0x21   : > { %v321_v30 = vmul.f32 %v1332_v6, %v250_v15  ;;  %1204 = vmatpush3.bf16.msra.mxu1 %v1236_v56  ;;  %v527_v32 = vpack.c.bf16 %v482_v11, %v481_v10  ;;  %v1413_v33 = vadd.f32 %v1339_v9, %v318_v13  ;;  %v352_v34 = vmul.f32 %v1332_v6, %v281_v21  ;;  %v287_v13 = vld [vmem:[%s1322_s29 + $0x180] sm:$0xff] }
  0x22   : > { %1124 = vmatprep.subr.bf16.mxu0 %v1237_v16  ;;  %1197 = vmatprep.subr.bf16.mxu1 %v1237_v16  ;;  %v1417_v36 = vpack.c.bf16 %v452_v19, %v451_v18  ;;  %v390_v37 = vadd.f32 %v1339_v9, %v319_v20  ;;  %v353_v38 = vmul.f32 %v1332_v6, %v282_v26  ;;  %v288_v18 = vld [vmem:[%s1322_s29 + $0x188] sm:$0xff]  ;;  %v257_v19 = vld [vmem:[%s1322_s29 + $0x90] sm:$0xff] }
  0x23   : > { %v1423_v41 = vpack.c.bf16 %v484_v23, %v483_v22  ;;  %v421_v42 = vadd.f32 %v1339_v9, %v350_v24  ;;  %v422_v43 = vadd.f32 %v1339_v9, %v351_v25  ;;  %v322_v44 = vmul.f32 %v1332_v6, %v251_v31  ;;  %v258_v24 = vld [vmem:[%s1322_s29 + $0x98] sm:$0xff] }
  0x24   : > { %v391_v46 = vadd.f32 %v1339_v9, %v320_v29  ;;  %v392_v47 = vadd.f32 %v1339_v9, %v321_v30  ;;  %v423_v48 = vadd.f32 %v1339_v9, %v352_v34  ;;  %v323_v49 = vmul.f32 %v1332_v6, %v252_v35  ;;  %1125 = vmatpush3.bf16.msra.mxu0 %v1237_v16  ;;  %v289_v29 = vld [vmem:[%s1322_s29 + $0x190] sm:$0xff]  ;;  %v290_v34 = vld [vmem:[%s1322_s29 + $0x198] sm:$0xff] }
  0x25   : > { %1205 = vmatpush3.bf16.msra.mxu1 %v1237_v16  ;;  %v453_v51 = vmax.f32 %v1413_v33, 0.0  ;;  %v424_v52 = vadd.f32 %v1339_v9, %v353_v38  ;;  %v354_v53 = vmul.f32 %v1332_v6, %v283_v39  ;;  %v355_v54 = vmul.f32 %v1332_v6, %v284_v40  ;;  %v259_v40 = vld [vmem:[%s1322_s29 + $0xa0] sm:$0xff] }
  0x26   : > { %v454_v55 = vmax.f32 %v390_v37, 0.0  ;;  %v393_v56 = vadd.f32 %v1339_v9, %v322_v44  ;;  %v394_v57 = vadd.f32 %v1339_v9, %v323_v49  ;;  %v324_v58 = vmul.f32 %v1332_v6, %v253_v45 }
  0x27   : > { %v485_v60 = vmax.f32 %v421_v42, 0.0  ;;  %v425_v61 = vadd.f32 %v1339_v9, %v354_v53  ;;  %v426_v62 = vadd.f32 %v1339_v9, %v355_v54  ;;  %v325_v63 = vmul.f32 %v1332_v6, %v254_v50  ;;  %1127 = vmatmul.mubr.bf16.vlgmr.msra.gmra.mrb[0].mxu0 %v510_v17  ;;  %v291_v50 = vld [vmem:[%s1322_s29 + $0x1a0] sm:$0xff] }
  0x28   : > { %1159 = vmatmul.mubr.bf16.vlgmr.msra.gmra.mrb[0].mxu1 %v526_v27  ;;  %v486_v0 = vmax.f32 %v422_v43, 0.0  ;;  %v455_v1 = vmax.f32 %v391_v46, 0.0  ;;  %v456_v2 = vmax.f32 %v392_v47, 0.0  ;;  %v395_v3 = vadd.f32 %v1339_v9, %v324_v58  ;;  %1130 = vmatprep.mubr.bf16.mxu0 %v511_v28  ;;  %v260_v46 = vld [vmem:[%s1322_s29 + $0xa8] sm:$0xff] }
  0x29   : > { %1162 = vmatprep.mubr.bf16.mxu1 %v527_v32  ;;  %v487_v7 = vmax.f32 %v423_v48, 0.0  ;;  %v488_v8 = vmax.f32 %v424_v52, 0.0  ;;  %v396_v10 = vadd.f32 %v1339_v9, %v325_v63  ;;  %v356_v11 = vmul.f32 %v1332_v6, %v285_v59 }
  0x2a   : > { %v457_v14 = vmax.f32 %v393_v56, 0.0  ;;  %v458_v15 = vmax.f32 %v394_v57, 0.0  ;;  %v489_v16 = vmax.f32 %v425_v61, 0.0  ;;  %v490_v17 = vmax.f32 %v426_v62, 0.0 }
  0x2b   : > { %v459_v20 = vmax.f32 %v395_v3, 0.0  ;;  %v460_v21 = vmax.f32 %v396_v10, 0.0  ;;  %v357_v22 = vmul.f32 %v1332_v6, %v286_v4  ;;  %v326_v23 = vmul.f32 %v1332_v6, %v255_v5  ;;  %v293_v10 = vld [vmem:[%s1322_s29 + $0x1b0] sm:$0xff] }
  0x2c   : > { %v513_v25 = vpack.c.bf16 %v454_v55, %v453_v51  ;;  %v529_v26 = vpack.c.bf16 %v486_v0, %v485_v60  ;;  %v327_v27 = vmul.f32 %v1332_v6, %v256_v12  ;;  %v358_v28 = vmul.f32 %v1332_v6, %v287_v13  ;;  %v292_v51 = vld [vmem:[%s1322_s29 + $0x1a8] sm:$0xff]  ;;  %v261_v55 = vld [vmem:[%s1322_s29 + $0xb0] sm:$0xff] }
  0x2d   : > { %v514_v30 = vpack.c.bf16 %v456_v2, %v455_v1  ;;  %v427_v31 = vadd.f32 %v1339_v9, %v356_v11  ;;  %v359_v32 = vmul.f32 %v1332_v6, %v288_v18  ;;  %v328_v33 = vmul.f32 %v1332_v6, %v257_v19  ;;  %v262_v2 = vld [vmem:[%s1322_s29 + $0xb8] sm:$0xff] }
  0x2e   : > { %v530_v35 = vpack.c.bf16 %v488_v8, %v487_v7  ;;  %v515_v37 = vpack.c.bf16 %v458_v15, %v457_v14  ;;  %v531_v38 = vpack.c.bf16 %v490_v17, %v489_v16  ;;  %v329_v39 = vmul.f32 %v1332_v6, %v258_v24  ;;  %v294_v15 = vld [vmem:[%s1322_s29 + $0x1b8] sm:$0xff] }
  0x2f   : > { %v1466_v42 = vpack.c.bf16 %v460_v21, %v459_v20  ;;  %v428_v43 = vadd.f32 %v1339_v9, %v357_v22  ;;  %v397_v44 = vadd.f32 %v1339_v9, %v326_v23  ;;  %v360_v45 = vmul.f32 %v1332_v6, %v289_v29  ;;  %1131 = vmatmul.mubr.bf16.gmra.mrb[4].mxu0 %v1417_v36  ;;  %v263_v20 = vld [vmem:[%s1322_s29 + $0xc0] sm:$0xff]  ;;  %v264_v21 = vld [vmem:[%s1322_s29 + $0xc8] sm:$0xff] }
  0x30   : > { %1163 = vmatmul.mubr.bf16.gmra.mrb[4].mxu1 %v1423_v41  ;;  %v398_v47 = vadd.f32 %v1339_v9, %v327_v27  ;;  %v429_v48 = vadd.f32 %v1339_v9, %v358_v28  ;;  %v361_v49 = vmul.f32 %v1332_v6, %v290_v34  ;;  %1134 = vmatprep.mubr.bf16.mxu0 %v513_v25  ;;  %v491_v52 = vmax.f32 %v427_v31, 0.0  ;;  %v295_v25 = vld [vmem:[%s1322_s29 + $0x1c0] sm:$0xff] }
  0x31   : > { %1166 = vmatprep.mubr.bf16.mxu1 %v529_v26  ;;  %v430_v53 = vadd.f32 %v1339_v9, %v359_v32  ;;  %v399_v54 = vadd.f32 %v1339_v9, %v328_v33  ;;  %v330_v36 = vmul.f32 %v1332_v6, %v259_v40  ;;  %v400_v41 = vadd.f32 %v1339_v9, %v329_v39  ;;  %v265_v26 = vld [vmem:[%s1322_s29 + $0xd0] sm:$0xff]  ;;  %v296_v32 = vld [vmem:[%s1322_s29 + $0x1c8] sm:$0xff] }
  0x32   : > { %v431_v56 = vadd.f32 %v1339_v9, %v360_v45  ;;  %v432_v57 = vadd.f32 %v1339_v9, %v361_v49  ;;  %v331_v58 = vmul.f32 %v1332_v6, %v260_v46  ;;  %v492_v59 = vmax.f32 %v428_v43, 0.0  ;;  %v298_v45 = vld [vmem:[%s1322_s29 + $0x1d8] sm:$0xff] }
  0x33   : > { %v401_v60 = vadd.f32 %v1339_v9, %v330_v36  ;;  %v362_v61 = vmul.f32 %v1332_v6, %v291_v50  ;;  %v363_v62 = vmul.f32 %v1332_v6, %v292_v51  ;;  %v461_v63 = vmax.f32 %v397_v44, 0.0  ;;  %v267_v50 = vld [vmem:[%s1322_s29 + $0xe0] sm:$0xff]  ;;  %v268_v36 = vld [vmem:[%s1322_s29 + $0xe8] sm:$0xff] }
  0x34   : > { %v462_v0 = vmax.f32 %v398_v47, 0.0  ;;  %v402_v1 = vadd.f32 %v1339_v9, %v331_v58  ;;  %v332_v3 = vmul.f32 %v1332_v6, %v261_v55  ;;  %v493_v4 = vmax.f32 %v429_v48, 0.0  ;;  %v299_v58 = vld [vmem:[%s1322_s29 + $0x1e0] sm:$0xff] }
  0x35   : > { %v494_v5 = vmax.f32 %v430_v53, 0.0  ;;  %v433_v7 = vadd.f32 %v1339_v9, %v362_v61  ;;  %v434_v8 = vadd.f32 %v1339_v9, %v363_v62  ;;  %v463_v11 = vmax.f32 %v399_v54, 0.0 }
  0x36   : > { %v464_v12 = vmax.f32 %v400_v41, 0.0  ;;  %v495_v13 = vmax.f32 %v431_v56, 0.0  ;;  %v496_v14 = vmax.f32 %v432_v57, 0.0  ;;  %v532_v16 = vpack.c.bf16 %v492_v59, %v491_v52  ;;  %v300_v59 = vld [vmem:[%s1322_s29 + $0x1e8] sm:$0xff] }
  0x37   : > { %v465_v17 = vmax.f32 %v401_v60, 0.0  ;;  %v466_v18 = vmax.f32 %v402_v1, 0.0  ;;  %v333_v19 = vmul.f32 %v1332_v6, %v262_v2  ;;  %1135 = vmatmul.mubr.bf16.gmra.mrb[8].mxu0 %v514_v30  ;;  %v517_v22 = vpack.c.bf16 %v462_v0, %v461_v63  ;;  %v266_v30 = vld [vmem:[%s1322_s29 + $0xd8] sm:$0xff]  ;;  %v269_v0 = vld [vmem:[%s1322_s29 + $0xf0] sm:$0xff] }
  0x38   : > { %1167 = vmatmul.mubr.bf16.gmra.mrb[8].mxu1 %v530_v35  ;;  %v1501_v23 = vadd.f32 %v1339_v9, %v332_v3  ;;  %v364_v24 = vmul.f32 %v1332_v6, %v293_v10  ;;  %1138 = vmatprep.mubr.bf16.mxu0 %v515_v37  ;;  %v533_v27 = vpack.c.bf16 %v494_v5, %v493_v4  ;;  %v497_v28 = vmax.f32 %v433_v7, 0.0  ;;  %v297_v37 = vld [vmem:[%s1322_s29 + $0x1d0] sm:$0xff]  ;;  %v270_v5 = vld [vmem:[%s1322_s29 + $0xf8] sm:$0xff] }
  0x39   : > { %1170 = vmatprep.mubr.bf16.mxu1 %v531_v38  ;;  %v498_v29 = vmax.f32 %v434_v8, 0.0  ;;  %v365_v31 = vmul.f32 %v1332_v6, %v294_v15  ;;  %v1509_v33 = vpack.c.bf16 %v464_v12, %v463_v11  ;;  %v1511_v34 = vpack.c.bf16 %v496_v14, %v495_v13 }
  0x3a   : > { %v334_v35 = vmul.f32 %v1332_v6, %v263_v20  ;;  %v335_v39 = vmul.f32 %v1332_v6, %v264_v21  ;;  %v1516_v38 = vpack.c.bf16 %v466_v18, %v465_v17  ;;  %v1519_v40 = vadd.f32 %v1339_v9, %v333_v19 }
  0x3b   : > { %v366_v43 = vmul.f32 %v1332_v6, %v295_v25  ;;  %v336_v44 = vmul.f32 %v1332_v6, %v265_v26  ;;  %v467_v46 = vmax.f32 %v1501_v23, 0.0  ;;  %v1526_v47 = vadd.f32 %v1339_v9, %v364_v24 }
  0x3c   : > { %v367_v48 = vmul.f32 %v1332_v6, %v296_v32  ;;  %v337_v49 = vmul.f32 %v1332_v6, %v266_v30  ;;  %v535_v51 = vpack.c.bf16 %v498_v29, %v497_v28  ;;  %v1532_v52 = vadd.f32 %v1339_v9, %v365_v31 }
  0x3d   : > { %v407_v53 = vadd.f32 %v1339_v9, %v336_v44  ;;  %v368_v54 = vmul.f32 %v1332_v6, %v297_v37  ;;  %v1538_v55 = vadd.f32 %v1339_v9, %v334_v35  ;;  %v1541_v41 = vadd.f32 %v1339_v9, %v335_v39 }
  0x3e   : > { %v408_v56 = vadd.f32 %v1339_v9, %v337_v49  ;;  %v369_v57 = vmul.f32 %v1332_v6, %v298_v45  ;;  %v437_v60 = vadd.f32 %v1339_v9, %v366_v43  ;;  %v338_v63 = vmul.f32 %v1332_v6, %v267_v50 }
  0x3f   : > { %v471_v61 = vmax.f32 %v407_v53, 0.0  ;;  %v439_v62 = vadd.f32 %v1339_v9, %v368_v54  ;;  %1139 = vmatmul.mubr.bf16.gmra.mrb[12].mxu0 %v1466_v42  ;;  %v438_v1 = vadd.f32 %v1339_v9, %v367_v48  ;;  %v339_v4 = vmul.f32 %v1332_v6, %v268_v36  ;;  %v301_v42 = vld [vmem:[%s1322_s29 + $0x1f0] sm:$0xff] }
  0x40   : > { %1171 = vmatmul.mubr.bf16.gmra.mrb[12].mxu1 %v532_v16  ;;  %v472_v2 = vmax.f32 %v408_v56, 0.0  ;;  %v440_v3 = vadd.f32 %v1339_v9, %v369_v57  ;;  %1142 = vmatprep.mubr.bf16.mxu0 %v517_v22  ;;  %v409_v8 = vadd.f32 %v1339_v9, %v338_v63  ;;  %v370_v10 = vmul.f32 %v1332_v6, %v299_v58  ;;  %v302_v16 = vld [vmem:[%s1322_s29 + $0x1f8] sm:$0xff] }
  0x41   : > { %1174 = vmatprep.mubr.bf16.mxu1 %v533_v27  ;;  %v503_v7 = vmax.f32 %v439_v62, 0.0  ;;  %v371_v11 = vmul.f32 %v1332_v6, %v300_v59  ;;  %v410_v14 = vadd.f32 %v1339_v9, %v339_v4  ;;  %v340_v15 = vmul.f32 %v1332_v6, %v269_v0 }
  0x42   : > { %v522_v12 = vpack.c.bf16 %v472_v2, %v471_v61  ;;  %v504_v13 = vmax.f32 %v440_v3, 0.0  ;;  %v473_v17 = vmax.f32 %v409_v8, 0.0  ;;  %v441_v18 = vadd.f32 %v1339_v9, %v370_v10 }
  0x43   : > { %v442_v19 = vadd.f32 %v1339_v9, %v371_v11  ;;  %v341_v20 = vmul.f32 %v1332_v6, %v270_v5  ;;  %v474_v22 = vmax.f32 %v410_v14, 0.0  ;;  %v411_v24 = vadd.f32 %v1339_v9, %v340_v15 }
  0x44   : > { %v538_v21 = vpack.c.bf16 %v504_v13, %v503_v7  ;;  %v372_v25 = vmul.f32 %v1332_v6, %v301_v42  ;;  %v505_v26 = vmax.f32 %v441_v18, 0.0  ;;  %v373_v29 = vmul.f32 %v1332_v6, %v302_v16 }
  0x45   : > { %v506_v27 = vmax.f32 %v442_v19, 0.0  ;;  %v412_v28 = vadd.f32 %v1339_v9, %v341_v20  ;;  %v468_v31 = vmax.f32 %v1519_v40, 0.0  ;;  %v523_v32 = vpack.c.bf16 %v474_v22, %v473_v17 }
  0x46   : > { %v475_v30 = vmax.f32 %v411_v24, 0.0  ;;  %v443_v35 = vadd.f32 %v1339_v9, %v372_v25  ;;  %v499_v39 = vmax.f32 %v1526_v47, 0.0  ;;  %v444_v44 = vadd.f32 %v1339_v9, %v373_v29 }
  0x47   : > { %v539_v37 = vpack.c.bf16 %v506_v27, %v505_v26  ;;  %v476_v43 = vmax.f32 %v412_v28, 0.0  ;;  %1143 = vmatmul.mubr.bf16.gmra.mrb[16].mxu0 %v1509_v33  ;;  %v500_v45 = vmax.f32 %v1532_v52, 0.0  ;;  %v469_v6 = vmax.f32 %v1538_v55, 0.0 }
  0x48   : > { %1175 = vmatmul.mubr.bf16.gmra.mrb[16].mxu1 %v1511_v34  ;;  %v470_v40 = vmax.f32 %v1541_v41, 0.0  ;;  %v507_v48 = vmax.f32 %v443_v35, 0.0  ;;  %1146 = vmatprep.mubr.bf16.mxu0 %v1516_v38  ;;  %v501_v49 = vmax.f32 %v437_v60, 0.0  ;;  %v502_v47 = vmax.f32 %v438_v1, 0.0 }
  0x49   : > { %1178 = vmatprep.mubr.bf16.mxu1 %v535_v51  ;;  %v524_v50 = vpack.c.bf16 %v476_v43, %v475_v30  ;;  %v508_v53 = vmax.f32 %v444_v44, 0.0  ;;  %v520_v33 = vpack.c.bf16 %v468_v31, %v467_v46  ;;  %v536_v34 = vpack.c.bf16 %v500_v45, %v499_v39 }
  0x4a   : > { %v521_v54 = vpack.c.bf16 %v470_v40, %v469_v6  ;;  %v537_v52 = vpack.c.bf16 %v502_v47, %v501_v49 }
  0x4b   : > { %v540_v9 = vpack.c.bf16 %v508_v53, %v507_v48 }
  0x4f   : > { %1147 = vmatmul.mubr.bf16.gmra.mrb[20].mxu0 %v520_v33 }
  0x50   : > { %1179 = vmatmul.mubr.bf16.gmra.mrb[20].mxu1 %v536_v34  ;;  %1150 = vmatprep.mubr.bf16.mxu0 %v521_v54 }
  0x51   : > { %1182 = vmatprep.mubr.bf16.mxu1 %v537_v52 }
  0x57   : > { %1151 = vmatmul.mubr.bf16.gmra.mrb[24].mxu0 %v522_v12 }
  0x58   : > { %1183 = vmatmul.mubr.bf16.gmra.mrb[24].mxu1 %v538_v21  ;;  %1154 = vmatprep.mubr.bf16.mxu0 %v523_v32 }
  0x59   : > { %1186 = vmatprep.mubr.bf16.mxu1 %v539_v37 }
  0x5f   : > { %1155 = vmatmul.mubr.bf16.gmra.mrb[28].mxu0 %v524_v50 }
  0x60   : > { %1187 = vmatmul.mubr.bf16.gmra.mrb[28].mxu1 %v540_v9 }
  0xfa   : > { %v1128_v23 = vpop.f32.mrb[0].mxu0 }
  0xfb   : > { %v1160_v38 = vpop.f32.mrb[0].mxu1  ;;  %896 = vst [vmem:[%s1587_s24 + $0x10] sm:$0xff] %v1128_v23  ;;  %v639_v46 = vpop.f32.mrb[1].mxu0 }
  0xfc   : > { %928 = vst [vmem:[%s1587_s24 + $0x110] sm:$0xff] %v1160_v38  ;;  %v767_v51 = vpop.f32.mrb[1].mxu1  ;;  %894 = vst [vmem:[%s1587_s24] sm:$0xff] %v639_v46  ;;  %v1129_v36 = vpop.f32.mrb[2].mxu0 }
  0xfd   : > { %926 = vst [vmem:[%s1587_s24 + $0x100] sm:$0xff] %v767_v51  ;;  %v1161_v55 = vpop.f32.mrb[2].mxu1  ;;  %897 = vst [vmem:[%s1587_s24 + $0x18] sm:$0xff] %v1129_v36  ;;  %v642_v41 = vpop.f32.mrb[3].mxu0 }
  0xfe   : > { %929 = vst [vmem:[%s1587_s24 + $0x118] sm:$0xff] %v1161_v55  ;;  %v770_v56 = vpop.f32.mrb[3].mxu1  ;;  %895 = vst [vmem:[%s1587_s24 + $0x8] sm:$0xff] %v642_v41 }
  0xff   : > { %927 = vst [vmem:[%s1587_s24 + $0x108] sm:$0xff] %v770_v56 }
 0x102   : > { %v1132_v57 = vpop.f32.mrb[4].mxu0 }
 0x103   : > { %v1164_v58 = vpop.f32.mrb[4].mxu1  ;;  %900 = vst [vmem:[%s1587_s24 + $0x30] sm:$0xff] %v1132_v57  ;;  %v655_v59 = vpop.f32.mrb[5].mxu0 }
 0x104   : > { %932 = vst [vmem:[%s1587_s24 + $0x130] sm:$0xff] %v1164_v58  ;;  %v783_v60 = vpop.f32.mrb[5].mxu1  ;;  %898 = vst [vmem:[%s1587_s24 + $0x20] sm:$0xff] %v655_v59  ;;  %v1133_v61 = vpop.f32.mrb[6].mxu0 }
 0x105   : > { %930 = vst [vmem:[%s1587_s24 + $0x120] sm:$0xff] %v783_v60  ;;  %v1165_v62 = vpop.f32.mrb[6].mxu1  ;;  %901 = vst [vmem:[%s1587_s24 + $0x38] sm:$0xff] %v1133_v61  ;;  %v658_v63 = vpop.f32.mrb[7].mxu0 }
 0x106   : > { %933 = vst [vmem:[%s1587_s24 + $0x138] sm:$0xff] %v1165_v62  ;;  %v786_v0 = vpop.f32.mrb[7].mxu1  ;;  %899 = vst [vmem:[%s1587_s24 + $0x28] sm:$0xff] %v658_v63 }
 0x107   : > { %931 = vst [vmem:[%s1587_s24 + $0x128] sm:$0xff] %v786_v0 }
 0x10a   : > { %v1136_v1 = vpop.f32.mrb[8].mxu0 }
 0x10b   : > { %v1168_v2 = vpop.f32.mrb[8].mxu1  ;;  %904 = vst [vmem:[%s1587_s24 + $0x50] sm:$0xff] %v1136_v1  ;;  %v671_v3 = vpop.f32.mrb[9].mxu0 }
 0x10c   : > { %936 = vst [vmem:[%s1587_s24 + $0x150] sm:$0xff] %v1168_v2  ;;  %v799_v4 = vpop.f32.mrb[9].mxu1  ;;  %902 = vst [vmem:[%s1587_s24 + $0x40] sm:$0xff] %v671_v3  ;;  %v1137_v5 = vpop.f32.mrb[10].mxu0 }
 0x10d   : > { %934 = vst [vmem:[%s1587_s24 + $0x140] sm:$0xff] %v799_v4  ;;  %v1169_v7 = vpop.f32.mrb[10].mxu1  ;;  %905 = vst [vmem:[%s1587_s24 + $0x58] sm:$0xff] %v1137_v5  ;;  %v674_v8 = vpop.f32.mrb[11].mxu0 }
 0x10e   : > { %937 = vst [vmem:[%s1587_s24 + $0x158] sm:$0xff] %v1169_v7  ;;  %v802_v10 = vpop.f32.mrb[11].mxu1  ;;  %903 = vst [vmem:[%s1587_s24 + $0x48] sm:$0xff] %v674_v8 }
 0x10f   : > { %935 = vst [vmem:[%s1587_s24 + $0x148] sm:$0xff] %v802_v10 }
 0x112   : > { %v1140_v11 = vpop.f32.mrb[12].mxu0 }
 0x113   : > { %v1172_v42 = vpop.f32.mrb[12].mxu1  ;;  %908 = vst [vmem:[%s1587_s24 + $0x70] sm:$0xff] %v1140_v11  ;;  %v687_v12 = vpop.f32.mrb[13].mxu0 }
 0x114   : > { %940 = vst [vmem:[%s1587_s24 + $0x170] sm:$0xff] %v1172_v42  ;;  %v815_v13 = vpop.f32.mrb[13].mxu1  ;;  %906 = vst [vmem:[%s1587_s24 + $0x60] sm:$0xff] %v687_v12  ;;  %v1141_v14 = vpop.f32.mrb[14].mxu0 }
 0x115   : > { %938 = vst [vmem:[%s1587_s24 + $0x160] sm:$0xff] %v815_v13  ;;  %v1173_v15 = vpop.f32.mrb[14].mxu1  ;;  %909 = vst [vmem:[%s1587_s24 + $0x78] sm:$0xff] %v1141_v14  ;;  %v690_v16 = vpop.f32.mrb[15].mxu0 }
 0x116   : > { %941 = vst [vmem:[%s1587_s24 + $0x178] sm:$0xff] %v1173_v15  ;;  %v818_v17 = vpop.f32.mrb[15].mxu1  ;;  %907 = vst [vmem:[%s1587_s24 + $0x68] sm:$0xff] %v690_v16 }
 0x117   : > { %939 = vst [vmem:[%s1587_s24 + $0x168] sm:$0xff] %v818_v17 }
 0x11a   : > { %v1144_v18 = vpop.f32.mrb[16].mxu0 }
 0x11b   : > { %v1176_v19 = vpop.f32.mrb[16].mxu1  ;;  %912 = vst [vmem:[%s1587_s24 + $0x90] sm:$0xff] %v1144_v18  ;;  %v703_v20 = vpop.f32.mrb[17].mxu0 }
 0x11c   : > { %944 = vst [vmem:[%s1587_s24 + $0x190] sm:$0xff] %v1176_v19  ;;  %v831_v21 = vpop.f32.mrb[17].mxu1  ;;  %910 = vst [vmem:[%s1587_s24 + $0x80] sm:$0xff] %v703_v20  ;;  %v1145_v22 = vpop.f32.mrb[18].mxu0 }
 0x11d   : > { %942 = vst [vmem:[%s1587_s24 + $0x180] sm:$0xff] %v831_v21  ;;  %v1177_v24 = vpop.f32.mrb[18].mxu1  ;;  %913 = vst [vmem:[%s1587_s24 + $0x98] sm:$0xff] %v1145_v22  ;;  %v706_v25 = vpop.f32.mrb[19].mxu0 }
 0x11e   : > { %945 = vst [vmem:[%s1587_s24 + $0x198] sm:$0xff] %v1177_v24  ;;  %v834_v26 = vpop.f32.mrb[19].mxu1  ;;  %911 = vst [vmem:[%s1587_s24 + $0x88] sm:$0xff] %v706_v25 }
 0x11f   : > { %943 = vst [vmem:[%s1587_s24 + $0x188] sm:$0xff] %v834_v26 }
 0x122   : > { %v1148_v27 = vpop.f32.mrb[20].mxu0 }
 0x123   : > { %v1180_v28 = vpop.f32.mrb[20].mxu1  ;;  %916 = vst [vmem:[%s1587_s24 + $0xb0] sm:$0xff] %v1148_v27  ;;  %v719_v29 = vpop.f32.mrb[21].mxu0 }
 0x124   : > { %948 = vst [vmem:[%s1587_s24 + $0x1b0] sm:$0xff] %v1180_v28  ;;  %v847_v31 = vpop.f32.mrb[21].mxu1  ;;  %914 = vst [vmem:[%s1587_s24 + $0xa0] sm:$0xff] %v719_v29  ;;  %v1149_v32 = vpop.f32.mrb[22].mxu0 }
 0x125   : > { %946 = vst [vmem:[%s1587_s24 + $0x1a0] sm:$0xff] %v847_v31  ;;  %v1181_v30 = vpop.f32.mrb[22].mxu1  ;;  %917 = vst [vmem:[%s1587_s24 + $0xb8] sm:$0xff] %v1149_v32  ;;  %v722_v35 = vpop.f32.mrb[23].mxu0 }
 0x126   : > { %949 = vst [vmem:[%s1587_s24 + $0x1b8] sm:$0xff] %v1181_v30  ;;  %v850_v39 = vpop.f32.mrb[23].mxu1  ;;  %915 = vst [vmem:[%s1587_s24 + $0xa8] sm:$0xff] %v722_v35 }
 0x127   : > { %947 = vst [vmem:[%s1587_s24 + $0x1a8] sm:$0xff] %v850_v39 }
 0x12a   : > { %v1152_v37 = vpop.f32.mrb[24].mxu0 }
 0x12b   : > { %v1184_v43 = vpop.f32.mrb[24].mxu1  ;;  %920 = vst [vmem:[%s1587_s24 + $0xd0] sm:$0xff] %v1152_v37  ;;  %v735_v44 = vpop.f32.mrb[25].mxu0 }
 0x12c   : > { %952 = vst [vmem:[%s1587_s24 + $0x1d0] sm:$0xff] %v1184_v43  ;;  %v863_v45 = vpop.f32.mrb[25].mxu1  ;;  %918 = vst [vmem:[%s1587_s24 + $0xc0] sm:$0xff] %v735_v44  ;;  %v1153_v6 = vpop.f32.mrb[26].mxu0 }
 0x12d   : > { %950 = vst [vmem:[%s1587_s24 + $0x1c0] sm:$0xff] %v863_v45  ;;  %v1185_v40 = vpop.f32.mrb[26].mxu1  ;;  %921 = vst [vmem:[%s1587_s24 + $0xd8] sm:$0xff] %v1153_v6  ;;  %v738_v48 = vpop.f32.mrb[27].mxu0 }
 0x12e   : > { %953 = vst [vmem:[%s1587_s24 + $0x1d8] sm:$0xff] %v1185_v40  ;;  %v866_v49 = vpop.f32.mrb[27].mxu1  ;;  %919 = vst [vmem:[%s1587_s24 + $0xc8] sm:$0xff] %v738_v48 }
 0x12f   : > { %951 = vst [vmem:[%s1587_s24 + $0x1c8] sm:$0xff] %v866_v49 }
 0x132   : > { %v1156_v47 = vpop.f32.mrb[28].mxu0 }
 0x133   : > { %v1188_v50 = vpop.f32.mrb[28].mxu1  ;;  %924 = vst [vmem:[%s1587_s24 + $0xf0] sm:$0xff] %v1156_v47  ;;  %v751_v53 = vpop.f32.mrb[29].mxu0 }
 0x134   : > { %956 = vst [vmem:[%s1587_s24 + $0x1f0] sm:$0xff] %v1188_v50  ;;  %v879_v9 = vpop.f32.mrb[29].mxu1  ;;  %922 = vst [vmem:[%s1587_s24 + $0xe0] sm:$0xff] %v751_v53  ;;  %v1157_v33 = vpop.f32.mrb[30].mxu0 }
 0x135   : > { %954 = vst [vmem:[%s1587_s24 + $0x1e0] sm:$0xff] %v879_v9  ;;  %v1189_v34 = vpop.f32.mrb[30].mxu1  ;;  %925 = vst [vmem:[%s1587_s24 + $0xf8] sm:$0xff] %v1157_v33  ;;  %v754_v54 = vpop.f32.mrb[31].mxu0 }
 0x136   : > { %957 = vst [vmem:[%s1587_s24 + $0x1f8] sm:$0xff] %v1189_v34  ;;  %v882_v52 = vpop.f32.mrb[31].mxu1  ;;  %923 = vst [vmem:[%s1587_s24 + $0xe8] sm:$0xff] %v754_v54 }
 0x137   : > { %955 = vst [vmem:[%s1587_s24 + $0x1e8] sm:$0xff] %v882_v52 }
 0x138 PF: > { %s14_s17 = sadd.s32 1, %s1260_s17   ;;  %s1667_s15 = smov %s1256_s16 }
 0x139   : > { %p11_p5 = scmp.ge.s32.totalorder %s14_s17, 6   ;;  %s1668_s16 = smov %s1670_s18 }
 0x13b   :  { %13 = sbr.rel (!%p11_p5) target bundleno = 2 (0x2), region = 69 }

// kernel: generator_forward.16
= control target key start
LH: loop header
LB: loop body
LE: loop exit
PB: predicated region body
PF: predicated region fallthrough
CT: control target
= control target key end

     0   :  { %s1879_s0 = inlined_call_operand.vmem [shape: f32[2048,128], index: 0, kind: input, shape index: {}]   ;;  %s1880_s1 = inlined_call_operand.vmem [shape: f32[1,128], index: 1, kind: input, shape index: {}]   ;;  %s1881_s2 = inlined_call_operand.vmem [shape: f32[1,128], index: 2, kind: input, shape index: {}]   ;;  %s1882_s3 = inlined_call_operand.vmem [shape: f32[1,128], index: 3, kind: output, shape index: {0}]   ;;  %s1883_s4 = inlined_call_operand.vmem [shape: f32[1,128], index: 4, kind: output, shape index: {1}]  }
   0x1   :  { %v16_v0 = vld [vmem:[%s1879_s0] sm:$0xff]  ;;  %v17_v1 = vld [vmem:[%s1879_s0 + $0x8] sm:$0xff]  ;;  %v18_v2 = vld [vmem:[%s1879_s0 + $0x10] sm:$0xff] }
   0x2   :  { %v19_v3 = vld [vmem:[%s1879_s0 + $0x18] sm:$0xff]  ;;  %v272_v4 = vadd.f32 %v17_v1, %v16_v0  ;;  %v534_v5 = vmul.f32 %v16_v0, %v16_v0  ;;  %v535_v6 = vmul.f32 %v17_v1, %v17_v1  ;;  %v536_v7 = vmul.f32 %v18_v2, %v18_v2  ;;  %v20_v8 = vld [vmem:[%s1879_s0 + $0x20] sm:$0xff]  ;;  %v21_v12 = vld [vmem:[%s1879_s0 + $0x28] sm:$0xff] }
   0x3   :  { %v537_v10 = vmul.f32 %v19_v3, %v19_v3  ;;  %v538_v14 = vmul.f32 %v20_v8, %v20_v8  ;;  %v22_v16 = vld [vmem:[%s1879_s0 + $0x30] sm:$0xff]  ;;  %v539_v18 = vmul.f32 %v21_v12, %v21_v12  ;;  %v23_v20 = vld [vmem:[%s1879_s0 + $0x38] sm:$0xff]  ;;  %v24_v24 = vld [vmem:[%s1879_s0 + $0x40] sm:$0xff] }
   0x4   :  { %v273_v9 = vadd.f32 %v272_v4, %v18_v2  ;;  %v790_v11 = vadd.f32 %v535_v6, %v534_v5  ;;  %v540_v22 = vmul.f32 %v22_v16, %v22_v16  ;;  %v541_v26 = vmul.f32 %v23_v20, %v23_v20  ;;  %v25_v28 = vld [vmem:[%s1879_s0 + $0x48] sm:$0xff]  ;;  %v26_v32 = vld [vmem:[%s1879_s0 + $0x50] sm:$0xff]  ;;  %v27_v36 = vld [vmem:[%s1879_s0 + $0x58] sm:$0xff] }
   0x5   :  { %v542_v30 = vmul.f32 %v24_v24, %v24_v24  ;;  %v543_v34 = vmul.f32 %v25_v28, %v25_v28  ;;  %v544_v38 = vmul.f32 %v26_v32, %v26_v32  ;;  %v28_v40 = vld [vmem:[%s1879_s0 + $0x60] sm:$0xff]  ;;  %v545_v42 = vmul.f32 %v27_v36, %v27_v36  ;;  %v29_v44 = vld [vmem:[%s1879_s0 + $0x68] sm:$0xff]  ;;  %v30_v48 = vld [vmem:[%s1879_s0 + $0x70] sm:$0xff] }
   0x6   :  { %v274_v13 = vadd.f32 %v273_v9, %v19_v3  ;;  %v791_v15 = vadd.f32 %v790_v11, %v536_v7  ;;  %v546_v46 = vmul.f32 %v28_v40, %v28_v40  ;;  %v547_v50 = vmul.f32 %v29_v44, %v29_v44  ;;  %v31_v52 = vld [vmem:[%s1879_s0 + $0x78] sm:$0xff]  ;;  %v32_v56 = vld [vmem:[%s1879_s0 + $0x80] sm:$0xff]  ;;  %v33_v60 = vld [vmem:[%s1879_s0 + $0x88] sm:$0xff] }
   0x7   :  { %v548_v54 = vmul.f32 %v30_v48, %v30_v48  ;;  %v549_v58 = vmul.f32 %v31_v52, %v31_v52  ;;  %v550_v62 = vmul.f32 %v32_v56, %v32_v56  ;;  %v34_v0 = vld [vmem:[%s1879_s0 + $0x90] sm:$0xff]  ;;  %v551_v2 = vmul.f32 %v33_v60, %v33_v60  ;;  %v35_v4 = vld [vmem:[%s1879_s0 + $0x98] sm:$0xff] }
   0x8   :  { %v275_v17 = vadd.f32 %v274_v13, %v20_v8  ;;  %v792_v19 = vadd.f32 %v791_v15, %v537_v10  ;;  %v552_v6 = vmul.f32 %v34_v0, %v34_v0  ;;  %v36_v8 = vld [vmem:[%s1879_s0 + $0xa0] sm:$0xff]  ;;  %v553_v10 = vmul.f32 %v35_v4, %v35_v4 }
   0xa   :  { %v276_v21 = vadd.f32 %v275_v17, %v21_v12  ;;  %v793_v23 = vadd.f32 %v792_v19, %v538_v14  ;;  %v37_v12 = vld [vmem:[%s1879_s0 + $0xa8] sm:$0xff]  ;;  %v554_v14 = vmul.f32 %v36_v8, %v36_v8 }
   0xc   :  { %v277_v25 = vadd.f32 %v276_v21, %v22_v16  ;;  %v794_v27 = vadd.f32 %v793_v23, %v539_v18  ;;  %v38_v16 = vld [vmem:[%s1879_s0 + $0xb0] sm:$0xff]  ;;  %v555_v18 = vmul.f32 %v37_v12, %v37_v12 }
   0xe   :  { %v278_v29 = vadd.f32 %v277_v25, %v23_v20  ;;  %v795_v31 = vadd.f32 %v794_v27, %v540_v22  ;;  %v39_v20 = vld [vmem:[%s1879_s0 + $0xb8] sm:$0xff]  ;;  %v556_v22 = vmul.f32 %v38_v16, %v38_v16 }
  0x10   :  { %v279_v33 = vadd.f32 %v278_v29, %v24_v24  ;;  %v796_v35 = vadd.f32 %v795_v31, %v541_v26  ;;  %v40_v24 = vld [vmem:[%s1879_s0 + $0xc0] sm:$0xff]  ;;  %v557_v26 = vmul.f32 %v39_v20, %v39_v20 }
  0x12   :  { %v280_v37 = vadd.f32 %v279_v33, %v25_v28  ;;  %v797_v39 = vadd.f32 %v796_v35, %v542_v30  ;;  %v41_v28 = vld [vmem:[%s1879_s0 + $0xc8] sm:$0xff]  ;;  %v558_v30 = vmul.f32 %v40_v24, %v40_v24 }
  0x14   :  { %v281_v41 = vadd.f32 %v280_v37, %v26_v32  ;;  %v798_v43 = vadd.f32 %v797_v39, %v543_v34  ;;  %v42_v32 = vld [vmem:[%s1879_s0 + $0xd0] sm:$0xff]  ;;  %v559_v34 = vmul.f32 %v41_v28, %v41_v28 }
  0x16   :  { %v282_v45 = vadd.f32 %v281_v41, %v27_v36  ;;  %v799_v47 = vadd.f32 %v798_v43, %v544_v38  ;;  %v43_v36 = vld [vmem:[%s1879_s0 + $0xd8] sm:$0xff]  ;;  %v560_v38 = vmul.f32 %v42_v32, %v42_v32 }
  0x18   :  { %v283_v49 = vadd.f32 %v282_v45, %v28_v40  ;;  %v800_v51 = vadd.f32 %v799_v47, %v545_v42  ;;  %v44_v40 = vld [vmem:[%s1879_s0 + $0xe0] sm:$0xff]  ;;  %v561_v42 = vmul.f32 %v43_v36, %v43_v36 }
  0x1a   :  { %v284_v53 = vadd.f32 %v283_v49, %v29_v44  ;;  %v801_v55 = vadd.f32 %v800_v51, %v546_v46  ;;  %v45_v44 = vld [vmem:[%s1879_s0 + $0xe8] sm:$0xff]  ;;  %v562_v46 = vmul.f32 %v44_v40, %v44_v40 }
  0x1c   :  { %v285_v57 = vadd.f32 %v284_v53, %v30_v48  ;;  %v802_v59 = vadd.f32 %v801_v55, %v547_v50  ;;  %v46_v48 = vld [vmem:[%s1879_s0 + $0xf0] sm:$0xff]  ;;  %v563_v50 = vmul.f32 %v45_v44, %v45_v44 }
  0x1e   :  { %v286_v61 = vadd.f32 %v285_v57, %v31_v52  ;;  %v803_v63 = vadd.f32 %v802_v59, %v548_v54  ;;  %v47_v52 = vld [vmem:[%s1879_s0 + $0xf8] sm:$0xff]  ;;  %v564_v54 = vmul.f32 %v46_v48, %v46_v48 }
  0x20   :  { %v287_v1 = vadd.f32 %v286_v61, %v32_v56  ;;  %v804_v3 = vadd.f32 %v803_v63, %v549_v58  ;;  %v48_v56 = vld [vmem:[%s1879_s0 + $0x100] sm:$0xff]  ;;  %v565_v58 = vmul.f32 %v47_v52, %v47_v52 }
  0x22   :  { %v288_v5 = vadd.f32 %v287_v1, %v33_v60  ;;  %v805_v7 = vadd.f32 %v804_v3, %v550_v62  ;;  %v49_v60 = vld [vmem:[%s1879_s0 + $0x108] sm:$0xff]  ;;  %v566_v62 = vmul.f32 %v48_v56, %v48_v56 }
  0x24   :  { %v289_v9 = vadd.f32 %v288_v5, %v34_v0  ;;  %v806_v11 = vadd.f32 %v805_v7, %v551_v2  ;;  %v50_v0 = vld [vmem:[%s1879_s0 + $0x110] sm:$0xff]  ;;  %v567_v2 = vmul.f32 %v49_v60, %v49_v60 }
  0x26   :  { %v290_v13 = vadd.f32 %v289_v9, %v35_v4  ;;  %v807_v15 = vadd.f32 %v806_v11, %v552_v6  ;;  %v51_v4 = vld [vmem:[%s1879_s0 + $0x118] sm:$0xff]  ;;  %v568_v6 = vmul.f32 %v50_v0, %v50_v0 }
  0x28   :  { %v291_v17 = vadd.f32 %v290_v13, %v36_v8  ;;  %v808_v19 = vadd.f32 %v807_v15, %v553_v10  ;;  %v52_v8 = vld [vmem:[%s1879_s0 + $0x120] sm:$0xff]  ;;  %v569_v10 = vmul.f32 %v51_v4, %v51_v4 }
  0x2a   :  { %v292_v21 = vadd.f32 %v291_v17, %v37_v12  ;;  %v809_v23 = vadd.f32 %v808_v19, %v554_v14  ;;  %v53_v12 = vld [vmem:[%s1879_s0 + $0x128] sm:$0xff]  ;;  %v570_v14 = vmul.f32 %v52_v8, %v52_v8 }
  0x2c   :  { %v293_v25 = vadd.f32 %v292_v21, %v38_v16  ;;  %v810_v27 = vadd.f32 %v809_v23, %v555_v18  ;;  %v54_v16 = vld [vmem:[%s1879_s0 + $0x130] sm:$0xff]  ;;  %v571_v18 = vmul.f32 %v53_v12, %v53_v12 }
  0x2e   :  { %v294_v29 = vadd.f32 %v293_v25, %v39_v20  ;;  %v811_v31 = vadd.f32 %v810_v27, %v556_v22  ;;  %v55_v20 = vld [vmem:[%s1879_s0 + $0x138] sm:$0xff]  ;;  %v572_v22 = vmul.f32 %v54_v16, %v54_v16 }
  0x30   :  { %v295_v33 = vadd.f32 %v294_v29, %v40_v24  ;;  %v812_v35 = vadd.f32 %v811_v31, %v557_v26  ;;  %v56_v24 = vld [vmem:[%s1879_s0 + $0x140] sm:$0xff]  ;;  %v573_v26 = vmul.f32 %v55_v20, %v55_v20 }
  0x32   :  { %v296_v37 = vadd.f32 %v295_v33, %v41_v28  ;;  %v813_v39 = vadd.f32 %v812_v35, %v558_v30  ;;  %v57_v28 = vld [vmem:[%s1879_s0 + $0x148] sm:$0xff]  ;;  %v574_v30 = vmul.f32 %v56_v24, %v56_v24 }
  0x34   :  { %v297_v41 = vadd.f32 %v296_v37, %v42_v32  ;;  %v814_v43 = vadd.f32 %v813_v39, %v559_v34  ;;  %v58_v32 = vld [vmem:[%s1879_s0 + $0x150] sm:$0xff]  ;;  %v575_v34 = vmul.f32 %v57_v28, %v57_v28 }
  0x36   :  { %v298_v45 = vadd.f32 %v297_v41, %v43_v36  ;;  %v815_v47 = vadd.f32 %v814_v43, %v560_v38  ;;  %v59_v36 = vld [vmem:[%s1879_s0 + $0x158] sm:$0xff]  ;;  %v576_v38 = vmul.f32 %v58_v32, %v58_v32 }
  0x38   :  { %v299_v49 = vadd.f32 %v298_v45, %v44_v40  ;;  %v816_v51 = vadd.f32 %v815_v47, %v561_v42  ;;  %v60_v40 = vld [vmem:[%s1879_s0 + $0x160] sm:$0xff]  ;;  %v577_v42 = vmul.f32 %v59_v36, %v59_v36 }
  0x3a   :  { %v300_v53 = vadd.f32 %v299_v49, %v45_v44  ;;  %v817_v55 = vadd.f32 %v816_v51, %v562_v46  ;;  %v61_v44 = vld [vmem:[%s1879_s0 + $0x168] sm:$0xff]  ;;  %v578_v46 = vmul.f32 %v60_v40, %v60_v40 }
  0x3c   :  { %v301_v57 = vadd.f32 %v300_v53, %v46_v48  ;;  %v818_v59 = vadd.f32 %v817_v55, %v563_v50  ;;  %v62_v48 = vld [vmem:[%s1879_s0 + $0x170] sm:$0xff]  ;;  %v579_v50 = vmul.f32 %v61_v44, %v61_v44 }
  0x3e   :  { %v302_v61 = vadd.f32 %v301_v57, %v47_v52  ;;  %v819_v63 = vadd.f32 %v818_v59, %v564_v54  ;;  %v63_v52 = vld [vmem:[%s1879_s0 + $0x178] sm:$0xff]  ;;  %v580_v54 = vmul.f32 %v62_v48, %v62_v48 }
  0x40   :  { %v303_v1 = vadd.f32 %v302_v61, %v48_v56  ;;  %v820_v3 = vadd.f32 %v819_v63, %v565_v58  ;;  %v64_v56 = vld [vmem:[%s1879_s0 + $0x180] sm:$0xff]  ;;  %v581_v58 = vmul.f32 %v63_v52, %v63_v52 }
  0x42   :  { %v304_v5 = vadd.f32 %v303_v1, %v49_v60  ;;  %v821_v7 = vadd.f32 %v820_v3, %v566_v62  ;;  %v65_v60 = vld [vmem:[%s1879_s0 + $0x188] sm:$0xff]  ;;  %v582_v62 = vmul.f32 %v64_v56, %v64_v56 }
  0x44   :  { %v305_v9 = vadd.f32 %v304_v5, %v50_v0  ;;  %v822_v11 = vadd.f32 %v821_v7, %v567_v2  ;;  %v66_v0 = vld [vmem:[%s1879_s0 + $0x190] sm:$0xff]  ;;  %v583_v2 = vmul.f32 %v65_v60, %v65_v60 }
  0x46   :  { %v306_v13 = vadd.f32 %v305_v9, %v51_v4  ;;  %v823_v15 = vadd.f32 %v822_v11, %v568_v6  ;;  %v67_v4 = vld [vmem:[%s1879_s0 + $0x198] sm:$0xff]  ;;  %v584_v6 = vmul.f32 %v66_v0, %v66_v0 }
  0x48   :  { %v307_v17 = vadd.f32 %v306_v13, %v52_v8  ;;  %v824_v19 = vadd.f32 %v823_v15, %v569_v10  ;;  %v68_v8 = vld [vmem:[%s1879_s0 + $0x1a0] sm:$0xff]  ;;  %v585_v10 = vmul.f32 %v67_v4, %v67_v4 }
  0x4a   :  { %v308_v21 = vadd.f32 %v307_v17, %v53_v12  ;;  %v825_v23 = vadd.f32 %v824_v19, %v570_v14  ;;  %v69_v12 = vld [vmem:[%s1879_s0 + $0x1a8] sm:$0xff]  ;;  %v586_v14 = vmul.f32 %v68_v8, %v68_v8 }
  0x4c   :  { %v309_v25 = vadd.f32 %v308_v21, %v54_v16  ;;  %v826_v27 = vadd.f32 %v825_v23, %v571_v18  ;;  %v70_v16 = vld [vmem:[%s1879_s0 + $0x1b0] sm:$0xff]  ;;  %v587_v18 = vmul.f32 %v69_v12, %v69_v12 }
  0x4e   :  { %v310_v29 = vadd.f32 %v309_v25, %v55_v20  ;;  %v827_v31 = vadd.f32 %v826_v27, %v572_v22  ;;  %v71_v20 = vld [vmem:[%s1879_s0 + $0x1b8] sm:$0xff]  ;;  %v588_v22 = vmul.f32 %v70_v16, %v70_v16 }
  0x50   :  { %v311_v33 = vadd.f32 %v310_v29, %v56_v24  ;;  %v828_v35 = vadd.f32 %v827_v31, %v573_v26  ;;  %v72_v24 = vld [vmem:[%s1879_s0 + $0x1c0] sm:$0xff]  ;;  %v589_v26 = vmul.f32 %v71_v20, %v71_v20 }
  0x52   :  { %v312_v37 = vadd.f32 %v311_v33, %v57_v28  ;;  %v829_v39 = vadd.f32 %v828_v35, %v574_v30  ;;  %v73_v28 = vld [vmem:[%s1879_s0 + $0x1c8] sm:$0xff]  ;;  %v590_v30 = vmul.f32 %v72_v24, %v72_v24 }
  0x54   :  { %v313_v41 = vadd.f32 %v312_v37, %v58_v32  ;;  %v830_v43 = vadd.f32 %v829_v39, %v575_v34  ;;  %v74_v32 = vld [vmem:[%s1879_s0 + $0x1d0] sm:$0xff]  ;;  %v591_v34 = vmul.f32 %v73_v28, %v73_v28 }
  0x56   :  { %v314_v45 = vadd.f32 %v313_v41, %v59_v36  ;;  %v831_v47 = vadd.f32 %v830_v43, %v576_v38  ;;  %v75_v36 = vld [vmem:[%s1879_s0 + $0x1d8] sm:$0xff]  ;;  %v592_v38 = vmul.f32 %v74_v32, %v74_v32 }
  0x58   :  { %v315_v49 = vadd.f32 %v314_v45, %v60_v40  ;;  %v832_v51 = vadd.f32 %v831_v47, %v577_v42  ;;  %v76_v40 = vld [vmem:[%s1879_s0 + $0x1e0] sm:$0xff]  ;;  %v593_v42 = vmul.f32 %v75_v36, %v75_v36 }
  0x5a   :  { %v316_v53 = vadd.f32 %v315_v49, %v61_v44  ;;  %v833_v55 = vadd.f32 %v832_v51, %v578_v46  ;;  %v77_v44 = vld [vmem:[%s1879_s0 + $0x1e8] sm:$0xff]  ;;  %v594_v46 = vmul.f32 %v76_v40, %v76_v40 }
  0x5c   :  { %v317_v57 = vadd.f32 %v316_v53, %v62_v48  ;;  %v834_v59 = vadd.f32 %v833_v55, %v579_v50  ;;  %v78_v48 = vld [vmem:[%s1879_s0 + $0x1f0] sm:$0xff]  ;;  %v595_v50 = vmul.f32 %v77_v44, %v77_v44 }
  0x5e   :  { %v318_v61 = vadd.f32 %v317_v57, %v63_v52  ;;  %v835_v63 = vadd.f32 %v834_v59, %v580_v54  ;;  %v79_v52 = vld [vmem:[%s1879_s0 + $0x1f8] sm:$0xff]  ;;  %v596_v54 = vmul.f32 %v78_v48, %v78_v48 }
  0x60   :  { %v319_v1 = vadd.f32 %v318_v61, %v64_v56  ;;  %v836_v3 = vadd.f32 %v835_v63, %v581_v58  ;;  %v80_v56 = vld [vmem:[%s1879_s0 + $0x200] sm:$0xff]  ;;  %v597_v58 = vmul.f32 %v79_v52, %v79_v52 }
  0x62   :  { %v320_v5 = vadd.f32 %v319_v1, %v65_v60  ;;  %v837_v7 = vadd.f32 %v836_v3, %v582_v62  ;;  %v81_v60 = vld [vmem:[%s1879_s0 + $0x208] sm:$0xff]  ;;  %v598_v62 = vmul.f32 %v80_v56, %v80_v56 }
  0x64   :  { %v321_v9 = vadd.f32 %v320_v5, %v66_v0  ;;  %v838_v11 = vadd.f32 %v837_v7, %v583_v2  ;;  %v82_v0 = vld [vmem:[%s1879_s0 + $0x210] sm:$0xff]  ;;  %v599_v2 = vmul.f32 %v81_v60, %v81_v60 }
  0x66   :  { %v322_v13 = vadd.f32 %v321_v9, %v67_v4  ;;  %v839_v15 = vadd.f32 %v838_v11, %v584_v6  ;;  %v83_v4 = vld [vmem:[%s1879_s0 + $0x218] sm:$0xff]  ;;  %v600_v6 = vmul.f32 %v82_v0, %v82_v0 }
  0x68   :  { %v323_v17 = vadd.f32 %v322_v13, %v68_v8  ;;  %v840_v19 = vadd.f32 %v839_v15, %v585_v10  ;;  %v84_v8 = vld [vmem:[%s1879_s0 + $0x220] sm:$0xff]  ;;  %v601_v10 = vmul.f32 %v83_v4, %v83_v4 }
  0x6a   :  { %v324_v21 = vadd.f32 %v323_v17, %v69_v12  ;;  %v841_v23 = vadd.f32 %v840_v19, %v586_v14  ;;  %v85_v12 = vld [vmem:[%s1879_s0 + $0x228] sm:$0xff]  ;;  %v602_v14 = vmul.f32 %v84_v8, %v84_v8 }
  0x6c   :  { %v325_v25 = vadd.f32 %v324_v21, %v70_v16  ;;  %v842_v27 = vadd.f32 %v841_v23, %v587_v18  ;;  %v86_v16 = vld [vmem:[%s1879_s0 + $0x230] sm:$0xff]  ;;  %v603_v18 = vmul.f32 %v85_v12, %v85_v12 }
  0x6e   :  { %v326_v29 = vadd.f32 %v325_v25, %v71_v20  ;;  %v843_v31 = vadd.f32 %v842_v27, %v588_v22  ;;  %v87_v20 = vld [vmem:[%s1879_s0 + $0x238] sm:$0xff]  ;;  %v604_v22 = vmul.f32 %v86_v16, %v86_v16 }
  0x70   :  { %v327_v33 = vadd.f32 %v326_v29, %v72_v24  ;;  %v844_v35 = vadd.f32 %v843_v31, %v589_v26  ;;  %v88_v24 = vld [vmem:[%s1879_s0 + $0x240] sm:$0xff]  ;;  %v605_v26 = vmul.f32 %v87_v20, %v87_v20 }
  0x72   :  { %v328_v37 = vadd.f32 %v327_v33, %v73_v28  ;;  %v845_v39 = vadd.f32 %v844_v35, %v590_v30  ;;  %v89_v28 = vld [vmem:[%s1879_s0 + $0x248] sm:$0xff]  ;;  %v606_v30 = vmul.f32 %v88_v24, %v88_v24 }
  0x74   :  { %v329_v41 = vadd.f32 %v328_v37, %v74_v32  ;;  %v846_v43 = vadd.f32 %v845_v39, %v591_v34  ;;  %v90_v32 = vld [vmem:[%s1879_s0 + $0x250] sm:$0xff]  ;;  %v607_v34 = vmul.f32 %v89_v28, %v89_v28 }
  0x76   :  { %v330_v45 = vadd.f32 %v329_v41, %v75_v36  ;;  %v847_v47 = vadd.f32 %v846_v43, %v592_v38  ;;  %v91_v36 = vld [vmem:[%s1879_s0 + $0x258] sm:$0xff]  ;;  %v608_v38 = vmul.f32 %v90_v32, %v90_v32 }
  0x78   :  { %v331_v49 = vadd.f32 %v330_v45, %v76_v40  ;;  %v848_v51 = vadd.f32 %v847_v47, %v593_v42  ;;  %v92_v40 = vld [vmem:[%s1879_s0 + $0x260] sm:$0xff]  ;;  %v609_v42 = vmul.f32 %v91_v36, %v91_v36 }
  0x7a   :  { %v332_v53 = vadd.f32 %v331_v49, %v77_v44  ;;  %v849_v55 = vadd.f32 %v848_v51, %v594_v46  ;;  %v93_v44 = vld [vmem:[%s1879_s0 + $0x268] sm:$0xff]  ;;  %v610_v46 = vmul.f32 %v92_v40, %v92_v40 }
  0x7c   :  { %v333_v57 = vadd.f32 %v332_v53, %v78_v48  ;;  %v850_v59 = vadd.f32 %v849_v55, %v595_v50  ;;  %v94_v48 = vld [vmem:[%s1879_s0 + $0x270] sm:$0xff]  ;;  %v611_v50 = vmul.f32 %v93_v44, %v93_v44 }
  0x7e   :  { %v334_v61 = vadd.f32 %v333_v57, %v79_v52  ;;  %v851_v63 = vadd.f32 %v850_v59, %v596_v54  ;;  %v95_v52 = vld [vmem:[%s1879_s0 + $0x278] sm:$0xff]  ;;  %v612_v54 = vmul.f32 %v94_v48, %v94_v48 }
  0x80   :  { %v335_v1 = vadd.f32 %v334_v61, %v80_v56  ;;  %v852_v3 = vadd.f32 %v851_v63, %v597_v58  ;;  %v96_v56 = vld [vmem:[%s1879_s0 + $0x280] sm:$0xff]  ;;  %v613_v58 = vmul.f32 %v95_v52, %v95_v52 }
  0x82   :  { %v336_v5 = vadd.f32 %v335_v1, %v81_v60  ;;  %v853_v7 = vadd.f32 %v852_v3, %v598_v62  ;;  %v97_v60 = vld [vmem:[%s1879_s0 + $0x288] sm:$0xff]  ;;  %v614_v62 = vmul.f32 %v96_v56, %v96_v56 }
  0x84   :  { %v337_v9 = vadd.f32 %v336_v5, %v82_v0  ;;  %v854_v11 = vadd.f32 %v853_v7, %v599_v2  ;;  %v98_v0 = vld [vmem:[%s1879_s0 + $0x290] sm:$0xff]  ;;  %v615_v2 = vmul.f32 %v97_v60, %v97_v60 }
  0x86   :  { %v338_v13 = vadd.f32 %v337_v9, %v83_v4  ;;  %v855_v15 = vadd.f32 %v854_v11, %v600_v6  ;;  %v99_v4 = vld [vmem:[%s1879_s0 + $0x298] sm:$0xff]  ;;  %v616_v6 = vmul.f32 %v98_v0, %v98_v0 }
  0x88   :  { %v339_v17 = vadd.f32 %v338_v13, %v84_v8  ;;  %v856_v19 = vadd.f32 %v855_v15, %v601_v10  ;;  %v100_v8 = vld [vmem:[%s1879_s0 + $0x2a0] sm:$0xff]  ;;  %v617_v10 = vmul.f32 %v99_v4, %v99_v4 }
  0x8a   :  { %v340_v21 = vadd.f32 %v339_v17, %v85_v12  ;;  %v857_v23 = vadd.f32 %v856_v19, %v602_v14  ;;  %v101_v12 = vld [vmem:[%s1879_s0 + $0x2a8] sm:$0xff]  ;;  %v618_v14 = vmul.f32 %v100_v8, %v100_v8 }
  0x8c   :  { %v341_v25 = vadd.f32 %v340_v21, %v86_v16  ;;  %v858_v27 = vadd.f32 %v857_v23, %v603_v18  ;;  %v102_v16 = vld [vmem:[%s1879_s0 + $0x2b0] sm:$0xff]  ;;  %v619_v18 = vmul.f32 %v101_v12, %v101_v12 }
  0x8e   :  { %v342_v29 = vadd.f32 %v341_v25, %v87_v20  ;;  %v859_v31 = vadd.f32 %v858_v27, %v604_v22  ;;  %v103_v20 = vld [vmem:[%s1879_s0 + $0x2b8] sm:$0xff]  ;;  %v620_v22 = vmul.f32 %v102_v16, %v102_v16 }
  0x90   :  { %v343_v33 = vadd.f32 %v342_v29, %v88_v24  ;;  %v860_v35 = vadd.f32 %v859_v31, %v605_v26  ;;  %v104_v24 = vld [vmem:[%s1879_s0 + $0x2c0] sm:$0xff]  ;;  %v621_v26 = vmul.f32 %v103_v20, %v103_v20 }
  0x92   :  { %v344_v37 = vadd.f32 %v343_v33, %v89_v28  ;;  %v861_v39 = vadd.f32 %v860_v35, %v606_v30  ;;  %v105_v28 = vld [vmem:[%s1879_s0 + $0x2c8] sm:$0xff]  ;;  %v622_v30 = vmul.f32 %v104_v24, %v104_v24 }
  0x94   :  { %v345_v41 = vadd.f32 %v344_v37, %v90_v32  ;;  %v862_v43 = vadd.f32 %v861_v39, %v607_v34  ;;  %v106_v32 = vld [vmem:[%s1879_s0 + $0x2d0] sm:$0xff]  ;;  %v623_v34 = vmul.f32 %v105_v28, %v105_v28 }
  0x96   :  { %v346_v45 = vadd.f32 %v345_v41, %v91_v36  ;;  %v863_v47 = vadd.f32 %v862_v43, %v608_v38  ;;  %v107_v36 = vld [vmem:[%s1879_s0 + $0x2d8] sm:$0xff]  ;;  %v624_v38 = vmul.f32 %v106_v32, %v106_v32 }
  0x98   :  { %v347_v49 = vadd.f32 %v346_v45, %v92_v40  ;;  %v864_v51 = vadd.f32 %v863_v47, %v609_v42  ;;  %v108_v40 = vld [vmem:[%s1879_s0 + $0x2e0] sm:$0xff]  ;;  %v625_v42 = vmul.f32 %v107_v36, %v107_v36 }
  0x9a   :  { %v348_v53 = vadd.f32 %v347_v49, %v93_v44  ;;  %v865_v55 = vadd.f32 %v864_v51, %v610_v46  ;;  %v109_v44 = vld [vmem:[%s1879_s0 + $0x2e8] sm:$0xff]  ;;  %v626_v46 = vmul.f32 %v108_v40, %v108_v40 }
  0x9c   :  { %v349_v57 = vadd.f32 %v348_v53, %v94_v48  ;;  %v866_v59 = vadd.f32 %v865_v55, %v611_v50  ;;  %v110_v48 = vld [vmem:[%s1879_s0 + $0x2f0] sm:$0xff]  ;;  %v627_v50 = vmul.f32 %v109_v44, %v109_v44 }
  0x9e   :  { %v350_v61 = vadd.f32 %v349_v57, %v95_v52  ;;  %v867_v63 = vadd.f32 %v866_v59, %v612_v54  ;;  %v111_v52 = vld [vmem:[%s1879_s0 + $0x2f8] sm:$0xff]  ;;  %v628_v54 = vmul.f32 %v110_v48, %v110_v48 }
  0xa0   :  { %v351_v1 = vadd.f32 %v350_v61, %v96_v56  ;;  %v868_v3 = vadd.f32 %v867_v63, %v613_v58  ;;  %v112_v56 = vld [vmem:[%s1879_s0 + $0x300] sm:$0xff]  ;;  %v629_v58 = vmul.f32 %v111_v52, %v111_v52 }
  0xa2   :  { %v352_v5 = vadd.f32 %v351_v1, %v97_v60  ;;  %v869_v7 = vadd.f32 %v868_v3, %v614_v62  ;;  %v113_v60 = vld [vmem:[%s1879_s0 + $0x308] sm:$0xff]  ;;  %v630_v62 = vmul.f32 %v112_v56, %v112_v56 }
  0xa4   :  { %v353_v9 = vadd.f32 %v352_v5, %v98_v0  ;;  %v870_v11 = vadd.f32 %v869_v7, %v615_v2  ;;  %v114_v0 = vld [vmem:[%s1879_s0 + $0x310] sm:$0xff]  ;;  %v631_v2 = vmul.f32 %v113_v60, %v113_v60 }
  0xa6   :  { %v354_v13 = vadd.f32 %v353_v9, %v99_v4  ;;  %v871_v15 = vadd.f32 %v870_v11, %v616_v6  ;;  %v115_v4 = vld [vmem:[%s1879_s0 + $0x318] sm:$0xff]  ;;  %v632_v6 = vmul.f32 %v114_v0, %v114_v0 }
  0xa8   :  { %v355_v17 = vadd.f32 %v354_v13, %v100_v8  ;;  %v872_v19 = vadd.f32 %v871_v15, %v617_v10  ;;  %v116_v8 = vld [vmem:[%s1879_s0 + $0x320] sm:$0xff]  ;;  %v633_v10 = vmul.f32 %v115_v4, %v115_v4 }
  0xaa   :  { %v356_v21 = vadd.f32 %v355_v17, %v101_v12  ;;  %v873_v23 = vadd.f32 %v872_v19, %v618_v14  ;;  %v117_v12 = vld [vmem:[%s1879_s0 + $0x328] sm:$0xff]  ;;  %v634_v14 = vmul.f32 %v116_v8, %v116_v8 }
  0xac   :  { %v357_v25 = vadd.f32 %v356_v21, %v102_v16  ;;  %v874_v27 = vadd.f32 %v873_v23, %v619_v18  ;;  %v118_v16 = vld [vmem:[%s1879_s0 + $0x330] sm:$0xff]  ;;  %v635_v18 = vmul.f32 %v117_v12, %v117_v12 }
  0xae   :  { %v358_v29 = vadd.f32 %v357_v25, %v103_v20  ;;  %v875_v31 = vadd.f32 %v874_v27, %v620_v22  ;;  %v119_v20 = vld [vmem:[%s1879_s0 + $0x338] sm:$0xff]  ;;  %v636_v22 = vmul.f32 %v118_v16, %v118_v16 }
  0xb0   :  { %v359_v33 = vadd.f32 %v358_v29, %v104_v24  ;;  %v876_v35 = vadd.f32 %v875_v31, %v621_v26  ;;  %v120_v24 = vld [vmem:[%s1879_s0 + $0x340] sm:$0xff]  ;;  %v637_v26 = vmul.f32 %v119_v20, %v119_v20 }
  0xb2   :  { %v360_v37 = vadd.f32 %v359_v33, %v105_v28  ;;  %v877_v39 = vadd.f32 %v876_v35, %v622_v30  ;;  %v121_v28 = vld [vmem:[%s1879_s0 + $0x348] sm:$0xff]  ;;  %v638_v30 = vmul.f32 %v120_v24, %v120_v24 }
  0xb4   :  { %v361_v41 = vadd.f32 %v360_v37, %v106_v32  ;;  %v878_v43 = vadd.f32 %v877_v39, %v623_v34  ;;  %v122_v32 = vld [vmem:[%s1879_s0 + $0x350] sm:$0xff]  ;;  %v639_v34 = vmul.f32 %v121_v28, %v121_v28 }
  0xb6   :  { %v362_v45 = vadd.f32 %v361_v41, %v107_v36  ;;  %v879_v47 = vadd.f32 %v878_v43, %v624_v38  ;;  %v123_v36 = vld [vmem:[%s1879_s0 + $0x358] sm:$0xff]  ;;  %v640_v38 = vmul.f32 %v122_v32, %v122_v32 }
  0xb8   :  { %v363_v49 = vadd.f32 %v362_v45, %v108_v40  ;;  %v880_v51 = vadd.f32 %v879_v47, %v625_v42  ;;  %v124_v40 = vld [vmem:[%s1879_s0 + $0x360] sm:$0xff]  ;;  %v641_v42 = vmul.f32 %v123_v36, %v123_v36 }
  0xba   :  { %v364_v53 = vadd.f32 %v363_v49, %v109_v44  ;;  %v881_v55 = vadd.f32 %v880_v51, %v626_v46  ;;  %v125_v44 = vld [vmem:[%s1879_s0 + $0x368] sm:$0xff]  ;;  %v642_v46 = vmul.f32 %v124_v40, %v124_v40 }
  0xbc   :  { %v365_v57 = vadd.f32 %v364_v53, %v110_v48  ;;  %v882_v59 = vadd.f32 %v881_v55, %v627_v50  ;;  %v126_v48 = vld [vmem:[%s1879_s0 + $0x370] sm:$0xff]  ;;  %v643_v50 = vmul.f32 %v125_v44, %v125_v44 }
  0xbe   :  { %v366_v61 = vadd.f32 %v365_v57, %v111_v52  ;;  %v883_v63 = vadd.f32 %v882_v59, %v628_v54  ;;  %v127_v52 = vld [vmem:[%s1879_s0 + $0x378] sm:$0xff]  ;;  %v644_v54 = vmul.f32 %v126_v48, %v126_v48 }
  0xc0   :  { %v367_v1 = vadd.f32 %v366_v61, %v112_v56  ;;  %v884_v3 = vadd.f32 %v883_v63, %v629_v58  ;;  %v128_v56 = vld [vmem:[%s1879_s0 + $0x380] sm:$0xff]  ;;  %v645_v58 = vmul.f32 %v127_v52, %v127_v52 }
  0xc2   :  { %v368_v5 = vadd.f32 %v367_v1, %v113_v60  ;;  %v885_v7 = vadd.f32 %v884_v3, %v630_v62  ;;  %v129_v60 = vld [vmem:[%s1879_s0 + $0x388] sm:$0xff]  ;;  %v646_v62 = vmul.f32 %v128_v56, %v128_v56 }
  0xc4   :  { %v369_v9 = vadd.f32 %v368_v5, %v114_v0  ;;  %v886_v11 = vadd.f32 %v885_v7, %v631_v2  ;;  %v130_v0 = vld [vmem:[%s1879_s0 + $0x390] sm:$0xff]  ;;  %v647_v2 = vmul.f32 %v129_v60, %v129_v60 }
  0xc6   :  { %v370_v13 = vadd.f32 %v369_v9, %v115_v4  ;;  %v887_v15 = vadd.f32 %v886_v11, %v632_v6  ;;  %v131_v4 = vld [vmem:[%s1879_s0 + $0x398] sm:$0xff]  ;;  %v648_v6 = vmul.f32 %v130_v0, %v130_v0 }
  0xc8   :  { %v371_v17 = vadd.f32 %v370_v13, %v116_v8  ;;  %v888_v19 = vadd.f32 %v887_v15, %v633_v10  ;;  %v132_v8 = vld [vmem:[%s1879_s0 + $0x3a0] sm:$0xff]  ;;  %v649_v10 = vmul.f32 %v131_v4, %v131_v4 }
  0xca   :  { %v372_v21 = vadd.f32 %v371_v17, %v117_v12  ;;  %v889_v23 = vadd.f32 %v888_v19, %v634_v14  ;;  %v133_v12 = vld [vmem:[%s1879_s0 + $0x3a8] sm:$0xff]  ;;  %v650_v14 = vmul.f32 %v132_v8, %v132_v8 }
  0xcc   :  { %v373_v25 = vadd.f32 %v372_v21, %v118_v16  ;;  %v890_v27 = vadd.f32 %v889_v23, %v635_v18  ;;  %v134_v16 = vld [vmem:[%s1879_s0 + $0x3b0] sm:$0xff]  ;;  %v651_v18 = vmul.f32 %v133_v12, %v133_v12 }
  0xce   :  { %v374_v29 = vadd.f32 %v373_v25, %v119_v20  ;;  %v891_v31 = vadd.f32 %v890_v27, %v636_v22  ;;  %v135_v20 = vld [vmem:[%s1879_s0 + $0x3b8] sm:$0xff]  ;;  %v652_v22 = vmul.f32 %v134_v16, %v134_v16 }
  0xd0   :  { %v375_v33 = vadd.f32 %v374_v29, %v120_v24  ;;  %v892_v35 = vadd.f32 %v891_v31, %v637_v26  ;;  %v136_v24 = vld [vmem:[%s1879_s0 + $0x3c0] sm:$0xff]  ;;  %v653_v26 = vmul.f32 %v135_v20, %v135_v20 }
  0xd2   :  { %v376_v37 = vadd.f32 %v375_v33, %v121_v28  ;;  %v893_v39 = vadd.f32 %v892_v35, %v638_v30  ;;  %v137_v28 = vld [vmem:[%s1879_s0 + $0x3c8] sm:$0xff]  ;;  %v654_v30 = vmul.f32 %v136_v24, %v136_v24 }
  0xd4   :  { %v377_v41 = vadd.f32 %v376_v37, %v122_v32  ;;  %v894_v43 = vadd.f32 %v893_v39, %v639_v34  ;;  %v138_v32 = vld [vmem:[%s1879_s0 + $0x3d0] sm:$0xff]  ;;  %v655_v34 = vmul.f32 %v137_v28, %v137_v28 }
  0xd6   :  { %v378_v45 = vadd.f32 %v377_v41, %v123_v36  ;;  %v895_v47 = vadd.f32 %v894_v43, %v640_v38  ;;  %v139_v36 = vld [vmem:[%s1879_s0 + $0x3d8] sm:$0xff]  ;;  %v656_v38 = vmul.f32 %v138_v32, %v138_v32 }
  0xd8   :  { %v379_v49 = vadd.f32 %v378_v45, %v124_v40  ;;  %v896_v51 = vadd.f32 %v895_v47, %v641_v42  ;;  %v140_v40 = vld [vmem:[%s1879_s0 + $0x3e0] sm:$0xff]  ;;  %v657_v42 = vmul.f32 %v139_v36, %v139_v36 }
  0xda   :  { %v380_v53 = vadd.f32 %v379_v49, %v125_v44  ;;  %v897_v55 = vadd.f32 %v896_v51, %v642_v46  ;;  %v141_v44 = vld [vmem:[%s1879_s0 + $0x3e8] sm:$0xff]  ;;  %v658_v46 = vmul.f32 %v140_v40, %v140_v40 }
  0xdc   :  { %v381_v57 = vadd.f32 %v380_v53, %v126_v48  ;;  %v898_v59 = vadd.f32 %v897_v55, %v643_v50  ;;  %v142_v48 = vld [vmem:[%s1879_s0 + $0x3f0] sm:$0xff]  ;;  %v659_v50 = vmul.f32 %v141_v44, %v141_v44 }
  0xde   :  { %v382_v61 = vadd.f32 %v381_v57, %v127_v52  ;;  %v899_v63 = vadd.f32 %v898_v59, %v644_v54  ;;  %v143_v52 = vld [vmem:[%s1879_s0 + $0x3f8] sm:$0xff]  ;;  %v660_v54 = vmul.f32 %v142_v48, %v142_v48 }
  0xe0   :  { %v383_v1 = vadd.f32 %v382_v61, %v128_v56  ;;  %v900_v3 = vadd.f32 %v899_v63, %v645_v58  ;;  %v144_v56 = vld [vmem:[%s1879_s0 + $0x400] sm:$0xff]  ;;  %v661_v58 = vmul.f32 %v143_v52, %v143_v52 }
  0xe2   :  { %v384_v5 = vadd.f32 %v383_v1, %v129_v60  ;;  %v901_v7 = vadd.f32 %v900_v3, %v646_v62  ;;  %v145_v60 = vld [vmem:[%s1879_s0 + $0x408] sm:$0xff]  ;;  %v662_v62 = vmul.f32 %v144_v56, %v144_v56 }
  0xe4   :  { %v385_v9 = vadd.f32 %v384_v5, %v130_v0  ;;  %v902_v11 = vadd.f32 %v901_v7, %v647_v2  ;;  %v146_v0 = vld [vmem:[%s1879_s0 + $0x410] sm:$0xff]  ;;  %v663_v2 = vmul.f32 %v145_v60, %v145_v60 }
  0xe6   :  { %v386_v13 = vadd.f32 %v385_v9, %v131_v4  ;;  %v903_v15 = vadd.f32 %v902_v11, %v648_v6  ;;  %v147_v4 = vld [vmem:[%s1879_s0 + $0x418] sm:$0xff]  ;;  %v664_v6 = vmul.f32 %v146_v0, %v146_v0 }
  0xe8   :  { %v387_v17 = vadd.f32 %v386_v13, %v132_v8  ;;  %v904_v19 = vadd.f32 %v903_v15, %v649_v10  ;;  %v148_v8 = vld [vmem:[%s1879_s0 + $0x420] sm:$0xff]  ;;  %v665_v10 = vmul.f32 %v147_v4, %v147_v4 }
  0xea   :  { %v388_v21 = vadd.f32 %v387_v17, %v133_v12  ;;  %v905_v23 = vadd.f32 %v904_v19, %v650_v14  ;;  %v149_v12 = vld [vmem:[%s1879_s0 + $0x428] sm:$0xff]  ;;  %v666_v14 = vmul.f32 %v148_v8, %v148_v8 }
  0xec   :  { %v389_v25 = vadd.f32 %v388_v21, %v134_v16  ;;  %v906_v27 = vadd.f32 %v905_v23, %v651_v18  ;;  %v150_v16 = vld [vmem:[%s1879_s0 + $0x430] sm:$0xff]  ;;  %v667_v18 = vmul.f32 %v149_v12, %v149_v12 }
  0xee   :  { %v390_v29 = vadd.f32 %v389_v25, %v135_v20  ;;  %v907_v31 = vadd.f32 %v906_v27, %v652_v22  ;;  %v151_v20 = vld [vmem:[%s1879_s0 + $0x438] sm:$0xff]  ;;  %v668_v22 = vmul.f32 %v150_v16, %v150_v16 }
  0xf0   :  { %v391_v33 = vadd.f32 %v390_v29, %v136_v24  ;;  %v908_v35 = vadd.f32 %v907_v31, %v653_v26  ;;  %v152_v24 = vld [vmem:[%s1879_s0 + $0x440] sm:$0xff]  ;;  %v669_v26 = vmul.f32 %v151_v20, %v151_v20 }
  0xf2   :  { %v392_v37 = vadd.f32 %v391_v33, %v137_v28  ;;  %v909_v39 = vadd.f32 %v908_v35, %v654_v30  ;;  %v153_v28 = vld [vmem:[%s1879_s0 + $0x448] sm:$0xff]  ;;  %v670_v30 = vmul.f32 %v152_v24, %v152_v24 }
  0xf4   :  { %v393_v41 = vadd.f32 %v392_v37, %v138_v32  ;;  %v910_v43 = vadd.f32 %v909_v39, %v655_v34  ;;  %v154_v32 = vld [vmem:[%s1879_s0 + $0x450] sm:$0xff]  ;;  %v671_v34 = vmul.f32 %v153_v28, %v153_v28 }
  0xf6   :  { %v394_v45 = vadd.f32 %v393_v41, %v139_v36  ;;  %v911_v47 = vadd.f32 %v910_v43, %v656_v38  ;;  %v155_v36 = vld [vmem:[%s1879_s0 + $0x458] sm:$0xff]  ;;  %v672_v38 = vmul.f32 %v154_v32, %v154_v32 }
  0xf8   :  { %v395_v49 = vadd.f32 %v394_v45, %v140_v40  ;;  %v912_v51 = vadd.f32 %v911_v47, %v657_v42  ;;  %v156_v40 = vld [vmem:[%s1879_s0 + $0x460] sm:$0xff]  ;;  %v673_v42 = vmul.f32 %v155_v36, %v155_v36 }
  0xfa   :  { %v396_v53 = vadd.f32 %v395_v49, %v141_v44  ;;  %v913_v55 = vadd.f32 %v912_v51, %v658_v46  ;;  %v157_v44 = vld [vmem:[%s1879_s0 + $0x468] sm:$0xff]  ;;  %v674_v46 = vmul.f32 %v156_v40, %v156_v40 }
  0xfc   :  { %v397_v57 = vadd.f32 %v396_v53, %v142_v48  ;;  %v914_v59 = vadd.f32 %v913_v55, %v659_v50  ;;  %v158_v48 = vld [vmem:[%s1879_s0 + $0x470] sm:$0xff]  ;;  %v675_v50 = vmul.f32 %v157_v44, %v157_v44 }
  0xfe   :  { %v398_v61 = vadd.f32 %v397_v57, %v143_v52  ;;  %v915_v63 = vadd.f32 %v914_v59, %v660_v54  ;;  %v159_v52 = vld [vmem:[%s1879_s0 + $0x478] sm:$0xff]  ;;  %v676_v54 = vmul.f32 %v158_v48, %v158_v48 }
 0x100   :  { %v399_v1 = vadd.f32 %v398_v61, %v144_v56  ;;  %v916_v3 = vadd.f32 %v915_v63, %v661_v58  ;;  %v160_v56 = vld [vmem:[%s1879_s0 + $0x480] sm:$0xff]  ;;  %v677_v58 = vmul.f32 %v159_v52, %v159_v52 }
 0x102   :  { %v400_v5 = vadd.f32 %v399_v1, %v145_v60  ;;  %v917_v7 = vadd.f32 %v916_v3, %v662_v62  ;;  %v161_v60 = vld [vmem:[%s1879_s0 + $0x488] sm:$0xff]  ;;  %v678_v62 = vmul.f32 %v160_v56, %v160_v56 }
 0x104   :  { %v401_v9 = vadd.f32 %v400_v5, %v146_v0  ;;  %v918_v11 = vadd.f32 %v917_v7, %v663_v2  ;;  %v162_v0 = vld [vmem:[%s1879_s0 + $0x490] sm:$0xff]  ;;  %v679_v2 = vmul.f32 %v161_v60, %v161_v60 }
 0x106   :  { %v402_v13 = vadd.f32 %v401_v9, %v147_v4  ;;  %v919_v15 = vadd.f32 %v918_v11, %v664_v6  ;;  %v163_v4 = vld [vmem:[%s1879_s0 + $0x498] sm:$0xff]  ;;  %v680_v6 = vmul.f32 %v162_v0, %v162_v0 }
 0x108   :  { %v403_v17 = vadd.f32 %v402_v13, %v148_v8  ;;  %v920_v19 = vadd.f32 %v919_v15, %v665_v10  ;;  %v164_v8 = vld [vmem:[%s1879_s0 + $0x4a0] sm:$0xff]  ;;  %v681_v10 = vmul.f32 %v163_v4, %v163_v4 }
 0x10a   :  { %v404_v21 = vadd.f32 %v403_v17, %v149_v12  ;;  %v921_v23 = vadd.f32 %v920_v19, %v666_v14  ;;  %v165_v12 = vld [vmem:[%s1879_s0 + $0x4a8] sm:$0xff]  ;;  %v682_v14 = vmul.f32 %v164_v8, %v164_v8 }
 0x10c   :  { %v405_v25 = vadd.f32 %v404_v21, %v150_v16  ;;  %v922_v27 = vadd.f32 %v921_v23, %v667_v18  ;;  %v166_v16 = vld [vmem:[%s1879_s0 + $0x4b0] sm:$0xff]  ;;  %v683_v18 = vmul.f32 %v165_v12, %v165_v12 }
 0x10e   :  { %v406_v29 = vadd.f32 %v405_v25, %v151_v20  ;;  %v923_v31 = vadd.f32 %v922_v27, %v668_v22  ;;  %v167_v20 = vld [vmem:[%s1879_s0 + $0x4b8] sm:$0xff]  ;;  %v684_v22 = vmul.f32 %v166_v16, %v166_v16 }
 0x110   :  { %v407_v33 = vadd.f32 %v406_v29, %v152_v24  ;;  %v924_v35 = vadd.f32 %v923_v31, %v669_v26  ;;  %v168_v24 = vld [vmem:[%s1879_s0 + $0x4c0] sm:$0xff]  ;;  %v685_v26 = vmul.f32 %v167_v20, %v167_v20 }
 0x112   :  { %v408_v37 = vadd.f32 %v407_v33, %v153_v28  ;;  %v925_v39 = vadd.f32 %v924_v35, %v670_v30  ;;  %v169_v28 = vld [vmem:[%s1879_s0 + $0x4c8] sm:$0xff]  ;;  %v686_v30 = vmul.f32 %v168_v24, %v168_v24 }
 0x114   :  { %v409_v41 = vadd.f32 %v408_v37, %v154_v32  ;;  %v926_v43 = vadd.f32 %v925_v39, %v671_v34  ;;  %v170_v32 = vld [vmem:[%s1879_s0 + $0x4d0] sm:$0xff]  ;;  %v687_v34 = vmul.f32 %v169_v28, %v169_v28 }
 0x116   :  { %v410_v45 = vadd.f32 %v409_v41, %v155_v36  ;;  %v927_v47 = vadd.f32 %v926_v43, %v672_v38  ;;  %v171_v36 = vld [vmem:[%s1879_s0 + $0x4d8] sm:$0xff]  ;;  %v688_v38 = vmul.f32 %v170_v32, %v170_v32 }
 0x118   :  { %v411_v49 = vadd.f32 %v410_v45, %v156_v40  ;;  %v928_v51 = vadd.f32 %v927_v47, %v673_v42  ;;  %v172_v40 = vld [vmem:[%s1879_s0 + $0x4e0] sm:$0xff]  ;;  %v689_v42 = vmul.f32 %v171_v36, %v171_v36 }
 0x11a   :  { %v412_v53 = vadd.f32 %v411_v49, %v157_v44  ;;  %v929_v55 = vadd.f32 %v928_v51, %v674_v46  ;;  %v173_v44 = vld [vmem:[%s1879_s0 + $0x4e8] sm:$0xff]  ;;  %v690_v46 = vmul.f32 %v172_v40, %v172_v40 }
 0x11c   :  { %v413_v57 = vadd.f32 %v412_v53, %v158_v48  ;;  %v930_v59 = vadd.f32 %v929_v55, %v675_v50  ;;  %v174_v48 = vld [vmem:[%s1879_s0 + $0x4f0] sm:$0xff]  ;;  %v691_v50 = vmul.f32 %v173_v44, %v173_v44 }
 0x11e   :  { %v414_v61 = vadd.f32 %v413_v57, %v159_v52  ;;  %v931_v63 = vadd.f32 %v930_v59, %v676_v54  ;;  %v175_v52 = vld [vmem:[%s1879_s0 + $0x4f8] sm:$0xff]  ;;  %v692_v54 = vmul.f32 %v174_v48, %v174_v48 }
 0x120   :  { %v415_v1 = vadd.f32 %v414_v61, %v160_v56  ;;  %v932_v3 = vadd.f32 %v931_v63, %v677_v58  ;;  %v176_v56 = vld [vmem:[%s1879_s0 + $0x500] sm:$0xff]  ;;  %v693_v58 = vmul.f32 %v175_v52, %v175_v52 }
 0x122   :  { %v416_v5 = vadd.f32 %v415_v1, %v161_v60  ;;  %v933_v7 = vadd.f32 %v932_v3, %v678_v62  ;;  %v177_v60 = vld [vmem:[%s1879_s0 + $0x508] sm:$0xff]  ;;  %v694_v62 = vmul.f32 %v176_v56, %v176_v56 }
 0x124   :  { %v417_v9 = vadd.f32 %v416_v5, %v162_v0  ;;  %v934_v11 = vadd.f32 %v933_v7, %v679_v2  ;;  %v178_v0 = vld [vmem:[%s1879_s0 + $0x510] sm:$0xff]  ;;  %v695_v2 = vmul.f32 %v177_v60, %v177_v60 }
 0x126   :  { %v418_v13 = vadd.f32 %v417_v9, %v163_v4  ;;  %v935_v15 = vadd.f32 %v934_v11, %v680_v6  ;;  %v179_v4 = vld [vmem:[%s1879_s0 + $0x518] sm:$0xff]  ;;  %v696_v6 = vmul.f32 %v178_v0, %v178_v0 }
 0x128   :  { %v419_v17 = vadd.f32 %v418_v13, %v164_v8  ;;  %v936_v19 = vadd.f32 %v935_v15, %v681_v10  ;;  %v180_v8 = vld [vmem:[%s1879_s0 + $0x520] sm:$0xff]  ;;  %v697_v10 = vmul.f32 %v179_v4, %v179_v4 }
 0x12a   :  { %v420_v21 = vadd.f32 %v419_v17, %v165_v12  ;;  %v937_v23 = vadd.f32 %v936_v19, %v682_v14  ;;  %v181_v12 = vld [vmem:[%s1879_s0 + $0x528] sm:$0xff]  ;;  %v698_v14 = vmul.f32 %v180_v8, %v180_v8 }
 0x12c   :  { %v421_v25 = vadd.f32 %v420_v21, %v166_v16  ;;  %v938_v27 = vadd.f32 %v937_v23, %v683_v18  ;;  %v182_v16 = vld [vmem:[%s1879_s0 + $0x530] sm:$0xff]  ;;  %v699_v18 = vmul.f32 %v181_v12, %v181_v12 }
 0x12e   :  { %v422_v29 = vadd.f32 %v421_v25, %v167_v20  ;;  %v939_v31 = vadd.f32 %v938_v27, %v684_v22  ;;  %v183_v20 = vld [vmem:[%s1879_s0 + $0x538] sm:$0xff]  ;;  %v700_v22 = vmul.f32 %v182_v16, %v182_v16 }
 0x130   :  { %v423_v33 = vadd.f32 %v422_v29, %v168_v24  ;;  %v940_v35 = vadd.f32 %v939_v31, %v685_v26  ;;  %v184_v24 = vld [vmem:[%s1879_s0 + $0x540] sm:$0xff]  ;;  %v701_v26 = vmul.f32 %v183_v20, %v183_v20 }
 0x132   :  { %v424_v37 = vadd.f32 %v423_v33, %v169_v28  ;;  %v941_v39 = vadd.f32 %v940_v35, %v686_v30  ;;  %v185_v28 = vld [vmem:[%s1879_s0 + $0x548] sm:$0xff]  ;;  %v702_v30 = vmul.f32 %v184_v24, %v184_v24 }
 0x134   :  { %v425_v41 = vadd.f32 %v424_v37, %v170_v32  ;;  %v942_v43 = vadd.f32 %v941_v39, %v687_v34  ;;  %v186_v32 = vld [vmem:[%s1879_s0 + $0x550] sm:$0xff]  ;;  %v703_v34 = vmul.f32 %v185_v28, %v185_v28 }
 0x136   :  { %v426_v45 = vadd.f32 %v425_v41, %v171_v36  ;;  %v943_v47 = vadd.f32 %v942_v43, %v688_v38  ;;  %v187_v36 = vld [vmem:[%s1879_s0 + $0x558] sm:$0xff]  ;;  %v704_v38 = vmul.f32 %v186_v32, %v186_v32 }
 0x138   :  { %v427_v49 = vadd.f32 %v426_v45, %v172_v40  ;;  %v944_v51 = vadd.f32 %v943_v47, %v689_v42  ;;  %v188_v40 = vld [vmem:[%s1879_s0 + $0x560] sm:$0xff]  ;;  %v705_v42 = vmul.f32 %v187_v36, %v187_v36 }
 0x13a   :  { %v428_v53 = vadd.f32 %v427_v49, %v173_v44  ;;  %v945_v55 = vadd.f32 %v944_v51, %v690_v46  ;;  %v189_v44 = vld [vmem:[%s1879_s0 + $0x568] sm:$0xff]  ;;  %v706_v46 = vmul.f32 %v188_v40, %v188_v40 }
 0x13c   :  { %v429_v57 = vadd.f32 %v428_v53, %v174_v48  ;;  %v946_v59 = vadd.f32 %v945_v55, %v691_v50  ;;  %v190_v48 = vld [vmem:[%s1879_s0 + $0x570] sm:$0xff]  ;;  %v707_v50 = vmul.f32 %v189_v44, %v189_v44 }
 0x13e   :  { %v430_v61 = vadd.f32 %v429_v57, %v175_v52  ;;  %v947_v63 = vadd.f32 %v946_v59, %v692_v54  ;;  %v191_v52 = vld [vmem:[%s1879_s0 + $0x578] sm:$0xff]  ;;  %v708_v54 = vmul.f32 %v190_v48, %v190_v48 }
 0x140   :  { %v431_v1 = vadd.f32 %v430_v61, %v176_v56  ;;  %v948_v3 = vadd.f32 %v947_v63, %v693_v58  ;;  %v192_v56 = vld [vmem:[%s1879_s0 + $0x580] sm:$0xff]  ;;  %v709_v58 = vmul.f32 %v191_v52, %v191_v52 }
 0x142   :  { %v432_v5 = vadd.f32 %v431_v1, %v177_v60  ;;  %v949_v7 = vadd.f32 %v948_v3, %v694_v62  ;;  %v193_v60 = vld [vmem:[%s1879_s0 + $0x588] sm:$0xff]  ;;  %v710_v62 = vmul.f32 %v192_v56, %v192_v56 }
 0x144   :  { %v433_v9 = vadd.f32 %v432_v5, %v178_v0  ;;  %v950_v11 = vadd.f32 %v949_v7, %v695_v2  ;;  %v194_v0 = vld [vmem:[%s1879_s0 + $0x590] sm:$0xff]  ;;  %v711_v2 = vmul.f32 %v193_v60, %v193_v60 }
 0x146   :  { %v434_v13 = vadd.f32 %v433_v9, %v179_v4  ;;  %v951_v15 = vadd.f32 %v950_v11, %v696_v6  ;;  %v195_v4 = vld [vmem:[%s1879_s0 + $0x598] sm:$0xff]  ;;  %v712_v6 = vmul.f32 %v194_v0, %v194_v0 }
 0x148   :  { %v435_v17 = vadd.f32 %v434_v13, %v180_v8  ;;  %v952_v19 = vadd.f32 %v951_v15, %v697_v10  ;;  %v196_v8 = vld [vmem:[%s1879_s0 + $0x5a0] sm:$0xff]  ;;  %v713_v10 = vmul.f32 %v195_v4, %v195_v4 }
 0x14a   :  { %v436_v21 = vadd.f32 %v435_v17, %v181_v12  ;;  %v953_v23 = vadd.f32 %v952_v19, %v698_v14  ;;  %v197_v12 = vld [vmem:[%s1879_s0 + $0x5a8] sm:$0xff]  ;;  %v714_v14 = vmul.f32 %v196_v8, %v196_v8 }
 0x14c   :  { %v437_v25 = vadd.f32 %v436_v21, %v182_v16  ;;  %v954_v27 = vadd.f32 %v953_v23, %v699_v18  ;;  %v198_v16 = vld [vmem:[%s1879_s0 + $0x5b0] sm:$0xff]  ;;  %v715_v18 = vmul.f32 %v197_v12, %v197_v12 }
 0x14e   :  { %v438_v29 = vadd.f32 %v437_v25, %v183_v20  ;;  %v955_v31 = vadd.f32 %v954_v27, %v700_v22  ;;  %v199_v20 = vld [vmem:[%s1879_s0 + $0x5b8] sm:$0xff]  ;;  %v716_v22 = vmul.f32 %v198_v16, %v198_v16 }
 0x150   :  { %v439_v33 = vadd.f32 %v438_v29, %v184_v24  ;;  %v956_v35 = vadd.f32 %v955_v31, %v701_v26  ;;  %v200_v24 = vld [vmem:[%s1879_s0 + $0x5c0] sm:$0xff]  ;;  %v717_v26 = vmul.f32 %v199_v20, %v199_v20 }
 0x152   :  { %v440_v37 = vadd.f32 %v439_v33, %v185_v28  ;;  %v957_v39 = vadd.f32 %v956_v35, %v702_v30  ;;  %v201_v28 = vld [vmem:[%s1879_s0 + $0x5c8] sm:$0xff]  ;;  %v718_v30 = vmul.f32 %v200_v24, %v200_v24 }
 0x154   :  { %v441_v41 = vadd.f32 %v440_v37, %v186_v32  ;;  %v958_v43 = vadd.f32 %v957_v39, %v703_v34  ;;  %v202_v32 = vld [vmem:[%s1879_s0 + $0x5d0] sm:$0xff]  ;;  %v719_v34 = vmul.f32 %v201_v28, %v201_v28 }
 0x156   :  { %v442_v45 = vadd.f32 %v441_v41, %v187_v36  ;;  %v959_v47 = vadd.f32 %v958_v43, %v704_v38  ;;  %v203_v36 = vld [vmem:[%s1879_s0 + $0x5d8] sm:$0xff]  ;;  %v720_v38 = vmul.f32 %v202_v32, %v202_v32 }
 0x158   :  { %v443_v49 = vadd.f32 %v442_v45, %v188_v40  ;;  %v960_v51 = vadd.f32 %v959_v47, %v705_v42  ;;  %v204_v40 = vld [vmem:[%s1879_s0 + $0x5e0] sm:$0xff]  ;;  %v721_v42 = vmul.f32 %v203_v36, %v203_v36 }
 0x15a   :  { %v444_v53 = vadd.f32 %v443_v49, %v189_v44  ;;  %v961_v55 = vadd.f32 %v960_v51, %v706_v46  ;;  %v205_v44 = vld [vmem:[%s1879_s0 + $0x5e8] sm:$0xff]  ;;  %v722_v46 = vmul.f32 %v204_v40, %v204_v40 }
 0x15c   :  { %v445_v57 = vadd.f32 %v444_v53, %v190_v48  ;;  %v962_v59 = vadd.f32 %v961_v55, %v707_v50  ;;  %v206_v48 = vld [vmem:[%s1879_s0 + $0x5f0] sm:$0xff]  ;;  %v723_v50 = vmul.f32 %v205_v44, %v205_v44 }
 0x15e   :  { %v446_v61 = vadd.f32 %v445_v57, %v191_v52  ;;  %v963_v63 = vadd.f32 %v962_v59, %v708_v54  ;;  %v207_v52 = vld [vmem:[%s1879_s0 + $0x5f8] sm:$0xff]  ;;  %v724_v54 = vmul.f32 %v206_v48, %v206_v48 }
 0x160   :  { %v447_v1 = vadd.f32 %v446_v61, %v192_v56  ;;  %v964_v3 = vadd.f32 %v963_v63, %v709_v58  ;;  %v208_v56 = vld [vmem:[%s1879_s0 + $0x600] sm:$0xff]  ;;  %v725_v58 = vmul.f32 %v207_v52, %v207_v52 }
 0x162   :  { %v448_v5 = vadd.f32 %v447_v1, %v193_v60  ;;  %v965_v7 = vadd.f32 %v964_v3, %v710_v62  ;;  %v209_v60 = vld [vmem:[%s1879_s0 + $0x608] sm:$0xff]  ;;  %v726_v62 = vmul.f32 %v208_v56, %v208_v56 }
 0x164   :  { %v449_v9 = vadd.f32 %v448_v5, %v194_v0  ;;  %v966_v11 = vadd.f32 %v965_v7, %v711_v2  ;;  %v210_v0 = vld [vmem:[%s1879_s0 + $0x610] sm:$0xff]  ;;  %v727_v2 = vmul.f32 %v209_v60, %v209_v60 }
 0x166   :  { %v450_v13 = vadd.f32 %v449_v9, %v195_v4  ;;  %v967_v15 = vadd.f32 %v966_v11, %v712_v6  ;;  %v211_v4 = vld [vmem:[%s1879_s0 + $0x618] sm:$0xff]  ;;  %v728_v6 = vmul.f32 %v210_v0, %v210_v0 }
 0x168   :  { %v451_v17 = vadd.f32 %v450_v13, %v196_v8  ;;  %v968_v19 = vadd.f32 %v967_v15, %v713_v10  ;;  %v212_v8 = vld [vmem:[%s1879_s0 + $0x620] sm:$0xff]  ;;  %v729_v10 = vmul.f32 %v211_v4, %v211_v4 }
 0x16a   :  { %v452_v21 = vadd.f32 %v451_v17, %v197_v12  ;;  %v969_v23 = vadd.f32 %v968_v19, %v714_v14  ;;  %v213_v12 = vld [vmem:[%s1879_s0 + $0x628] sm:$0xff]  ;;  %v730_v14 = vmul.f32 %v212_v8, %v212_v8 }
 0x16c   :  { %v453_v25 = vadd.f32 %v452_v21, %v198_v16  ;;  %v970_v27 = vadd.f32 %v969_v23, %v715_v18  ;;  %v214_v16 = vld [vmem:[%s1879_s0 + $0x630] sm:$0xff]  ;;  %v731_v18 = vmul.f32 %v213_v12, %v213_v12 }
 0x16e   :  { %v454_v29 = vadd.f32 %v453_v25, %v199_v20  ;;  %v971_v31 = vadd.f32 %v970_v27, %v716_v22  ;;  %v215_v20 = vld [vmem:[%s1879_s0 + $0x638] sm:$0xff]  ;;  %v732_v22 = vmul.f32 %v214_v16, %v214_v16 }
 0x170   :  { %v455_v33 = vadd.f32 %v454_v29, %v200_v24  ;;  %v972_v35 = vadd.f32 %v971_v31, %v717_v26  ;;  %v216_v24 = vld [vmem:[%s1879_s0 + $0x640] sm:$0xff]  ;;  %v733_v26 = vmul.f32 %v215_v20, %v215_v20 }
 0x172   :  { %v456_v37 = vadd.f32 %v455_v33, %v201_v28  ;;  %v973_v39 = vadd.f32 %v972_v35, %v718_v30  ;;  %v217_v28 = vld [vmem:[%s1879_s0 + $0x648] sm:$0xff]  ;;  %v734_v30 = vmul.f32 %v216_v24, %v216_v24 }
 0x174   :  { %v457_v41 = vadd.f32 %v456_v37, %v202_v32  ;;  %v974_v43 = vadd.f32 %v973_v39, %v719_v34  ;;  %v218_v32 = vld [vmem:[%s1879_s0 + $0x650] sm:$0xff]  ;;  %v735_v34 = vmul.f32 %v217_v28, %v217_v28 }
 0x176   :  { %v458_v45 = vadd.f32 %v457_v41, %v203_v36  ;;  %v975_v47 = vadd.f32 %v974_v43, %v720_v38  ;;  %v219_v36 = vld [vmem:[%s1879_s0 + $0x658] sm:$0xff]  ;;  %v736_v38 = vmul.f32 %v218_v32, %v218_v32 }
 0x178   :  { %v459_v49 = vadd.f32 %v458_v45, %v204_v40  ;;  %v976_v51 = vadd.f32 %v975_v47, %v721_v42  ;;  %v220_v40 = vld [vmem:[%s1879_s0 + $0x660] sm:$0xff]  ;;  %v737_v42 = vmul.f32 %v219_v36, %v219_v36 }
 0x17a   :  { %v460_v53 = vadd.f32 %v459_v49, %v205_v44  ;;  %v977_v55 = vadd.f32 %v976_v51, %v722_v46  ;;  %v221_v44 = vld [vmem:[%s1879_s0 + $0x668] sm:$0xff]  ;;  %v738_v46 = vmul.f32 %v220_v40, %v220_v40 }
 0x17c   :  { %v461_v57 = vadd.f32 %v460_v53, %v206_v48  ;;  %v978_v59 = vadd.f32 %v977_v55, %v723_v50  ;;  %v222_v48 = vld [vmem:[%s1879_s0 + $0x670] sm:$0xff]  ;;  %v739_v50 = vmul.f32 %v221_v44, %v221_v44 }
 0x17e   :  { %v462_v61 = vadd.f32 %v461_v57, %v207_v52  ;;  %v979_v63 = vadd.f32 %v978_v59, %v724_v54  ;;  %v223_v52 = vld [vmem:[%s1879_s0 + $0x678] sm:$0xff]  ;;  %v740_v54 = vmul.f32 %v222_v48, %v222_v48 }
 0x180   :  { %v463_v1 = vadd.f32 %v462_v61, %v208_v56  ;;  %v980_v3 = vadd.f32 %v979_v63, %v725_v58  ;;  %v224_v56 = vld [vmem:[%s1879_s0 + $0x680] sm:$0xff]  ;;  %v741_v58 = vmul.f32 %v223_v52, %v223_v52 }
 0x182   :  { %v464_v5 = vadd.f32 %v463_v1, %v209_v60  ;;  %v981_v7 = vadd.f32 %v980_v3, %v726_v62  ;;  %v225_v60 = vld [vmem:[%s1879_s0 + $0x688] sm:$0xff]  ;;  %v742_v62 = vmul.f32 %v224_v56, %v224_v56 }
 0x184   :  { %v465_v9 = vadd.f32 %v464_v5, %v210_v0  ;;  %v982_v11 = vadd.f32 %v981_v7, %v727_v2  ;;  %v226_v0 = vld [vmem:[%s1879_s0 + $0x690] sm:$0xff]  ;;  %v743_v2 = vmul.f32 %v225_v60, %v225_v60 }
 0x186   :  { %v466_v13 = vadd.f32 %v465_v9, %v211_v4  ;;  %v983_v15 = vadd.f32 %v982_v11, %v728_v6  ;;  %v227_v4 = vld [vmem:[%s1879_s0 + $0x698] sm:$0xff]  ;;  %v744_v6 = vmul.f32 %v226_v0, %v226_v0 }
 0x188   :  { %v467_v17 = vadd.f32 %v466_v13, %v212_v8  ;;  %v984_v19 = vadd.f32 %v983_v15, %v729_v10  ;;  %v228_v8 = vld [vmem:[%s1879_s0 + $0x6a0] sm:$0xff]  ;;  %v745_v10 = vmul.f32 %v227_v4, %v227_v4 }
 0x18a   :  { %v468_v21 = vadd.f32 %v467_v17, %v213_v12  ;;  %v985_v23 = vadd.f32 %v984_v19, %v730_v14  ;;  %v229_v12 = vld [vmem:[%s1879_s0 + $0x6a8] sm:$0xff]  ;;  %v746_v14 = vmul.f32 %v228_v8, %v228_v8 }
 0x18c   :  { %v469_v25 = vadd.f32 %v468_v21, %v214_v16  ;;  %v986_v27 = vadd.f32 %v985_v23, %v731_v18  ;;  %v230_v16 = vld [vmem:[%s1879_s0 + $0x6b0] sm:$0xff]  ;;  %v747_v18 = vmul.f32 %v229_v12, %v229_v12 }
 0x18e   :  { %v470_v29 = vadd.f32 %v469_v25, %v215_v20  ;;  %v987_v31 = vadd.f32 %v986_v27, %v732_v22  ;;  %v231_v20 = vld [vmem:[%s1879_s0 + $0x6b8] sm:$0xff]  ;;  %v748_v22 = vmul.f32 %v230_v16, %v230_v16 }
 0x190   :  { %v471_v33 = vadd.f32 %v470_v29, %v216_v24  ;;  %v988_v35 = vadd.f32 %v987_v31, %v733_v26  ;;  %v232_v24 = vld [vmem:[%s1879_s0 + $0x6c0] sm:$0xff]  ;;  %v749_v26 = vmul.f32 %v231_v20, %v231_v20 }
 0x192   :  { %v472_v37 = vadd.f32 %v471_v33, %v217_v28  ;;  %v989_v39 = vadd.f32 %v988_v35, %v734_v30  ;;  %v233_v28 = vld [vmem:[%s1879_s0 + $0x6c8] sm:$0xff]  ;;  %v750_v30 = vmul.f32 %v232_v24, %v232_v24 }
 0x194   :  { %v473_v41 = vadd.f32 %v472_v37, %v218_v32  ;;  %v990_v43 = vadd.f32 %v989_v39, %v735_v34  ;;  %v234_v32 = vld [vmem:[%s1879_s0 + $0x6d0] sm:$0xff]  ;;  %v751_v34 = vmul.f32 %v233_v28, %v233_v28 }
 0x196   :  { %v474_v45 = vadd.f32 %v473_v41, %v219_v36  ;;  %v991_v47 = vadd.f32 %v990_v43, %v736_v38  ;;  %v235_v36 = vld [vmem:[%s1879_s0 + $0x6d8] sm:$0xff]  ;;  %v752_v38 = vmul.f32 %v234_v32, %v234_v32 }
 0x198   :  { %v475_v49 = vadd.f32 %v474_v45, %v220_v40  ;;  %v992_v51 = vadd.f32 %v991_v47, %v737_v42  ;;  %v236_v40 = vld [vmem:[%s1879_s0 + $0x6e0] sm:$0xff]  ;;  %v753_v42 = vmul.f32 %v235_v36, %v235_v36 }
 0x19a   :  { %v476_v53 = vadd.f32 %v475_v49, %v221_v44  ;;  %v993_v55 = vadd.f32 %v992_v51, %v738_v46  ;;  %v237_v44 = vld [vmem:[%s1879_s0 + $0x6e8] sm:$0xff]  ;;  %v754_v46 = vmul.f32 %v236_v40, %v236_v40 }
 0x19c   :  { %v477_v57 = vadd.f32 %v476_v53, %v222_v48  ;;  %v994_v59 = vadd.f32 %v993_v55, %v739_v50  ;;  %v238_v48 = vld [vmem:[%s1879_s0 + $0x6f0] sm:$0xff]  ;;  %v755_v50 = vmul.f32 %v237_v44, %v237_v44 }
 0x19e   :  { %v478_v61 = vadd.f32 %v477_v57, %v223_v52  ;;  %v995_v63 = vadd.f32 %v994_v59, %v740_v54  ;;  %v239_v52 = vld [vmem:[%s1879_s0 + $0x6f8] sm:$0xff]  ;;  %v756_v54 = vmul.f32 %v238_v48, %v238_v48 }
 0x1a0   :  { %v479_v1 = vadd.f32 %v478_v61, %v224_v56  ;;  %v996_v3 = vadd.f32 %v995_v63, %v741_v58  ;;  %v240_v56 = vld [vmem:[%s1879_s0 + $0x700] sm:$0xff]  ;;  %v757_v58 = vmul.f32 %v239_v52, %v239_v52 }
 0x1a2   :  { %v480_v5 = vadd.f32 %v479_v1, %v225_v60  ;;  %v997_v7 = vadd.f32 %v996_v3, %v742_v62  ;;  %v241_v60 = vld [vmem:[%s1879_s0 + $0x708] sm:$0xff]  ;;  %v758_v62 = vmul.f32 %v240_v56, %v240_v56 }
 0x1a4   :  { %v481_v9 = vadd.f32 %v480_v5, %v226_v0  ;;  %v998_v11 = vadd.f32 %v997_v7, %v743_v2  ;;  %v242_v0 = vld [vmem:[%s1879_s0 + $0x710] sm:$0xff]  ;;  %v759_v2 = vmul.f32 %v241_v60, %v241_v60 }
 0x1a6   :  { %v482_v13 = vadd.f32 %v481_v9, %v227_v4  ;;  %v999_v15 = vadd.f32 %v998_v11, %v744_v6  ;;  %v243_v4 = vld [vmem:[%s1879_s0 + $0x718] sm:$0xff]  ;;  %v760_v6 = vmul.f32 %v242_v0, %v242_v0 }
 0x1a8   :  { %v483_v17 = vadd.f32 %v482_v13, %v228_v8  ;;  %v1000_v19 = vadd.f32 %v999_v15, %v745_v10  ;;  %v244_v8 = vld [vmem:[%s1879_s0 + $0x720] sm:$0xff]  ;;  %v761_v10 = vmul.f32 %v243_v4, %v243_v4 }
 0x1aa   :  { %v484_v21 = vadd.f32 %v483_v17, %v229_v12  ;;  %v1001_v23 = vadd.f32 %v1000_v19, %v746_v14  ;;  %v245_v12 = vld [vmem:[%s1879_s0 + $0x728] sm:$0xff]  ;;  %v762_v14 = vmul.f32 %v244_v8, %v244_v8 }
 0x1ac   :  { %v485_v25 = vadd.f32 %v484_v21, %v230_v16  ;;  %v1002_v27 = vadd.f32 %v1001_v23, %v747_v18  ;;  %v246_v16 = vld [vmem:[%s1879_s0 + $0x730] sm:$0xff]  ;;  %v763_v18 = vmul.f32 %v245_v12, %v245_v12 }
 0x1ae   :  { %v486_v29 = vadd.f32 %v485_v25, %v231_v20  ;;  %v1003_v31 = vadd.f32 %v1002_v27, %v748_v22  ;;  %v247_v20 = vld [vmem:[%s1879_s0 + $0x738] sm:$0xff]  ;;  %v764_v22 = vmul.f32 %v246_v16, %v246_v16 }
 0x1b0   :  { %v487_v33 = vadd.f32 %v486_v29, %v232_v24  ;;  %v1004_v35 = vadd.f32 %v1003_v31, %v749_v26  ;;  %v248_v24 = vld [vmem:[%s1879_s0 + $0x740] sm:$0xff]  ;;  %v765_v26 = vmul.f32 %v247_v20, %v247_v20 }
 0x1b2   :  { %v488_v37 = vadd.f32 %v487_v33, %v233_v28  ;;  %v1005_v39 = vadd.f32 %v1004_v35, %v750_v30  ;;  %v249_v28 = vld [vmem:[%s1879_s0 + $0x748] sm:$0xff]  ;;  %v766_v30 = vmul.f32 %v248_v24, %v248_v24 }
 0x1b4   :  { %v489_v41 = vadd.f32 %v488_v37, %v234_v32  ;;  %v1006_v43 = vadd.f32 %v1005_v39, %v751_v34  ;;  %v250_v32 = vld [vmem:[%s1879_s0 + $0x750] sm:$0xff]  ;;  %v767_v34 = vmul.f32 %v249_v28, %v249_v28 }
 0x1b6   :  { %v490_v45 = vadd.f32 %v489_v41, %v235_v36  ;;  %v1007_v47 = vadd.f32 %v1006_v43, %v752_v38  ;;  %v251_v36 = vld [vmem:[%s1879_s0 + $0x758] sm:$0xff]  ;;  %v768_v38 = vmul.f32 %v250_v32, %v250_v32 }
 0x1b8   :  { %v491_v49 = vadd.f32 %v490_v45, %v236_v40  ;;  %v1008_v51 = vadd.f32 %v1007_v47, %v753_v42  ;;  %v252_v40 = vld [vmem:[%s1879_s0 + $0x760] sm:$0xff]  ;;  %v769_v42 = vmul.f32 %v251_v36, %v251_v36 }
 0x1ba   :  { %v492_v53 = vadd.f32 %v491_v49, %v237_v44  ;;  %v1009_v55 = vadd.f32 %v1008_v51, %v754_v46  ;;  %v253_v44 = vld [vmem:[%s1879_s0 + $0x768] sm:$0xff]  ;;  %v770_v46 = vmul.f32 %v252_v40, %v252_v40 }
 0x1bc   :  { %v493_v57 = vadd.f32 %v492_v53, %v238_v48  ;;  %v1010_v59 = vadd.f32 %v1009_v55, %v755_v50  ;;  %v254_v48 = vld [vmem:[%s1879_s0 + $0x770] sm:$0xff]  ;;  %v771_v50 = vmul.f32 %v253_v44, %v253_v44 }
 0x1be   :  { %v494_v61 = vadd.f32 %v493_v57, %v239_v52  ;;  %v1011_v63 = vadd.f32 %v1010_v59, %v756_v54  ;;  %v255_v52 = vld [vmem:[%s1879_s0 + $0x778] sm:$0xff]  ;;  %v772_v54 = vmul.f32 %v254_v48, %v254_v48 }
 0x1c0   :  { %v495_v1 = vadd.f32 %v494_v61, %v240_v56  ;;  %v1012_v3 = vadd.f32 %v1011_v63, %v757_v58  ;;  %v256_v56 = vld [vmem:[%s1879_s0 + $0x780] sm:$0xff]  ;;  %v773_v58 = vmul.f32 %v255_v52, %v255_v52 }
 0x1c2   :  { %v496_v5 = vadd.f32 %v495_v1, %v241_v60  ;;  %v1013_v7 = vadd.f32 %v1012_v3, %v758_v62  ;;  %v257_v60 = vld [vmem:[%s1879_s0 + $0x788] sm:$0xff]  ;;  %v774_v62 = vmul.f32 %v256_v56, %v256_v56 }
 0x1c4   :  { %v497_v9 = vadd.f32 %v496_v5, %v242_v0  ;;  %v1014_v11 = vadd.f32 %v1013_v7, %v759_v2  ;;  %v258_v0 = vld [vmem:[%s1879_s0 + $0x790] sm:$0xff]  ;;  %v775_v2 = vmul.f32 %v257_v60, %v257_v60 }
 0x1c6   :  { %v498_v13 = vadd.f32 %v497_v9, %v243_v4  ;;  %v1015_v15 = vadd.f32 %v1014_v11, %v760_v6  ;;  %v259_v4 = vld [vmem:[%s1879_s0 + $0x798] sm:$0xff]  ;;  %v776_v6 = vmul.f32 %v258_v0, %v258_v0 }
 0x1c8   :  { %v499_v17 = vadd.f32 %v498_v13, %v244_v8  ;;  %v1016_v19 = vadd.f32 %v1015_v15, %v761_v10  ;;  %v260_v8 = vld [vmem:[%s1879_s0 + $0x7a0] sm:$0xff]  ;;  %v777_v10 = vmul.f32 %v259_v4, %v259_v4 }
 0x1ca   :  { %v500_v21 = vadd.f32 %v499_v17, %v245_v12  ;;  %v1017_v23 = vadd.f32 %v1016_v19, %v762_v14  ;;  %v261_v12 = vld [vmem:[%s1879_s0 + $0x7a8] sm:$0xff]  ;;  %v778_v14 = vmul.f32 %v260_v8, %v260_v8 }
 0x1cc   :  { %v501_v25 = vadd.f32 %v500_v21, %v246_v16  ;;  %v1018_v27 = vadd.f32 %v1017_v23, %v763_v18  ;;  %v262_v16 = vld [vmem:[%s1879_s0 + $0x7b0] sm:$0xff]  ;;  %v779_v18 = vmul.f32 %v261_v12, %v261_v12 }
 0x1ce   :  { %v502_v29 = vadd.f32 %v501_v25, %v247_v20  ;;  %v1019_v31 = vadd.f32 %v1018_v27, %v764_v22  ;;  %v263_v20 = vld [vmem:[%s1879_s0 + $0x7b8] sm:$0xff]  ;;  %v780_v22 = vmul.f32 %v262_v16, %v262_v16 }
 0x1d0   :  { %v503_v33 = vadd.f32 %v502_v29, %v248_v24  ;;  %v1020_v35 = vadd.f32 %v1019_v31, %v765_v26  ;;  %v264_v24 = vld [vmem:[%s1879_s0 + $0x7c0] sm:$0xff]  ;;  %v781_v26 = vmul.f32 %v263_v20, %v263_v20 }
 0x1d2   :  { %v504_v37 = vadd.f32 %v503_v33, %v249_v28  ;;  %v1021_v39 = vadd.f32 %v1020_v35, %v766_v30  ;;  %v265_v28 = vld [vmem:[%s1879_s0 + $0x7c8] sm:$0xff]  ;;  %v782_v30 = vmul.f32 %v264_v24, %v264_v24 }
 0x1d4   :  { %v505_v41 = vadd.f32 %v504_v37, %v250_v32  ;;  %v1022_v43 = vadd.f32 %v1021_v39, %v767_v34  ;;  %v266_v32 = vld [vmem:[%s1879_s0 + $0x7d0] sm:$0xff]  ;;  %v783_v34 = vmul.f32 %v265_v28, %v265_v28 }
 0x1d6   :  { %v506_v45 = vadd.f32 %v505_v41, %v251_v36  ;;  %v1023_v47 = vadd.f32 %v1022_v43, %v768_v38  ;;  %v267_v36 = vld [vmem:[%s1879_s0 + $0x7d8] sm:$0xff]  ;;  %v784_v38 = vmul.f32 %v266_v32, %v266_v32 }
 0x1d8   :  { %v507_v49 = vadd.f32 %v506_v45, %v252_v40  ;;  %v1024_v51 = vadd.f32 %v1023_v47, %v769_v42  ;;  %v268_v40 = vld [vmem:[%s1879_s0 + $0x7e0] sm:$0xff]  ;;  %v785_v42 = vmul.f32 %v267_v36, %v267_v36 }
 0x1da   :  { %v508_v53 = vadd.f32 %v507_v49, %v253_v44  ;;  %v1025_v55 = vadd.f32 %v1024_v51, %v770_v46  ;;  %v269_v44 = vld [vmem:[%s1879_s0 + $0x7e8] sm:$0xff]  ;;  %v786_v46 = vmul.f32 %v268_v40, %v268_v40 }
 0x1dc   :  { %v509_v57 = vadd.f32 %v508_v53, %v254_v48  ;;  %v1026_v59 = vadd.f32 %v1025_v55, %v771_v50  ;;  %v270_v48 = vld [vmem:[%s1879_s0 + $0x7f0] sm:$0xff]  ;;  %v787_v50 = vmul.f32 %v269_v44, %v269_v44 }
 0x1de   :  { %v510_v61 = vadd.f32 %v509_v57, %v255_v52  ;;  %v1027_v63 = vadd.f32 %v1026_v59, %v772_v54  ;;  %v271_v52 = vld [vmem:[%s1879_s0 + $0x7f8] sm:$0xff]  ;;  %v788_v54 = vmul.f32 %v270_v48, %v270_v48 }
 0x1df   :  { %v789_v57 = vmul.f32 %v271_v52, %v271_v52 }
 0x1e0   :  { %v511_v1 = vadd.f32 %v510_v61, %v256_v56  ;;  %v1028_v3 = vadd.f32 %v1027_v63, %v773_v58 }
 0x1e2   :  { %v512_v5 = vadd.f32 %v511_v1, %v257_v60  ;;  %v1029_v7 = vadd.f32 %v1028_v3, %v774_v62 }
 0x1e4   :  { %v513_v9 = vadd.f32 %v512_v5, %v258_v0  ;;  %v1030_v11 = vadd.f32 %v1029_v7, %v775_v2 }
 0x1e6   :  { %v514_v13 = vadd.f32 %v513_v9, %v259_v4  ;;  %v1031_v15 = vadd.f32 %v1030_v11, %v776_v6 }
 0x1e8   :  { %v515_v17 = vadd.f32 %v514_v13, %v260_v8  ;;  %v1032_v19 = vadd.f32 %v1031_v15, %v777_v10 }
 0x1ea   :  { %v516_v21 = vadd.f32 %v515_v17, %v261_v12  ;;  %v1033_v23 = vadd.f32 %v1032_v19, %v778_v14  ;;  %v1060_v19 = vld [vmem:[%s1881_s2] sm:$0x1] }
 0x1ec   :  { %v517_v25 = vadd.f32 %v516_v21, %v262_v16  ;;  %v1034_v27 = vadd.f32 %v1033_v23, %v779_v18  ;;  %v1055_v16 = vld [vmem:[%s1880_s1] sm:$0x1] }
 0x1ee   :  { %v518_v29 = vadd.f32 %v517_v25, %v263_v20  ;;  %v1035_v31 = vadd.f32 %v1034_v27, %v780_v22 }
 0x1f0   :  { %v519_v33 = vadd.f32 %v518_v29, %v264_v24  ;;  %v1036_v35 = vadd.f32 %v1035_v31, %v781_v26 }
 0x1f2   :  { %v520_v37 = vadd.f32 %v519_v33, %v265_v28  ;;  %v1037_v39 = vadd.f32 %v1036_v35, %v782_v30 }
 0x1f4   :  { %v521_v41 = vadd.f32 %v520_v37, %v266_v32  ;;  %v1038_v43 = vadd.f32 %v1037_v39, %v783_v34 }
 0x1f6   :  { %v522_v45 = vadd.f32 %v521_v41, %v267_v36  ;;  %v1039_v47 = vadd.f32 %v1038_v43, %v784_v38 }
 0x1f8   :  { %v523_v49 = vadd.f32 %v522_v45, %v268_v40  ;;  %v1040_v51 = vadd.f32 %v1039_v47, %v785_v42 }
 0x1fa   :  { %v524_v53 = vadd.f32 %v523_v49, %v269_v44  ;;  %v1041_v55 = vadd.f32 %v1040_v51, %v786_v46 }
 0x1fc   :  { %v525_v56 = vadd.f32 %v524_v53, %v270_v48  ;;  %v1042_v58 = vadd.f32 %v1041_v55, %v787_v50 }
 0x1fe   :  { %v526_v59 = vadd.f32 %v525_v56, %v271_v52  ;;  %v1043_v60 = vadd.f32 %v1042_v58, %v788_v54 }
 0x200   :  { %v527_v61 = vrot.slane %v526_v59, 4  ;;  %v1044_v62 = vadd.f32 %v1043_v60, %v789_v57 }
 0x202   :  { %v528_v63 = vadd.f32 %v527_v61, %v526_v59  ;;  %v1045_v0 = vrot.slane %v1044_v62, 4 }
 0x204   :  { %v529_v1 = vrot.slane %v528_v63, 2  ;;  %v1046_v2 = vadd.f32 %v1045_v0, %v1044_v62 }
 0x206   :  { %v530_v3 = vadd.f32 %v529_v1, %v528_v63  ;;  %v1047_v4 = vrot.slane %v1046_v2, 2 }
 0x208   :  { %v531_v5 = vrot.slane %v530_v3, 1  ;;  %v1048_v6 = vadd.f32 %v1047_v4, %v1046_v2 }
 0x20a   :  { %v532_v7 = vadd.f32 %v531_v5, %v530_v3  ;;  %v1049_v8 = vrot.slane %v1048_v6, 1 }
 0x20c   :  { %v533_v9 = vmul.f32 0.00048828125, %v532_v7  ;;  %v1050_v10 = vadd.f32 %v1049_v8, %v1048_v6 }
 0x20e   :  { %v1052_v11 = vmul.f32 %v533_v9, %v533_v9  ;;  %v1051_v12 = vmul.f32 0.00048828125, %v1050_v10 }
 0x210   :  { %v1053_v13 = vsub.f32 %v1051_v12, %v1052_v11 }
 0x212   :  { %v1054_v14 = vmax.f32 %v1053_v13, 0.0 }
 0x214   :  { %v1056_v15 = vadd.f32 1e-05, %v1054_v14 }
 0x216   :  { %1072 = vrsqrt.f32 %v1056_v15 }
 0x220   :  { %v1073_v17 = vpop.eup %1072 }
 0x221   :  { %v1058_v18 = vmul.f32 %v1073_v17, %v1055_v16 }
 0x223   :  { %1059 = vst [vmem:[%s1882_s3] sm:$0x1] %v1058_v18  ;;  %v1061_v20 = vmul.f32 %v1058_v18, %v533_v9 }
 0x225   :  { %v1062_v21 = vsub.f32 %v1060_v19, %v1061_v20 }
 0x227   :  { %1063 = vst [vmem:[%s1883_s4] sm:$0x1] %v1062_v21 }

</bundles_post_ra>
